<compile_context>
chip_gen: v6e
topology: v6e:2x2x1
jax: 0.10.0
libtpu: 0.0.40
codegen_flags: <defaults>
</compile_context>

<pallas_src>
import math

import numpy as np
import jax
import jax.numpy as jnp
from jax.experimental import pallas as pl
from jax.experimental.pallas import tpu as pltpu

# bf16 for the encoder matmul operands (2x MXU throughput on v5e/v6e/v7x, half the VMEM
# bytes of the largest scratch). Softmax / reassembly math stays f32 (v5e has no bf16 VPU).
ENC_DTYPE = jnp.bfloat16


def _pick_band_rows(Wc, total_rows, tp_target):
    """Rows per band such that band_rows * Wc (flat lane axis) is a multiple of 128."""
    align = 128 // math.gcd(Wc, 128)
    trh = -(-max(1, tp_target // Wc) // align) * align
    cap = -(-total_rows // align) * align          # never pad past all rows
    return max(align, min(trh, cap))


def _vmem_limit_bytes():
    """Scoped VMEM budget tied to the actual part (review: v7x has only 64 MiB)."""
    try:
        cap = getattr(pltpu.get_tpu_info(), "vmem_capacity_bytes", 64 * 1024 * 1024)
    except Exception:
        cap = 64 * 1024 * 1024
    return int(min(3 * cap // 4, 96 * 1024 * 1024))


# ----------------------------- fused CARAFE forward -----------------------------

def carafe_forward(x_nchw, params, Kencoder=3, delta=2, Kup=5, tp_target=640):
    N, Cin, H, W = x_nchw.shape
    Cm = params["w_down"].shape[0]
    outC = params["w_out"].shape[0]
    d2 = delta * delta
    K2 = Kup * Kup
    Ne = d2 * K2
    pad = Kup // 2                       # container spatial pad (covers encoder pad too)
    kc = Kencoder // 2
    # Flat-pixel addressing wraps columns into neighbouring rows; the wrapped reads only
    # ever feed discarded pad pixels as long as the reassembly pad covers the encoder pad.
    assert pad >= kc, "CARAFE kernel requires Kup//2 >= Kencoder//2"

    Hp, Wc = H + 2 * pad, W + 2 * pad
    R0 = N * Hp                          # real padded rows (all images stacked)
    TRH = _pick_band_rows(Wc, R0, tp_target)
    TP = TRH * Wc                        # flat pixels per band (lane axis, % 128 == 0)
    nb = -(-R0 // TRH)
    R1 = nb * TRH
    lead = pad * Wc + pad                # band's first pixel offset inside its window
    WIN = TP + 2 * lead                  # band + pad-row halo (+ column-wrap slack)

    # taps per group so softmax max/exp/sum run on full 8-sublane vregs
    TPG = (8 // d2) if (d2 <= 8 and 8 % d2 == 0) else 1
    NG = -(-K2 // TPG)
    K2p = NG * TPG
    ROWS = TPG * d2
    Nep = K2p * d2                       # logit rows incl. phantom taps (bias -1e30)
    K9 = Kencoder * Kencoder * Cm

    f32 = jnp.float32

    # ---------- glue: zero-padded (Cin+1)-channel container, overlapping band windows ----
    # Channel Cin is a validity mask (1 at real pixels) used to zero the down-conv bias at
    # pad pixels, matching PyTorch's zero padding of the feature map.
    # TODO(synk): the mask channel / window duplication could be generated in-kernel
    # (iota + manual DMA) to shave the remaining host-side copies (review #12).
    x32 = x_nchw.astype(f32)
    xpad = jnp.pad(x32, ((0, 0), (0, 0), (pad, pad), (pad, pad)))
    vmask = jnp.pad(jnp.ones((N, 1, H, W), f32),
                    ((0, 0), (0, 0), (pad, pad), (pad, pad)))
    cont = jnp.concatenate([xpad, vmask], axis=1)                      # (N, Cin+1, Hp, Wc)
    cont = jnp.transpose(cont, (1, 0, 2, 3)).reshape(Cin + 1, R0, Wc)
    cont = jnp.pad(cont, ((0, 0), (pad, R1 - R0 + pad), (0, 0)))       # halo / fill rows
    flat = cont.reshape(Cin + 1, (R1 + 2 * pad) * Wc)
    flat = jnp.pad(flat, ((0, 0), (pad, pad)))                         # column-wrap slack
    idx = jnp.arange(nb)[:, None] * TP + jnp.arange(WIN)[None, :]
    wins = jnp.transpose(flat[:, idx], (1, 0, 2))                      # (nb, Cin+1, WIN)

    # ---------- weights in kernel-friendly layouts ----------
    wdo = jnp.concatenate([params["w_down"].reshape(Cm, Cin),
                           params["w_out"].reshape(outC, Cin)], axis=0).astype(f32)
    bd = params["b_down"].reshape(Cm, 1).astype(f32)
    bo = params["b_out"].reshape(outC, 1).astype(f32)
    # encoder as ONE im2col matmul: rows = logit channel, cols = (tap t)*Cm + feat channel
    we = jnp.transpose(params["w_enc"], (0, 2, 3, 1)).reshape(Ne, K9).astype(f32)
    we = jnp.pad(we, ((0, Nep - Ne), (0, 0))).astype(ENC_DTYPE)        # phantom rows = 0
    be = jnp.pad(params["b_enc"].reshape(Ne, 1).astype(f32),
                 ((0, Nep - Ne), (0, 0)), constant_values=-1e30)       # phantom bias -> exp 0

    def kernel(x_ref, wdo_ref, bd_ref, we_ref, be_ref, bo_ref, o_ref,
               feat_ref, xo_ref, stk_ref, enc_ref):
        xw = x_ref[0]                                                  # (Cin+1, WIN)

        # ---- 1x1 down conv + folded 1x1 out conv: ONE stacked MXU matmul, split rows ----
        fx = jnp.dot(wdo_ref[...], xw[:Cin, :], preferred_element_type=jnp.float32)
        mask = xw[Cin:Cin + 1, :]                                      # kills bias at pads
        feat_ref[...] = ((fx[:Cm, :] + bd_ref[...]) * mask).astype(ENC_DTYPE)
        xo_ref[...] = fx[Cm:Cm + outC, :]

        # ---- 3x3 encoder conv: pack 9 shifted slices once, ONE bf16 MXU matmul (K=9*Cm) --
        for ky in range(Kencoder):
            for kx in range(Kencoder):
                t = ky * Kencoder + kx
                s = lead + (ky - kc) * Wc + (kx - kc)
                stk_ref[t * Cm:(t + 1) * Cm, :] = feat_ref[:, s:s + TP]
        enc_ref[...] = jnp.dot(we_ref[...], stk_ref[...],
                               preferred_element_type=jnp.float32) + be_ref[...]

        # ---- softmax max over the Kup^2 taps, processed ROWS (=8) rows at a time --------
        m8 = enc_ref[0:ROWS, :]
        for g in range(1, NG):
            m8 = jnp.maximum(m8, enc_ref[g * ROWS:(g + 1) * ROWS, :])
        m = m8[0:d2, :]
        for t in range(1, TPG):
            m = jnp.maximum(m, m8[t * d2:(t + 1) * d2, :])
        m_rep = jnp.concatenate([m] * TPG, axis=0) if TPG > 1 else m   # (ROWS, TP)

        # ---- fused exp + denominator + 25-tap reassembly, accumulated in registers ------
        s8 = None                                                      # (ROWS, TP)
        acc = None                                                     # (d2, outC, TP)
        for g in range(NG):
            e = jnp.exp(enc_ref[g * ROWS:(g + 1) * ROWS, :] - m_rep)
            s8 = e if s8 is None else s8 + e
            for t in range(TPG):
                k = g * TPG + t
                if k >= K2:                                            # phantom tap
                    continue
                u, v = k // Kup, k % Kup
                off = lead + (u - pad) * Wc + (v - pad)
                xo_k = xo_ref[:, off:off + TP]                         # (outC, TP)
                ek = e[t * d2:(t + 1) * d2, :]                         # (d2, TP)
                term = ek[:, None, :] * xo_k[None, :, :]
                acc = term if acc is None else acc + term
        ssum = s8[0:d2, :]
        for t in range(1, TPG):
            ssum = ssum + s8[t * d2:(t + 1) * d2, :]
        inv = pl.reciprocal(ssum, approx=True)                         # EUP vrcp
        o_ref[...] = acc * inv[:, None, :] + bo_ref[...]               # single store

    y_flat = pl.pallas_call(
        kernel,
        out_shape=jax.ShapeDtypeStruct((d2, outC, nb * TP), jnp.float32),
        grid=(nb,),
        in_specs=[
            pl.BlockSpec((1, Cin + 1, WIN), lambda b: (b, 0, 0)),      # band + pad-row halo
            pl.BlockSpec((Cm + outC, Cin), lambda b: (0, 0)),
            pl.BlockSpec((Cm, 1), lambda b: (0, 0)),
            pl.BlockSpec((Nep, K9), lambda b: (0, 0)),
            pl.BlockSpec((Nep, 1), lambda b: (0, 0)),
            pl.BlockSpec((outC, 1), lambda b: (0, 0)),
        ],
        out_specs=pl.BlockSpec((d2, outC, TP), lambda b: (0, 0, b)),
        scratch_shapes=[
            pltpu.VMEM((Cm, WIN), ENC_DTYPE),      # down-conv features over band + halo
            pltpu.VMEM((outC, WIN), jnp.float32),  # out-conv'd input over band + halo
            pltpu.VMEM((K9, TP), ENC_DTYPE),       # 9-tap im2col stack
            pltpu.VMEM((Nep, TP), jnp.float32),    # encoder logits (8-row padded)
        ],
        compiler_params=pltpu.CompilerParams(
            dimension_semantics=("parallel",),
            vmem_limit_bytes=_vmem_limit_bytes(),
        ),
    )(wins, wdo, bd, we, be, bo)

    # ---------- glue: drop pads, pixel-shuffle by delta, back to NCHW ----------
    y = y_flat.reshape(d2, outC, R1, Wc)[:, :, :R0, :]
    y = y.reshape(d2, outC, N, Hp, Wc)[:, :, :, pad:pad + H, pad:pad + W]
    y = y.reshape(delta, delta, outC, N, H, W)
    y = jnp.transpose(y, (3, 2, 4, 0, 5, 1)).reshape(N, outC, H * delta, W * delta)
    return y


# ----------------------------- Pure-JAX reference -----------------------------

def carafe_reference(x_nchw, params, Kencoder=3, delta=2, Kup=5):
    N, C, H, W = x_nchw.shape
    x = jnp.transpose(x_nchw, (0, 2, 3, 1))
    P = N * H * W
    Cm = params["w_down"].shape[0]
    feat = (x.reshape(P, C) @ params["w_down"].reshape(Cm, C).T
            + params["b_down"]).reshape(N, H, W, Cm)
    pe = Kencoder // 2
    fp = jnp.pad(feat, ((0, 0), (pe, pe), (pe, pe), (0, 0)))
    cols = jnp.stack(
        [fp[:, ky:ky + H, kx:kx + W, :] for ky in range(Kencoder) for kx in range(Kencoder)],
        axis=3).reshape(P, Kencoder * Kencoder * Cm)
    We = jnp.transpose(params["w_enc"], (2, 3, 1, 0)).reshape(Kencoder * Kencoder * Cm, -1)
    enc = cols @ We + params["b_enc"]
    logits = jnp.transpose(enc.reshape(P, Kup * Kup, delta * delta), (0, 2, 1))
    wgt = jax.nn.softmax(logits, axis=-1)
    pu = Kup // 2
    xp = jnp.pad(x, ((0, 0), (pu, pu), (pu, pu), (0, 0)))
    pats = jnp.stack(
        [xp[:, u:u + H, v:v + W, :] for u in range(Kup) for v in range(Kup)],
        axis=-1).reshape(P, C, Kup * Kup)
    out = jnp.einsum('pck,pdk->pdc', pats, wgt)
    out = out.reshape(N, H, W, delta, delta, C)
    up = jnp.transpose(out, (0, 1, 3, 2, 4, 5)).reshape(N, H * delta, W * delta, C)
    outC = params["w_out"].shape[0]
    y = up.reshape(-1, C) @ params["w_out"].reshape(outC, C).T + params["b_out"]
    return jnp.transpose(y.reshape(N, H * delta, W * delta, outC), (0, 3, 1, 2))


# ----------------------------- Main -----------------------------

if __name__ == "__main__":
    N, inC, outC, H, W = 2, 4, 4, 16, 16
    Kencoder, delta, Kup, Cm = 3, 2, 5, 64

    key = jax.random.PRNGKey(0)
    keys = jax.random.split(key, 7)
    params = {
        "w_down": 0.10 * jax.random.normal(keys[0], (Cm, inC, 1, 1), jnp.float32),
        "b_down": 0.10 * jax.random.normal(keys[1], (Cm,), jnp.float32),
        "w_enc":  0.05 * jax.random.normal(keys[2], (delta ** 2 * Kup ** 2, Cm, Kencoder, Kencoder), jnp.float32),
        "b_enc":  0.05 * jax.random.normal(keys[3], (delta ** 2 * Kup ** 2,), jnp.float32),
        "w_out":  0.10 * jax.random.normal(keys[4], (outC, inC, 1, 1), jnp.float32),
        "b_out":  0.10 * jax.random.normal(keys[5], (outC,), jnp.float32),
    }
    x = jax.random.normal(keys[6], (N, inC, H, W), jnp.float32)

    fwd = jax.jit(lambda inp: carafe_forward(inp, params, Kencoder=Kencoder,
                                             delta=delta, Kup=Kup))
    y = jax.block_until_ready(fwd(x))
    assert y.shape == (N, outC, H * delta, W * delta), y.shape

    y_ref = carafe_reference(x, params, Kencoder=Kencoder, delta=delta, Kup=Kup)
    # tolerance accounts for bf16 encoder operands + approx reciprocal in the softmax
    np.testing.assert_allclose(np.asarray(y), np.asarray(y_ref), rtol=1e-2, atol=1e-2)

    print("KERNEL_OK")
</pallas_src>

<mosaic_0001>
module attributes {stable_mosaic.version = 11 : i64} {
  func.func @kernel(%arg0: i32, %arg1: memref<1x5x724xf32, #tpu.memory_space<vmem>>, %arg2: memref<68x4xf32, #tpu.memory_space<vmem>>, %arg3: memref<64x1xf32, #tpu.memory_space<vmem>>, %arg4: memref<104x576xbf16, #tpu.memory_space<vmem>>, %arg5: memref<104x1xf32, #tpu.memory_space<vmem>>, %arg6: memref<4x1xf32, #tpu.memory_space<vmem>>, %arg7: memref<4x4x640xf32, #tpu.memory_space<vmem>>, %arg8: memref<64x724xbf16, #tpu.memory_space<vmem>>, %arg9: memref<4x724xf32, #tpu.memory_space<vmem>>, %arg10: memref<576x640xbf16, #tpu.memory_space<vmem>>, %arg11: memref<104x640xf32, #tpu.memory_space<vmem>>) attributes {dimension_semantics = [#tpu.dimension_semantics<parallel>], iteration_bounds = array<i64: 2>, scalar_prefetch = 0 : i64, scratch_operands = 4 : i64, tpu.core_type = #tpu.core_type<tc>, window_params = [{transform_indices = @transform_0, window_bounds = array<i64: 1, 5, 724>}, {pipeline_mode = #tpu.pipeline_mode<synchronous>, transform_indices = @transform_1, window_bounds = array<i64: 68, 4>}, {pipeline_mode = #tpu.pipeline_mode<synchronous>, transform_indices = @transform_2, window_bounds = array<i64: 64, 1>}, {pipeline_mode = #tpu.pipeline_mode<synchronous>, transform_indices = @transform_3, window_bounds = array<i64: 104, 576>}, {pipeline_mode = #tpu.pipeline_mode<synchronous>, transform_indices = @transform_4, window_bounds = array<i64: 104, 1>}, {pipeline_mode = #tpu.pipeline_mode<synchronous>, transform_indices = @transform_5, window_bounds = array<i64: 4, 1>}, {transform_indices = @transform_6, window_bounds = array<i64: 4, 4, 640>}]} {
    %c0 = arith.constant 0 : index
    %c0_0 = arith.constant 0 : index
    %c0_1 = arith.constant 0 : index
    %0 = vector.load %arg1[%c0, %c0_0, %c0_1] : memref<1x5x724xf32, #tpu.memory_space<vmem>>, vector<1x5x724xf32>
    %1 = vector.shape_cast %0 : vector<1x5x724xf32> to vector<5x724xf32>
    %c0_2 = arith.constant 0 : index
    %c0_3 = arith.constant 0 : index
    %2 = vector.load %arg2[%c0_2, %c0_3] : memref<68x4xf32, #tpu.memory_space<vmem>>, vector<68x4xf32>
    %3 = vector.extract_strided_slice %1 {offsets = [0, 0], sizes = [4, 724], strides = [1, 1]} : vector<5x724xf32> to vector<4x724xf32>
    %cst = arith.constant dense<0.000000e+00> : vector<68x724xf32>
    %4 = tpu.matmul %2, %3, %cst {dimension_numbers = #tpu.dot_dimension_numbers<[1], [0], [0], [1], [0, 0, 1, 1], [], []>} : vector<68x4xf32>, vector<4x724xf32>, vector<68x724xf32> -> vector<68x724xf32>
    %5 = vector.extract_strided_slice %1 {offsets = [4, 0], sizes = [1, 724], strides = [1, 1]} : vector<5x724xf32> to vector<1x724xf32>
    %6 = vector.extract_strided_slice %4 {offsets = [0, 0], sizes = [64, 724], strides = [1, 1]} : vector<68x724xf32> to vector<64x724xf32>
    %c0_4 = arith.constant 0 : index
    %c0_5 = arith.constant 0 : index
    %7 = vector.load %arg3[%c0_4, %c0_5] : memref<64x1xf32, #tpu.memory_space<vmem>>, vector<64x1xf32>
    %8 = vector.broadcast %7 : vector<64x1xf32> to vector<64x724xf32>
    %9 = arith.addf %6, %8 : vector<64x724xf32>
    %10 = vector.broadcast %5 : vector<1x724xf32> to vector<64x724xf32>
    %11 = arith.mulf %9, %10 : vector<64x724xf32>
    %12 = arith.truncf %11 : vector<64x724xf32> to vector<64x724xbf16>
    %c0_6 = arith.constant 0 : index
    %c0_7 = arith.constant 0 : index
    %13 = vector.load %arg8[%c0_6, %c0_7] : memref<64x724xbf16, #tpu.memory_space<vmem>>, vector<64x724xbf16>
    tpu.vector_store %arg8[%c0_6, %c0_7], %12 {strides = array<i32>} : memref<64x724xbf16, #tpu.memory_space<vmem>>, vector<64x724xbf16>,
    %14 = vector.extract_strided_slice %4 {offsets = [64, 0], sizes = [4, 724], strides = [1, 1]} : vector<68x724xf32> to vector<4x724xf32>
    %c0_8 = arith.constant 0 : index
    %c0_9 = arith.constant 0 : index
    %15 = vector.load %arg9[%c0_8, %c0_9] : memref<4x724xf32, #tpu.memory_space<vmem>>, vector<4x724xf32>
    tpu.vector_store %arg9[%c0_8, %c0_9], %14 {strides = array<i32>} : memref<4x724xf32, #tpu.memory_space<vmem>>, vector<4x724xf32>,
    %c0_10 = arith.constant 0 : index
    %c21 = arith.constant 21 : index
    %16 = vector.load %arg8[%c0_10, %c21] : memref<64x724xbf16, #tpu.memory_space<vmem>>, vector<64x640xbf16>
    %c0_11 = arith.constant 0 : index
    %c0_12 = arith.constant 0 : index
    %17 = vector.load %arg10[%c0_11, %c0_12] : memref<576x640xbf16, #tpu.memory_space<vmem>>, vector<64x640xbf16>
    tpu.vector_store %arg10[%c0_11, %c0_12], %16 {strides = array<i32>} : memref<576x640xbf16, #tpu.memory_space<vmem>>, vector<64x640xbf16>,
    %c0_13 = arith.constant 0 : index
    %c22 = arith.constant 22 : index
    %18 = vector.load %arg8[%c0_13, %c22] : memref<64x724xbf16, #tpu.memory_space<vmem>>, vector<64x640xbf16>
    %c64 = arith.constant 64 : index
    %c0_14 = arith.constant 0 : index
    %19 = vector.load %arg10[%c64, %c0_14] : memref<576x640xbf16, #tpu.memory_space<vmem>>, vector<64x640xbf16>
    tpu.vector_store %arg10[%c64, %c0_14], %18 {strides = array<i32>} : memref<576x640xbf16, #tpu.memory_space<vmem>>, vector<64x640xbf16>,
    %c0_15 = arith.constant 0 : index
    %c23 = arith.constant 23 : index
    %20 = vector.load %arg8[%c0_15, %c23] : memref<64x724xbf16, #tpu.memory_space<vmem>>, vector<64x640xbf16>
    %c128 = arith.constant 128 : index
    %c0_16 = arith.constant 0 : index
    %21 = vector.load %arg10[%c128, %c0_16] : memref<576x640xbf16, #tpu.memory_space<vmem>>, vector<64x640xbf16>
    tpu.vector_store %arg10[%c128, %c0_16], %20 {strides = array<i32>} : memref<576x640xbf16, #tpu.memory_space<vmem>>, vector<64x640xbf16>,
    %c0_17 = arith.constant 0 : index
    %c41 = arith.constant 41 : index
    %22 = vector.load %arg8[%c0_17, %c41] : memref<64x724xbf16, #tpu.memory_space<vmem>>, vector<64x640xbf16>
    %c192 = arith.constant 192 : index
    %c0_18 = arith.constant 0 : index
    %23 = vector.load %arg10[%c192, %c0_18] : memref<576x640xbf16, #tpu.memory_space<vmem>>, vector<64x640xbf16>
    tpu.vector_store %arg10[%c192, %c0_18], %22 {strides = array<i32>} : memref<576x640xbf16, #tpu.memory_space<vmem>>, vector<64x640xbf16>,
    %c0_19 = arith.constant 0 : index
    %c42 = arith.constant 42 : index
    %24 = vector.load %arg8[%c0_19, %c42] : memref<64x724xbf16, #tpu.memory_space<vmem>>, vector<64x640xbf16>
    %c256 = arith.constant 256 : index
    %c0_20 = arith.constant 0 : index
    %25 = vector.load %arg10[%c256, %c0_20] : memref<576x640xbf16, #tpu.memory_space<vmem>>, vector<64x640xbf16>
    tpu.vector_store %arg10[%c256, %c0_20], %24 {strides = array<i32>} : memref<576x640xbf16, #tpu.memory_space<vmem>>, vector<64x640xbf16>,
    %c0_21 = arith.constant 0 : index
    %c43 = arith.constant 43 : index
    %26 = vector.load %arg8[%c0_21, %c43] : memref<64x724xbf16, #tpu.memory_space<vmem>>, vector<64x640xbf16>
    %c320 = arith.constant 320 : index
    %c0_22 = arith.constant 0 : index
    %27 = vector.load %arg10[%c320, %c0_22] : memref<576x640xbf16, #tpu.memory_space<vmem>>, vector<64x640xbf16>
    tpu.vector_store %arg10[%c320, %c0_22], %26 {strides = array<i32>} : memref<576x640xbf16, #tpu.memory_space<vmem>>, vector<64x640xbf16>,
    %c0_23 = arith.constant 0 : index
    %c61 = arith.constant 61 : index
    %28 = vector.load %arg8[%c0_23, %c61] : memref<64x724xbf16, #tpu.memory_space<vmem>>, vector<64x640xbf16>
    %c384 = arith.constant 384 : index
    %c0_24 = arith.constant 0 : index
    %29 = vector.load %arg10[%c384, %c0_24] : memref<576x640xbf16, #tpu.memory_space<vmem>>, vector<64x640xbf16>
    tpu.vector_store %arg10[%c384, %c0_24], %28 {strides = array<i32>} : memref<576x640xbf16, #tpu.memory_space<vmem>>, vector<64x640xbf16>,
    %c0_25 = arith.constant 0 : index
    %c62 = arith.constant 62 : index
    %30 = vector.load %arg8[%c0_25, %c62] : memref<64x724xbf16, #tpu.memory_space<vmem>>, vector<64x640xbf16>
    %c448 = arith.constant 448 : index
    %c0_26 = arith.constant 0 : index
    %31 = vector.load %arg10[%c448, %c0_26] : memref<576x640xbf16, #tpu.memory_space<vmem>>, vector<64x640xbf16>
    tpu.vector_store %arg10[%c448, %c0_26], %30 {strides = array<i32>} : memref<576x640xbf16, #tpu.memory_space<vmem>>, vector<64x640xbf16>,
    %c0_27 = arith.constant 0 : index
    %c63 = arith.constant 63 : index
    %32 = vector.load %arg8[%c0_27, %c63] : memref<64x724xbf16, #tpu.memory_space<vmem>>, vector<64x640xbf16>
    %c512 = arith.constant 512 : index
    %c0_28 = arith.constant 0 : index
    %33 = vector.load %arg10[%c512, %c0_28] : memref<576x640xbf16, #tpu.memory_space<vmem>>, vector<64x640xbf16>
    tpu.vector_store %arg10[%c512, %c0_28], %32 {strides = array<i32>} : memref<576x640xbf16, #tpu.memory_space<vmem>>, vector<64x640xbf16>,
    %c0_29 = arith.constant 0 : index
    %c0_30 = arith.constant 0 : index
    %34 = vector.load %arg4[%c0_29, %c0_30] : memref<104x576xbf16, #tpu.memory_space<vmem>>, vector<104x576xbf16>
    %c0_31 = arith.constant 0 : index
    %c0_32 = arith.constant 0 : index
    %35 = vector.load %arg10[%c0_31, %c0_32] : memref<576x640xbf16, #tpu.memory_space<vmem>>, vector<576x640xbf16>
    %cst_33 = arith.constant dense<0.000000e+00> : vector<104x640xf32>
    %36 = tpu.matmul %34, %35, %cst_33 {dimension_numbers = #tpu.dot_dimension_numbers<[1], [0], [0], [1], [0, 0, 1, 1], [], []>} : vector<104x576xbf16>, vector<576x640xbf16>, vector<104x640xf32> -> vector<104x640xf32>
    %c0_34 = arith.constant 0 : index
    %c0_35 = arith.constant 0 : index
    %37 = vector.load %arg5[%c0_34, %c0_35] : memref<104x1xf32, #tpu.memory_space<vmem>>, vector<104x1xf32>
    %38 = vector.broadcast %37 : vector<104x1xf32> to vector<104x640xf32>
    %39 = arith.addf %36, %38 : vector<104x640xf32>
    %c0_36 = arith.constant 0 : index
    %c0_37 = arith.constant 0 : index
    %40 = vector.load %arg11[%c0_36, %c0_37] : memref<104x640xf32, #tpu.memory_space<vmem>>, vector<104x640xf32>
    tpu.vector_store %arg11[%c0_36, %c0_37], %39 {strides = array<i32>} : memref<104x640xf32, #tpu.memory_space<vmem>>, vector<104x640xf32>,
    %c0_38 = arith.constant 0 : index
    %c0_39 = arith.constant 0 : index
    %41 = vector.load %arg11[%c0_38, %c0_39] : memref<104x640xf32, #tpu.memory_space<vmem>>, vector<8x640xf32>
    %c8 = arith.constant 8 : index
    %c0_40 = arith.constant 0 : index
    %42 = vector.load %arg11[%c8, %c0_40] : memref<104x640xf32, #tpu.memory_space<vmem>>, vector<8x640xf32>
    %43 = arith.maximumf %41, %42 : vector<8x640xf32>
    %c16 = arith.constant 16 : index
    %c0_41 = arith.constant 0 : index
    %44 = vector.load %arg11[%c16, %c0_41] : memref<104x640xf32, #tpu.memory_space<vmem>>, vector<8x640xf32>
    %45 = arith.maximumf %43, %44 : vector<8x640xf32>
    %c24 = arith.constant 24 : index
    %c0_42 = arith.constant 0 : index
    %46 = vector.load %arg11[%c24, %c0_42] : memref<104x640xf32, #tpu.memory_space<vmem>>, vector<8x640xf32>
    %47 = arith.maximumf %45, %46 : vector<8x640xf32>
    %c32 = arith.constant 32 : index
    %c0_43 = arith.constant 0 : index
    %48 = vector.load %arg11[%c32, %c0_43] : memref<104x640xf32, #tpu.memory_space<vmem>>, vector<8x640xf32>
    %49 = arith.maximumf %47, %48 : vector<8x640xf32>
    %c40 = arith.constant 40 : index
    %c0_44 = arith.constant 0 : index
    %50 = vector.load %arg11[%c40, %c0_44] : memref<104x640xf32, #tpu.memory_space<vmem>>, vector<8x640xf32>
    %51 = arith.maximumf %49, %50 : vector<8x640xf32>
    %c48 = arith.constant 48 : index
    %c0_45 = arith.constant 0 : index
    %52 = vector.load %arg11[%c48, %c0_45] : memref<104x640xf32, #tpu.memory_space<vmem>>, vector<8x640xf32>
    %53 = arith.maximumf %51, %52 : vector<8x640xf32>
    %c56 = arith.constant 56 : index
    %c0_46 = arith.constant 0 : index
    %54 = vector.load %arg11[%c56, %c0_46] : memref<104x640xf32, #tpu.memory_space<vmem>>, vector<8x640xf32>
    %55 = arith.maximumf %53, %54 : vector<8x640xf32>
    %c64_47 = arith.constant 64 : index
    %c0_48 = arith.constant 0 : index
    %56 = vector.load %arg11[%c64_47, %c0_48] : memref<104x640xf32, #tpu.memory_space<vmem>>, vector<8x640xf32>
    %57 = arith.maximumf %55, %56 : vector<8x640xf32>
    %c72 = arith.constant 72 : index
    %c0_49 = arith.constant 0 : index
    %58 = vector.load %arg11[%c72, %c0_49] : memref<104x640xf32, #tpu.memory_space<vmem>>, vector<8x640xf32>
    %59 = arith.maximumf %57, %58 : vector<8x640xf32>
    %c80 = arith.constant 80 : index
    %c0_50 = arith.constant 0 : index
    %60 = vector.load %arg11[%c80, %c0_50] : memref<104x640xf32, #tpu.memory_space<vmem>>, vector<8x640xf32>
    %61 = arith.maximumf %59, %60 : vector<8x640xf32>
    %c88 = arith.constant 88 : index
    %c0_51 = arith.constant 0 : index
    %62 = vector.load %arg11[%c88, %c0_51] : memref<104x640xf32, #tpu.memory_space<vmem>>, vector<8x640xf32>
    %63 = arith.maximumf %61, %62 : vector<8x640xf32>
    %c96 = arith.constant 96 : index
    %c0_52 = arith.constant 0 : index
    %64 = vector.load %arg11[%c96, %c0_52] : memref<104x640xf32, #tpu.memory_space<vmem>>, vector<8x640xf32>
    %65 = arith.maximumf %63, %64 : vector<8x640xf32>
    %66 = vector.extract_strided_slice %65 {offsets = [0, 0], sizes = [4, 640], strides = [1, 1]} : vector<8x640xf32> to vector<4x640xf32>
    %67 = vector.extract_strided_slice %65 {offsets = [4, 0], sizes = [4, 640], strides = [1, 1]} : vector<8x640xf32> to vector<4x640xf32>
    %68 = arith.maximumf %66, %67 : vector<4x640xf32>
    %69 = tpu.concatenate %68, %68 in 0 : vector<4x640xf32>, vector<4x640xf32> -> vector<8x640xf32>
    %c0_53 = arith.constant 0 : index
    %c0_54 = arith.constant 0 : index
    %70 = vector.load %arg11[%c0_53, %c0_54] : memref<104x640xf32, #tpu.memory_space<vmem>>, vector<8x640xf32>
    %71 = arith.subf %70, %69 : vector<8x640xf32>
    %72 = math.exp %71 : vector<8x640xf32>
    %c0_55 = arith.constant 0 : index
    %c0_56 = arith.constant 0 : index
    %73 = vector.load %arg9[%c0_55, %c0_56] : memref<4x724xf32, #tpu.memory_space<vmem>>, vector<4x640xf32>
    %74 = vector.extract_strided_slice %72 {offsets = [0, 0], sizes = [4, 640], strides = [1, 1]} : vector<8x640xf32> to vector<4x640xf32>
    %75 = vector.shape_cast %74 : vector<4x640xf32> to vector<4x1x640xf32>
    %76 = vector.shape_cast %73 : vector<4x640xf32> to vector<1x4x640xf32>
    %77 = vector.broadcast %75 : vector<4x1x640xf32> to vector<4x4x640xf32>
    %78 = vector.broadcast %76 : vector<1x4x640xf32> to vector<4x4x640xf32>
    %79 = arith.mulf %77, %78 : vector<4x4x640xf32>
    %c0_57 = arith.constant 0 : index
    %c1 = arith.constant 1 : index
    %80 = vector.load %arg9[%c0_57, %c1] : memref<4x724xf32, #tpu.memory_space<vmem>>, vector<4x640xf32>
    %81 = vector.extract_strided_slice %72 {offsets = [4, 0], sizes = [4, 640], strides = [1, 1]} : vector<8x640xf32> to vector<4x640xf32>
    %82 = vector.shape_cast %81 : vector<4x640xf32> to vector<4x1x640xf32>
    %83 = vector.shape_cast %80 : vector<4x640xf32> to vector<1x4x640xf32>
    %84 = vector.broadcast %82 : vector<4x1x640xf32> to vector<4x4x640xf32>
    %85 = vector.broadcast %83 : vector<1x4x640xf32> to vector<4x4x640xf32>
    %86 = arith.mulf %84, %85 : vector<4x4x640xf32>
    %87 = arith.addf %79, %86 : vector<4x4x640xf32>
    %c8_58 = arith.constant 8 : index
    %c0_59 = arith.constant 0 : index
    %88 = vector.load %arg11[%c8_58, %c0_59] : memref<104x640xf32, #tpu.memory_space<vmem>>, vector<8x640xf32>
    %89 = arith.subf %88, %69 : vector<8x640xf32>
    %90 = math.exp %89 : vector<8x640xf32>
    %91 = arith.addf %72, %90 : vector<8x640xf32>
    %c0_60 = arith.constant 0 : index
    %c2 = arith.constant 2 : index
    %92 = vector.load %arg9[%c0_60, %c2] : memref<4x724xf32, #tpu.memory_space<vmem>>, vector<4x640xf32>
    %93 = vector.extract_strided_slice %90 {offsets = [0, 0], sizes = [4, 640], strides = [1, 1]} : vector<8x640xf32> to vector<4x640xf32>
    %94 = vector.shape_cast %93 : vector<4x640xf32> to vector<4x1x640xf32>
    %95 = vector.shape_cast %92 : vector<4x640xf32> to vector<1x4x640xf32>
    %96 = vector.broadcast %94 : vector<4x1x640xf32> to vector<4x4x640xf32>
    %97 = vector.broadcast %95 : vector<1x4x640xf32> to vector<4x4x640xf32>
    %98 = arith.mulf %96, %97 : vector<4x4x640xf32>
    %99 = arith.addf %87, %98 : vector<4x4x640xf32>
    %c0_61 = arith.constant 0 : index
    %c3 = arith.constant 3 : index
    %100 = vector.load %arg9[%c0_61, %c3] : memref<4x724xf32, #tpu.memory_space<vmem>>, vector<4x640xf32>
    %101 = vector.extract_strided_slice %90 {offsets = [4, 0], sizes = [4, 640], strides = [1, 1]} : vector<8x640xf32> to vector<4x640xf32>
    %102 = vector.shape_cast %101 : vector<4x640xf32> to vector<4x1x640xf32>
    %103 = vector.shape_cast %100 : vector<4x640xf32> to vector<1x4x640xf32>
    %104 = vector.broadcast %102 : vector<4x1x640xf32> to vector<4x4x640xf32>
    %105 = vector.broadcast %103 : vector<1x4x640xf32> to vector<4x4x640xf32>
    %106 = arith.mulf %104, %105 : vector<4x4x640xf32>
    %107 = arith.addf %99, %106 : vector<4x4x640xf32>
    %c16_62 = arith.constant 16 : index
    %c0_63 = arith.constant 0 : index
    %108 = vector.load %arg11[%c16_62, %c0_63] : memref<104x640xf32, #tpu.memory_space<vmem>>, vector<8x640xf32>
    %109 = arith.subf %108, %69 : vector<8x640xf32>
    %110 = math.exp %109 : vector<8x640xf32>
    %111 = arith.addf %91, %110 : vector<8x640xf32>
    %c0_64 = arith.constant 0 : index
    %c4 = arith.constant 4 : index
    %112 = vector.load %arg9[%c0_64, %c4] : memref<4x724xf32, #tpu.memory_space<vmem>>, vector<4x640xf32>
    %113 = vector.extract_strided_slice %110 {offsets = [0, 0], sizes = [4, 640], strides = [1, 1]} : vector<8x640xf32> to vector<4x640xf32>
    %114 = vector.shape_cast %113 : vector<4x640xf32> to vector<4x1x640xf32>
    %115 = vector.shape_cast %112 : vector<4x640xf32> to vector<1x4x640xf32>
    %116 = vector.broadcast %114 : vector<4x1x640xf32> to vector<4x4x640xf32>
    %117 = vector.broadcast %115 : vector<1x4x640xf32> to vector<4x4x640xf32>
    %118 = arith.mulf %116, %117 : vector<4x4x640xf32>
    %119 = arith.addf %107, %118 : vector<4x4x640xf32>
    %c0_65 = arith.constant 0 : index
    %c20 = arith.constant 20 : index
    %120 = vector.load %arg9[%c0_65, %c20] : memref<4x724xf32, #tpu.memory_space<vmem>>, vector<4x640xf32>
    %121 = vector.extract_strided_slice %110 {offsets = [4, 0], sizes = [4, 640], strides = [1, 1]} : vector<8x640xf32> to vector<4x640xf32>
    %122 = vector.shape_cast %121 : vector<4x640xf32> to vector<4x1x640xf32>
    %123 = vector.shape_cast %120 : vector<4x640xf32> to vector<1x4x640xf32>
    %124 = vector.broadcast %122 : vector<4x1x640xf32> to vector<4x4x640xf32>
    %125 = vector.broadcast %123 : vector<1x4x640xf32> to vector<4x4x640xf32>
    %126 = arith.mulf %124, %125 : vector<4x4x640xf32>
    %127 = arith.addf %119, %126 : vector<4x4x640xf32>
    %c24_66 = arith.constant 24 : index
    %c0_67 = arith.constant 0 : index
    %128 = vector.load %arg11[%c24_66, %c0_67] : memref<104x640xf32, #tpu.memory_space<vmem>>, vector<8x640xf32>
    %129 = arith.subf %128, %69 : vector<8x640xf32>
    %130 = math.exp %129 : vector<8x640xf32>
    %131 = arith.addf %111, %130 : vector<8x640xf32>
    %c0_68 = arith.constant 0 : index
    %c21_69 = arith.constant 21 : index
    %132 = vector.load %arg9[%c0_68, %c21_69] : memref<4x724xf32, #tpu.memory_space<vmem>>, vector<4x640xf32>
    %133 = vector.extract_strided_slice %130 {offsets = [0, 0], sizes = [4, 640], strides = [1, 1]} : vector<8x640xf32> to vector<4x640xf32>
    %134 = vector.shape_cast %133 : vector<4x640xf32> to vector<4x1x640xf32>
    %135 = vector.shape_cast %132 : vector<4x640xf32> to vector<1x4x640xf32>
    %136 = vector.broadcast %134 : vector<4x1x640xf32> to vector<4x4x640xf32>
    %137 = vector.broadcast %135 : vector<1x4x640xf32> to vector<4x4x640xf32>
    %138 = arith.mulf %136, %137 : vector<4x4x640xf32>
    %139 = arith.addf %127, %138 : vector<4x4x640xf32>
    %c0_70 = arith.constant 0 : index
    %c22_71 = arith.constant 22 : index
    %140 = vector.load %arg9[%c0_70, %c22_71] : memref<4x724xf32, #tpu.memory_space<vmem>>, vector<4x640xf32>
    %141 = vector.extract_strided_slice %130 {offsets = [4, 0], sizes = [4, 640], strides = [1, 1]} : vector<8x640xf32> to vector<4x640xf32>
    %142 = vector.shape_cast %141 : vector<4x640xf32> to vector<4x1x640xf32>
    %143 = vector.shape_cast %140 : vector<4x640xf32> to vector<1x4x640xf32>
    %144 = vector.broadcast %142 : vector<4x1x640xf32> to vector<4x4x640xf32>
    %145 = vector.broadcast %143 : vector<1x4x640xf32> to vector<4x4x640xf32>
    %146 = arith.mulf %144, %145 : vector<4x4x640xf32>
    %147 = arith.addf %139, %146 : vector<4x4x640xf32>
    %c32_72 = arith.constant 32 : index
    %c0_73 = arith.constant 0 : index
    %148 = vector.load %arg11[%c32_72, %c0_73] : memref<104x640xf32, #tpu.memory_space<vmem>>, vector<8x640xf32>
    %149 = arith.subf %148, %69 : vector<8x640xf32>
    %150 = math.exp %149 : vector<8x640xf32>
    %151 = arith.addf %131, %150 : vector<8x640xf32>
    %c0_74 = arith.constant 0 : index
    %c23_75 = arith.constant 23 : index
    %152 = vector.load %arg9[%c0_74, %c23_75] : memref<4x724xf32, #tpu.memory_space<vmem>>, vector<4x640xf32>
    %153 = vector.extract_strided_slice %150 {offsets = [0, 0], sizes = [4, 640], strides = [1, 1]} : vector<8x640xf32> to vector<4x640xf32>
    %154 = vector.shape_cast %153 : vector<4x640xf32> to vector<4x1x640xf32>
    %155 = vector.shape_cast %152 : vector<4x640xf32> to vector<1x4x640xf32>
    %156 = vector.broadcast %154 : vector<4x1x640xf32> to vector<4x4x640xf32>
    %157 = vector.broadcast %155 : vector<1x4x640xf32> to vector<4x4x640xf32>
    %158 = arith.mulf %156, %157 : vector<4x4x640xf32>
    %159 = arith.addf %147, %158 : vector<4x4x640xf32>
    %c0_76 = arith.constant 0 : index
    %c24_77 = arith.constant 24 : index
    %160 = vector.load %arg9[%c0_76, %c24_77] : memref<4x724xf32, #tpu.memory_space<vmem>>, vector<4x640xf32>
    %161 = vector.extract_strided_slice %150 {offsets = [4, 0], sizes = [4, 640], strides = [1, 1]} : vector<8x640xf32> to vector<4x640xf32>
    %162 = vector.shape_cast %161 : vector<4x640xf32> to vector<4x1x640xf32>
    %163 = vector.shape_cast %160 : vector<4x640xf32> to vector<1x4x640xf32>
    %164 = vector.broadcast %162 : vector<4x1x640xf32> to vector<4x4x640xf32>
    %165 = vector.broadcast %163 : vector<1x4x640xf32> to vector<4x4x640xf32>
    %166 = arith.mulf %164, %165 : vector<4x4x640xf32>
    %167 = arith.addf %159, %166 : vector<4x4x640xf32>
    %c40_78 = arith.constant 40 : index
    %c0_79 = arith.constant 0 : index
    %168 = vector.load %arg11[%c40_78, %c0_79] : memref<104x640xf32, #tpu.memory_space<vmem>>, vector<8x640xf32>
    %169 = arith.subf %168, %69 : vector<8x640xf32>
    %170 = math.exp %169 : vector<8x640xf32>
    %171 = arith.addf %151, %170 : vector<8x640xf32>
    %c0_80 = arith.constant 0 : index
    %c40_81 = arith.constant 40 : index
    %172 = vector.load %arg9[%c0_80, %c40_81] : memref<4x724xf32, #tpu.memory_space<vmem>>, vector<4x640xf32>
    %173 = vector.extract_strided_slice %170 {offsets = [0, 0], sizes = [4, 640], strides = [1, 1]} : vector<8x640xf32> to vector<4x640xf32>
    %174 = vector.shape_cast %173 : vector<4x640xf32> to vector<4x1x640xf32>
    %175 = vector.shape_cast %172 : vector<4x640xf32> to vector<1x4x640xf32>
    %176 = vector.broadcast %174 : vector<4x1x640xf32> to vector<4x4x640xf32>
    %177 = vector.broadcast %175 : vector<1x4x640xf32> to vector<4x4x640xf32>
    %178 = arith.mulf %176, %177 : vector<4x4x640xf32>
    %179 = arith.addf %167, %178 : vector<4x4x640xf32>
    %c0_82 = arith.constant 0 : index
    %c41_83 = arith.constant 41 : index
    %180 = vector.load %arg9[%c0_82, %c41_83] : memref<4x724xf32, #tpu.memory_space<vmem>>, vector<4x640xf32>
    %181 = vector.extract_strided_slice %170 {offsets = [4, 0], sizes = [4, 640], strides = [1, 1]} : vector<8x640xf32> to vector<4x640xf32>
    %182 = vector.shape_cast %181 : vector<4x640xf32> to vector<4x1x640xf32>
    %183 = vector.shape_cast %180 : vector<4x640xf32> to vector<1x4x640xf32>
    %184 = vector.broadcast %182 : vector<4x1x640xf32> to vector<4x4x640xf32>
    %185 = vector.broadcast %183 : vector<1x4x640xf32> to vector<4x4x640xf32>
    %186 = arith.mulf %184, %185 : vector<4x4x640xf32>
    %187 = arith.addf %179, %186 : vector<4x4x640xf32>
    %c48_84 = arith.constant 48 : index
    %c0_85 = arith.constant 0 : index
    %188 = vector.load %arg11[%c48_84, %c0_85] : memref<104x640xf32, #tpu.memory_space<vmem>>, vector<8x640xf32>
    %189 = arith.subf %188, %69 : vector<8x640xf32>
    %190 = math.exp %189 : vector<8x640xf32>
    %191 = arith.addf %171, %190 : vector<8x640xf32>
    %c0_86 = arith.constant 0 : index
    %c42_87 = arith.constant 42 : index
    %192 = vector.load %arg9[%c0_86, %c42_87] : memref<4x724xf32, #tpu.memory_space<vmem>>, vector<4x640xf32>
    %193 = vector.extract_strided_slice %190 {offsets = [0, 0], sizes = [4, 640], strides = [1, 1]} : vector<8x640xf32> to vector<4x640xf32>
    %194 = vector.shape_cast %193 : vector<4x640xf32> to vector<4x1x640xf32>
    %195 = vector.shape_cast %192 : vector<4x640xf32> to vector<1x4x640xf32>
    %196 = vector.broadcast %194 : vector<4x1x640xf32> to vector<4x4x640xf32>
    %197 = vector.broadcast %195 : vector<1x4x640xf32> to vector<4x4x640xf32>
    %198 = arith.mulf %196, %197 : vector<4x4x640xf32>
    %199 = arith.addf %187, %198 : vector<4x4x640xf32>
    %c0_88 = arith.constant 0 : index
    %c43_89 = arith.constant 43 : index
    %200 = vector.load %arg9[%c0_88, %c43_89] : memref<4x724xf32, #tpu.memory_space<vmem>>, vector<4x640xf32>
    %201 = vector.extract_strided_slice %190 {offsets = [4, 0], sizes = [4, 640], strides = [1, 1]} : vector<8x640xf32> to vector<4x640xf32>
    %202 = vector.shape_cast %201 : vector<4x640xf32> to vector<4x1x640xf32>
    %203 = vector.shape_cast %200 : vector<4x640xf32> to vector<1x4x640xf32>
    %204 = vector.broadcast %202 : vector<4x1x640xf32> to vector<4x4x640xf32>
    %205 = vector.broadcast %203 : vector<1x4x640xf32> to vector<4x4x640xf32>
    %206 = arith.mulf %204, %205 : vector<4x4x640xf32>
    %207 = arith.addf %199, %206 : vector<4x4x640xf32>
    %c56_90 = arith.constant 56 : index
    %c0_91 = arith.constant 0 : index
    %208 = vector.load %arg11[%c56_90, %c0_91] : memref<104x640xf32, #tpu.memory_space<vmem>>, vector<8x640xf32>
    %209 = arith.subf %208, %69 : vector<8x640xf32>
    %210 = math.exp %209 : vector<8x640xf32>
    %211 = arith.addf %191, %210 : vector<8x640xf32>
    %c0_92 = arith.constant 0 : index
    %c44 = arith.constant 44 : index
    %212 = vector.load %arg9[%c0_92, %c44] : memref<4x724xf32, #tpu.memory_space<vmem>>, vector<4x640xf32>
    %213 = vector.extract_strided_slice %210 {offsets = [0, 0], sizes = [4, 640], strides = [1, 1]} : vector<8x640xf32> to vector<4x640xf32>
    %214 = vector.shape_cast %213 : vector<4x640xf32> to vector<4x1x640xf32>
    %215 = vector.shape_cast %212 : vector<4x640xf32> to vector<1x4x640xf32>
    %216 = vector.broadcast %214 : vector<4x1x640xf32> to vector<4x4x640xf32>
    %217 = vector.broadcast %215 : vector<1x4x640xf32> to vector<4x4x640xf32>
    %218 = arith.mulf %216, %217 : vector<4x4x640xf32>
    %219 = arith.addf %207, %218 : vector<4x4x640xf32>
    %c0_93 = arith.constant 0 : index
    %c60 = arith.constant 60 : index
    %220 = vector.load %arg9[%c0_93, %c60] : memref<4x724xf32, #tpu.memory_space<vmem>>, vector<4x640xf32>
    %221 = vector.extract_strided_slice %210 {offsets = [4, 0], sizes = [4, 640], strides = [1, 1]} : vector<8x640xf32> to vector<4x640xf32>
    %222 = vector.shape_cast %221 : vector<4x640xf32> to vector<4x1x640xf32>
    %223 = vector.shape_cast %220 : vector<4x640xf32> to vector<1x4x640xf32>
    %224 = vector.broadcast %222 : vector<4x1x640xf32> to vector<4x4x640xf32>
    %225 = vector.broadcast %223 : vector<1x4x640xf32> to vector<4x4x640xf32>
    %226 = arith.mulf %224, %225 : vector<4x4x640xf32>
    %227 = arith.addf %219, %226 : vector<4x4x640xf32>
    %c64_94 = arith.constant 64 : index
    %c0_95 = arith.constant 0 : index
    %228 = vector.load %arg11[%c64_94, %c0_95] : memref<104x640xf32, #tpu.memory_space<vmem>>, vector<8x640xf32>
    %229 = arith.subf %228, %69 : vector<8x640xf32>
    %230 = math.exp %229 : vector<8x640xf32>
    %231 = arith.addf %211, %230 : vector<8x640xf32>
    %c0_96 = arith.constant 0 : index
    %c61_97 = arith.constant 61 : index
    %232 = vector.load %arg9[%c0_96, %c61_97] : memref<4x724xf32, #tpu.memory_space<vmem>>, vector<4x640xf32>
    %233 = vector.extract_strided_slice %230 {offsets = [0, 0], sizes = [4, 640], strides = [1, 1]} : vector<8x640xf32> to vector<4x640xf32>
    %234 = vector.shape_cast %233 : vector<4x640xf32> to vector<4x1x640xf32>
    %235 = vector.shape_cast %232 : vector<4x640xf32> to vector<1x4x640xf32>
    %236 = vector.broadcast %234 : vector<4x1x640xf32> to vector<4x4x640xf32>
    %237 = vector.broadcast %235 : vector<1x4x640xf32> to vector<4x4x640xf32>
    %238 = arith.mulf %236, %237 : vector<4x4x640xf32>
    %239 = arith.addf %227, %238 : vector<4x4x640xf32>
    %c0_98 = arith.constant 0 : index
    %c62_99 = arith.constant 62 : index
    %240 = vector.load %arg9[%c0_98, %c62_99] : memref<4x724xf32, #tpu.memory_space<vmem>>, vector<4x640xf32>
    %241 = vector.extract_strided_slice %230 {offsets = [4, 0], sizes = [4, 640], strides = [1, 1]} : vector<8x640xf32> to vector<4x640xf32>
    %242 = vector.shape_cast %241 : vector<4x640xf32> to vector<4x1x640xf32>
    %243 = vector.shape_cast %240 : vector<4x640xf32> to vector<1x4x640xf32>
    %244 = vector.broadcast %242 : vector<4x1x640xf32> to vector<4x4x640xf32>
    %245 = vector.broadcast %243 : vector<1x4x640xf32> to vector<4x4x640xf32>
    %246 = arith.mulf %244, %245 : vector<4x4x640xf32>
    %247 = arith.addf %239, %246 : vector<4x4x640xf32>
    %c72_100 = arith.constant 72 : index
    %c0_101 = arith.constant 0 : index
    %248 = vector.load %arg11[%c72_100, %c0_101] : memref<104x640xf32, #tpu.memory_space<vmem>>, vector<8x640xf32>
    %249 = arith.subf %248, %69 : vector<8x640xf32>
    %250 = math.exp %249 : vector<8x640xf32>
    %251 = arith.addf %231, %250 : vector<8x640xf32>
    %c0_102 = arith.constant 0 : index
    %c63_103 = arith.constant 63 : index
    %252 = vector.load %arg9[%c0_102, %c63_103] : memref<4x724xf32, #tpu.memory_space<vmem>>, vector<4x640xf32>
    %253 = vector.extract_strided_slice %250 {offsets = [0, 0], sizes = [4, 640], strides = [1, 1]} : vector<8x640xf32> to vector<4x640xf32>
    %254 = vector.shape_cast %253 : vector<4x640xf32> to vector<4x1x640xf32>
    %255 = vector.shape_cast %252 : vector<4x640xf32> to vector<1x4x640xf32>
    %256 = vector.broadcast %254 : vector<4x1x640xf32> to vector<4x4x640xf32>
    %257 = vector.broadcast %255 : vector<1x4x640xf32> to vector<4x4x640xf32>
    %258 = arith.mulf %256, %257 : vector<4x4x640xf32>
    %259 = arith.addf %247, %258 : vector<4x4x640xf32>
    %c0_104 = arith.constant 0 : index
    %c64_105 = arith.constant 64 : index
    %260 = vector.load %arg9[%c0_104, %c64_105] : memref<4x724xf32, #tpu.memory_space<vmem>>, vector<4x640xf32>
    %261 = vector.extract_strided_slice %250 {offsets = [4, 0], sizes = [4, 640], strides = [1, 1]} : vector<8x640xf32> to vector<4x640xf32>
    %262 = vector.shape_cast %261 : vector<4x640xf32> to vector<4x1x640xf32>
    %263 = vector.shape_cast %260 : vector<4x640xf32> to vector<1x4x640xf32>
    %264 = vector.broadcast %262 : vector<4x1x640xf32> to vector<4x4x640xf32>
    %265 = vector.broadcast %263 : vector<1x4x640xf32> to vector<4x4x640xf32>
    %266 = arith.mulf %264, %265 : vector<4x4x640xf32>
    %267 = arith.addf %259, %266 : vector<4x4x640xf32>
    %c80_106 = arith.constant 80 : index
    %c0_107 = arith.constant 0 : index
    %268 = vector.load %arg11[%c80_106, %c0_107] : memref<104x640xf32, #tpu.memory_space<vmem>>, vector<8x640xf32>
    %269 = arith.subf %268, %69 : vector<8x640xf32>
    %270 = math.exp %269 : vector<8x640xf32>
    %271 = arith.addf %251, %270 : vector<8x640xf32>
    %c0_108 = arith.constant 0 : index
    %c80_109 = arith.constant 80 : index
    %272 = vector.load %arg9[%c0_108, %c80_109] : memref<4x724xf32, #tpu.memory_space<vmem>>, vector<4x640xf32>
    %273 = vector.extract_strided_slice %270 {offsets = [0, 0], sizes = [4, 640], strides = [1, 1]} : vector<8x640xf32> to vector<4x640xf32>
    %274 = vector.shape_cast %273 : vector<4x640xf32> to vector<4x1x640xf32>
    %275 = vector.shape_cast %272 : vector<4x640xf32> to vector<1x4x640xf32>
    %276 = vector.broadcast %274 : vector<4x1x640xf32> to vector<4x4x640xf32>
    %277 = vector.broadcast %275 : vector<1x4x640xf32> to vector<4x4x640xf32>
    %278 = arith.mulf %276, %277 : vector<4x4x640xf32>
    %279 = arith.addf %267, %278 : vector<4x4x640xf32>
    %c0_110 = arith.constant 0 : index
    %c81 = arith.constant 81 : index
    %280 = vector.load %arg9[%c0_110, %c81] : memref<4x724xf32, #tpu.memory_space<vmem>>, vector<4x640xf32>
    %281 = vector.extract_strided_slice %270 {offsets = [4, 0], sizes = [4, 640], strides = [1, 1]} : vector<8x640xf32> to vector<4x640xf32>
    %282 = vector.shape_cast %281 : vector<4x640xf32> to vector<4x1x640xf32>
    %283 = vector.shape_cast %280 : vector<4x640xf32> to vector<1x4x640xf32>
    %284 = vector.broadcast %282 : vector<4x1x640xf32> to vector<4x4x640xf32>
    %285 = vector.broadcast %283 : vector<1x4x640xf32> to vector<4x4x640xf32>
    %286 = arith.mulf %284, %285 : vector<4x4x640xf32>
    %287 = arith.addf %279, %286 : vector<4x4x640xf32>
    %c88_111 = arith.constant 88 : index
    %c0_112 = arith.constant 0 : index
    %288 = vector.load %arg11[%c88_111, %c0_112] : memref<104x640xf32, #tpu.memory_space<vmem>>, vector<8x640xf32>
    %289 = arith.subf %288, %69 : vector<8x640xf32>
    %290 = math.exp %289 : vector<8x640xf32>
    %291 = arith.addf %271, %290 : vector<8x640xf32>
    %c0_113 = arith.constant 0 : index
    %c82 = arith.constant 82 : index
    %292 = vector.load %arg9[%c0_113, %c82] : memref<4x724xf32, #tpu.memory_space<vmem>>, vector<4x640xf32>
    %293 = vector.extract_strided_slice %290 {offsets = [0, 0], sizes = [4, 640], strides = [1, 1]} : vector<8x640xf32> to vector<4x640xf32>
    %294 = vector.shape_cast %293 : vector<4x640xf32> to vector<4x1x640xf32>
    %295 = vector.shape_cast %292 : vector<4x640xf32> to vector<1x4x640xf32>
    %296 = vector.broadcast %294 : vector<4x1x640xf32> to vector<4x4x640xf32>
    %297 = vector.broadcast %295 : vector<1x4x640xf32> to vector<4x4x640xf32>
    %298 = arith.mulf %296, %297 : vector<4x4x640xf32>
    %299 = arith.addf %287, %298 : vector<4x4x640xf32>
    %c0_114 = arith.constant 0 : index
    %c83 = arith.constant 83 : index
    %300 = vector.load %arg9[%c0_114, %c83] : memref<4x724xf32, #tpu.memory_space<vmem>>, vector<4x640xf32>
    %301 = vector.extract_strided_slice %290 {offsets = [4, 0], sizes = [4, 640], strides = [1, 1]} : vector<8x640xf32> to vector<4x640xf32>
    %302 = vector.shape_cast %301 : vector<4x640xf32> to vector<4x1x640xf32>
    %303 = vector.shape_cast %300 : vector<4x640xf32> to vector<1x4x640xf32>
    %304 = vector.broadcast %302 : vector<4x1x640xf32> to vector<4x4x640xf32>
    %305 = vector.broadcast %303 : vector<1x4x640xf32> to vector<4x4x640xf32>
    %306 = arith.mulf %304, %305 : vector<4x4x640xf32>
    %307 = arith.addf %299, %306 : vector<4x4x640xf32>
    %c96_115 = arith.constant 96 : index
    %c0_116 = arith.constant 0 : index
    %308 = vector.load %arg11[%c96_115, %c0_116] : memref<104x640xf32, #tpu.memory_space<vmem>>, vector<8x640xf32>
    %309 = arith.subf %308, %69 : vector<8x640xf32>
    %310 = math.exp %309 : vector<8x640xf32>
    %311 = arith.addf %291, %310 : vector<8x640xf32>
    %c0_117 = arith.constant 0 : index
    %c84 = arith.constant 84 : index
    %312 = vector.load %arg9[%c0_117, %c84] : memref<4x724xf32, #tpu.memory_space<vmem>>, vector<4x640xf32>
    %313 = vector.extract_strided_slice %310 {offsets = [0, 0], sizes = [4, 640], strides = [1, 1]} : vector<8x640xf32> to vector<4x640xf32>
    %314 = vector.shape_cast %313 : vector<4x640xf32> to vector<4x1x640xf32>
    %315 = vector.shape_cast %312 : vector<4x640xf32> to vector<1x4x640xf32>
    %316 = vector.broadcast %314 : vector<4x1x640xf32> to vector<4x4x640xf32>
    %317 = vector.broadcast %315 : vector<1x4x640xf32> to vector<4x4x640xf32>
    %318 = arith.mulf %316, %317 : vector<4x4x640xf32>
    %319 = arith.addf %307, %318 : vector<4x4x640xf32>
    %320 = vector.extract_strided_slice %311 {offsets = [0, 0], sizes = [4, 640], strides = [1, 1]} : vector<8x640xf32> to vector<4x640xf32>
    %321 = vector.extract_strided_slice %311 {offsets = [4, 0], sizes = [4, 640], strides = [1, 1]} : vector<8x640xf32> to vector<4x640xf32>
    %322 = arith.addf %320, %321 : vector<4x640xf32>
    %323 = tpu.reciprocal %322 {approx = true} : vector<4x640xf32> -> vector<4x640xf32>
    %324 = vector.shape_cast %323 : vector<4x640xf32> to vector<4x1x640xf32>
    %325 = vector.broadcast %324 : vector<4x1x640xf32> to vector<4x4x640xf32>
    %326 = arith.mulf %319, %325 : vector<4x4x640xf32>
    %c0_118 = arith.constant 0 : index
    %c0_119 = arith.constant 0 : index
    %327 = vector.load %arg6[%c0_118, %c0_119] : memref<4x1xf32, #tpu.memory_space<vmem>>, vector<4x1xf32>
    %328 = vector.shape_cast %327 : vector<4x1xf32> to vector<1x4x1xf32>
    %329 = vector.broadcast %328 : vector<1x4x1xf32> to vector<4x4x640xf32>
    %330 = arith.addf %326, %329 : vector<4x4x640xf32>
    %c0_120 = arith.constant 0 : index
    %c0_121 = arith.constant 0 : index
    %c0_122 = arith.constant 0 : index
    %331 = vector.load %arg7[%c0_120, %c0_121, %c0_122] : memref<4x4x640xf32, #tpu.memory_space<vmem>>, vector<4x4x640xf32>
    tpu.vector_store %arg7[%c0_120, %c0_121, %c0_122], %330 {strides = array<i32>} : memref<4x4x640xf32, #tpu.memory_space<vmem>>, vector<4x4x640xf32>,
    return
  }
  func.func @transform_0(%arg0: i32) -> (i32, i32, i32) {
    %c0_i32 = arith.constant 0 : i32
    %c0_i32_0 = arith.constant 0 : i32
    %c0_i32_1 = arith.constant 0 : i32
    return %arg0, %c0_i32, %c0_i32_0 : i32, i32, i32
  }
  func.func @transform_1(%arg0: i32) -> (i32, i32) {
    %c0_i32 = arith.constant 0 : i32
    %c0_i32_0 = arith.constant 0 : i32
    %c0_i32_1 = arith.constant 0 : i32
    return %c0_i32, %c0_i32_0 : i32, i32
  }
  func.func @transform_2(%arg0: i32) -> (i32, i32) {
    %c0_i32 = arith.constant 0 : i32
    %c0_i32_0 = arith.constant 0 : i32
    %c0_i32_1 = arith.constant 0 : i32
    return %c0_i32, %c0_i32_0 : i32, i32
  }
  func.func @transform_3(%arg0: i32) -> (i32, i32) {
    %c0_i32 = arith.constant 0 : i32
    %c0_i32_0 = arith.constant 0 : i32
    %c0_i32_1 = arith.constant 0 : i32
    return %c0_i32, %c0_i32_0 : i32, i32
  }
  func.func @transform_4(%arg0: i32) -> (i32, i32) {
    %c0_i32 = arith.constant 0 : i32
    %c0_i32_0 = arith.constant 0 : i32
    %c0_i32_1 = arith.constant 0 : i32
    return %c0_i32, %c0_i32_0 : i32, i32
  }
  func.func @transform_5(%arg0: i32) -> (i32, i32) {
    %c0_i32 = arith.constant 0 : i32
    %c0_i32_0 = arith.constant 0 : i32
    %c0_i32_1 = arith.constant 0 : i32
    return %c0_i32, %c0_i32_0 : i32, i32
  }
  func.func @transform_6(%arg0: i32) -> (i32, i32, i32) {
    %c0_i32 = arith.constant 0 : i32
    %c0_i32_0 = arith.constant 0 : i32
    %c0_i32_1 = arith.constant 0 : i32
    return %c0_i32, %c0_i32_0, %arg0 : i32, i32, i32
  }
}

</mosaic_0001>

<bundles_post_ra>
// kernel: _lambda_.1
= control target key start
LH: loop header
LB: loop body
LE: loop exit
PB: predicated region body
PF: predicated region fallthrough
CT: control target
= control target key end

     0   :  { %s12628_s21 = smov 0   ;;  %s12630_s22 = smov 0   ;;  %s20326_s0 = inlined_call_operand.vmem [shape: f32[2,5,724], index: 0, kind: input, shape index: {}]   ;;  %s20327_s1 = inlined_call_operand.vmem [shape: f32[68,4], index: 1, kind: input, shape index: {}]   ;;  %s20328_s2 = inlined_call_operand.vmem [shape: f32[64,1], index: 2, kind: input, shape index: {}]   ;;  %s20329_s3 = inlined_call_operand.vmem [shape: bf16[104,576], index: 3, kind: input, shape index: {}]   ;;  %s20330_s4 = inlined_call_operand.vmem [shape: f32[104,1], index: 4, kind: input, shape index: {}]   ;;  %s20331_s5 = inlined_call_operand.vmem [shape: f32[4,1], index: 5, kind: input, shape index: {}]   ;;  %s20332_s6 = inlined_call_operand.vmem [shape: f32[4,4,1280], index: 6, kind: output, shape index: {}]  }
   0x1   :  { %s12632_s23 = smov 0  }
   0x2 LB: > { %s12641_s24 = sadd.s32 4294967295, %s12563_s23   ;;  %s12643_s25 = sadd.s32 1, %s12563_s23   ;;  %s12563_s23 = sphi %s12632_s23, %s21826_s23   ;;  %s12559_s22 = sphi %s12630_s22, %s21825_s22   ;;  %s12555_s21 = sphi %s12628_s21, %s21824_s21  }
   0x3   : > { %s151_s26 = ssub.s32 %s12563_s23, %s12643_s25  ;;  %s154_s27 = sadd.s32 1, %s12559_s22 }
   0x4   : > { %p152_p0 = scmp.eq.s32.totalorder %s151_s26, 0  ;;  %p164_p1 = scmp.ne.s32.totalorder %s12559_s22, %s12555_s21 }
   0x5   : > { %p165_p2 = scmp.eq.s32.totalorder %s12641_s24, 1  ;;  %p11680_p3 = scmp.ge.s32.totalorder %s12563_s23, 1 }
   0x6   : > { %s12651_s28 = scalar_select %p152_p0, %s12559_s22, %s154_s27  }
   0x7   : > { %p12653_p4 = por %p165_p2, %p164_p1  ;;  %p212_p5 = scmp.lt.s32.totalorder %s12563_s23, 3 }
   0x9   : > { %p213_p6 = pnand %p11680_p3, %p212_p5 }
   0xb   : > { %216 = sbr.rel (%p213_p6) target bundleno = 1687 (0x697), region = 44 }
  0x10   : > { %p241_p7 = scmp.lt.s32.totalorder %s12641_s24, 1  ;;  %v20333_v0 = vmov 0.0   ;;  %v20355_v1 = vmov 0   ;;  %v667_v2 = vld [vmem:[%s20328_s2] sm:$0xff]  ;;  %vm291_vm0 = vcmask 1043456   ;;  %v669_v3 = vld [vmem:[%s20328_s2 + $0x10] sm:$0xff]  ;;  %v763_v25 = vlaneseq }
  0x11   : > { %374 = vmatprep.mubr.f32.mxu0 %v20333_v0  ;;  %493 = vmatprep.mubr.f32.mxu1 %v20333_v0  ;;  %v12675_v4 = vld [vmem:[%s20327_s1] sm:$0xff]  ;;  %vm263_vm1 = vcmask 31744   ;;  %v668_v8 = vld [vmem:[%s20328_s2 + $0x8] sm:$0xff]  ;;  %v670_v12 = vld [vmem:[%s20328_s2 + $0x18] sm:$0xff]  ;;  %s12568_s10 = smov 106   ;;  %s12569_s11 = smov 85  }
  0x12   : > { %s242_s30 = scalar_select %p241_p7, %s12641_s24, 1  ;;  %12236 = vset.pattern.permute.xlu0 %v20355_v1  ;;  %12237 = vset.pattern.permute.xlu1 %v20355_v1  ;;  %v255_v13 = vld [vmem:[%s20327_s1 + $0x8] sm:$0xff]  ;;  %v671_v14 = vld [vmem:[%s20328_s2 + $0x20] sm:$0xff]  ;;  %v256_v16 = vld [vmem:[%s20327_s1 + $0x10] sm:$0xff]  ;;  %v12798_v26 = vshrl.u32 %v763_v25, 7  ;;  %vm981_vm2 = vcmask 687108  }
  0x13   : > { %677 = vperm.xlu0 %12236, %v667_v2   ;;  %687 = vperm.xlu1 %12237, %v669_v3   ;;  %v672_v15 = vld [vmem:[%s20328_s2 + $0x28] sm:$0xff]  ;;  %v673_v17 = vld [vmem:[%s20328_s2 + $0x30] sm:$0xff]  ;;  %v674_v18 = vld [vmem:[%s20328_s2 + $0x38] sm:$0xff]  ;;  %s12570_s12 = smov 86   ;;  %s12571_s13 = smov 87   ;;  %vm1142_vm4 = vcmask 875520  }
  0x14   : > { %s12183_s9 = smul.u32 48, %s242_s30  ;;  %v257_v19 = vld [vmem:[%s20327_s1 + $0x18] sm:$0xff]  ;;  %v258_v20 = vld [vmem:[%s20327_s1 + $0x20] sm:$0xff]  ;;  %v259_v21 = vld [vmem:[%s20327_s1 + $0x28] sm:$0xff]  ;;  %20876 = vst [vmem:[#allocation7_spill] sm:$0xff] %v12798_v26  ;;  %v12801_v27 = vsub.s32 4, %v12798_v26 }
  0x15   : > { %v260_v22 = vld [vmem:[%s20327_s1 + $0x30] sm:$0xff]  ;;  %v261_v23 = vld [vmem:[%s20327_s1 + $0x38] sm:$0xff]  ;;  %v262_v24 = vld [vmem:[%s20327_s1 + $0x40] sm:$0xf]  ;;  %s12573_s15 = smov 105   ;;  %vm1351_vm5 = vcmask 867328  }
  0x16   : > { %s245_s14 = scalar_lea.vmem %s20326_s0, %s12183_s9  ;;  %20877 = vst [vmem:[#allocation8_spill] sm:$0xff] %v12801_v27  ;;  %s12567_s9 = smov 107   ;;  %vm12997_vm3 = vmor %vm981_vm2, %vm291_vm0  ;;  %vm2187_vm6 = vcmask 695296   ;;  %vm1978_vm7 = vcmask 703488   ;;  %vm1769_vm8 = vcmask 711680   ;;  %vm2605_vm9 = vcmask 539648  }
  0x17   : > { %v12677_v5 = vld [vmem:[%s245_s14 + $0x8] sm:$0x1f]  ;;  %v12679_v6 = vld [vmem:[%s245_s14 + $0x18] sm:$0x1f]  ;;  %v12681_v7 = vld [vmem:[%s245_s14] sm:$0x1f]  ;;  %682 = vperm.xlu0 %12236, %v668_v8   ;;  %692 = vperm.xlu1 %12237, %v670_v12  }
  0x18   : > { %11682 = vmatprep.subr.msk.mxu0 %vm291_vm0, %v12677_v5  ;;  %11693 = vmatprep.subr.msk.mxu1 %vm291_vm0, %v12679_v6  ;;  %v12690_v9 = vld [vmem:[%s245_s14 + $0x10] sm:$0x1f]  ;;  %v12692_v10 = vld [vmem:[%s245_s14 + $0x28] sm:$0x1f]  ;;  %v12694_v11 = vld [vmem:[%s245_s14 + $0x20] sm:$0x1f]  ;;  %v12807_v29 = vrot.slane %v12677_v5, %v12801_v27  ;;  %v12811_v30 = vrot.slane %v12679_v6, %v12801_v27  ;;  %v12815_v33 = vrot.slane %v12681_v7, %v12801_v27 }
  0x19   : > { %11683 = vmatpush1.msk.msra.mxu0 %vm291_vm0, %v12681_v7  ;;  %11694 = vmatpush1.msk.msra.mxu1 %vm291_vm0, %v12690_v9  ;;  %v12819_v34 = vrot.slane %v12690_v9, %v12801_v27  ;;  %s12572_s14 = smov 66   ;;  %vm1560_vm10 = vcmask 859136   ;;  %s12574_s16 = smov 67   ;;  %vm2396_vm11 = vcmask 547840   ;;  %vm2814_vm12 = vcmask 531456  }
  0x1a   : > { %11684 = vmatmul.mubr.msk.f32.vlgmr.msra.gmra.mxu0 %vm263_vm1, %v12675_v4  ;;  %11695 = vmatmul.mubr.msk.f32.vlgmr.msra.gmra.mxu1 %vm263_vm1, %v12675_v4  ;;  %s12575_s23 = smov 65   ;;  %vm4338_vm13 = vcmask 523264   ;;  %s12576_s27 = smov 127   ;;  %vm12585_vm14 = vmmov 0   ;;  %vm7713_vm15 = vcmask 850944   ;;  %vm8895_vm2 = vcmask 687104  }
  0x1b   : > { %380 = vmatprep.mubr.f32.mxu0 %v20333_v0  ;;  %499 = vmatprep.mubr.f32.mxu1 %v20333_v0  ;;  %s12577_s8 = smov 126   ;;  %s12578_s26 = smov 125  }
  0x1c   : > { %11704 = vmatprep.subr.msk.mxu0 %vm291_vm0, %v12692_v10  ;;  %697 = vperm.xlu0 %12236, %v671_v14   ;;  %s12579_s7 = smov 124   ;;  %s12580_s20 = smov 108  }
  0x1d   : > { %11705 = vmatpush1.msk.msra.mxu0 %vm291_vm0, %v12694_v11  ;;  %702 = vperm.xlu1 %12237, %v672_v15   ;;  %s12588_s17 = smov 47   ;;  %s12591_s18 = smov 44  }
  0x1e   : > { %11685 = vmatmul.mubr.msk.f32.gmra.mxu0 %vm263_vm1, %v255_v13  ;;  %11696 = vmatmul.mubr.msk.f32.gmra.mxu1 %vm263_vm1, %v255_v13 }
  0x1f   : > { %386 = vmatprep.mubr.f32.mxu0 %v20333_v0  ;;  %505 = vmatprep.mubr.f32.mxu1 %v20333_v0 }
  0x20   : > { %707 = vperm.xlu0 %12236, %v673_v17  }
  0x21   : > { %712 = vperm.xlu1 %12237, %v674_v18  }
  0x22   : > { %11686 = vmatmul.mubr.msk.f32.gmra.mxu0 %vm263_vm1, %v256_v16  ;;  %11697 = vmatmul.mubr.msk.f32.gmra.mxu1 %vm263_vm1, %v256_v16 }
  0x23   : > { %392 = vmatprep.mubr.f32.mxu0 %v20333_v0  ;;  %511 = vmatprep.mubr.f32.mxu1 %v20333_v0 }
  0x26   : > { %11687 = vmatmul.mubr.msk.f32.gmra.mxu0 %vm263_vm1, %v257_v19  ;;  %11698 = vmatmul.mubr.msk.f32.gmra.mxu1 %vm263_vm1, %v257_v19 }
  0x27   : > { %398 = vmatprep.mubr.f32.mxu0 %v20333_v0  ;;  %517 = vmatprep.mubr.f32.mxu1 %v20333_v0 }
  0x2a   : > { %11688 = vmatmul.mubr.msk.f32.gmra.mxu0 %vm263_vm1, %v258_v20  ;;  %11699 = vmatmul.mubr.msk.f32.gmra.mxu1 %vm263_vm1, %v258_v20 }
  0x2b   : > { %404 = vmatprep.mubr.f32.mxu0 %v20333_v0  ;;  %523 = vmatprep.mubr.f32.mxu1 %v20333_v0 }
  0x2e   : > { %11689 = vmatmul.mubr.msk.f32.gmra.mxu0 %vm263_vm1, %v259_v21  ;;  %11700 = vmatmul.mubr.msk.f32.gmra.mxu1 %vm263_vm1, %v259_v21 }
  0x2f   : > { %410 = vmatprep.mubr.f32.mxu0 %v20333_v0  ;;  %529 = vmatprep.mubr.f32.mxu1 %v20333_v0 }
  0x32   : > { %11690 = vmatmul.mubr.msk.f32.gmra.mxu0 %vm263_vm1, %v260_v22  ;;  %11701 = vmatmul.mubr.msk.f32.gmra.mxu1 %vm263_vm1, %v260_v22 }
  0x33   : > { %416 = vmatprep.mubr.f32.mxu0 %v20333_v0  ;;  %535 = vmatprep.mubr.f32.mxu1 %v20333_v0 }
  0x36   : > { %11691 = vmatmul.mubr.msk.f32.gmra.mxu0 %vm263_vm1, %v261_v23  ;;  %11702 = vmatmul.mubr.msk.f32.gmra.mxu1 %vm263_vm1, %v261_v23 }
  0x37   : > { %422 = vmatprep.mubr.f32.mxu0 %v20333_v0  ;;  %541 = vmatprep.mubr.f32.mxu1 %v20333_v0 }
  0x3a   : > { %11692 = vmatmul.mubr.msk.f32.gmra.mxu0 %vm263_vm1, %v262_v24  ;;  %11703 = vmatmul.mubr.msk.f32.gmra.mxu1 %vm263_vm1, %v262_v24 }
  0x3b   : > { %612 = vmatprep.mubr.f32.mxu0 %v20333_v0 }
  0x3e   : > { %11706 = vmatmul.mubr.msk.f32.vlgmr.msra.gmra.mxu0 %vm263_vm1, %v12675_v4 }
  0x3f   : > { %618 = vmatprep.mubr.f32.mxu0 %v20333_v0 }
  0x42   : > { %11707 = vmatmul.mubr.msk.f32.gmra.mxu0 %vm263_vm1, %v255_v13 }
  0x43   : > { %624 = vmatprep.mubr.f32.mxu0 %v20333_v0 }
  0x46   : > { %11708 = vmatmul.mubr.msk.f32.gmra.mxu0 %vm263_vm1, %v256_v16 }
  0x47   : > { %630 = vmatprep.mubr.f32.mxu0 %v20333_v0 }
  0x4a   : > { %11709 = vmatmul.mubr.msk.f32.gmra.mxu0 %vm263_vm1, %v257_v19 }
  0x4b   : > { %636 = vmatprep.mubr.f32.mxu0 %v20333_v0 }
  0x4e   : > { %11710 = vmatmul.mubr.msk.f32.gmra.mxu0 %vm263_vm1, %v258_v20 }
  0x4f   : > { %642 = vmatprep.mubr.f32.mxu0 %v20333_v0 }
  0x52   : > { %11711 = vmatmul.mubr.msk.f32.gmra.mxu0 %vm263_vm1, %v259_v21 }
  0x53   : > { %648 = vmatprep.mubr.f32.mxu0 %v20333_v0 }
  0x56   : > { %11712 = vmatmul.mubr.msk.f32.gmra.mxu0 %vm263_vm1, %v260_v22 }
  0x57   : > { %654 = vmatprep.mubr.f32.mxu0 %v20333_v0 }
  0x5a   : > { %11713 = vmatmul.mubr.msk.f32.gmra.mxu0 %vm263_vm1, %v261_v23 }
  0x5b   : > { %660 = vmatprep.mubr.f32.mxu0 %v20333_v0 }
  0x5e   : > { %11714 = vmatmul.mubr.msk.f32.gmra.mxu0 %vm263_vm1, %v262_v24  ;;  %vm7959_vm1 = vcmask 719872  }
  0x8e   : > { %v12803_v28 = vpop.permute.xlu0 %677  ;;  %v12831_v48 = vpop.permute.xlu1 %687 }
  0x92   : > { %v12825_v43 = vpop.permute.xlu0 %682  ;;  %v12857_v9 = vpop.permute.xlu1 %692 }
  0x97   : > { %v12873_v22 = vpop.permute.xlu0 %697 }
  0xda   : > { %v376_v31 = vpop.f32.mrf.mxu0  ;;  %v495_v32 = vpop.f32.mrf.mxu1 }
  0xdb   : > { %v715_v35 = vadd.f32 %v12803_v28, %v376_v31  ;;  %v717_v36 = vadd.f32 %v12803_v28, %v495_v32 }
  0xdc   : > { %v378_v37 = vpop.f32.mrf.mxu0  ;;  %v497_v38 = vpop.f32.mrf.mxu1 }
  0xdd   : > { %v716_v39 = vadd.f32 %v12803_v28, %v378_v37  ;;  %v718_v40 = vadd.f32 %v12803_v28, %v497_v38  ;;  %v787_v44 = vmul.f32 %v12815_v33, %v715_v35  ;;  %v789_v45 = vmul.f32 %v12819_v34, %v717_v36 }
  0xde   : > { %v382_v41 = vpop.f32.mrf.mxu0  ;;  %v501_v42 = vpop.f32.mrf.mxu1 }
  0xdf   : > { %v788_v46 = vmul.f32 %v12807_v29, %v716_v39  ;;  %v790_v47 = vmul.f32 %v12811_v30, %v718_v40  ;;  %v721_v49 = vadd.f32 %v12825_v43, %v382_v41  ;;  %v723_v50 = vadd.f32 %v12825_v43, %v501_v42 }
  0xe0   : > { %v384_v51 = vpop.f32.mrf.mxu0  ;;  %v503_v52 = vpop.f32.mrf.mxu1 }
  0xe1   : > { %v12835_v53 = vpack.c.bf16 %v788_v46, %v787_v44  ;;  %v12837_v54 = vpack.c.bf16 %v790_v47, %v789_v45  ;;  %v722_v55 = vadd.f32 %v12825_v43, %v384_v51  ;;  %v724_v56 = vadd.f32 %v12825_v43, %v503_v52  ;;  %v12895_v47 = vpop.permute.xlu1 %702 }
  0xe2   : > { %v388_v57 = vpop.f32.mrf.mxu0  ;;  %v507_v58 = vpop.f32.mrf.mxu1  ;;  %v793_v61 = vmul.f32 %v12815_v33, %v721_v49  ;;  %v795_v62 = vmul.f32 %v12819_v34, %v723_v50 }
  0xe3   : > { %979 = vst [vmem:[#allocation2] sm:$0xff] %v12835_v53  ;;  %980 = vst [vmem:[#allocation2 + $0x8] sm:$0xff] %v12837_v54  ;;  %1070 = vrot.lane.b32.xlu1 %v12837_v54, %s12567_s9  ;;  %1068 = vrot.lane.b32.xlu0 %v12835_v53, %s12567_s9  ;;  %v727_v59 = vadd.f32 %v12831_v48, %v388_v57  ;;  %v729_v60 = vadd.f32 %v12831_v48, %v507_v58 }
  0xe4   : > { %v794_v63 = vmul.f32 %v12807_v29, %v722_v55  ;;  %v796_v2 = vmul.f32 %v12811_v30, %v724_v56  ;;  %v390_v3 = vpop.f32.mrf.mxu0  ;;  %v509_v4 = vpop.f32.mrf.mxu1 }
  0xe5   : > { %v728_v5 = vadd.f32 %v12831_v48, %v390_v3  ;;  %v730_v6 = vadd.f32 %v12831_v48, %v509_v4  ;;  %v799_v7 = vmul.f32 %v12815_v33, %v727_v59  ;;  %v801_v8 = vmul.f32 %v12819_v34, %v729_v60 }
  0xe6   : > { %v12859_v12 = vpack.c.bf16 %v794_v63, %v793_v61  ;;  %v12861_v13 = vpack.c.bf16 %v796_v2, %v795_v62  ;;  %v394_v14 = vpop.f32.mrf.mxu0  ;;  %v513_v15 = vpop.f32.mrf.mxu1 }
  0xe7   : > { %1280 = vrot.lane.b32.xlu1 %v12837_v54, %s12568_s10  ;;  %1278 = vrot.lane.b32.xlu0 %v12835_v53, %s12568_s10  ;;  %v800_v16 = vmul.f32 %v12807_v29, %v728_v5  ;;  %v802_v17 = vmul.f32 %v12811_v30, %v730_v6  ;;  %v733_v18 = vadd.f32 %v12857_v9, %v394_v14  ;;  %v12913_v63 = vpop.permute.xlu0 %707 }
  0xe8   : > { %984 = vst [vmem:[#allocation2 + $0x18] sm:$0xff] %v12859_v12  ;;  %985 = vst [vmem:[#allocation2 + $0x20] sm:$0xff] %v12861_v13  ;;  %v396_v19 = vpop.f32.mrf.mxu0  ;;  %v515_v20 = vpop.f32.mrf.mxu1  ;;  %v735_v21 = vadd.f32 %v12857_v9, %v513_v15 }
  0xe9   : > { %v12875_v23 = vpack.c.bf16 %v800_v16, %v799_v7  ;;  %v12877_v24 = vpack.c.bf16 %v802_v17, %v801_v8  ;;  %v734_v25 = vadd.f32 %v12857_v9, %v396_v19  ;;  %v736_v31 = vadd.f32 %v12857_v9, %v515_v20 }
  0xea   : > { %v400_v32 = vpop.f32.mrf.mxu0  ;;  %v519_v35 = vpop.f32.mrf.mxu1  ;;  %v805_v36 = vmul.f32 %v12815_v33, %v733_v18  ;;  %v807_v37 = vmul.f32 %v12819_v34, %v735_v21 }
  0xeb   : > { %v739_v38 = vadd.f32 %v12873_v22, %v400_v32  ;;  %v741_v39 = vadd.f32 %v12873_v22, %v519_v35  ;;  %2116 = vrot.lane.b32.xlu1 %v12837_v54, %s12569_s11  ;;  %2114 = vrot.lane.b32.xlu0 %v12835_v53, %s12569_s11  ;;  %987 = vst [vmem:[#allocation2 + $0x30] sm:$0xff] %v12875_v23  ;;  %988 = vst [vmem:[#allocation2 + $0x38] sm:$0xff] %v12877_v24  ;;  %v12932_v18 = vpop.permute.xlu1 %712 }
  0xec   : > { %v806_v40 = vmul.f32 %v12807_v29, %v734_v25  ;;  %v402_v41 = vpop.f32.mrf.mxu0  ;;  %v521_v42 = vpop.f32.mrf.mxu1  ;;  %v808_v44 = vmul.f32 %v12811_v30, %v736_v31 }
  0xed   : > { %v740_v45 = vadd.f32 %v12873_v22, %v402_v41  ;;  %v742_v46 = vadd.f32 %v12873_v22, %v521_v42  ;;  %v811_v49 = vmul.f32 %v12815_v33, %v739_v38  ;;  %v813_v50 = vmul.f32 %v12819_v34, %v741_v39 }
  0xee   : > { %v406_v51 = vpop.f32.mrf.mxu0  ;;  %v525_v52 = vpop.f32.mrf.mxu1  ;;  %v12899_v55 = vpack.c.bf16 %v806_v40, %v805_v36  ;;  %v12901_v56 = vpack.c.bf16 %v808_v44, %v807_v37 }
  0xef   : > { %v812_v57 = vmul.f32 %v12807_v29, %v740_v45  ;;  %v814_v58 = vmul.f32 %v12811_v30, %v742_v46  ;;  %1907 = vrot.lane.b32.xlu1 %v12837_v54, %s12570_s12  ;;  %1905 = vrot.lane.b32.xlu0 %v12835_v53, %s12570_s12  ;;  %v745_v59 = vadd.f32 %v12895_v47, %v406_v51 }
  0xf0   : > { %v408_v60 = vpop.f32.mrf.mxu0  ;;  %v527_v61 = vpop.f32.mrf.mxu1  ;;  %990 = vst [vmem:[#allocation2 + $0x48] sm:$0xff] %v12899_v55  ;;  %991 = vst [vmem:[#allocation2 + $0x50] sm:$0xff] %v12901_v56  ;;  %v747_v62 = vadd.f32 %v12895_v47, %v525_v52 }
  0xf1   : > { %v12915_v2 = vpack.c.bf16 %v812_v57, %v811_v49  ;;  %v12917_v3 = vpack.c.bf16 %v814_v58, %v813_v50  ;;  %v746_v4 = vadd.f32 %v12895_v47, %v408_v60  ;;  %v748_v5 = vadd.f32 %v12895_v47, %v527_v61 }
  0xf2   : > { %v412_v6 = vpop.f32.mrf.mxu0  ;;  %v531_v7 = vpop.f32.mrf.mxu1  ;;  %v817_v8 = vmul.f32 %v12815_v33, %v745_v59  ;;  %v819_v14 = vmul.f32 %v12819_v34, %v747_v62 }
  0xf3   : > { %993 = vst [vmem:[#allocation2 + $0x60] sm:$0xff] %v12915_v2  ;;  %994 = vst [vmem:[#allocation2 + $0x68] sm:$0xff] %v12917_v3  ;;  %v751_v15 = vadd.f32 %v12913_v63, %v412_v6  ;;  %v753_v16 = vadd.f32 %v12913_v63, %v531_v7  ;;  %1698 = vrot.lane.b32.xlu1 %v12837_v54, %s12571_s13  ;;  %1696 = vrot.lane.b32.xlu0 %v12835_v53, %s12571_s13 }
  0xf4   : > { %v818_v17 = vmul.f32 %v12807_v29, %v746_v4  ;;  %v414_v19 = vpop.f32.mrf.mxu0  ;;  %v533_v20 = vpop.f32.mrf.mxu1  ;;  %v820_v21 = vmul.f32 %v12811_v30, %v748_v5  ;;  %v12975_v6 = vrot.slane %v12692_v10, %v12801_v27 }
  0xf5   : > { %v752_v25 = vadd.f32 %v12913_v63, %v414_v19  ;;  %v754_v31 = vadd.f32 %v12913_v63, %v533_v20  ;;  %v823_v32 = vmul.f32 %v12815_v33, %v751_v15  ;;  %v825_v35 = vmul.f32 %v12819_v34, %v753_v16 }
  0xf6   : > { %v418_v36 = vpop.f32.mrf.mxu0  ;;  %v12939_v37 = vpack.c.bf16 %v818_v17, %v817_v8  ;;  %v12941_v38 = vpack.c.bf16 %v820_v21, %v819_v14  ;;  %v537_v39 = vpop.f32.mrf.mxu1 }
  0xf7   : > { %v824_v40 = vmul.f32 %v12807_v29, %v752_v25  ;;  %v826_v41 = vmul.f32 %v12811_v30, %v754_v31  ;;  %2534 = vrot.lane.b32.xlu1 %v12837_v54, %s12572_s14  ;;  %2532 = vrot.lane.b32.xlu0 %v12835_v53, %s12572_s14  ;;  %v757_v42 = vadd.f32 %v12932_v18, %v418_v36 }
  0xf8   : > { %v420_v44 = vpop.f32.mrf.mxu0  ;;  %996 = vst [vmem:[#allocation2 + $0x78] sm:$0xff] %v12939_v37  ;;  %997 = vst [vmem:[#allocation2 + $0x80] sm:$0xff] %v12941_v38  ;;  %v539_v45 = vpop.f32.mrf.mxu1  ;;  %v759_v46 = vadd.f32 %v12932_v18, %v537_v39 }
  0xf9   : > { %v12953_v49 = vpack.c.bf16 %v824_v40, %v823_v32  ;;  %v12955_v50 = vpack.c.bf16 %v826_v41, %v825_v35  ;;  %v758_v51 = vadd.f32 %v12932_v18, %v420_v44  ;;  %v829_v52 = vmul.f32 %v12815_v33, %v757_v42 }
  0xfa   : > { %v424_v57 = vpop.f32.mrf.mxu0  ;;  %v760_v58 = vadd.f32 %v12932_v18, %v539_v45  ;;  %v831_v59 = vmul.f32 %v12819_v34, %v759_v46 }
  0xfb   : > { %999 = vst [vmem:[#allocation2 + $0x90] sm:$0xff] %v12953_v49  ;;  %1000 = vst [vmem:[#allocation2 + $0x98] sm:$0xff] %v12955_v50  ;;  %1489 = vrot.lane.b32.xlu1 %v12837_v54, %s12573_s15  ;;  %1487 = vrot.lane.b32.xlu0 %v12835_v53, %s12573_s15  ;;  %v830_v60 = vmul.f32 %v12807_v29, %v758_v51  ;;  %v12979_v54 = vrot.slane %v12694_v11, %v12801_v27  ;;  %v13554_v27 = vld [vmem:[#allocation2 + $0x60] sm:$0xff] }
  0xfc   : > { %v426_v61 = vpop.f32.mrf.mxu0  ;;  %v832_v33 = vmul.f32 %v12811_v30, %v760_v58 }
  0xfd   : > { %v1011_v62 = vcombine.low %v424_v57, %v426_v61  ;;  %v12969_v4 = vpack.c.bf16 %v830_v60, %v829_v52 }
  0xfe   : > { %v614_v34 = vpop.f32.mrf.mxu0  ;;  %v12971_v5 = vpack.c.bf16 %v832_v33, %v831_v59 }
  0xff   : > { %1017 = vst [vmem:[#allocation3] sm:$0xff] %v1011_v62  ;;  %v719_v29 = vadd.f32 %v12803_v28, %v614_v34  ;;  %1076 = vrot.lane.b32.xlu0 %v12861_v13, %s12567_s9  ;;  %1074 = vrot.lane.b32.xlu1 %v12859_v12, %s12567_s9  ;;  %1002 = vst [vmem:[#allocation2 + $0xa8] sm:$0xff] %v12969_v4 }
 0x100   : > { %v616_v30 = vpop.f32.mrf.mxu0  ;;  %1003 = vst [vmem:[#allocation2 + $0xb0] sm:$0xff] %v12971_v5 }
 0x101   : > { %v720_v10 = vadd.f32 %v12803_v28, %v616_v30  ;;  %v791_v11 = vmul.f32 %v12979_v54, %v719_v29 }
 0x102   : > { %v620_v53 = vpop.f32.mrf.mxu0 }
 0x103   : > { %v792_v7 = vmul.f32 %v12975_v6, %v720_v10  ;;  %v725_v8 = vadd.f32 %v12825_v43, %v620_v53  ;;  %1286 = vrot.lane.b32.xlu0 %v12861_v13, %s12568_s10  ;;  %1284 = vrot.lane.b32.xlu1 %v12859_v12, %s12568_s10 }
 0x104   : > { %v622_v28 = vpop.f32.mrf.mxu0 }
 0x105   : > { %v11988_v15 = vpack.c.bf16 %v792_v7, %v791_v11  ;;  %v726_v16 = vadd.f32 %v12825_v43, %v622_v28  ;;  %v797_v19 = vmul.f32 %v12979_v54, %v725_v8 }
 0x106   : > { %v626_v17 = vpop.f32.mrf.mxu0 }
 0x107   : > { %983 = vst.msk [vmem:[#allocation2 + $0x10] sm:$0xff] %vm12997_vm3, %v11988_v15  ;;  %v798_v20 = vmul.f32 %v12975_v6, %v726_v16  ;;  %v731_v21 = vadd.f32 %v12831_v48, %v626_v17  ;;  %2120 = vrot.lane.b32.xlu0 %v12859_v12, %s12569_s11  ;;  %2122 = vrot.lane.b32.xlu1 %v12861_v13, %s12569_s11 }
 0x108   : > { %v628_v25 = vpop.f32.mrf.mxu0 }
 0x109   : > { %v11991_v31 = vpack.c.bf16 %v798_v20, %v797_v19  ;;  %v732_v43 = vadd.f32 %v12831_v48, %v628_v25  ;;  %v803_v32 = vmul.f32 %v12979_v54, %v731_v21 }
 0x10a   : > { %v632_v35 = vpop.f32.mrf.mxu0 }
 0x10b   : > { %986 = vst.msk [vmem:[#allocation2 + $0x28] sm:$0xff] %vm12997_vm3, %v11991_v31  ;;  %v804_v36 = vmul.f32 %v12975_v6, %v732_v43  ;;  %v737_v39 = vadd.f32 %v12857_v9, %v632_v35  ;;  %1911 = vrot.lane.b32.xlu0 %v12859_v12, %s12570_s12  ;;  %1913 = vrot.lane.b32.xlu1 %v12861_v13, %s12570_s12 }
 0x10c   : > { %v634_v40 = vpop.f32.mrf.mxu0 }
 0x10d   : > { %v11994_v41 = vpack.c.bf16 %v804_v36, %v803_v32  ;;  %v738_v48 = vadd.f32 %v12857_v9, %v634_v40  ;;  %v809_v42 = vmul.f32 %v12979_v54, %v737_v39 }
 0x10e   : > { %v638_v44 = vpop.f32.mrf.mxu0 }
 0x10f   : > { %989 = vst.msk [vmem:[#allocation2 + $0x40] sm:$0xff] %vm12997_vm3, %v11994_v41  ;;  %v810_v45 = vmul.f32 %v12975_v6, %v738_v48  ;;  %v743_v46 = vadd.f32 %v12873_v22, %v638_v44  ;;  %1702 = vrot.lane.b32.xlu0 %v12859_v12, %s12571_s13  ;;  %1704 = vrot.lane.b32.xlu1 %v12861_v13, %s12571_s13 }
 0x110   : > { %v640_v51 = vpop.f32.mrf.mxu0 }
 0x111   : > { %v11997_v52 = vpack.c.bf16 %v810_v45, %v809_v42  ;;  %v744_v9 = vadd.f32 %v12873_v22, %v640_v51  ;;  %v815_v58 = vmul.f32 %v12979_v54, %v743_v46 }
 0x112   : > { %v644_v57 = vpop.f32.mrf.mxu0 }
 0x113   : > { %992 = vst.msk [vmem:[#allocation2 + $0x58] sm:$0xff] %vm12997_vm3, %v11997_v52  ;;  %v816_v59 = vmul.f32 %v12975_v6, %v744_v9  ;;  %v749_v60 = vadd.f32 %v12895_v47, %v644_v57  ;;  %2538 = vrot.lane.b32.xlu0 %v12859_v12, %s12572_s14  ;;  %2540 = vrot.lane.b32.xlu1 %v12861_v13, %s12572_s14 }
 0x114   : > { %v646_v61 = vpop.f32.mrf.mxu0 }
 0x115   : > { %v12000_v33 = vpack.c.bf16 %v816_v59, %v815_v58  ;;  %v821_v22 = vmul.f32 %v12979_v54, %v749_v60  ;;  %v750_v62 = vadd.f32 %v12895_v47, %v646_v61 }
 0x116   : > { %v650_v34 = vpop.f32.mrf.mxu0 }
 0x117   : > { %995 = vst.msk [vmem:[#allocation2 + $0x70] sm:$0xff] %vm12997_vm3, %v12000_v33  ;;  %v822_v29 = vmul.f32 %v12975_v6, %v750_v62  ;;  %v755_v30 = vadd.f32 %v12913_v63, %v650_v34  ;;  %1493 = vrot.lane.b32.xlu0 %v12859_v12, %s12573_s15  ;;  %1495 = vrot.lane.b32.xlu1 %v12861_v13, %s12573_s15 }
 0x118   : > { %v652_v10 = vpop.f32.mrf.mxu0 }
 0x119   : > { %v12003_v53 = vpack.c.bf16 %v822_v29, %v821_v22  ;;  %v756_v11 = vadd.f32 %v12913_v63, %v652_v10  ;;  %v827_v47 = vmul.f32 %v12979_v54, %v755_v30 }
 0x11a   : > { %v656_v7 = vpop.f32.mrf.mxu0 }
 0x11b   : > { %998 = vst.msk [vmem:[#allocation2 + $0x88] sm:$0xff] %vm12997_vm3, %v12003_v53  ;;  %v828_v8 = vmul.f32 %v12975_v6, %v756_v11  ;;  %v761_v28 = vadd.f32 %v12932_v18, %v656_v7  ;;  %1082 = vrot.lane.b32.xlu1 %v12877_v24, %s12567_s9  ;;  %1080 = vrot.lane.b32.xlu0 %v12875_v23, %s12567_s9 }
 0x11c   : > { %v658_v12 = vpop.f32.mrf.mxu0 }
 0x11d   : > { %v12006_v13 = vpack.c.bf16 %v828_v8, %v827_v47  ;;  %v762_v63 = vadd.f32 %v12932_v18, %v658_v12  ;;  %v833_v15 = vmul.f32 %v12979_v54, %v761_v28 }
 0x11f   : > { %1001 = vst.msk [vmem:[#allocation2 + $0xa0] sm:$0xff] %vm12997_vm3, %v12006_v13  ;;  %v834_v16 = vmul.f32 %v12975_v6, %v762_v63  ;;  %1292 = vrot.lane.b32.xlu1 %v12877_v24, %s12568_s10  ;;  %1290 = vrot.lane.b32.xlu0 %v12875_v23, %s12568_s10 }
 0x121   : > { %v12009_v17 = vpack.c.bf16 %v834_v16, %v833_v15 }
 0x123   : > { %1004 = vst.msk [vmem:[#allocation2 + $0xb8] sm:$0xff] %vm12997_vm3, %v12009_v17  ;;  %2128 = vrot.lane.b32.xlu1 %v12877_v24, %s12569_s11  ;;  %2126 = vrot.lane.b32.xlu0 %v12875_v23, %s12569_s11 }
 0x127   : > { %1919 = vrot.lane.b32.xlu1 %v12877_v24, %s12570_s12  ;;  %1917 = vrot.lane.b32.xlu0 %v12875_v23, %s12570_s12 }
 0x12b   : > { %1710 = vrot.lane.b32.xlu1 %v12877_v24, %s12571_s13  ;;  %1708 = vrot.lane.b32.xlu0 %v12875_v23, %s12571_s13 }
 0x12f   : > { %2546 = vrot.lane.b32.xlu1 %v12877_v24, %s12572_s14  ;;  %2544 = vrot.lane.b32.xlu0 %v12875_v23, %s12572_s14 }
 0x133   : > { %1501 = vrot.lane.b32.xlu1 %v12877_v24, %s12573_s15  ;;  %1499 = vrot.lane.b32.xlu0 %v12875_v23, %s12573_s15 }
 0x137   : > { %1088 = vrot.lane.b32.xlu0 %v12901_v56, %s12567_s9  ;;  %1086 = vrot.lane.b32.xlu1 %v12899_v55, %s12567_s9 }
 0x13b   : > { %1298 = vrot.lane.b32.xlu0 %v12901_v56, %s12568_s10  ;;  %1296 = vrot.lane.b32.xlu1 %v12899_v55, %s12568_s10 }
 0x13f   : > { %2132 = vrot.lane.b32.xlu0 %v12899_v55, %s12569_s11  ;;  %2134 = vrot.lane.b32.xlu1 %v12901_v56, %s12569_s11 }
 0x143   : > { %1923 = vrot.lane.b32.xlu0 %v12899_v55, %s12570_s12  ;;  %1925 = vrot.lane.b32.xlu1 %v12901_v56, %s12570_s12 }
 0x147   : > { %1714 = vrot.lane.b32.xlu0 %v12899_v55, %s12571_s13  ;;  %1716 = vrot.lane.b32.xlu1 %v12901_v56, %s12571_s13 }
 0x14b   : > { %2550 = vrot.lane.b32.xlu0 %v12899_v55, %s12572_s14  ;;  %2552 = vrot.lane.b32.xlu1 %v12901_v56, %s12572_s14 }
 0x14f   : > { %1505 = vrot.lane.b32.xlu0 %v12899_v55, %s12573_s15  ;;  %1507 = vrot.lane.b32.xlu1 %v12901_v56, %s12573_s15 }
 0x153   : > { %1094 = vrot.lane.b32.xlu1 %v12917_v3, %s12567_s9  ;;  %1092 = vrot.lane.b32.xlu0 %v12915_v2, %s12567_s9 }
 0x155   : > { %v13124_v23 = vpop.permute.xlu1 %1070  ;;  %v1069_v24 = vpop.permute.xlu0 %1068 }
 0x156   : > { %v20369_v18 = vrot.slane %v13124_v23, 4  ;;  %v1116_v6 = vrot.slane %v1069_v24, 4 }
 0x157   : > { %1304 = vrot.lane.b32.xlu1 %v12917_v3, %s12568_s10  ;;  %1302 = vrot.lane.b32.xlu0 %v12915_v2, %s12568_s10 }
 0x158   : > { %v1141_v55 = vsel %vm291_vm0, %v1116_v6, %v20369_v18 }
 0x159   : > { %v1143_v56 = vsel %vm1142_vm4, %v1069_v24, %v1141_v55  ;;  %v13135_v54 = vpop.permute.xlu1 %1280  ;;  %v1279_v19 = vpop.permute.xlu0 %1278 }
 0x15a   : > { %1206 = vst [vmem:[#allocation4] sm:$0xff] %v1143_v56  ;;  %v20366_v20 = vrot.slane %v13135_v54, 4  ;;  %v1326_v21 = vrot.slane %v1279_v19, 4 }
 0x15b   : > { %2140 = vrot.lane.b32.xlu1 %v12917_v3, %s12569_s11  ;;  %2138 = vrot.lane.b32.xlu0 %v12915_v2, %s12569_s11 }
 0x15c   : > { %v1350_v25 = vsel %vm291_vm0, %v1326_v21, %v20366_v20  ;;  %v13524_v20 = vld [vmem:[#allocation2 + $0x68] sm:$0xff] }
 0x15d   : > { %v1352_v31 = vsel %vm1351_vm5, %v1279_v19, %v1350_v25  ;;  %v13146_v43 = vpop.permute.xlu1 %2116  ;;  %v2115_v32 = vpop.permute.xlu0 %2114 }
 0x15e   : > { %20880 = vst [vmem:[#allocation9_spill] sm:$0xff] %v13146_v43  ;;  %1415 = vst [vmem:[#allocation4 + $0xa0] sm:$0xff] %v1352_v31  ;;  %v20346_v35 = vrot.slane %v13146_v43, 4  ;;  %v2162_v36 = vrot.slane %v2115_v32, 4 }
 0x15f   : > { %1931 = vrot.lane.b32.xlu1 %v12917_v3, %s12570_s12  ;;  %1929 = vrot.lane.b32.xlu0 %v12915_v2, %s12570_s12 }
 0x160   : > { %v2186_v39 = vsel %vm291_vm0, %v2162_v36, %v20346_v35 }
 0x161   : > { %v2188_v40 = vsel %vm2187_vm6, %v2115_v32, %v2186_v39  ;;  %v13157_v41 = vpop.permute.xlu1 %1907  ;;  %v1906_v48 = vpop.permute.xlu0 %1905 }
 0x162   : > { %20881 = vst [vmem:[#allocation10_spill] sm:$0xff] %v13157_v41  ;;  %2251 = vst [vmem:[#allocation4 + $0x320] sm:$0xff] %v2188_v40  ;;  %v20339_v42 = vrot.slane %v13157_v41, 4  ;;  %v1953_v44 = vrot.slane %v1906_v48, 4  ;;  %v13595_v41 = vld [vmem:[#allocation2 + $0xb8] sm:$0xff] }
 0x163   : > { %1722 = vrot.lane.b32.xlu1 %v12917_v3, %s12571_s13  ;;  %1720 = vrot.lane.b32.xlu0 %v12915_v2, %s12571_s13 }
 0x164   : > { %v1977_v45 = vsel %vm291_vm0, %v1953_v44, %v20339_v42  ;;  %v13541_v42 = vld [vmem:[#allocation2 + $0x88] sm:$0xff] }
 0x165   : > { %v1979_v46 = vsel %vm1978_vm7, %v1906_v48, %v1977_v45  ;;  %v13168_v51 = vpop.permute.xlu1 %1698  ;;  %v1697_v52 = vpop.permute.xlu0 %1696 }
 0x166   : > { %20882 = vst [vmem:[#allocation11_spill] sm:$0xff] %v13168_v51  ;;  %2042 = vst [vmem:[#allocation4 + $0x280] sm:$0xff] %v1979_v46  ;;  %v20352_v9 = vrot.slane %v13168_v51, 4  ;;  %v1744_v57 = vrot.slane %v1697_v52, 4 }
 0x167   : > { %2558 = vrot.lane.b32.xlu1 %v12917_v3, %s12572_s14  ;;  %2556 = vrot.lane.b32.xlu0 %v12915_v2, %s12572_s14 }
 0x168   : > { %v1768_v58 = vsel %vm291_vm0, %v1744_v57, %v20352_v9  ;;  %v13466_v9 = vld [vmem:[#allocation2 + $0x28] sm:$0xff] }
 0x169   : > { %v1770_v59 = vsel %vm1769_vm8, %v1697_v52, %v1768_v58  ;;  %v13179_v60 = vpop.permute.xlu1 %2534  ;;  %v2533_v61 = vpop.permute.xlu0 %2532 }
 0x16a   : > { %20883 = vst [vmem:[#allocation12_spill] sm:$0xff] %v13179_v60  ;;  %1833 = vst [vmem:[#allocation4 + $0x1e0] sm:$0xff] %v1770_v59  ;;  %v20336_v33 = vrot.slane %v13179_v60, 4  ;;  %v2580_v22 = vrot.slane %v2533_v61, 4  ;;  %v13571_v60 = vld [vmem:[#allocation2 + $0xa0] sm:$0xff] }
 0x16b   : > { %1513 = vrot.lane.b32.xlu1 %v12917_v3, %s12573_s15  ;;  %1511 = vrot.lane.b32.xlu0 %v12915_v2, %s12573_s15 }
 0x16c   : > { %v2604_v62 = vsel %vm291_vm0, %v2580_v22, %v20336_v33 }
 0x16d   : > { %v2606_v34 = vsel %vm2605_vm9, %v2533_v61, %v2604_v62  ;;  %v13190_v29 = vpop.permute.xlu1 %1489  ;;  %v1488_v30 = vpop.permute.xlu0 %1487 }
 0x16e   : > { %20884 = vst [vmem:[#allocation13_spill] sm:$0xff] %v13190_v29  ;;  %2669 = vst [vmem:[#allocation4 + $0x460] sm:$0xff] %v2606_v34  ;;  %v20342_v10 = vrot.slane %v13190_v29, 4  ;;  %v1535_v53 = vrot.slane %v1488_v30, 4 }
 0x16f   : > { %1100 = vrot.lane.b32.xlu0 %v12941_v38, %s12567_s9  ;;  %1098 = vrot.lane.b32.xlu1 %v12939_v37, %s12567_s9 }
 0x170   : > { %v1559_v2 = vsel %vm291_vm0, %v1535_v53, %v20342_v10 }
 0x171   : > { %v1561_v3 = vsel %vm1560_vm10, %v1488_v30, %v1559_v2  ;;  %v13201_v11 = vpop.permute.xlu0 %1076  ;;  %v1075_v7 = vpop.permute.xlu1 %1074 }
 0x172   : > { %1624 = vst [vmem:[#allocation4 + $0x140] sm:$0xff] %v1561_v3  ;;  %v20367_v47 = vrot.slane %v13201_v11, 4  ;;  %v1119_v8 = vrot.slane %v1075_v7, 4 }
 0x173   : > { %1310 = vrot.lane.b32.xlu0 %v12941_v38, %s12568_s10  ;;  %1308 = vrot.lane.b32.xlu1 %v12939_v37, %s12568_s10 }
 0x174   : > { %v1147_v28 = vsel %vm291_vm0, %v1119_v8, %v20367_v47  ;;  %v13526_v47 = vld [vmem:[#allocation2 + $0x70] sm:$0xff] }
 0x175   : > { %v1148_v12 = vsel %vm1142_vm4, %v1075_v7, %v1147_v28  ;;  %v13212_v13 = vpop.permute.xlu0 %1286  ;;  %v1285_v63 = vpop.permute.xlu1 %1284 }
 0x176   : > { %1209 = vst [vmem:[#allocation4 + $0x14] sm:$0xff] %v1148_v12  ;;  %v20365_v15 = vrot.slane %v13212_v13, 4  ;;  %v1329_v16 = vrot.slane %v1285_v63, 4 }
 0x177   : > { %2144 = vrot.lane.b32.xlu0 %v12939_v37, %s12569_s11  ;;  %2146 = vrot.lane.b32.xlu1 %v12941_v38, %s12569_s11 }
 0x178   : > { %v1356_v17 = vsel %vm291_vm0, %v1329_v16, %v20365_v15 }
 0x179   : > { %v1357_v24 = vsel %vm1351_vm5, %v1285_v63, %v1356_v17  ;;  %v2121_v6 = vpop.permute.xlu0 %2120  ;;  %v13223_v55 = vpop.permute.xlu1 %2122 }
 0x17a   : > { %20885 = vst [vmem:[#allocation14_spill] sm:$0xff] %v13223_v55  ;;  %1418 = vst [vmem:[#allocation4 + $0xb4] sm:$0xff] %v1357_v24  ;;  %v2165_v56 = vrot.slane %v2121_v6, 4  ;;  %v20345_v19 = vrot.slane %v13223_v55, 4 }
 0x17b   : > { %1935 = vrot.lane.b32.xlu0 %v12939_v37, %s12570_s12  ;;  %1937 = vrot.lane.b32.xlu1 %v12941_v38, %s12570_s12 }
 0x17c   : > { %v2192_v21 = vsel %vm291_vm0, %v2165_v56, %v20345_v19 }
 0x17d   : > { %v2193_v25 = vsel %vm2187_vm6, %v2121_v6, %v2192_v21  ;;  %v1912_v31 = vpop.permute.xlu0 %1911  ;;  %v13234_v32 = vpop.permute.xlu1 %1913 }
 0x17e   : > { %20886 = vst [vmem:[#allocation15_spill] sm:$0xff] %v13234_v32  ;;  %2254 = vst [vmem:[#allocation4 + $0x334] sm:$0xff] %v2193_v25  ;;  %v1956_v36 = vrot.slane %v1912_v31, 4  ;;  %v20338_v39 = vrot.slane %v13234_v32, 4  ;;  %v13593_v32 = vld [vmem:[#allocation2 + $0x78] sm:$0xff] }
 0x17f   : > { %1726 = vrot.lane.b32.xlu0 %v12939_v37, %s12571_s13  ;;  %1728 = vrot.lane.b32.xlu1 %v12941_v38, %s12571_s13 }
 0x180   : > { %v1983_v40 = vsel %vm291_vm0, %v1956_v36, %v20338_v39 }
 0x181   : > { %v1984_v48 = vsel %vm1978_vm7, %v1912_v31, %v1983_v40  ;;  %v1703_v44 = vpop.permute.xlu0 %1702  ;;  %v13245_v45 = vpop.permute.xlu1 %1704 }
 0x182   : > { %20887 = vst [vmem:[#allocation16_spill] sm:$0xff] %v13245_v45  ;;  %2045 = vst [vmem:[#allocation4 + $0x294] sm:$0xff] %v1984_v48  ;;  %v1747_v46 = vrot.slane %v1703_v44, 4  ;;  %v20351_v52 = vrot.slane %v13245_v45, 4  ;;  %v13678_v45 = vld [vmem:[#allocation2 + $0x20] sm:$0xff] }
 0x183   : > { %2562 = vrot.lane.b32.xlu0 %v12939_v37, %s12572_s14  ;;  %2564 = vrot.lane.b32.xlu1 %v12941_v38, %s12572_s14 }
 0x184   : > { %v1774_v57 = vsel %vm291_vm0, %v1747_v46, %v20351_v52  ;;  %v13464_v52 = vld [vmem:[#allocation2 + $0x10] sm:$0xff] }
 0x185   : > { %v1775_v58 = vsel %vm1769_vm8, %v1703_v44, %v1774_v57  ;;  %v2539_v59 = vpop.permute.xlu0 %2538  ;;  %v13256_v61 = vpop.permute.xlu1 %2540 }
 0x186   : > { %20888 = vst [vmem:[#allocation17_spill] sm:$0xff] %v13256_v61  ;;  %1836 = vst [vmem:[#allocation4 + $0x1f4] sm:$0xff] %v1775_v58  ;;  %v2583_v22 = vrot.slane %v2539_v59, 4  ;;  %v20335_v62 = vrot.slane %v13256_v61, 4  ;;  %v13569_v61 = vld [vmem:[#allocation2 + $0x80] sm:$0xff] }
 0x187   : > { %1517 = vrot.lane.b32.xlu0 %v12939_v37, %s12573_s15  ;;  %1519 = vrot.lane.b32.xlu1 %v12941_v38, %s12573_s15 }
 0x188   : > { %v2610_v34 = vsel %vm291_vm0, %v2583_v22, %v20335_v62 }
 0x189   : > { %v2611_v30 = vsel %vm2605_vm9, %v2539_v59, %v2610_v34  ;;  %v1494_v53 = vpop.permute.xlu0 %1493  ;;  %v13267_v2 = vpop.permute.xlu1 %1495 }
 0x18a   : > { %20889 = vst [vmem:[#allocation18_spill] sm:$0xff] %v13267_v2  ;;  %2672 = vst [vmem:[#allocation4 + $0x474] sm:$0xff] %v2611_v30  ;;  %v1538_v3 = vrot.slane %v1494_v53, 4  ;;  %v20341_v7 = vrot.slane %v13267_v2, 4  ;;  %v13631_v2 = vld [vmem:[#allocation2 + $0x48] sm:$0xff] }
 0x18b   : > { %1106 = vrot.lane.b32.xlu1 %v12955_v50, %s12567_s9  ;;  %1104 = vrot.lane.b32.xlu0 %v12953_v49, %s12567_s9 }
 0x18c   : > { %v1565_v37 = vsel %vm291_vm0, %v1538_v3, %v20341_v7 }
 0x18d   : > { %v1566_v38 = vsel %vm1560_vm10, %v1494_v53, %v1565_v37  ;;  %v13278_v8 = vpop.permute.xlu1 %1082  ;;  %v1081_v28 = vpop.permute.xlu0 %1080 }
 0x18e   : > { %1627 = vst [vmem:[#allocation4 + $0x154] sm:$0xff] %v1566_v38  ;;  %v20363_v12 = vrot.slane %v13278_v8, 4  ;;  %v1122_v63 = vrot.slane %v1081_v28, 4 }
 0x18f   : > { %1316 = vrot.lane.b32.xlu1 %v12955_v50, %s12568_s10  ;;  %1314 = vrot.lane.b32.xlu0 %v12953_v49, %s12568_s10 }
 0x190   : > { %v1152_v16 = vsel %vm291_vm0, %v1122_v63, %v20363_v12 }
 0x191   : > { %v1153_v17 = vsel %vm1142_vm4, %v1081_v28, %v1152_v16  ;;  %v13289_v24 = vpop.permute.xlu1 %1292  ;;  %v1291_v6 = vpop.permute.xlu0 %1290 }
 0x192   : > { %1212 = vst [vmem:[#allocation4 + $0x28] sm:$0xff] %v1153_v17  ;;  %v20361_v56 = vrot.slane %v13289_v24, 4  ;;  %v1332_v21 = vrot.slane %v1291_v6, 4 }
 0x193   : > { %2152 = vrot.lane.b32.xlu1 %v12955_v50, %s12569_s11  ;;  %2150 = vrot.lane.b32.xlu0 %v12953_v49, %s12569_s11 }
 0x194   : > { %v1361_v25 = vsel %vm291_vm0, %v1332_v21, %v20361_v56 }
 0x195   : > { %v13300_v31 = vsel %vm1351_vm5, %v1291_v6, %v1361_v25  ;;  %v13302_v36 = vpop.permute.xlu1 %2128  ;;  %v2127_v40 = vpop.permute.xlu0 %2126 }
 0x196   : > { %20890 = vst [vmem:[#allocation19_spill] sm:$0xff] %v13302_v36  ;;  %v20349_v48 = vrot.slane %v13302_v36, 4  ;;  %v2168_v44 = vrot.slane %v2127_v40, 4 }
 0x197   : > { %1943 = vrot.lane.b32.xlu1 %v12955_v50, %s12570_s12  ;;  %1941 = vrot.lane.b32.xlu0 %v12953_v49, %s12570_s12 }
 0x198   : > { %v2197_v46 = vsel %vm291_vm0, %v2168_v44, %v20349_v48 }
 0x199   : > { %v13313_v57 = vsel %vm2187_vm6, %v2127_v40, %v2197_v46  ;;  %v13315_v58 = vpop.permute.xlu1 %1919  ;;  %v1918_v59 = vpop.permute.xlu0 %1917 }
 0x19a   : > { %20891 = vst [vmem:[#allocation20_spill] sm:$0xff] %v13315_v58  ;;  %v20340_v22 = vrot.slane %v13315_v58, 4  ;;  %v1959_v34 = vrot.slane %v1918_v59, 4 }
 0x19b   : > { %1734 = vrot.lane.b32.xlu1 %v12955_v50, %s12571_s13  ;;  %1732 = vrot.lane.b32.xlu0 %v12953_v49, %s12571_s13 }
 0x19c   : > { %v1988_v30 = vsel %vm291_vm0, %v1959_v34, %v20340_v22 }
 0x19d   : > { %v1989_v53 = vsel %vm1978_vm7, %v1918_v59, %v1988_v30  ;;  %v13326_v3 = vpop.permute.xlu1 %1710  ;;  %v1709_v37 = vpop.permute.xlu0 %1708 }
 0x19e   : > { %20892 = vst [vmem:[#allocation21_spill] sm:$0xff] %v13326_v3  ;;  %2048 = vst [vmem:[#allocation4 + $0x2a8] sm:$0xff] %v1989_v53  ;;  %v20354_v38 = vrot.slane %v13326_v3, 4  ;;  %v1750_v28 = vrot.slane %v1709_v37, 4  ;;  %v2712_v3 = vld [vmem:[#allocation2 + $0x98] sm:$0xff] }
 0x19f   : > { %2570 = vrot.lane.b32.xlu1 %v12955_v50, %s12572_s14  ;;  %2568 = vrot.lane.b32.xlu0 %v12953_v49, %s12572_s14 }
 0x1a0   : > { %v1779_v63 = vsel %vm291_vm0, %v1750_v28, %v20354_v38 }
 0x1a1   : > { %v1780_v16 = vsel %vm1769_vm8, %v1709_v37, %v1779_v63  ;;  %v13337_v17 = vpop.permute.xlu1 %2546  ;;  %v2545_v6 = vpop.permute.xlu0 %2544 }
 0x1a2   : > { %20893 = vst [vmem:[#allocation22_spill] sm:$0xff] %v13337_v17  ;;  %1839 = vst [vmem:[#allocation4 + $0x208] sm:$0xff] %v1780_v16  ;;  %v20337_v21 = vrot.slane %v13337_v17, 4  ;;  %v2586_v25 = vrot.slane %v2545_v6, 4 }
 0x1a3   : > { %1525 = vrot.lane.b32.xlu1 %v12955_v50, %s12573_s15  ;;  %1523 = vrot.lane.b32.xlu0 %v12953_v49, %s12573_s15 }
 0x1a4   : > { %v2615_v40 = vsel %vm291_vm0, %v2586_v25, %v20337_v21 }
 0x1a5   : > { %v2616_v44 = vsel %vm2605_vm9, %v2545_v6, %v2615_v40  ;;  %v13348_v46 = vpop.permute.xlu1 %1501  ;;  %v1500_v59 = vpop.permute.xlu0 %1499 }
 0x1a6   : > { %20894 = vst [vmem:[#allocation23_spill] sm:$0xff] %v13348_v46  ;;  %2675 = vst [vmem:[#allocation4 + $0x488] sm:$0xff] %v2616_v44  ;;  %v20343_v34 = vrot.slane %v13348_v46, 4  ;;  %v1541_v30 = vrot.slane %v1500_v59, 4  ;;  %v13633_v46 = vld [vmem:[#allocation2 + $0x50] sm:$0xff] }
 0x1a7   : > { %2361 = vrot.lane.b32.xlu1 %v12955_v50, %s12574_s16  ;;  %2359 = vrot.lane.b32.xlu0 %v12953_v49, %s12574_s16 }
 0x1a8   : > { %v1570_v53 = vsel %vm291_vm0, %v1541_v30, %v20343_v34 }
 0x1a9   : > { %v1571_v37 = vsel %vm1560_vm10, %v1500_v59, %v1570_v53  ;;  %v13359_v28 = vpop.permute.xlu0 %1088  ;;  %v1087_v63 = vpop.permute.xlu1 %1086 }
 0x1aa   : > { %1630 = vst [vmem:[#allocation4 + $0x168] sm:$0xff] %v1571_v37  ;;  %v20362_v16 = vrot.slane %v13359_v28, 4  ;;  %v1125_v6 = vrot.slane %v1087_v63, 4 }
 0x1ab   : > { %1112 = vrot.lane.b32.xlu0 %v12971_v5, %s12567_s9  ;;  %1110 = vrot.lane.b32.xlu1 %v12969_v4, %s12567_s9 }
 0x1ac   : > { %v1157_v49 = vsel %vm291_vm0, %v1125_v6, %v20362_v16 }
 0x1ad   : > { %v1158_v50 = vsel %vm1142_vm4, %v1087_v63, %v1157_v49  ;;  %v13370_v25 = vpop.permute.xlu0 %1298  ;;  %v1297_v40 = vpop.permute.xlu1 %1296 }
 0x1ae   : > { %1215 = vst [vmem:[#allocation4 + $0x3c] sm:$0xff] %v1158_v50  ;;  %v20359_v44 = vrot.slane %v13370_v25, 4  ;;  %v1335_v59 = vrot.slane %v1297_v40, 4 }
 0x1af   : > { %1320 = vrot.lane.b32.xlu0 %v12969_v4, %s12568_s10  ;;  %1322 = vrot.lane.b32.xlu1 %v12971_v5, %s12568_s10 }
 0x1b0   : > { %v1366_v30 = vsel %vm291_vm0, %v1335_v59, %v20359_v44  ;;  %v13496_v44 = vld [vmem:[#allocation2 + $0x58] sm:$0xff] }
 0x1b1   : > { %v13381_v53 = vsel %vm1351_vm5, %v1297_v40, %v1366_v30  ;;  %v2133_v37 = vpop.permute.xlu0 %2132  ;;  %v13383_v63 = vpop.permute.xlu1 %2134 }
 0x1b2   : > { %20895 = vst [vmem:[#allocation24_spill] sm:$0xff] %v13383_v63  ;;  %v2171_v6 = vrot.slane %v2133_v37, 4  ;;  %v20347_v49 = vrot.slane %v13383_v63, 4 }
 0x1b3   : > { %2156 = vrot.lane.b32.xlu0 %v12969_v4, %s12569_s11  ;;  %2158 = vrot.lane.b32.xlu1 %v12971_v5, %s12569_s11 }
 0x1b4   : > { %v2202_v40 = vsel %vm291_vm0, %v2171_v6, %v20347_v49 }
 0x1b5   : > { %v13398_v59 = vsel %vm2187_vm6, %v2133_v37, %v2202_v40  ;;  %v1924_v30 = vpop.permute.xlu0 %1923  ;;  %v13400_v62 = vpop.permute.xlu1 %1925 }
 0x1b6   : > { %20896 = vst [vmem:[#allocation25_spill] sm:$0xff] %v13400_v62  ;;  %v1962_v33 = vrot.slane %v1924_v30, 4  ;;  %v20344_v21 = vrot.slane %v13400_v62, 4  ;;  %v13612_v62 = vld [vmem:[#allocation2 + $0x30] sm:$0xff] }
 0x1b7   : > { %1947 = vrot.lane.b32.xlu0 %v12969_v4, %s12570_s12  ;;  %1949 = vrot.lane.b32.xlu1 %v12971_v5, %s12570_s12 }
 0x1b8   : > { %v1993_v37 = vsel %vm291_vm0, %v1962_v33, %v20344_v21 }
 0x1b9   : > { %v1994_v6 = vsel %vm1978_vm7, %v1924_v30, %v1993_v37  ;;  %v1715_v40 = vpop.permute.xlu0 %1714  ;;  %v13415_v22 = vpop.permute.xlu1 %1716 }
 0x1ba   : > { %20897 = vst [vmem:[#allocation26_spill] sm:$0xff] %v13415_v22  ;;  %2051 = vst [vmem:[#allocation4 + $0x2bc] sm:$0xff] %v1994_v6  ;;  %v1753_v7 = vrot.slane %v1715_v40, 4  ;;  %v20353_v10 = vrot.slane %v13415_v22, 4  ;;  %v2711_v22 = vld [vmem:[#allocation2 + $0x90] sm:$0xff] }
 0x1bb   : > { %1738 = vrot.lane.b32.xlu0 %v12969_v4, %s12571_s13  ;;  %1740 = vrot.lane.b32.xlu1 %v12971_v5, %s12571_s13 }
 0x1bc   : > { %v1784_v34 = vsel %vm291_vm0, %v1753_v7, %v20353_v10 }
 0x1bd   : > { %v1785_v33 = vsel %vm1769_vm8, %v1715_v40, %v1784_v34  ;;  %v2551_v30 = vpop.permute.xlu0 %2550  ;;  %v13426_v37 = vpop.permute.xlu1 %2552 }
 0x1be   : > { %20898 = vst [vmem:[#allocation27_spill] sm:$0xff] %v13426_v37  ;;  %1842 = vst [vmem:[#allocation4 + $0x21c] sm:$0xff] %v1785_v33  ;;  %v2589_v6 = vrot.slane %v2551_v30, 4  ;;  %v20348_v21 = vrot.slane %v13426_v37, 4 }
 0x1bf   : > { %2574 = vrot.lane.b32.xlu0 %v12969_v4, %s12572_s14  ;;  %2576 = vrot.lane.b32.xlu1 %v12971_v5, %s12572_s14 }
 0x1c0   : > { %v2620_v19 = vsel %vm291_vm0, %v2589_v6, %v20348_v21 }
 0x1c1   : > { %v2621_v7 = vsel %vm2605_vm9, %v2551_v30, %v2620_v19  ;;  %v1506_v34 = vpop.permute.xlu0 %1505  ;;  %v13437_v40 = vpop.permute.xlu1 %1507 }
 0x1c2   : > { %20899 = vst [vmem:[#allocation28_spill] sm:$0xff] %v13437_v40  ;;  %2678 = vst [vmem:[#allocation4 + $0x49c] sm:$0xff] %v2621_v7  ;;  %v1544_v33 = vrot.slane %v1506_v34, 4  ;;  %v20350_v35 = vrot.slane %v13437_v40, 4 }
 0x1c3   : > { %1529 = vrot.lane.b32.xlu0 %v12969_v4, %s12573_s15  ;;  %1531 = vrot.lane.b32.xlu1 %v12971_v5, %s12573_s15 }
 0x1c4   : > { %v1575_v49 = vsel %vm291_vm0, %v1544_v33, %v20350_v35 }
 0x1c5   : > { %v1576_v6 = vsel %vm1560_vm10, %v1506_v34, %v1575_v49  ;;  %v13448_v19 = vpop.permute.xlu1 %1094  ;;  %v1093_v30 = vpop.permute.xlu0 %1092 }
 0x1c6   : > { %1633 = vst [vmem:[#allocation4 + $0x17c] sm:$0xff] %v1576_v6  ;;  %v20358_v7 = vrot.slane %v13448_v19, 4  ;;  %v1128_v21 = vrot.slane %v1093_v30, 4 }
 0x1c7   : > { %2365 = vrot.lane.b32.xlu0 %v12969_v4, %s12574_s16  ;;  %2367 = vrot.lane.b32.xlu1 %v12971_v5, %s12574_s16 }
 0x1c8   : > { %v1162_v48 = vsel %vm291_vm0, %v1128_v21, %v20358_v7  ;;  %v13494_v7 = vld [vmem:[#allocation2 + $0x40] sm:$0xff] }
 0x1c9   : > { %v13459_v33 = vsel %vm1142_vm4, %v1093_v30, %v1162_v48  ;;  %v13461_v49 = vpop.permute.xlu1 %1304  ;;  %v1303_v34 = vpop.permute.xlu0 %1302 }
 0x1ca   : > { %v20357_v6 = vrot.slane %v13461_v49, 4  ;;  %v1338_v35 = vrot.slane %v1303_v34, 4 }
 0x1cb   : > { %1072 = vrot.lane.b32.xlu0 %v13464_v52, %s12567_s9  ;;  %1078 = vrot.lane.b32.xlu1 %v13466_v9, %s12567_s9 }
 0x1cc   : > { %v1371_v4 = vsel %vm291_vm0, %v1338_v35, %v20357_v6 }
 0x1cd   : > { %v13476_v5 = vsel %vm1351_vm5, %v1303_v34, %v1371_v4  ;;  %v13478_v48 = vpop.permute.xlu1 %2140  ;;  %v2139_v21 = vpop.permute.xlu0 %2138 }
 0x1ce   : > { %20900 = vst [vmem:[#allocation29_spill] sm:$0xff] %v13478_v48  ;;  %v20360_v30 = vrot.slane %v13478_v48, 4  ;;  %v2174_v10 = vrot.slane %v2139_v21, 4  ;;  %v13676_v48 = vld [vmem:[#allocation2 + $0x18] sm:$0xff] }
 0x1cf   : > { %1282 = vrot.lane.b32.xlu0 %v13464_v52, %s12568_s10  ;;  %1288 = vrot.lane.b32.xlu1 %v13466_v9, %s12568_s10 }
 0x1d0   : > { %v2207_v38 = vsel %vm291_vm0, %v2174_v10, %v20360_v30 }
 0x1d1   : > { %v13489_v35 = vsel %vm2187_vm6, %v2139_v21, %v2207_v38  ;;  %v13491_v34 = vpop.permute.xlu1 %1931  ;;  %v1930_v4 = vpop.permute.xlu0 %1929 }
 0x1d2   : > { %20901 = vst [vmem:[#allocation30_spill] sm:$0xff] %v13491_v34  ;;  %v20364_v1 = vrot.slane %v13491_v34, 4  ;;  %v1965_v6 = vrot.slane %v1930_v4, 4  ;;  %v13614_v34 = vld [vmem:[#allocation2 + $0x38] sm:$0xff] }
 0x1d3   : > { %1084 = vrot.lane.b32.xlu0 %v13494_v7, %s12567_s9  ;;  %1090 = vrot.lane.b32.xlu1 %v13496_v44, %s12567_s9 }
 0x1d4   : > { %v1998_v10 = vsel %vm291_vm0, %v1965_v6, %v20364_v1 }
 0x1d5   : > { %v13506_v38 = vsel %vm1978_vm7, %v1930_v4, %v1998_v10  ;;  %v13508_v21 = vpop.permute.xlu1 %1722  ;;  %v1721_v30 = vpop.permute.xlu0 %1720 }
 0x1d6   : > { %20902 = vst [vmem:[#allocation31_spill] sm:$0xff] %v13508_v21  ;;  %v20368_v56 = vrot.slane %v13508_v21, 4  ;;  %v1756_v16 = vrot.slane %v1721_v30, 4 }
 0x1d7   : > { %1294 = vrot.lane.b32.xlu0 %v13494_v7, %s12568_s10  ;;  %1300 = vrot.lane.b32.xlu1 %v13496_v44, %s12568_s10 }
 0x1d8   : > { %v1789_v12 = vsel %vm291_vm0, %v1756_v16, %v20368_v56 }
 0x1d9   : > { %v13519_v6 = vsel %vm1769_vm8, %v1721_v30, %v1789_v12  ;;  %v13521_v4 = vpop.permute.xlu1 %2558  ;;  %v2557_v10 = vpop.permute.xlu0 %2556 }
 0x1da   : > { %20903 = vst [vmem:[#allocation32_spill] sm:$0xff] %v13521_v4  ;;  %v20370_v1 = vrot.slane %v13521_v4, 4  ;;  %v2592_v15 = vrot.slane %v2557_v10, 4 }
 0x1db   : > { %2349 = vrot.lane.b32.xlu1 %v13524_v20, %s12574_s16  ;;  %1096 = vrot.lane.b32.xlu0 %v13526_v47, %s12567_s9 }
 0x1dc   : > { %v2625_v12 = vsel %vm291_vm0, %v2592_v15, %v20370_v1 }
 0x1dd   : > { %v13536_v16 = vsel %vm2605_vm9, %v2557_v10, %v2625_v12  ;;  %v13538_v30 = vpop.permute.xlu1 %1513  ;;  %v1512_v56 = vpop.permute.xlu0 %1511 }
 0x1de   : > { %20904 = vst [vmem:[#allocation33_spill] sm:$0xff] %v13538_v30  ;;  %v20373_v18 = vrot.slane %v13538_v30, 4  ;;  %v1547_v39 = vrot.slane %v1512_v56, 4  ;;  %v13654_v30 = vld [vmem:[#allocation2 + $0x8] sm:$0xff] }
 0x1df   : > { %1306 = vrot.lane.b32.xlu0 %v13526_v47, %s12568_s10  ;;  %1102 = vrot.lane.b32.xlu1 %v13541_v42, %s12567_s9 }
 0x1e0   : > { %v1580_v15 = vsel %vm291_vm0, %v1547_v39, %v20373_v18 }
 0x1e1   : > { %v1581_v10 = vsel %vm1560_vm10, %v1512_v56, %v1580_v15  ;;  %v13551_v12 = vpop.permute.xlu0 %1100  ;;  %v1099_v1 = vpop.permute.xlu1 %1098 }
 0x1e2   : > { %1636 = vst [vmem:[#allocation4 + $0x190] sm:$0xff] %v1581_v10  ;;  %v20384_v50 = vrot.slane %v13551_v12, 4  ;;  %v1131_v0 = vrot.slane %v1099_v1, 4 }
 0x1e3   : > { %2347 = vrot.lane.b32.xlu0 %v13554_v27, %s12574_s16  ;;  %1312 = vrot.lane.b32.xlu1 %v13541_v42, %s12568_s10 }
 0x1e4   : > { %v1167_v39 = vsel %vm291_vm0, %v1131_v0, %v20384_v50  ;;  %v12276_v0 = vld [vmem:[%s20329_s3 + $0x4] ss:$20 sps:$4 sm:$0xff]  }
 0x1e5   : > { %v13564_v56 = vsel %vm1142_vm4, %v1099_v1, %v1167_v39  ;;  %v13566_v15 = vpop.permute.xlu0 %1310  ;;  %v1309_v10 = vpop.permute.xlu1 %1308  ;;  %4392 = vmatprep.mubr.bf16.mxu1 %v12276_v0 }
 0x1e6   : > { %20905 = vst [vmem:[#allocation34_spill] sm:$0xff] %v13566_v15  ;;  %v20393_v18 = vrot.slane %v13566_v15, 4  ;;  %v1341_v26 = vrot.slane %v1309_v10, 4  ;;  %v2715_v15 = vld [vmem:[#allocation2 + $0xb0] sm:$0xff] }
 0x1e7   : > { %2355 = vrot.lane.b32.xlu1 %v13569_v61, %s12574_s16  ;;  %1108 = vrot.lane.b32.xlu0 %v13571_v60, %s12567_s9 }
 0x1e8   : > { %v1376_v1 = vsel %vm291_vm0, %v1341_v26, %v20393_v18 }
 0x1e9   : > { %v13588_v39 = vsel %vm1351_vm5, %v1309_v10, %v1376_v1  ;;  %v2145_v50 = vpop.permute.xlu0 %2144  ;;  %v13590_v37 = vpop.permute.xlu1 %2146 }
 0x1ea   : > { %20906 = vst [vmem:[#allocation35_spill] sm:$0xff] %v13590_v37  ;;  %v2177_v17 = vrot.slane %v2145_v50, 4  ;;  %v20400_v4 = vrot.slane %v13590_v37, 4 }
 0x1eb   : > { %2353 = vrot.lane.b32.xlu0 %v13593_v32, %s12574_s16  ;;  %1114 = vrot.lane.b32.xlu1 %v13595_v41, %s12567_s9 }
 0x1ec   : > { %v2212_v26 = vsel %vm291_vm0, %v2177_v17, %v20400_v4 }
 0x1ed   : > { %v13607_v10 = vsel %vm2187_vm6, %v2145_v50, %v2212_v26  ;;  %v1936_v0 = vpop.permute.xlu0 %1935  ;;  %v13609_v1 = vpop.permute.xlu1 %1937 }
 0x1ee   : > { %20907 = vst [vmem:[#allocation36_spill] sm:$0xff] %v13609_v1  ;;  %v1968_v18 = vrot.slane %v1936_v0, 4  ;;  %v20411_v58 = vrot.slane %v13609_v1, 4  ;;  %v13652_v1 = vld [vmem:[#allocation2] sm:$0xff] }
 0x1ef   : > { %2335 = vrot.lane.b32.xlu0 %v13612_v62, %s12574_s16  ;;  %2337 = vrot.lane.b32.xlu1 %v13614_v34, %s12574_s16 }
 0x1f0   : > { %v2003_v17 = vsel %vm291_vm0, %v1968_v18, %v20411_v58 }
 0x1f1   : > { %v13626_v50 = vsel %vm1978_vm7, %v1936_v0, %v2003_v17  ;;  %v1727_v26 = vpop.permute.xlu0 %1726  ;;  %v13628_v4 = vpop.permute.xlu1 %1728 }
 0x1f2   : > { %20908 = vst [vmem:[#allocation37_spill] sm:$0xff] %v13628_v4  ;;  %v1759_v29 = vrot.slane %v1727_v26, 4  ;;  %v20420_v40 = vrot.slane %v13628_v4, 4 }
 0x1f3   : > { %2341 = vrot.lane.b32.xlu0 %v13631_v2, %s12574_s16  ;;  %2343 = vrot.lane.b32.xlu1 %v13633_v46, %s12574_s16 }
 0x1f4   : > { %v1794_v18 = vsel %vm291_vm0, %v1759_v29, %v20420_v40  ;;  %v12284_v29 = vld [vmem:[%s20329_s3 + $0xc] ss:$20 sps:$4 sm:$0xff]  }
 0x1f5   : > { %v13647_v0 = vsel %vm1769_vm8, %v1727_v26, %v1794_v18  ;;  %v2563_v17 = vpop.permute.xlu0 %2562  ;;  %v13649_v58 = vpop.permute.xlu1 %2564  ;;  %4493 = vmatprep.mubr.bf16.mxu0 %v12284_v29 }
 0x1f6   : > { %20909 = vst [vmem:[#allocation38_spill] sm:$0xff] %v13649_v58  ;;  %v2595_v55 = vrot.slane %v2563_v17, 4  ;;  %v20429_v43 = vrot.slane %v13649_v58, 4 }
 0x1f7   : > { %2323 = vrot.lane.b32.xlu0 %v13652_v1, %s12574_s16  ;;  %2325 = vrot.lane.b32.xlu1 %v13654_v30, %s12574_s16 }
 0x1f8   : > { %v2630_v26 = vsel %vm291_vm0, %v2595_v55, %v20429_v43 }
 0x1f9   : > { %v13671_v18 = vsel %vm2605_vm9, %v2563_v17, %v2630_v26  ;;  %v1518_v40 = vpop.permute.xlu0 %1517  ;;  %v13673_v63 = vpop.permute.xlu1 %1519 }
 0x1fa   : > { %20910 = vst [vmem:[#allocation39_spill] sm:$0xff] %v13673_v63  ;;  %v1550_v36 = vrot.slane %v1518_v40, 4  ;;  %v20432_v37 = vrot.slane %v13673_v63, 4 }
 0x1fb   : > { %2329 = vrot.lane.b32.xlu0 %v13676_v48, %s12574_s16  ;;  %2331 = vrot.lane.b32.xlu1 %v13678_v45, %s12574_s16 }
 0x1fc   : > { %v1585_v17 = vsel %vm291_vm0, %v1550_v36, %v20432_v37 }
 0x1fd   : > { %v13692_v29 = vsel %vm1560_vm10, %v1518_v40, %v1585_v17  ;;  %v13694_v26 = vpop.permute.xlu1 %1106  ;;  %v1105_v43 = vpop.permute.xlu0 %1104 }
 0x1fe   : > { %20911 = vst [vmem:[#allocation40_spill] sm:$0xff] %v13694_v26  ;;  %v20439_v51 = vrot.slane %v13694_v26, 4  ;;  %v1134_v58 = vrot.slane %v1105_v43, 4  ;;  %v2714_v26 = vld [vmem:[#allocation2 + $0xa8] sm:$0xff] }
 0x1ff   : > { %1318 = vrot.lane.b32.xlu0 %v13571_v60, %s12568_s10  ;;  %1324 = vrot.lane.b32.xlu1 %v13595_v41, %s12568_s10 }
 0x200   : > { %v1172_v55 = vsel %vm291_vm0, %v1134_v58, %v20439_v51 }
 0x201   : > { %v13705_v36 = vsel %vm1142_vm4, %v1105_v43, %v1172_v55  ;;  %v13707_v40 = vpop.permute.xlu1 %1316  ;;  %v1315_v17 = vpop.permute.xlu0 %1314 }
 0x202   : > { %v20448_v37 = vrot.slane %v13707_v40, 4  ;;  %v1344_v63 = vrot.slane %v1315_v17, 4 }
 0x203   : > { %2777 = vrot.lane.b32.xlu0 %v2711_v22, %s12575_s23  ;;  %2779 = vrot.lane.b32.xlu1 %v2712_v3, %s12575_s23 }
 0x204   : > { %v1381_v58 = vsel %vm291_vm0, %v1344_v63, %v20448_v37 }
 0x205   : > { %v13716_v43 = vsel %vm1351_vm5, %v1315_v17, %v1381_v58  ;;  %v13718_v55 = vpop.permute.xlu1 %2152  ;;  %v2151_v51 = vpop.permute.xlu0 %2150 }
 0x206   : > { %20912 = vst [vmem:[#allocation41_spill] sm:$0xff] %v13718_v55  ;;  %v20449_v4 = vrot.slane %v13718_v55, 4  ;;  %v2180_v21 = vrot.slane %v2151_v51, 4 }
 0x207   : > { %2783 = vrot.lane.b32.xlu0 %v2714_v26, %s12575_s23  ;;  %2785 = vrot.lane.b32.xlu1 %v2715_v15, %s12575_s23 }
 0x208   : > { %v2217_v22 = vsel %vm291_vm0, %v2180_v21, %v20449_v4 }
 0x209   : > { %v13727_v3 = vsel %vm2187_vm6, %v2151_v51, %v2217_v22  ;;  %v13729_v63 = vpop.permute.xlu1 %1943  ;;  %v1942_v17 = vpop.permute.xlu0 %1941 }
 0x20a   : > { %20913 = vst [vmem:[#allocation42_spill] sm:$0xff] %v13729_v63  ;;  %v20450_v58 = vrot.slane %v13729_v63, 4  ;;  %v1971_v37 = vrot.slane %v1942_v17, 4 }
 0x20b   : > { %2765 = vrot.lane.b32.xlu0 %v13554_v27, %s12575_s23  ;;  %2767 = vrot.lane.b32.xlu1 %v13524_v20, %s12575_s23 }
 0x20c   : > { %v2008_v15 = vsel %vm291_vm0, %v1971_v37, %v20450_v58 }
 0x20d   : > { %v13740_v21 = vsel %vm1978_vm7, %v1942_v17, %v2008_v15  ;;  %v13742_v51 = vpop.permute.xlu1 %1734  ;;  %v1733_v26 = vpop.permute.xlu0 %1732 }
 0x20e   : > { %20914 = vst [vmem:[#allocation43_spill] sm:$0xff] %v13742_v51  ;;  %v20451_v22 = vrot.slane %v13742_v51, 4  ;;  %v1762_v4 = vrot.slane %v1733_v26, 4 }
 0x20f   : > { %2771 = vrot.lane.b32.xlu0 %v13593_v32, %s12575_s23  ;;  %2773 = vrot.lane.b32.xlu1 %v13569_v61, %s12575_s23 }
 0x210   : > { %v1799_v27 = vsel %vm291_vm0, %v1762_v4, %v20451_v22 }
 0x211   : > { %v13753_v20 = vsel %vm1769_vm8, %v1733_v26, %v1799_v27  ;;  %v13755_v37 = vpop.permute.xlu1 %2570  ;;  %v2569_v17 = vpop.permute.xlu0 %2568 }
 0x212   : > { %20915 = vst [vmem:[#allocation44_spill] sm:$0xff] %v13755_v37  ;;  %v20454_v15 = vrot.slane %v13755_v37, 4  ;;  %v2598_v58 = vrot.slane %v2569_v17, 4 }
 0x213   : > { %1736 = vrot.lane.b32.xlu0 %v13571_v60, %s12571_s13  ;;  %1742 = vrot.lane.b32.xlu1 %v13595_v41, %s12571_s13 }
 0x214   : > { %v2635_v32 = vsel %vm291_vm0, %v2598_v58, %v20454_v15 }
 0x215   : > { %v13766_v61 = vsel %vm2605_vm9, %v2569_v17, %v2635_v32  ;;  %v13768_v4 = vpop.permute.xlu1 %1525  ;;  %v1524_v26 = vpop.permute.xlu0 %1523 }
 0x216   : > { %20916 = vst [vmem:[#allocation45_spill] sm:$0xff] %v13768_v4  ;;  %v20457_v27 = vrot.slane %v13768_v4, 4  ;;  %v1553_v22 = vrot.slane %v1524_v26, 4 }
 0x217   : > { %2753 = vrot.lane.b32.xlu0 %v13612_v62, %s12575_s23  ;;  %2755 = vrot.lane.b32.xlu1 %v13614_v34, %s12575_s23 }
 0x218   : > { %v1590_v37 = vsel %vm291_vm0, %v1553_v22, %v20457_v27 }
 0x219   : > { %v13779_v58 = vsel %vm1560_vm10, %v1524_v26, %v1590_v37  ;;  %v13781_v17 = vpop.permute.xlu1 %2361  ;;  %v2360_v32 = vpop.permute.xlu0 %2359 }
 0x21a   : > { %20917 = vst [vmem:[#allocation46_spill] sm:$0xff] %v13781_v17  ;;  %v20458_v15 = vrot.slane %v13781_v17, 4  ;;  %v2389_v63 = vrot.slane %v2360_v32, 4 }
 0x21b   : > { %2759 = vrot.lane.b32.xlu0 %v13631_v2, %s12575_s23  ;;  %2761 = vrot.lane.b32.xlu1 %v13633_v46, %s12575_s23 }
 0x21c   : > { %v2426_v62 = vsel %vm291_vm0, %v2389_v63, %v20458_v15 }
 0x21d   : > { %v13792_v34 = vsel %vm2396_vm11, %v2360_v32, %v2426_v62  ;;  %v13794_v22 = vpop.permute.xlu0 %1112  ;;  %v1111_v37 = vpop.permute.xlu1 %1110 }
 0x21e   : > { %v20461_v26 = vrot.slane %v13794_v22, 4  ;;  %v1137_v27 = vrot.slane %v1111_v37, 4 }
 0x21f   : > { %1724 = vrot.lane.b32.xlu0 %v13526_v47, %s12571_s13  ;;  %1730 = vrot.lane.b32.xlu1 %v13541_v42, %s12571_s13 }
 0x220   : > { %v1177_v2 = vsel %vm291_vm0, %v1137_v27, %v20461_v26 }
 0x221   : > { %v13805_v46 = vsel %vm1142_vm4, %v1111_v37, %v1177_v2  ;;  %v1321_v63 = vpop.permute.xlu0 %1320  ;;  %v13807_v32 = vpop.permute.xlu1 %1322 }
 0x222   : > { %20918 = vst [vmem:[#allocation47_spill] sm:$0xff] %v13807_v32  ;;  %v1347_v62 = vrot.slane %v1321_v63, 4  ;;  %v20468_v15 = vrot.slane %v13807_v32, 4 }
 0x223   : > { %2741 = vrot.lane.b32.xlu0 %v13652_v1, %s12575_s23  ;;  %2743 = vrot.lane.b32.xlu1 %v13654_v30, %s12575_s23  ;;  %v543_v1 = vpop.f32.mrf.mxu1 }
 0x224   : > { %v1386_v17 = vsel %vm291_vm0, %v1347_v62, %v20468_v15 }
 0x225   : > { %v1387_v27 = vsel %vm1351_vm5, %v1321_v63, %v1386_v17  ;;  %v2157_v37 = vpop.permute.xlu0 %2156  ;;  %v13818_v2 = vpop.permute.xlu1 %2158  ;;  %v11805_v17 = vcombine.high %v13476_v5, %v13588_v39 }
 0x226   : > { %v2183_v26 = vrot.slane %v2157_v37, 4  ;;  %v2184_v4 = vrot.slane %v13818_v2, 4  ;;  %v11809_v55 = vcombine.low %v13716_v43, %v1387_v27  ;;  %v11810_v51 = vcombine.high %v13716_v43, %v1387_v27  ;;  %v545_v63 = vpop.f32.mrf.mxu1 }
 0x227   : > { %2747 = vrot.lane.b32.xlu0 %v13676_v48, %s12575_s23  ;;  %2749 = vrot.lane.b32.xlu1 %v13678_v45, %s12575_s23  ;;  %v1012_v27 = vcombine.low %v543_v1, %v545_v63  ;;  %v20919_v63 = vcombine.low %v13476_v5, %v13588_v39  ;;  %v12240_v39 = vld [vmem:[#allocation4 + $0xa4] ss:$20 sps:$4 sm:$0xff]  }
 0x228   : > { %v2222_v30 = vsel %vm291_vm0, %v2183_v26, %v2184_v4  ;;  %4360 = vmatprep.subr.bf16.mxu1 %v11810_v51  ;;  %v662_v51 = vpop.f32.mrf.mxu0 }
 0x229   : > { %v2223_v62 = vsel %vm2187_vm6, %v2157_v37, %v2222_v30  ;;  %v1948_v15 = vpop.permute.xlu0 %1947  ;;  %v13833_v43 = vpop.permute.xlu1 %1949  ;;  %4361 = vmatpush1.bf16.msra.mxu1 %v11809_v55  ;;  %1018 = vst [vmem:[#allocation3 + $0x8] sm:$0xff] %v1012_v27  ;;  %v11885_v37 = vcombine.high %v13489_v35, %v13607_v10 }
 0x22a   : > { %v1974_v48 = vrot.slane %v1948_v15, 4  ;;  %v1975_v32 = vrot.slane %v13833_v43, 4  ;;  %4362 = vmatprep.subr.bf16.mxu1 %v11805_v17  ;;  %v11889_v45 = vcombine.low %v13727_v3, %v2223_v62  ;;  %v11890_v26 = vcombine.high %v13727_v3, %v2223_v62  ;;  %v664_v1 = vpop.f32.mrf.mxu0 }
 0x22b   : > { %1712 = vrot.lane.b32.xlu0 %v13494_v7, %s12571_s13  ;;  %1718 = vrot.lane.b32.xlu1 %v13496_v44, %s12571_s13  ;;  %v1013_v62 = vcombine.low %v662_v51, %v664_v1 }
 0x22c   : > { %v2013_v55 = vsel %vm291_vm0, %v1974_v48, %v1975_v32  ;;  %4461 = vmatprep.subr.bf16.mxu0 %v11890_v26  ;;  %v20920_v26 = vcombine.high %v13300_v31, %v13381_v53 }
 0x22d   : > { %v13848_v30 = vsel %vm1978_vm7, %v1948_v15, %v2013_v55  ;;  %v1739_v3 = vpop.permute.xlu0 %1738  ;;  %v13850_v17 = vpop.permute.xlu1 %1740  ;;  %4363 = vmatpush1.bf16.msra.mxu1 %v20919_v63  ;;  %4462 = vmatpush1.bf16.msra.mxu0 %v11889_v45  ;;  %1019 = vst.msk [vmem:[#allocation3 + $0x10] sm:$0xff] %vm12997_vm3, %v1013_v62  ;;  %v20921_v55 = vcombine.low %v13300_v31, %v13381_v53  ;;  %v12238_v31 = vld [vmem:[#allocation4 + $0xa0] ss:$20 sps:$4 sm:$0xff]   ;;  %vm9117_vm3 = vcmask 556032  }
 0x22e   : > { %v1765_v27 = vrot.slane %v1739_v3, 4  ;;  %v1766_v48 = vrot.slane %v13850_v17, 4  ;;  %4364 = vmatprep.subr.bf16.mxu1 %v20920_v26  ;;  %4463 = vmatprep.subr.bf16.mxu0 %v11885_v37  ;;  %v20922_v37 = vcombine.low %v13489_v35, %v13607_v10  ;;  %v20923_v63 = vcombine.high %v13313_v57, %v13398_v59  ;;  %v12243_v10 = vld [vmem:[#allocation4 + $0x324] ss:$20 sps:$4 sm:$0xff]  }
 0x22f   : > { %2154 = vrot.lane.b32.xlu0 %v13571_v60, %s12569_s11  ;;  %2160 = vrot.lane.b32.xlu1 %v13595_v41, %s12569_s11  ;;  %v11790_v35 = vcombine.high %v13705_v36, %v13805_v46  ;;  %v20924_v26 = vcombine.low %v13313_v57, %v13398_v59  ;;  %v11870_v59 = vcombine.high %v13740_v21, %v13848_v30 }
 0x230   : > { %v1804_v5 = vsel %vm291_vm0, %v1765_v27, %v1766_v48 }
 0x231   : > { %v13869_v15 = vsel %vm1769_vm8, %v1739_v3, %v1804_v5  ;;  %v2575_v45 = vpop.permute.xlu0 %2574  ;;  %v13871_v51 = vpop.permute.xlu1 %2576  ;;  %4365 = vmatpush1.bf16.msra.mxu1 %v20921_v55  ;;  %4464 = vmatpush1.bf16.msra.mxu0 %v20922_v37  ;;  %v12241_v55 = vld [vmem:[#allocation4 + $0x320] ss:$20 sps:$4 sm:$0xff]  }
 0x232   : > { %v2601_v14 = vrot.slane %v2575_v45, 4  ;;  %v2602_v1 = vrot.slane %v13871_v51, 4  ;;  %4366 = vmatprep.subr.bf16.mxu1 %v12240_v39  ;;  %4465 = vmatprep.subr.bf16.mxu0 %v20923_v63 }
 0x233   : > { %1700 = vrot.lane.b32.xlu0 %v13464_v52, %s12571_s13  ;;  %1706 = vrot.lane.b32.xlu1 %v13466_v9, %s12571_s13 }
 0x234   : > { %v2640_v53 = vsel %vm291_vm0, %v2601_v14, %v2602_v1 }
 0x235   : > { %v13893_v3 = vsel %vm2605_vm9, %v2575_v45, %v2640_v53  ;;  %v1530_v62 = vpop.permute.xlu0 %1529  ;;  %v13895_v27 = vpop.permute.xlu1 %1531  ;;  %4367 = vmatpush1.bf16.msra.mxu1 %v12238_v31  ;;  %4466 = vmatpush1.bf16.msra.mxu0 %v20924_v26  ;;  %v11789_v45 = vcombine.low %v13705_v36, %v13805_v46  ;;  %v20925_v36 = vcombine.high %v13459_v33, %v13564_v56 }
 0x236   : > { %v1556_v5 = vrot.slane %v1530_v62, 4  ;;  %v1557_v39 = vrot.slane %v13895_v27, 4  ;;  %4368 = vmatprep.subr.bf16.mxu1 %v11790_v35  ;;  %4467 = vmatprep.subr.bf16.mxu0 %v12243_v10  ;;  %v11869_v46 = vcombine.low %v13740_v21, %v13848_v30  ;;  %v12246_v10 = vld [vmem:[#allocation4 + $0x2c] ss:$20 sps:$4 sm:$0xff]   ;;  %v20927_v21 = vcombine.high %v13506_v38, %v13626_v50  ;;  %v12244_v30 = vld [vmem:[#allocation4 + $0x28] ss:$20 sps:$4 sm:$0xff]  }
 0x237   : > { %2142 = vrot.lane.b32.xlu0 %v13526_v47, %s12569_s11  ;;  %2148 = vrot.lane.b32.xlu1 %v13541_v42, %s12569_s11 }
 0x238   : > { %v1595_v57 = vsel %vm291_vm0, %v1556_v5, %v1557_v39 }
 0x239   : > { %v13913_v37 = vsel %vm1560_vm10, %v1530_v62, %v1595_v57  ;;  %v2366_v14 = vpop.permute.xlu0 %2365  ;;  %v13915_v63 = vpop.permute.xlu1 %2367  ;;  %4369 = vmatpush1.bf16.msra.mxu1 %v11789_v45  ;;  %4468 = vmatpush1.bf16.msra.mxu0 %v12241_v55  ;;  %v20926_v45 = vcombine.low %v13459_v33, %v13564_v56 }
 0x23a   : > { %v2392_v31 = vrot.slane %v2366_v14, 4  ;;  %v2393_v53 = vrot.slane %v13915_v63, 4  ;;  %4370 = vmatprep.subr.bf16.mxu1 %v20925_v36  ;;  %4469 = vmatprep.subr.bf16.mxu0 %v11870_v59  ;;  %v20928_v59 = vrot.slane %v13124_v23, 4 }
 0x23b   : > { %1527 = vrot.lane.b32.xlu0 %v13571_v60, %s12573_s15  ;;  %1533 = vrot.lane.b32.xlu1 %v13595_v41, %s12573_s15 }
 0x23c   : > { %v2431_v35 = vsel %vm291_vm0, %v2392_v31, %v2393_v53 }
 0x23d   : > { %v13931_v62 = vsel %vm2396_vm11, %v2366_v14, %v2431_v35  ;;  %v1073_v26 = vpop.permute.xlu0 %1072  ;;  %v1079_v5 = vpop.permute.xlu1 %1078  ;;  %4371 = vmatpush1.bf16.msra.mxu1 %v20926_v45  ;;  %4470 = vmatpush1.bf16.msra.mxu0 %v11869_v46  ;;  %v20929_v14 = vrot.slane %v13201_v11, 4  ;;  %v12249_v46 = vld [vmem:[#allocation4 + $0x4] ss:$20 sps:$4 sm:$0xff]   ;;  %v12252_v35 = vld [vmem:[#allocation4 + $0x2ac] ss:$20 sps:$4 sm:$0xff]  }
 0x23e   : > { %v1118_v55 = vrot.slane %v1073_v26, 4  ;;  %v1121_v57 = vrot.slane %v1079_v5, 4  ;;  %4372 = vmatprep.subr.bf16.mxu1 %v12246_v10  ;;  %4471 = vmatprep.subr.bf16.mxu0 %v20927_v21 }
 0x23f   : > { %2130 = vrot.lane.b32.xlu0 %v13494_v7, %s12569_s11  ;;  %2136 = vrot.lane.b32.xlu1 %v13496_v44, %s12569_s11 }
 0x240   : > { %v1144_v33 = vsel %vm291_vm0, %v20928_v59, %v1118_v55  ;;  %v1146_v56 = vsel %vm1142_vm4, %v1073_v26, %v1118_v55  ;;  %v1149_v31 = vsel %vm291_vm0, %v20929_v14, %v1121_v57  ;;  %v1151_v36 = vsel %vm1142_vm4, %v1079_v5, %v1121_v57 }
 0x241   : > { %v1145_v10 = vsel %vm1142_vm4, %v13124_v23, %v1144_v33  ;;  %1208 = vst [vmem:[#allocation4 + $0x10] sm:$0xf] %v1146_v56  ;;  %v1150_v45 = vsel %vm1142_vm4, %v13201_v11, %v1149_v31  ;;  %1211 = vst [vmem:[#allocation4 + $0x24] sm:$0xf] %v1151_v36  ;;  %v1283_v21 = vpop.permute.xlu0 %1282  ;;  %v1289_v59 = vpop.permute.xlu1 %1288  ;;  %4373 = vmatpush1.bf16.msra.mxu1 %v12244_v30  ;;  %v20930_v26 = vcombine.low %v13506_v38, %v13626_v50  ;;  %v12247_v23 = vld [vmem:[#allocation4] ss:$20 sps:$4 sm:$0xff]  }
 0x242   : > { %1207 = vst [vmem:[#allocation4 + $0x8] sm:$0xff] %v1145_v10  ;;  %1210 = vst [vmem:[#allocation4 + $0x1c] sm:$0xff] %v1150_v45  ;;  %v1328_v5 = vrot.slane %v1283_v21, 4  ;;  %v1331_v55 = vrot.slane %v1289_v59, 4  ;;  %4374 = vmatprep.subr.bf16.mxu1 %v12249_v46  ;;  %v12250_v11 = vld [vmem:[#allocation4 + $0x2a8] ss:$20 sps:$4 sm:$0xff]   ;;  %v11850_v57 = vcombine.high %v13753_v20, %v13869_v15 }
 0x243   : > { %4472 = vmatpush1.bf16.msra.mxu0 %v20930_v26  ;;  %1515 = vrot.lane.b32.xlu0 %v13526_v47, %s12573_s15  ;;  %v20931_v38 = vrot.slane %v13135_v54, 4  ;;  %v20932_v33 = vrot.slane %v13212_v13, 4  ;;  %v12255_v31 = vld [vmem:[#allocation4 + $0x284] ss:$20 sps:$4 sm:$0xff]   ;;  %v20933_v26 = vrot.slane %v13278_v8, 4 }
 0x244   : > { %4473 = vmatprep.subr.bf16.mxu0 %v12252_v35  ;;  %1521 = vrot.lane.b32.xlu1 %v13541_v42, %s12573_s15  ;;  %v1355_v30 = vsel %vm1351_vm5, %v1283_v21, %v1328_v5  ;;  %v1360_v14 = vsel %vm1351_vm5, %v1289_v59, %v1331_v55  ;;  %v11930_v59 = vcombine.high %v13766_v61, %v13893_v3 }
 0x245   : > { %v1353_v50 = vsel %vm291_vm0, %v20931_v38, %v1328_v5  ;;  %v1358_v56 = vsel %vm291_vm0, %v20932_v33, %v1331_v55  ;;  %1417 = vst [vmem:[#allocation4 + $0xb0] sm:$0xf] %v1355_v30  ;;  %1420 = vst [vmem:[#allocation4 + $0xc4] sm:$0xf] %v1360_v14  ;;  %v1085_v35 = vpop.permute.xlu0 %1084  ;;  %v1091_v10 = vpop.permute.xlu1 %1090  ;;  %4375 = vmatpush1.bf16.msra.mxu1 %v12247_v23  ;;  %v20934_v23 = vrot.slane %v13359_v28, 4 }
 0x246   : > { %v13974_v36 = vsel %vm1351_vm5, %v13135_v54, %v1353_v50  ;;  %v13978_v46 = vsel %vm1351_vm5, %v13212_v13, %v1358_v56  ;;  %v1124_v45 = vrot.slane %v1085_v35, 4  ;;  %v1127_v21 = vrot.slane %v1091_v10, 4  ;;  %4376 = vmatprep.subr.bf16.mxu1 %v11850_v57  ;;  %v12253_v13 = vld [vmem:[#allocation4 + $0x280] ss:$20 sps:$4 sm:$0xff]  }
 0x247   : > { %4474 = vmatpush1.bf16.msra.mxu0 %v12250_v11  ;;  %2118 = vrot.lane.b32.xlu0 %v13464_v52, %s12569_s11  ;;  %v11849_v54 = vcombine.low %v13753_v20, %v13869_v15  ;;  %v20935_v30 = vcombine.high %v13519_v6, %v13647_v0  ;;  %v20936_v56 = vrot.slane %v13289_v24, 4 }
 0x248   : > { %4475 = vmatprep.subr.bf16.mxu0 %v12255_v31  ;;  %2124 = vrot.lane.b32.xlu1 %v13466_v9, %s12569_s11  ;;  %v1154_v5 = vsel %vm291_vm0, %v20933_v26, %v1124_v45  ;;  %v1156_v55 = vsel %vm1142_vm4, %v1085_v35, %v1124_v45  ;;  %v1159_v52 = vsel %vm291_vm0, %v20934_v23, %v1127_v21  ;;  %v20937_v35 = vrot.slane %v13370_v25, 4 }
 0x249   : > { %v1161_v11 = vsel %vm1142_vm4, %v1091_v10, %v1127_v21  ;;  %v13998_v9 = vsel %vm1142_vm4, %v13278_v8, %v1154_v5  ;;  %1214 = vst [vmem:[#allocation4 + $0x38] sm:$0xf] %v1156_v55  ;;  %v14002_v20 = vsel %vm1142_vm4, %v13359_v28, %v1159_v52  ;;  %v1295_v15 = vpop.permute.xlu0 %1294  ;;  %v1301_v57 = vpop.permute.xlu1 %1300  ;;  %4377 = vmatpush2.bf16.msra.mxu1 %v11849_v54  ;;  %v12258_v21 = vld [vmem:[#allocation4 + $0x20c] ss:$20 sps:$4 sm:$0xff]   ;;  %v20940_v26 = vrot.slane %v13448_v19, 4 }
 0x24a   : > { %1217 = vst [vmem:[#allocation4 + $0x4c] sm:$0xf] %v1161_v11  ;;  %v1334_v38 = vrot.slane %v1295_v15, 4  ;;  %v1337_v50 = vrot.slane %v1301_v57, 4  ;;  %4378 = vmatprep.subr.bf16.mxu1 %v20935_v30  ;;  %v11781_v8 = vcombine.low %v13998_v9, %v14002_v20  ;;  %v11782_v33 = vcombine.high %v13998_v9, %v14002_v20  ;;  %v12264_v5 = vld [vmem:[#allocation4 + $0x48c] ss:$20 sps:$4 sm:$0xff]  }
 0x24b   : > { %4476 = vmatpush1.bf16.msra.mxu0 %v12253_v13  ;;  %1503 = vrot.lane.b32.xlu0 %v13494_v7, %s12573_s15  ;;  %v11929_v28 = vcombine.low %v13766_v61, %v13893_v3  ;;  %v20938_v54 = vcombine.low %v13519_v6, %v13647_v0  ;;  %v3159_v20 = vld [vmem:[%s20330_s4 + $0x10] sm:$0xff] }
 0x24c   : > { %4477 = vmatprep.subr.bf16.mxu0 %v11930_v59  ;;  %1509 = vrot.lane.b32.xlu1 %v13496_v44, %s12573_s15  ;;  %v1363_v14 = vsel %vm291_vm0, %v20936_v56, %v1334_v38  ;;  %v1365_v31 = vsel %vm1351_vm5, %v1295_v15, %v1334_v38  ;;  %v1368_v10 = vsel %vm291_vm0, %v20937_v35, %v1337_v50  ;;  %v12261_v59 = vld [vmem:[#allocation4 + $0x1e4] ss:$20 sps:$4 sm:$0xff]   ;;  %v12262_v38 = vld [vmem:[#allocation4 + $0x488] ss:$20 sps:$4 sm:$0xff]  }
 0x24d   : > { %v1370_v45 = vsel %vm1351_vm5, %v1301_v57, %v1337_v50  ;;  %v14027_v7 = vsel %vm1351_vm5, %v13289_v24, %v1363_v14  ;;  %1423 = vst [vmem:[#allocation4 + $0xd8] sm:$0xf] %v1365_v31  ;;  %v14031_v44 = vsel %vm1351_vm5, %v13370_v25, %v1368_v10  ;;  %v14033_v61 = vpop.permute.xlu1 %2349  ;;  %v1097_v3 = vpop.permute.xlu0 %1096  ;;  %4379 = vmatpush2.bf16.msra.mxu1 %v20938_v54  ;;  %v12256_v25 = vld [vmem:[#allocation4 + $0x208] ss:$20 sps:$4 sm:$0xff]   ;;  %v14058_v57 = vld [vmem:[#allocation2 + $0x28] sm:$0xff] }
 0x24e   : > { %1426 = vst [vmem:[#allocation4 + $0xec] sm:$0xf] %v1370_v45  ;;  %v1130_v13 = vrot.slane %v1097_v3, 4  ;;  %4380 = vmatprep.subr.bf16.mxu1 %v12258_v21  ;;  %v20939_v24 = vcombine.high %v13536_v16, %v13671_v18  ;;  %v14056_v15 = vld [vmem:[#allocation2 + $0x10] sm:$0xff] }
 0x24f   : > { %4478 = vmatpush2.bf16.msra.mxu0 %v11929_v28  ;;  %1945 = vrot.lane.b32.xlu0 %v13571_v60, %s12570_s12  ;;  %v20943_v28 = vrot.slane %v13551_v12, 4  ;;  %v12267_v31 = vld [vmem:[#allocation4 + $0x464] ss:$20 sps:$4 sm:$0xff]  }
 0x250   : > { %4479 = vmatprep.subr.bf16.mxu0 %v20939_v24  ;;  %1951 = vrot.lane.b32.xlu1 %v13595_v41, %s12570_s12  ;;  %v1164_v6 = vsel %vm291_vm0, %v20940_v26, %v1130_v13  ;;  %v1166_v0 = vsel %vm1142_vm4, %v1097_v3, %v1130_v13  ;;  %v20941_v41 = vcombine.low %v13536_v16, %v13671_v18  ;;  %v20942_v18 = vrot.slane %v13461_v49, 4  ;;  %v3001_v24 = vld [vmem:[#allocation4 + $0x190] sm:$0xff]  ;;  %v20944_v26 = vld [vmem:[#allocation34_spill] sm:$0xff] }
 0x251   : > { %v14051_v55 = vsel %vm1142_vm4, %v13448_v19, %v1164_v6  ;;  %1220 = vst [vmem:[#allocation4 + $0x60] sm:$0xf] %v1166_v0  ;;  %v1307_v23 = vpop.permute.xlu0 %1306  ;;  %v1103_v52 = vpop.permute.xlu1 %1102  ;;  %4381 = vmatpush2.bf16.msra.mxu1 %v12256_v25  ;;  %v12259_v19 = vld [vmem:[#allocation4 + $0x1e0] ss:$20 sps:$4 sm:$0xff]   ;;  %v11830_v16 = vcombine.high %v13779_v58, %v13913_v37  ;;  %v2384_v3 = vrot.slane %v14033_v61, 4  ;;  %v11825_v25 = vcombine.high %v3001_v24, %v13692_v29 }
 0x252   : > { %v1340_v60 = vrot.slane %v1307_v23, 4  ;;  %v1133_v11 = vrot.slane %v1103_v52, 4  ;;  %4382 = vmatprep.subr.bf16.mxu1 %v12261_v59  ;;  %v20945_v6 = vrot.slane %v20944_v26, 4 }
 0x253   : > { %4480 = vmatpush2.bf16.msra.mxu0 %v20941_v41  ;;  %1491 = vrot.lane.b32.xlu0 %v14056_v15, %s12573_s15  ;;  %v14106_v41 = vld [vmem:[#allocation2 + $0x40] sm:$0xff] }
 0x254   : > { %4481 = vmatprep.subr.bf16.mxu0 %v12264_v5  ;;  %1497 = vrot.lane.b32.xlu1 %v14058_v57, %s12573_s15  ;;  %v1373_v50 = vsel %vm291_vm0, %v20942_v18, %v1340_v60  ;;  %v1375_v30 = vsel %vm1351_vm5, %v1307_v23, %v1340_v60  ;;  %v1169_v56 = vsel %vm291_vm0, %v20943_v28, %v1133_v11  ;;  %v14108_v60 = vld [vmem:[#allocation2 + $0x58] sm:$0xff] }
 0x255   : > { %v1171_v14 = vsel %vm1142_vm4, %v1103_v52, %v1133_v11  ;;  %v14076_v35 = vsel %vm1351_vm5, %v13461_v49, %v1373_v50  ;;  %1429 = vst [vmem:[#allocation4 + $0x100] sm:$0xf] %v1375_v30  ;;  %v14080_v10 = vsel %vm1142_vm4, %v13551_v12, %v1169_v56  ;;  %v2348_v45 = vpop.permute.xlu0 %2347  ;;  %v1313_v21 = vpop.permute.xlu1 %1312  ;;  %4383 = vmatpush2.bf16.msra.mxu1 %v12259_v19  ;;  %v12265_v12 = vld [vmem:[#allocation4 + $0x460] ss:$20 sps:$4 sm:$0xff]  }
 0x256   : > { %1223 = vst [vmem:[#allocation4 + $0x74] sm:$0xf] %v1171_v14  ;;  %v2383_v54 = vrot.slane %v2348_v45, 4  ;;  %v1343_v13 = vrot.slane %v1313_v21, 4  ;;  %4384 = vmatprep.subr.bf16.mxu1 %v11830_v16  ;;  %v11829_v49 = vcombine.low %v13779_v58, %v13913_v37  ;;  %v11824_v11 = vcombine.low %v3001_v24, %v13692_v29  ;;  %v12270_v30 = vld [vmem:[#allocation4 + $0x16c] ss:$20 sps:$4 sm:$0xff]  }
 0x257   : > { %4482 = vmatpush2.bf16.msra.mxu0 %v12262_v38  ;;  %1933 = vrot.lane.b32.xlu0 %v13526_v47, %s12570_s12  ;;  %v11910_v47 = vcombine.high %v13792_v34, %v13931_v62  ;;  %v11909_v19 = vcombine.low %v13792_v34, %v13931_v62  ;;  %v20946_v38 = vld [vmem:[#allocation40_spill] sm:$0xff]  ;;  %v12273_v24 = vld [vmem:[#allocation4 + $0x144] ss:$20 sps:$4 sm:$0xff]  }
 0x258   : > { %4483 = vmatprep.subr.bf16.mxu0 %v12267_v31  ;;  %1939 = vrot.lane.b32.xlu1 %v13541_v42, %s12570_s12  ;;  %v2416_v59 = vsel %vm291_vm0, %v2383_v54, %v2384_v3  ;;  %v1378_v0 = vsel %vm291_vm0, %v20945_v6, %v1343_v13  ;;  %v1380_v5 = vsel %vm1351_vm5, %v1313_v21, %v1343_v13  ;;  %v20947_v16 = vrot.slane %v20946_v38, 4  ;;  %v12268_v62 = vld [vmem:[#allocation4 + $0x168] ss:$20 sps:$4 sm:$0xff]  }
 0x259   : > { %v2417_v42 = vsel %vm2396_vm11, %v2348_v45, %v2416_v59  ;;  %v14102_v58 = vsel %vm1351_vm5, %v20944_v26, %v1378_v0  ;;  %1432 = vst [vmem:[#allocation4 + $0x114] sm:$0xf] %v1380_v5  ;;  %v14104_v37 = vpop.permute.xlu1 %2355  ;;  %v1109_v23 = vpop.permute.xlu0 %1108  ;;  %4385 = vmatpush2.bf16.msra.mxu1 %v11829_v49  ;;  %v20948_v21 = vrot.slane %v13794_v22, 4  ;;  %v14145_v0 = vld [vmem:[#allocation2 + $0xa0] sm:$0xff]  ;;  %v14147_v5 = vld [vmem:[#allocation2 + $0xb8] sm:$0xff] }
 0x25a   : > { %v1136_v52 = vrot.slane %v1109_v23, 4  ;;  %4386 = vmatprep.subr.bf16.mxu1 %v11825_v25  ;;  %v2387_v29 = vrot.slane %v14104_v37, 4 }
 0x25b   : > { %4484 = vmatpush2.bf16.msra.mxu0 %v12265_v12  ;;  %1921 = vrot.lane.b32.xlu0 %v14106_v41, %s12570_s12 }
 0x25c   : > { %4485 = vmatprep.subr.bf16.mxu0 %v11910_v47  ;;  %1927 = vrot.lane.b32.xlu1 %v14108_v60, %s12570_s12  ;;  %v1174_v18 = vsel %vm291_vm0, %v20947_v16, %v1136_v52  ;;  %v1176_v50 = vsel %vm1142_vm4, %v1109_v23, %v1136_v52  ;;  %v12277_v16 = vld [vmem:[%s20329_s3 + $0x2c] ss:$20 sps:$4 sm:$0xff]  }
 0x25d   : > { %v14123_v28 = vsel %vm1142_vm4, %v20946_v38, %v1174_v18  ;;  %1226 = vst [vmem:[#allocation4 + $0x88] sm:$0xf] %v1176_v50  ;;  %v2354_v56 = vpop.permute.xlu0 %2353  ;;  %v1115_v14 = vpop.permute.xlu1 %1114  ;;  %4387 = vmatpush2.bf16.msra.mxu1 %v11824_v11  ;;  %v12274_v11 = vld [vmem:[%s20329_s3] ss:$20 sps:$4 sm:$0xff]  }
 0x25e   : > { %v2386_v31 = vrot.slane %v2354_v56, 4  ;;  %v1139_v34 = vrot.slane %v1115_v14, 4  ;;  %4388 = vmatprep.subr.bf16.mxu1 %v12270_v30  ;;  %v14166_v30 = vld [vmem:[#allocation2 + $0x70] sm:$0xff] }
 0x25f   : > { %4486 = vmatpush2.bf16.msra.mxu0 %v11909_v19  ;;  %1909 = vrot.lane.b32.xlu0 %v14056_v15, %s12570_s12 }
 0x260   : > { %1915 = vrot.lane.b32.xlu1 %v14058_v57, %s12570_s12  ;;  %v2421_v45 = vsel %vm291_vm0, %v2386_v31, %v2387_v29  ;;  %v1179_v54 = vsel %vm291_vm0, %v20948_v21, %v1139_v34  ;;  %v1181_v13 = vsel %vm1142_vm4, %v1115_v14, %v1139_v34 }
 0x261   : > { %v2422_v49 = vsel %vm2396_vm11, %v2354_v56, %v2421_v45  ;;  %v14140_v12 = vsel %vm1142_vm4, %v13794_v22, %v1179_v54  ;;  %1229 = vst [vmem:[#allocation4 + $0x9c] sm:$0xf] %v1181_v13  ;;  %v2336_v25 = vpop.permute.xlu0 %2335  ;;  %v14142_v59 = vpop.permute.xlu1 %2337  ;;  %4389 = vmatpush2.bf16.msra.mxu1 %v12268_v62  ;;  %v12271_v22 = vld [vmem:[#allocation4 + $0x140] ss:$20 sps:$4 sm:$0xff]  }
 0x262   : > { %v2377_v26 = vrot.slane %v2336_v25, 4  ;;  %v2378_v6 = vrot.slane %v14142_v59, 4  ;;  %4390 = vmatprep.subr.bf16.mxu1 %v12273_v24  ;;  %v11904_v47 = vcombine.low %v2417_v42, %v2422_v49  ;;  %v11905_v23 = vcombine.high %v2417_v42, %v2422_v49  ;;  %v14168_v56 = vld [vmem:[#allocation2 + $0x88] sm:$0xff] }
 0x263   : > { %2572 = vrot.lane.b32.xlu0 %v14145_v0, %s12572_s14  ;;  %v12279_v49 = vld [vmem:[%s20329_s3 + $0x28] ss:$20 sps:$4 sm:$0xff]  }
 0x264   : > { %2578 = vrot.lane.b32.xlu1 %v14147_v5, %s12572_s14  ;;  %v2406_v52 = vsel %vm291_vm0, %v2377_v26, %v2378_v6  ;;  %4487 = vmatprep.subr.bf16.mxu0 %v11905_v23  ;;  %v12280_v23 = vld [vmem:[%s20329_s3 + $0x54] ss:$20 sps:$4 sm:$0xff]  }
 0x265   : > { %v2407_v19 = vsel %vm2396_vm11, %v2336_v25, %v2406_v52  ;;  %v2342_v38 = vpop.permute.xlu0 %2341  ;;  %v14160_v42 = vpop.permute.xlu1 %2343  ;;  %4391 = vmatpush2.bf16.msra.mxu1 %v12271_v22  ;;  %4488 = vmatpush2.bf16.msra.mxu0 %v11904_v47 }
 0x266   : > { %v2380_v18 = vrot.slane %v2342_v38, 4  ;;  %v2381_v50 = vrot.slane %v14160_v42, 4 }
 0x267   : > { %2560 = vrot.lane.b32.xlu0 %v14166_v30, %s12572_s14 }
 0x268   : > { %2566 = vrot.lane.b32.xlu1 %v14168_v56, %s12572_s14  ;;  %v2411_v14 = vsel %vm291_vm0, %v2380_v18, %v2381_v50  ;;  %4393 = vmatmul.mubr.bf16.vlgmr.msra.gmra.mxu1 %v12274_v11 }
 0x269   : > { %v2412_v31 = vsel %vm2396_vm11, %v2342_v38, %v2411_v14  ;;  %v2324_v34 = vpop.permute.xlu0 %2323  ;;  %v14178_v62 = vpop.permute.xlu1 %2325  ;;  %4402 = vmatprep.mubr.bf16.mxu1 %v12277_v16 }
 0x26a   : > { %v2371_v45 = vrot.slane %v2324_v34, 4  ;;  %v2372_v21 = vrot.slane %v14178_v62, 4  ;;  %v11899_v54 = vcombine.low %v2407_v19, %v2412_v31  ;;  %v11900_v13 = vcombine.high %v2407_v19, %v2412_v31 }
 0x26b   : > { %2548 = vrot.lane.b32.xlu0 %v14106_v41, %s12572_s14 }
 0x26c   : > { %2554 = vrot.lane.b32.xlu1 %v14108_v60, %s12572_s14  ;;  %v2395_v24 = vsel %vm291_vm0, %v2371_v45, %v2372_v21  ;;  %4489 = vmatprep.subr.bf16.mxu0 %v11900_v13  ;;  %v20949_v45 = vrot.slane %v13707_v40, 4 }
 0x26d   : > { %v2397_v25 = vsel %vm2396_vm11, %v2324_v34, %v2395_v24  ;;  %v2330_v26 = vpop.permute.xlu0 %2329  ;;  %v14192_v47 = vpop.permute.xlu1 %2331  ;;  %4490 = vmatpush2.bf16.msra.mxu0 %v11899_v54  ;;  %v20950_v24 = vld [vmem:[#allocation47_spill] sm:$0xff] }
 0x26e   : > { %v2374_v22 = vrot.slane %v2330_v26, 4  ;;  %v2375_v52 = vrot.slane %v14192_v47, 4 }
 0x26f   : > { %2536 = vrot.lane.b32.xlu0 %v14056_v15, %s12572_s14 }
 0x270   : > { %2542 = vrot.lane.b32.xlu1 %v14058_v57, %s12572_s14  ;;  %v2401_v11 = vsel %vm291_vm0, %v2374_v22, %v2375_v52  ;;  %4403 = vmatmul.mubr.bf16.gmra.mxu1 %v12279_v49  ;;  %v20951_v49 = vrot.slane %v20950_v24, 4  ;;  %v12285_v22 = vld [vmem:[%s20329_s3 + $0x50] ss:$20 sps:$4 sm:$0xff]  }
 0x271   : > { %v2402_v19 = vsel %vm2396_vm11, %v2330_v26, %v2401_v11  ;;  %v1319_v38 = vpop.permute.xlu0 %1318  ;;  %v1325_v16 = vpop.permute.xlu1 %1324  ;;  %4412 = vmatprep.mubr.bf16.mxu1 %v12280_v23 }
 0x272   : > { %v1346_v18 = vrot.slane %v1319_v38, 4  ;;  %v1349_v14 = vrot.slane %v1325_v16, 4  ;;  %v11894_v31 = vcombine.low %v2397_v25, %v2402_v19  ;;  %v11895_v34 = vcombine.high %v2397_v25, %v2402_v19  ;;  %v12282_v25 = vld [vmem:[%s20329_s3 + $0x8] ss:$20 sps:$4 sm:$0xff]  }
 0x273   : > { %2363 = vrot.lane.b32.xlu0 %v14145_v0, %s12574_s16 }
 0x274   : > { %2369 = vrot.lane.b32.xlu1 %v14147_v5, %s12574_s16  ;;  %v1383_v54 = vsel %vm291_vm0, %v20949_v45, %v1346_v18  ;;  %v1385_v13 = vsel %vm1351_vm5, %v1319_v38, %v1346_v18  ;;  %v1388_v26 = vsel %vm291_vm0, %v20951_v49, %v1349_v14  ;;  %v1390_v23 = vsel %vm1351_vm5, %v1325_v16, %v1349_v14  ;;  %v12286_v18 = vld [vmem:[%s20329_s3 + $0x7c] ss:$20 sps:$4 sm:$0xff]  }
 0x275   : > { %4491 = vmatprep.subr.bf16.mxu0 %v11895_v34  ;;  %v1384_v11 = vsel %vm1351_vm5, %v13707_v40, %v1383_v54  ;;  %1435 = vst [vmem:[#allocation4 + $0x128] sm:$0xf] %v1385_v13  ;;  %v1389_v19 = vsel %vm1351_vm5, %v20950_v24, %v1388_v26  ;;  %1438 = vst [vmem:[#allocation4 + $0x13c] sm:$0xf] %v1390_v23  ;;  %v2778_v38 = vpop.permute.xlu0 %2777  ;;  %v14228_v16 = vpop.permute.xlu1 %2779  ;;  %v12288_v40 = vld [vmem:[%s20329_s3 + $0x34] ss:$20 sps:$4 sm:$0xff]  }
 0x276   : > { %4492 = vmatpush2.bf16.msra.mxu0 %v11894_v31  ;;  %v2807_v14 = vrot.slane %v2778_v38, 4  ;;  %v2808_v34 = vrot.slane %v14228_v16, 4  ;;  %v11811_v45 = vcombine.low %v1384_v11, %v1389_v19  ;;  %v11812_v49 = vcombine.high %v1384_v11, %v1389_v19  ;;  %v12290_v19 = vld [vmem:[%s20329_s3 + $0x78] ss:$20 sps:$4 sm:$0xff]  }
 0x277   : > { %2351 = vrot.lane.b32.xlu0 %v14166_v30, %s12574_s16  ;;  %v11807_v11 = vcombine.high %v14076_v35, %v14102_v58 }
 0x278   : > { %2357 = vrot.lane.b32.xlu1 %v14168_v56, %s12574_s16  ;;  %v2844_v31 = vsel %vm291_vm0, %v2807_v14, %v2808_v34  ;;  %4413 = vmatmul.mubr.bf16.gmra.mxu1 %v12285_v22  ;;  %v11806_v22 = vcombine.low %v14076_v35, %v14102_v58 }
 0x279   : > { %4494 = vmatmul.mubr.bf16.vlgmr.msra.gmra.mxu0 %v12282_v25  ;;  %v2845_v54 = vsel %vm2814_vm12, %v2778_v38, %v2844_v31  ;;  %v2784_v13 = vpop.permute.xlu0 %2783  ;;  %v14245_v24 = vpop.permute.xlu1 %2785  ;;  %4663 = vmatprep.subr.bf16.mxu0 %v11812_v49  ;;  %v12291_v49 = vld [vmem:[%s20329_s3 + $0x30] ss:$20 sps:$4 sm:$0xff]  }
 0x27a   : > { %4422 = vmatprep.mubr.bf16.mxu1 %v12286_v18  ;;  %v2810_v26 = vrot.slane %v2784_v13, 4  ;;  %v2811_v23 = vrot.slane %v14245_v24, 4  ;;  %4664 = vmatpush1.bf16.msra.mxu0 %v11811_v45  ;;  %v11802_v45 = vcombine.high %v14027_v7, %v14031_v44 }
 0x27b   : > { %4503 = vmatprep.mubr.bf16.mxu0 %v12288_v40  ;;  %2339 = vrot.lane.b32.xlu0 %v14106_v41, %s12574_s16 }
 0x27c   : > { %2345 = vrot.lane.b32.xlu1 %v14108_v60, %s12574_s16  ;;  %v2849_v25 = vsel %vm291_vm0, %v2810_v26, %v2811_v23  ;;  %4665 = vmatprep.subr.bf16.mxu0 %v11807_v11  ;;  %v11801_v26 = vcombine.low %v14027_v7, %v14031_v44  ;;  %v12292_v11 = vld [vmem:[%s20329_s3 + $0xa4] ss:$20 sps:$4 sm:$0xff]   ;;  %v11797_v44 = vcombine.high %v13974_v36, %v13978_v46 }
 0x27d   : > { %v2850_v38 = vsel %vm2814_vm12, %v2784_v13, %v2849_v25  ;;  %v2766_v18 = vpop.permute.xlu0 %2765  ;;  %v14263_v14 = vpop.permute.xlu1 %2767 }
 0x27e   : > { %v2801_v40 = vrot.slane %v2766_v18, 4  ;;  %v2802_v35 = vrot.slane %v14263_v14, 4  ;;  %4666 = vmatpush1.bf16.msra.mxu0 %v11806_v22  ;;  %v11949_v58 = vcombine.low %v2845_v54, %v2850_v38  ;;  %v11950_v31 = vcombine.high %v2845_v54, %v2850_v38  ;;  %v12294_v38 = vld [vmem:[%s20329_s3 + $0x5c] ss:$20 sps:$4 sm:$0xff]  }
 0x27f   : > { %2327 = vrot.lane.b32.xlu0 %v14056_v15, %s12574_s16  ;;  %4667 = vmatprep.subr.bf16.mxu0 %v11802_v45 }
 0x280   : > { %2333 = vrot.lane.b32.xlu1 %v14058_v57, %s12574_s16  ;;  %v2834_v13 = vsel %vm291_vm0, %v2801_v40, %v2802_v35  ;;  %4423 = vmatmul.mubr.bf16.gmra.mxu1 %v12290_v19 }
 0x281   : > { %v2835_v54 = vsel %vm2814_vm12, %v2766_v18, %v2834_v13  ;;  %v2772_v25 = vpop.permute.xlu0 %2771  ;;  %v14284_v22 = vpop.permute.xlu1 %2773  ;;  %4504 = vmatmul.mubr.bf16.gmra.mxu0 %v12291_v49  ;;  %4570 = vmatprep.subr.bf16.mxu1 %v11950_v31  ;;  %v11796_v18 = vcombine.low %v13974_v36, %v13978_v46  ;;  %v11792_v36 = vcombine.high %v14123_v28, %v14140_v12 }
 0x282   : > { %v2804_v40 = vrot.slane %v2772_v25, 4  ;;  %v20475_v7 = vrot.slane %v14284_v22, 4  ;;  %4571 = vmatpush1.bf16.msra.mxu1 %v11949_v58  ;;  %4668 = vmatpush1.bf16.msra.mxu0 %v11801_v26  ;;  %v11791_v26 = vcombine.low %v14123_v28, %v14140_v12 }
 0x283   : > { %2781 = vrot.lane.b32.xlu0 %v14145_v0, %s12575_s23  ;;  %4669 = vmatprep.subr.bf16.mxu0 %v11797_v44  ;;  %v12296_v0 = vld [vmem:[%s20329_s3 + $0xa0] ss:$20 sps:$4 sm:$0xff]  }
 0x284   : > { %2787 = vrot.lane.b32.xlu1 %v14147_v5, %s12575_s23  ;;  %v2839_v19 = vsel %vm291_vm0, %v2804_v40, %v20475_v7  ;;  %4432 = vmatprep.mubr.bf16.mxu1 %v12292_v11  ;;  %v12297_v5 = vld [vmem:[%s20329_s3 + $0x58] ss:$20 sps:$4 sm:$0xff]  }
 0x285   : > { %v2840_v45 = vsel %vm2814_vm12, %v2772_v25, %v2839_v19  ;;  %v1737_v49 = vpop.permute.xlu0 %1736  ;;  %v1743_v58 = vpop.permute.xlu1 %1742  ;;  %4513 = vmatprep.mubr.bf16.mxu0 %v12294_v38  ;;  %v20952_v25 = vld [vmem:[#allocation43_spill] sm:$0xff] }
 0x286   : > { %v1764_v31 = vrot.slane %v1737_v49, 4  ;;  %v1767_v13 = vrot.slane %v1743_v58, 4  ;;  %4670 = vmatpush1.bf16.msra.mxu0 %v11796_v18  ;;  %v11945_v46 = vcombine.high %v2835_v54, %v2840_v45  ;;  %v11944_v11 = vcombine.low %v2835_v54, %v2840_v45  ;;  %v12300_v54 = vld [vmem:[%s20329_s3 + $0x84] ss:$20 sps:$4 sm:$0xff]  }
 0x287   : > { %2769 = vrot.lane.b32.xlu0 %v14166_v30, %s12575_s23  ;;  %v20953_v38 = vrot.slane %v20952_v25, 4  ;;  %4671 = vmatprep.subr.bf16.mxu0 %v11792_v36  ;;  %v12303_v36 = vld [vmem:[%s20329_s3 + $0x80] ss:$20 sps:$4 sm:$0xff]  }
 0x288   : > { %2775 = vrot.lane.b32.xlu1 %v14168_v56, %s12575_s23  ;;  %v1803_v44 = vsel %vm1769_vm8, %v1737_v49, %v1764_v31  ;;  %v1806_v19 = vsel %vm291_vm0, %v1766_v48, %v1767_v13  ;;  %v1808_v18 = vsel %vm1769_vm8, %v1743_v58, %v1767_v13  ;;  %4433 = vmatmul.mubr.bf16.gmra.mxu1 %v12296_v0  ;;  %v12298_v48 = vld [vmem:[%s20329_s3 + $0xcc] ss:$20 sps:$4 sm:$0xff]   ;;  %v2938_v58 = vld [vmem:[%s20329_s3 + $0xf0] sm:$0xff] }
 0x289   : > { %v1801_v40 = vsel %vm291_vm0, %v20953_v38, %v1764_v31  ;;  %1853 = vst [vmem:[#allocation4 + $0x268] sm:$0xf] %v1803_v44  ;;  %v14330_v28 = vsel %vm1769_vm8, %v13850_v17, %v1806_v19  ;;  %1856 = vst [vmem:[#allocation4 + $0x27c] sm:$0xf] %v1808_v18  ;;  %v2754_v12 = vpop.permute.xlu0 %2753  ;;  %v14332_v56 = vpop.permute.xlu1 %2755  ;;  %4514 = vmatmul.mubr.bf16.gmra.mxu0 %v12297_v5  ;;  %4572 = vmatprep.subr.bf16.mxu1 %v11945_v46  ;;  %v12306_v18 = vld [vmem:[#allocation4 + $0xc] ss:$20 sps:$4 sm:$0xff]  }
 0x28a   : > { %v14326_v30 = vsel %vm1769_vm8, %v20952_v25, %v1801_v40  ;;  %v2795_v45 = vrot.slane %v2754_v12, 4  ;;  %v20474_v49 = vrot.slane %v14332_v56, 4  ;;  %4672 = vmatpush1.bf16.msra.mxu0 %v11791_v26  ;;  %v11787_v17 = vcombine.high %v14051_v55, %v14080_v10  ;;  %4573 = vmatpush1.bf16.msra.mxu1 %v11944_v11  ;;  %v3158_v25 = vld [vmem:[%s20330_s4 + $0x8] sm:$0xff] }
 0x28b   : > { %2757 = vrot.lane.b32.xlu0 %v14106_v41, %s12575_s23  ;;  %v11786_v5 = vcombine.low %v14051_v55, %v14080_v10  ;;  %4442 = vmatprep.mubr.bf16.mxu1 %v12298_v48  ;;  %v14365_v55 = vcombine.high %v2938_v58, %v2938_v58  ;;  %v3157_v10 = vld [vmem:[%s20330_s4] sm:$0xff] }
 0x28c   : > { %2763 = vrot.lane.b32.xlu1 %v14108_v60, %s12575_s23  ;;  %v2824_v0 = vsel %vm291_vm0, %v2795_v45, %v20474_v49  ;;  %4673 = vmatprep.subr.bf16.mxu0 %v11787_v17  ;;  %v12302_v60 = vld [vmem:[%s20329_s3 + $0xc8] ss:$20 sps:$4 sm:$0xff]   ;;  %v12308_v40 = vld [vmem:[%s20329_s3 + $0xac] ss:$20 sps:$4 sm:$0xff]  }
 0x28d   : > { %v2825_v31 = vsel %vm2814_vm12, %v2754_v12, %v2824_v0  ;;  %v2760_v13 = vpop.permute.xlu0 %2759  ;;  %v14356_v41 = vpop.permute.xlu1 %2761  ;;  %4523 = vmatprep.mubr.bf16.mxu0 %v12300_v54  ;;  %v20956_v0 = vld [vmem:[#allocation37_spill] sm:$0xff] }
 0x28e   : > { %v2798_v46 = vrot.slane %v2760_v13, 4  ;;  %v20473_v26 = vrot.slane %v14356_v41, 4  ;;  %4674 = vmatpush1.bf16.msra.mxu0 %v11786_v5  ;;  %v20957_v5 = vrot.slane %v20956_v0, 4 }
 0x28f   : > { %2745 = vrot.lane.b32.xlu0 %v14056_v15, %s12575_s23  ;;  %4675 = vmatprep.subr.bf16.mxu0 %v11782_v33  ;;  %v20954_v33 = vld [vmem:[#allocation31_spill] sm:$0xff] }
 0x290   : > { %2751 = vrot.lane.b32.xlu1 %v14058_v57, %s12575_s23  ;;  %v2829_v11 = vsel %vm291_vm0, %v2798_v46, %v20473_v26  ;;  %4443 = vmatmul.mubr.bf16.gmra.mxu1 %v12302_v60  ;;  %v20955_v54 = vrot.slane %v20954_v33, 4 }
 0x291   : > { %v2830_v15 = vsel %vm2814_vm12, %v2760_v13, %v2829_v11  ;;  %v1725_v38 = vpop.permute.xlu0 %1724  ;;  %v1731_v57 = vpop.permute.xlu1 %1730  ;;  %4524 = vmatmul.mubr.bf16.gmra.mxu0 %v12303_v36  ;;  %4452 = vmatprep.mubr.bf16.mxu1 %v14365_v55  ;;  %v14411_v11 = vcombine.low %v2938_v58, %v2938_v58 }
 0x292   : > { %v1758_v44 = vrot.slane %v1725_v38, 4  ;;  %v1761_v19 = vrot.slane %v1731_v57, 4  ;;  %4676 = vmatpush1.bf16.msra.mxu0 %v11781_v8  ;;  %v11939_v12 = vcombine.low %v2825_v31, %v2830_v15  ;;  %v11940_v48 = vcombine.high %v2825_v31, %v2830_v15  ;;  %v3160_v8 = vld [vmem:[%s20330_s4 + $0x18] sm:$0xff]  ;;  %v12304_v31 = vld [vmem:[#allocation4 + $0x8] ss:$20 sps:$4 sm:$0xff]   ;;  %4533 = vmatprep.mubr.bf16.mxu0 %v12308_v40 }
 0x293   : > { %3172 = vperm.xlu0 %12236, %v3157_v10   ;;  %4677 = vmatprep.subr.bf16.mxu0 %v12306_v18  ;;  %v3161_v40 = vld [vmem:[%s20330_s4 + $0x20] sm:$0xff]  ;;  %v11851_v18 = vcombine.low %v14326_v30, %v14330_v28 }
 0x294   : > { %3177 = vperm.xlu1 %12237, %v3158_v25   ;;  %v1791_v45 = vsel %vm291_vm0, %v20955_v54, %v1758_v44  ;;  %v1793_v17 = vsel %vm1769_vm8, %v1725_v38, %v1758_v44  ;;  %v1796_v13 = vsel %vm291_vm0, %v20957_v5, %v1761_v19  ;;  %v1798_v9 = vsel %vm1769_vm8, %v1731_v57, %v1761_v19  ;;  %v12311_v25 = vld [vmem:[%s20329_s3 + $0xa8] ss:$20 sps:$4 sm:$0xff]   ;;  %v3163_v5 = vld [vmem:[%s20330_s4 + $0x30] sm:$0xff] }
 0x295   : > { %v1792_v60 = vsel %vm1769_vm8, %v20954_v33, %v1791_v45  ;;  %1847 = vst [vmem:[#allocation4 + $0x240] sm:$0xf] %v1793_v17  ;;  %v1797_v36 = vsel %vm1769_vm8, %v20956_v0, %v1796_v13  ;;  %1850 = vst [vmem:[#allocation4 + $0x254] sm:$0xf] %v1798_v9  ;;  %v2742_v46 = vpop.permute.xlu0 %2741  ;;  %v14409_v10 = vpop.permute.xlu1 %2743  ;;  %4574 = vmatprep.subr.bf16.mxu1 %v11940_v48  ;;  %v11852_v57 = vcombine.high %v14326_v30, %v14330_v28  ;;  %v12312_v44 = vld [vmem:[%s20329_s3 + $0xd4] ss:$20 sps:$4 sm:$0xff]  }
 0x296   : > { %v2789_v15 = vrot.slane %v2742_v46, 4  ;;  %v20472_v38 = vrot.slane %v14409_v10, 4  ;;  %4575 = vmatpush1.bf16.msra.mxu1 %v11939_v12  ;;  %4678 = vmatpush1.bf16.msra.mxu0 %v12304_v31  ;;  %v3162_v19 = vld [vmem:[%s20330_s4 + $0x28] sm:$0xff]  ;;  %v11847_v17 = vcombine.high %v1792_v60, %v1797_v36  ;;  %v2933_v0 = vld [vmem:[%s20329_s3 + $0xd0] sm:$0xff]  ;;  %v2939_v28 = vld [vmem:[%s20329_s3 + $0xf8] sm:$0xff] }
 0x297   : > { %3182 = vperm.xlu0 %12236, %v3159_v20   ;;  %4679 = vmatprep.subr.bf16.mxu0 %v11852_v57  ;;  %v2936_v30 = vld [vmem:[%s20329_s3 + $0xe4] sm:$0xff]  ;;  %v3164_v9 = vld [vmem:[%s20330_s4 + $0x38] sm:$0xff]  ;;  %v11846_v20 = vcombine.low %v1792_v60, %v1797_v36  ;;  %v14460_v57 = vcombine.high %v2939_v28, %v2939_v28 }
 0x298   : > { %3187 = vperm.xlu1 %12237, %v3160_v8   ;;  %v2813_v58 = vsel %vm291_vm0, %v2789_v15, %v20472_v38  ;;  %4453 = vmatmul.mubr.bf16.gmra.mxu1 %v14411_v11  ;;  %v20958_v8 = vmov 0   ;;  %v14458_v15 = vcombine.low %v2933_v0, %v2936_v30 }
 0x299   : > { %v2815_v12 = vsel %vm2814_vm12, %v2742_v46, %v2813_v58  ;;  %v2748_v48 = vpop.permute.xlu0 %2747  ;;  %v14434_v33 = vpop.permute.xlu1 %2749  ;;  %4534 = vmatmul.mubr.bf16.gmra.mxu0 %v12311_v25  ;;  %4594 = vmatprep.mubr.bf16.mxu1 %v20958_v8  ;;  %20959 = vst [vmem:[#allocation34_spill] sm:$0xff] %v14460_v57 }
 0x29a   : > { %v2792_v54 = vrot.slane %v2748_v48, 4  ;;  %v20471_v45 = vrot.slane %v14434_v33, 4  ;;  %4680 = vmatpush2.bf16.msra.mxu0 %v11851_v18  ;;  %4543 = vmatprep.mubr.bf16.mxu0 %v12312_v44  ;;  %v20960_v18 = vld [vmem:[#allocation21_spill] sm:$0xff] }
 0x29b   : > { %3192 = vperm.xlu0 %12236, %v3161_v40   ;;  %4681 = vmatprep.subr.bf16.mxu0 %v11847_v17  ;;  %v20961_v60 = vrot.slane %v20960_v18, 4 }
 0x29c   : > { %3197 = vperm.xlu1 %12237, %v3162_v19   ;;  %v2819_v13 = vsel %vm291_vm0, %v2792_v54, %v20471_v45 }
 0x29d   : > { %v2820_v31 = vsel %vm2814_vm12, %v2748_v48, %v2819_v13  ;;  %v1713_v46 = vpop.permute.xlu0 %1712  ;;  %v1719_v25 = vpop.permute.xlu1 %1718  ;;  %v20962_v48 = vld [vmem:[#allocation26_spill] sm:$0xff]  ;;  %v3165_v13 = vld [vmem:[%s20330_s4 + $0x40] sm:$0xff] }
 0x29e   : > { %v1752_v44 = vrot.slane %v1713_v46, 4  ;;  %v1755_v58 = vrot.slane %v1719_v25, 4  ;;  %4682 = vmatpush2.bf16.msra.mxu0 %v11846_v20  ;;  %v11934_v40 = vcombine.low %v2815_v12, %v2820_v31  ;;  %v11935_v19 = vcombine.high %v2815_v12, %v2820_v31  ;;  %v3166_v12 = vld [vmem:[%s20330_s4 + $0x48] sm:$0xff] }
 0x29f   : > { %3202 = vperm.xlu0 %12236, %v3163_v5   ;;  %v20963_v17 = vrot.slane %v20962_v48, 4  ;;  %v12315_v5 = vld [vmem:[%s20329_s3 + $0x10] ss:$20 sps:$4 sm:$0xff]  }
 0x2a0   : > { %3207 = vperm.xlu1 %12237, %v3164_v9   ;;  %v1781_v36 = vsel %vm291_vm0, %v20961_v60, %v1752_v44  ;;  %v1783_v54 = vsel %vm1769_vm8, %v1713_v46, %v1752_v44  ;;  %v1788_v30 = vsel %vm1769_vm8, %v1719_v25, %v1755_v58  ;;  %4576 = vmatprep.subr.bf16.mxu1 %v11935_v19 }
 0x2a1   : > { %v1786_v0 = vsel %vm291_vm0, %v20963_v17, %v1755_v58  ;;  %v1782_v9 = vsel %vm1769_vm8, %v20960_v18, %v1781_v36  ;;  %1841 = vst [vmem:[#allocation4 + $0x218] sm:$0xf] %v1783_v54  ;;  %1844 = vst [vmem:[#allocation4 + $0x22c] sm:$0xf] %v1788_v30  ;;  %v2155_v31 = vpop.permute.xlu0 %2154  ;;  %v2161_v46 = vpop.permute.xlu1 %2160  ;;  %4544 = vmatmul.mubr.bf16.gmra.mxu0 %v14458_v15  ;;  %4577 = vmatpush1.bf16.msra.mxu1 %v11934_v40  ;;  %v20964_v18 = vld [vmem:[#allocation41_spill] sm:$0xff]  ;;  %v3167_v17 = vld [vmem:[%s20330_s4 + $0x50] sm:$0xff] }
 0x2a2   : > { %v1787_v20 = vsel %vm1769_vm8, %v20962_v48, %v1786_v0  ;;  %v2182_v25 = vrot.slane %v2155_v31, 4  ;;  %v2185_v44 = vrot.slane %v2161_v46, 4  ;;  %4553 = vmatprep.mubr.bf16.mxu0 %v14460_v57  ;;  %v20965_v60 = vrot.slane %v20964_v18, 4  ;;  %v3168_v0 = vld [vmem:[%s20330_s4 + $0x58] sm:$0xff] }
 0x2a3   : > { %v11841_v58 = vcombine.low %v1782_v9, %v1787_v20  ;;  %v11842_v19 = vcombine.high %v1782_v9, %v1787_v20  ;;  %3212 = vperm.xlu0 %12236, %v3165_v13   ;;  %v14504_v9 = vcombine.low %v2939_v28, %v2939_v28 }
 0x2a4   : > { %3217 = vperm.xlu1 %12237, %v3166_v12   ;;  %v2219_v36 = vsel %vm291_vm0, %v20965_v60, %v2182_v25  ;;  %v2221_v54 = vsel %vm2187_vm6, %v2155_v31, %v2182_v25  ;;  %v2224_v48 = vsel %vm291_vm0, %v2184_v4, %v2185_v44  ;;  %v2226_v40 = vsel %vm2187_vm6, %v2161_v46, %v2185_v44  ;;  %v3169_v25 = vld [vmem:[%s20330_s4 + $0x60] sm:$0xff] }
 0x2a5   : > { %11954 = vmatmul.mubr.msk.bf16.vlgmr.msra.gmra.mxu1 %vm4338_vm13, %v12315_v5  ;;  %v2220_v30 = vsel %vm2187_vm6, %v20964_v18, %v2219_v36  ;;  %2271 = vst [vmem:[#allocation4 + $0x3a8] sm:$0xf] %v2221_v54  ;;  %v2225_v13 = vsel %vm2187_vm6, %v13818_v2, %v2224_v48  ;;  %2274 = vst [vmem:[#allocation4 + $0x3bc] sm:$0xf] %v2226_v40  ;;  %v1701_v4 = vpop.permute.xlu0 %1700  ;;  %v1707_v12 = vpop.permute.xlu1 %1706  ;;  %4683 = vmatprep.subr.bf16.mxu0 %v11842_v19  ;;  %v20967_v2 = vld [vmem:[#allocation11_spill] sm:$0xff]  ;;  %v20969_v19 = vld [vmem:[#allocation16_spill] sm:$0xff] }
 0x2a6   : > { %20966 = vst [vmem:[#allocation40_spill] sm:$0xff] %v14504_v9  ;;  %4604 = vmatprep.mubr.bf16.mxu1 %v20958_v8  ;;  %v1746_v20 = vrot.slane %v1701_v4, 4  ;;  %v1749_v31 = vrot.slane %v1707_v12, 4  ;;  %4684 = vmatpush2.bf16.msra.mxu0 %v11841_v58  ;;  %v11891_v46 = vcombine.low %v2220_v30, %v2225_v13  ;;  %v11892_v5 = vcombine.high %v2220_v30, %v2225_v13  ;;  %v12318_v54 = vld [vmem:[%s20329_s3 + $0x38] ss:$20 sps:$4 sm:$0xff]  }
 0x2a7   : > { %3222 = vperm.xlu0 %12236, %v3167_v17   ;;  %v20968_v44 = vrot.slane %v20967_v2, 4  ;;  %v20970_v60 = vrot.slane %v20969_v19, 4 }
 0x2a8   : > { %3227 = vperm.xlu1 %12237, %v3168_v0   ;;  %v1773_v28 = vsel %vm1769_vm8, %v1701_v4, %v1746_v20  ;;  %v1778_v58 = vsel %vm1769_vm8, %v1707_v12, %v1749_v31  ;;  %4764 = vmatprep.subr.bf16.mxu1 %v11892_v5  ;;  %v20971_v5 = vld [vmem:[#allocation29_spill] sm:$0xff] }
 0x2a9   : > { %v1771_v18 = vsel %vm291_vm0, %v20968_v44, %v1746_v20  ;;  %v1776_v36 = vsel %vm291_vm0, %v20970_v60, %v1749_v31  ;;  %1835 = vst [vmem:[#allocation4 + $0x1f0] sm:$0xf] %v1773_v28  ;;  %1838 = vst [vmem:[#allocation4 + $0x204] sm:$0xf] %v1778_v58  ;;  %v2143_v17 = vpop.permute.xlu0 %2142  ;;  %v2149_v0 = vpop.permute.xlu1 %2148  ;;  %4554 = vmatmul.mubr.bf16.gmra.mxu0 %v14504_v9  ;;  %4765 = vmatpush1.bf16.msra.mxu1 %v11891_v46  ;;  %v12500_v20 = vld [vmem:[%s20329_s3 + $0x4] ss:$20 sps:$4 sm:$0xff]  }
 0x2aa   : > { %v1772_v48 = vsel %vm1769_vm8, %v20967_v2, %v1771_v18  ;;  %v1777_v40 = vsel %vm1769_vm8, %v20969_v19, %v1776_v36  ;;  %v2176_v30 = vrot.slane %v2143_v17, 4  ;;  %v2179_v13 = vrot.slane %v2149_v0, 4  ;;  %4695 = vmatprep.mubr.bf16.mxu0 %v12500_v20  ;;  %v14529_v31 = vld [vmem:[#allocation3] sm:$0xff]  ;;  %v20973_v18 = vld [vmem:[#allocation35_spill] sm:$0xff] }
 0x2ab   : > { %v11836_v4 = vcombine.low %v1772_v48, %v1777_v40  ;;  %v11837_v12 = vcombine.high %v1772_v48, %v1777_v40  ;;  %3232 = vperm.xlu0 %12236, %v3169_v25   ;;  %v20972_v2 = vrot.slane %v20971_v5, 4  ;;  %v20974_v28 = vrot.slane %v20973_v18, 4 }
 0x2ac   : > { %5829 = vrot.lane.b32.xlu1 %v14529_v31, %s12576_s27  ;;  %v2211_v44 = vsel %vm2187_vm6, %v2143_v17, %v2176_v30  ;;  %v2216_v60 = vsel %vm2187_vm6, %v2149_v0, %v2179_v13  ;;  %v14544_v25 = vcombine.high %v14529_v31, %v14529_v31 }
 0x2ad   : > { %v2209_v46 = vsel %vm291_vm0, %v20972_v2, %v2176_v30  ;;  %v2214_v19 = vsel %vm291_vm0, %v20974_v28, %v2179_v13  ;;  %11955 = vmatmul.mubr.msk.bf16.gmra.mxu1 %vm4338_vm13, %v12318_v54  ;;  %2265 = vst [vmem:[#allocation4 + $0x380] sm:$0xf] %v2211_v44  ;;  %2268 = vst [vmem:[#allocation4 + $0x394] sm:$0xf] %v2216_v60  ;;  %v1528_v48 = vpop.permute.xlu0 %1527  ;;  %v1534_v40 = vpop.permute.xlu1 %1533  ;;  %4685 = vmatprep.subr.bf16.mxu0 %v11837_v12  ;;  %v14551_v13 = vld [vmem:[#allocation3 + $0x8] sm:$0xff] }
 0x2ae   : > { %20975 = vst [vmem:[#allocation47_spill] sm:$0xff] %v14544_v25  ;;  %v2210_v36 = vsel %vm2187_vm6, %v20971_v5, %v2209_v46  ;;  %v2215_v58 = vsel %vm2187_vm6, %v20973_v18, %v2214_v19  ;;  %4614 = vmatprep.mubr.bf16.mxu1 %v20958_v8  ;;  %v1555_v17 = vrot.slane %v1528_v48, 4  ;;  %v1558_v0 = vrot.slane %v1534_v40, 4  ;;  %4686 = vmatpush2.bf16.msra.mxu0 %v11836_v4  ;;  %v12319_v12 = vld [vmem:[%s20329_s3 + $0x60] ss:$20 sps:$4 sm:$0xff]   ;;  %v20977_v4 = vld [vmem:[#allocation45_spill] sm:$0xff] }
 0x2af   : > { %v11886_v54 = vcombine.low %v2210_v36, %v2215_v58  ;;  %v11887_v30 = vcombine.high %v2210_v36, %v2215_v58  ;;  %v14555_v20 = vcombine.high %v14551_v13, %v14551_v13  ;;  %5831 = vrot.lane.b32.xlu0 %v14544_v25, %s12576_s27  ;;  %v14564_v5 = vld [vmem:[#allocation3 + $0x10] sm:$0xff]  ;;  %v20978_v2 = vrot.slane %v20977_v4, 4 }
 0x2b0   : > { %5833 = vrot.lane.b32.xlu1 %v14551_v13, %s12576_s27  ;;  %v1594_v44 = vsel %vm1560_vm10, %v1528_v48, %v1555_v17  ;;  %v1597_v18 = vsel %vm291_vm0, %v1557_v39, %v1558_v0  ;;  %v1599_v28 = vsel %vm1560_vm10, %v1534_v40, %v1558_v0  ;;  %v14580_v39 = vcombine.high %v14564_v5, %v14564_v5  ;;  %v20979_v40 = vld [vmem:[#allocation19_spill] sm:$0xff] }
 0x2b1   : > { %20976 = vst [vmem:[#allocation43_spill] sm:$0xff] %v14555_v20  ;;  %v1592_v46 = vsel %vm291_vm0, %v20978_v2, %v1555_v17  ;;  %4766 = vmatprep.subr.bf16.mxu1 %v11887_v30  ;;  %1644 = vst [vmem:[#allocation4 + $0x1c8] sm:$0xf] %v1594_v44  ;;  %v1598_v60 = vsel %vm1560_vm10, %v13895_v27, %v1597_v18  ;;  %v2131_v36 = vpop.permute.xlu0 %2130  ;;  %v2137_v58 = vpop.permute.xlu1 %2136  ;;  %v20980_v27 = vrot.slane %v20979_v40, 4  ;;  %v20981_v30 = vld [vmem:[#allocation24_spill] sm:$0xff] }
 0x2b2   : > { %v1593_v19 = vsel %vm1560_vm10, %v20977_v4, %v1592_v46  ;;  %1647 = vst [vmem:[#allocation4 + $0x1dc] sm:$0xf] %v1599_v28  ;;  %4767 = vmatpush1.bf16.msra.mxu1 %v11886_v54  ;;  %v2170_v2 = vrot.slane %v2131_v36, 4  ;;  %v2173_v48 = vrot.slane %v2137_v58, 4  ;;  %v20982_v4 = vrot.slane %v20981_v30, 4 }
 0x2b3   : > { %v11831_v17 = vcombine.low %v1593_v19, %v1598_v60  ;;  %v11832_v45 = vcombine.high %v1593_v19, %v1598_v60  ;;  %5835 = vrot.lane.b32.xlu0 %v14555_v20, %s12576_s27 }
 0x2b4   : > { %5837 = vrot.lane.b32.xlu1 %v14564_v5, %s12576_s27  ;;  %v2199_v0 = vsel %vm291_vm0, %v20980_v27, %v2170_v2  ;;  %v2201_v54 = vsel %vm2187_vm6, %v2131_v36, %v2170_v2  ;;  %v2204_v46 = vsel %vm291_vm0, %v20982_v4, %v2173_v48  ;;  %v2206_v44 = vsel %vm2187_vm6, %v2137_v58, %v2173_v48  ;;  %v12320_v4 = vld [vmem:[%s20329_s3 + $0x88] ss:$20 sps:$4 sm:$0xff]  }
 0x2b5   : > { %11956 = vmatmul.mubr.msk.bf16.gmra.mxu1 %vm4338_vm13, %v12319_v12  ;;  %v2200_v18 = vsel %vm2187_vm6, %v20979_v40, %v2199_v0  ;;  %2259 = vst [vmem:[#allocation4 + $0x358] sm:$0xf] %v2201_v54  ;;  %v2205_v28 = vsel %vm2187_vm6, %v20981_v30, %v2204_v46  ;;  %2262 = vst [vmem:[#allocation4 + $0x36c] sm:$0xf] %v2206_v44  ;;  %v1516_v19 = vpop.permute.xlu0 %1515  ;;  %4687 = vmatprep.subr.bf16.mxu0 %v11832_v45  ;;  %v20983_v12 = vld [vmem:[#allocation33_spill] sm:$0xff]  ;;  %v20985_v0 = vld [vmem:[#allocation39_spill] sm:$0xff] }
 0x2b6   : > { %v1522_v60 = vpop.permute.xlu1 %1521  ;;  %4624 = vmatprep.mubr.bf16.mxu1 %v20958_v8  ;;  %v1549_v36 = vrot.slane %v1516_v19, 4  ;;  %4688 = vmatpush2.bf16.msra.mxu0 %v11831_v17  ;;  %v11881_v27 = vcombine.low %v2200_v18, %v2205_v28  ;;  %v11882_v58 = vcombine.high %v2200_v18, %v2205_v28  ;;  %v20984_v48 = vrot.slane %v20983_v12, 4 }
 0x2b7   : > { %v1552_v2 = vrot.slane %v1522_v60, 4  ;;  %5839 = vrot.lane.b32.xlu0 %v14580_v39, %s12576_s27  ;;  %v20986_v54 = vrot.slane %v20985_v0, 4  ;;  %s12581_s27 = smov 104  }
 0x2b8   : > { %6075 = vrot.lane.b32.xlu1 %v14529_v31, %s12577_s8  ;;  %v1582_v40 = vsel %vm291_vm0, %v20984_v48, %v1549_v36  ;;  %v1584_v45 = vsel %vm1560_vm10, %v1516_v19, %v1549_v36  ;;  %4768 = vmatprep.subr.bf16.mxu1 %v11882_v58 }
 0x2b9   : > { %v1587_v30 = vsel %vm291_vm0, %v20986_v54, %v1552_v2  ;;  %v1589_v17 = vsel %vm1560_vm10, %v1522_v60, %v1552_v2  ;;  %v1583_v46 = vsel %vm1560_vm10, %v20983_v12, %v1582_v40  ;;  %1638 = vst [vmem:[#allocation4 + $0x1a0] sm:$0xf] %v1584_v45  ;;  %v2119_v18 = vpop.permute.xlu0 %2118  ;;  %4769 = vmatpush1.bf16.msra.mxu1 %v11881_v27  ;;  %v20987_v2 = vld [vmem:[#allocation9_spill] sm:$0xff]  ;;  %v20989_v45 = vld [vmem:[#allocation14_spill] sm:$0xff] }
 0x2ba   : > { %v1588_v44 = vsel %vm1560_vm10, %v20985_v0, %v1587_v30  ;;  %1641 = vst [vmem:[#allocation4 + $0x1b4] sm:$0xf] %v1589_v17  ;;  %v2125_v28 = vpop.permute.xlu1 %2124  ;;  %v2164_v19 = vrot.slane %v2119_v18, 4  ;;  %v20988_v58 = vrot.slane %v20987_v2, 4  ;;  %v20990_v0 = vrot.slane %v20989_v45, 4 }
 0x2bb   : > { %v2167_v36 = vrot.slane %v2125_v28, 4  ;;  %v11826_v48 = vcombine.low %v1583_v46, %v1588_v44  ;;  %v11827_v60 = vcombine.high %v1583_v46, %v1588_v44  ;;  %6077 = vrot.lane.b32.xlu0 %v14544_v25, %s12577_s8 }
 0x2bc   : > { %6079 = vrot.lane.b32.xlu1 %v14551_v13, %s12577_s8  ;;  %v2189_v12 = vsel %vm291_vm0, %v20988_v58, %v2164_v19  ;;  %v2191_v40 = vsel %vm2187_vm6, %v2119_v18, %v2164_v19 }
 0x2bd   : > { %v2194_v27 = vsel %vm291_vm0, %v20990_v0, %v2167_v36  ;;  %v2196_v54 = vsel %vm2187_vm6, %v2125_v28, %v2167_v36  ;;  %11957 = vmatmul.mubr.msk.bf16.gmra.mxu1 %vm4338_vm13, %v12320_v4  ;;  %v2190_v30 = vsel %vm2187_vm6, %v20987_v2, %v2189_v12  ;;  %2253 = vst [vmem:[#allocation4 + $0x330] sm:$0xf] %v2191_v40  ;;  %v1504_v46 = vpop.permute.xlu0 %1503  ;;  %v20991_v4 = vld [vmem:[#allocation23_spill] sm:$0xff]  ;;  %v12321_v0 = vld [vmem:[%s20329_s3 + $0xb0] ss:$20 sps:$4 sm:$0xff]  }
 0x2be   : > { %v2195_v17 = vsel %vm2187_vm6, %v20989_v45, %v2194_v27  ;;  %2256 = vst [vmem:[#allocation4 + $0x344] sm:$0xf] %v2196_v54  ;;  %v1510_v44 = vpop.permute.xlu1 %1509  ;;  %4689 = vmatprep.subr.bf16.mxu0 %v11827_v60  ;;  %4634 = vmatprep.mubr.bf16.mxu1 %v20958_v8  ;;  %v1543_v18 = vrot.slane %v1504_v46, 4  ;;  %v20992_v36 = vrot.slane %v20991_v4, 4  ;;  %v20993_v60 = vld [vmem:[#allocation28_spill] sm:$0xff] }
 0x2bf   : > { %v1546_v19 = vrot.slane %v1510_v44, 4  ;;  %4690 = vmatpush2.bf16.msra.mxu0 %v11826_v48  ;;  %v11876_v58 = vcombine.low %v2190_v30, %v2195_v17  ;;  %v11877_v28 = vcombine.high %v2190_v30, %v2195_v17  ;;  %6081 = vrot.lane.b32.xlu0 %v14555_v20, %s12577_s8  ;;  %v20994_v40 = vrot.slane %v20993_v60, 4 }
 0x2c0   : > { %6083 = vrot.lane.b32.xlu1 %v14564_v5, %s12577_s8  ;;  %v1572_v2 = vsel %vm291_vm0, %v20992_v36, %v1543_v18  ;;  %v1574_v12 = vsel %vm1560_vm10, %v1504_v46, %v1543_v18 }
 0x2c1   : > { %v1577_v45 = vsel %vm291_vm0, %v20994_v40, %v1546_v19  ;;  %v1579_v48 = vsel %vm1560_vm10, %v1510_v44, %v1546_v19  ;;  %4770 = vmatprep.subr.bf16.mxu1 %v11877_v28  ;;  %v1573_v27 = vsel %vm1560_vm10, %v20991_v4, %v1572_v2  ;;  %1632 = vst [vmem:[#allocation4 + $0x178] sm:$0xf] %v1574_v12  ;;  %v1946_v30 = vpop.permute.xlu0 %1945  ;;  %v20995_v19 = vld [vmem:[#allocation42_spill] sm:$0xff] }
 0x2c2   : > { %v1578_v54 = vsel %vm1560_vm10, %v20993_v60, %v1577_v45  ;;  %1635 = vst [vmem:[#allocation4 + $0x18c] sm:$0xf] %v1579_v48  ;;  %v1952_v17 = vpop.permute.xlu1 %1951  ;;  %4771 = vmatpush1.bf16.msra.mxu1 %v11876_v58  ;;  %v1973_v46 = vrot.slane %v1946_v30, 4  ;;  %v20996_v28 = vrot.slane %v20995_v19, 4 }
 0x2c3   : > { %v1976_v18 = vrot.slane %v1952_v17, 4  ;;  %v11821_v36 = vcombine.low %v1573_v27, %v1578_v54  ;;  %v11822_v44 = vcombine.high %v1573_v27, %v1578_v54  ;;  %6085 = vrot.lane.b32.xlu0 %v14580_v39, %s12577_s8 }
 0x2c4   : > { %6297 = vrot.lane.b32.xlu1 %v14529_v31, %s12578_s26  ;;  %v2010_v4 = vsel %vm291_vm0, %v20996_v28, %v1973_v46  ;;  %v2012_v2 = vsel %vm1978_vm7, %v1946_v30, %v1973_v46  ;;  %v12322_v28 = vld [vmem:[%s20329_s3 + $0xd8] ss:$20 sps:$4 sm:$0xff]  }
 0x2c5   : > { %v2015_v58 = vsel %vm291_vm0, %v1975_v32, %v1976_v18  ;;  %v2017_v12 = vsel %vm1978_vm7, %v1952_v17, %v1976_v18  ;;  %11958 = vmatmul.mubr.msk.bf16.gmra.mxu1 %vm4338_vm13, %v12321_v0  ;;  %v2011_v60 = vsel %vm1978_vm7, %v20995_v19, %v2010_v4  ;;  %2062 = vst [vmem:[#allocation4 + $0x308] sm:$0xf] %v2012_v2  ;;  %v1492_v45 = vpop.permute.xlu0 %1491  ;;  %v20997_v0 = vld [vmem:[#allocation13_spill] sm:$0xff]  ;;  %v20999_v18 = vld [vmem:[#allocation18_spill] sm:$0xff] }
 0x2c6   : > { %v2016_v40 = vsel %vm1978_vm7, %v13833_v43, %v2015_v58  ;;  %2065 = vst [vmem:[#allocation4 + $0x31c] sm:$0xf] %v2017_v12  ;;  %v1498_v48 = vpop.permute.xlu1 %1497  ;;  %4691 = vmatprep.subr.bf16.mxu0 %v11822_v44  ;;  %4644 = vmatprep.mubr.bf16.mxu1 %v20958_v8  ;;  %v1537_v27 = vrot.slane %v1492_v45, 4  ;;  %v20998_v17 = vrot.slane %v20997_v0, 4  ;;  %v21000_v44 = vrot.slane %v20999_v18, 4 }
 0x2c7   : > { %v1540_v54 = vrot.slane %v1498_v48, 4  ;;  %4692 = vmatpush2.bf16.msra.mxu0 %v11821_v36  ;;  %v11871_v32 = vcombine.low %v2011_v60, %v2016_v40  ;;  %v11872_v30 = vcombine.high %v2011_v60, %v2016_v40  ;;  %6299 = vrot.lane.b32.xlu0 %v14544_v25, %s12578_s26 }
 0x2c8   : > { %6301 = vrot.lane.b32.xlu1 %v14551_v13, %s12578_s26  ;;  %v1562_v43 = vsel %vm291_vm0, %v20998_v17, %v1537_v27  ;;  %v1564_v46 = vsel %vm1560_vm10, %v1492_v45, %v1537_v27  ;;  %v21001_v27 = vld [vmem:[#allocation30_spill] sm:$0xff]  ;;  %v21003_v17 = vld [vmem:[#allocation36_spill] sm:$0xff] }
 0x2c9   : > { %v1567_v19 = vsel %vm291_vm0, %v21000_v44, %v1540_v54  ;;  %v1569_v36 = vsel %vm1560_vm10, %v1498_v48, %v1540_v54  ;;  %4772 = vmatprep.subr.bf16.mxu1 %v11872_v30  ;;  %v1563_v4 = vsel %vm1560_vm10, %v20997_v0, %v1562_v43  ;;  %1626 = vst [vmem:[#allocation4 + $0x150] sm:$0xf] %v1564_v46  ;;  %v1934_v58 = vpop.permute.xlu0 %1933  ;;  %v21002_v54 = vrot.slane %v21001_v27, 4 }
 0x2ca   : > { %v1568_v2 = vsel %vm1560_vm10, %v20999_v18, %v1567_v19  ;;  %1629 = vst [vmem:[#allocation4 + $0x164] sm:$0xf] %v1569_v36  ;;  %v1940_v12 = vpop.permute.xlu1 %1939  ;;  %4773 = vmatpush1.bf16.msra.mxu1 %v11871_v32  ;;  %v1967_v60 = vrot.slane %v1934_v58, 4  ;;  %v21004_v43 = vrot.slane %v21003_v17, 4 }
 0x2cb   : > { %v1970_v40 = vrot.slane %v1940_v12, 4  ;;  %v11816_v45 = vcombine.low %v1563_v4, %v1568_v2  ;;  %v11817_v48 = vcombine.high %v1563_v4, %v1568_v2  ;;  %6303 = vrot.lane.b32.xlu0 %v14555_v20, %s12578_s26 }
 0x2cc   : > { %6305 = vrot.lane.b32.xlu1 %v14564_v5, %s12578_s26  ;;  %v2000_v30 = vsel %vm291_vm0, %v21002_v54, %v1967_v60  ;;  %v2002_v0 = vsel %vm1978_vm7, %v1934_v58, %v1967_v60 }
 0x2cd   : > { %v2005_v32 = vsel %vm291_vm0, %v21004_v43, %v1970_v40  ;;  %v2007_v46 = vsel %vm1978_vm7, %v1940_v12, %v1970_v40  ;;  %11959 = vmatmul.mubr.msk.bf16.gmra.mxu1 %vm4338_vm13, %v12322_v28  ;;  %v2001_v18 = vsel %vm1978_vm7, %v21001_v27, %v2000_v30  ;;  %2056 = vst [vmem:[#allocation4 + $0x2e0] sm:$0xf] %v2002_v0  ;;  %v1922_v19 = vpop.permute.xlu0 %1921  ;;  %v21005_v28 = vld [vmem:[#allocation20_spill] sm:$0xff]  ;;  %v21007_v27 = vld [vmem:[#allocation25_spill] sm:$0xff] }
 0x2ce   : > { %v2006_v44 = vsel %vm1978_vm7, %v21003_v17, %v2005_v32  ;;  %2059 = vst [vmem:[#allocation4 + $0x2f4] sm:$0xf] %v2007_v46  ;;  %v1928_v36 = vpop.permute.xlu1 %1927  ;;  %4693 = vmatprep.subr.bf16.mxu0 %v11817_v48  ;;  %4654 = vmatprep.mubr.bf16.mxu1 %v20958_v8  ;;  %v1961_v4 = vrot.slane %v1922_v19, 4  ;;  %v21006_v60 = vrot.slane %v21005_v28, 4  ;;  %v21008_v54 = vrot.slane %v21007_v27, 4 }
 0x2cf   : > { %v1964_v2 = vrot.slane %v1928_v36, 4  ;;  %4694 = vmatpush2.bf16.msra.mxu0 %v11816_v45  ;;  %v11866_v58 = vcombine.low %v2001_v18, %v2006_v44  ;;  %v11867_v12 = vcombine.high %v2001_v18, %v2006_v44  ;;  %6307 = vrot.lane.b32.xlu0 %v14580_v39, %s12578_s26  ;;  %v14726_v0 = vld [vmem:[%s20329_s3 + $0x100] ss:$0 sps:$4 sm:$0xff]   ;;  %s12582_s26 = smov 88  }
 0x2d0   : > { %6543 = vrot.lane.b32.xlu1 %v14529_v31, %s12579_s7  ;;  %v1990_v40 = vsel %vm291_vm0, %v21006_v60, %v1961_v4  ;;  %v1992_v48 = vsel %vm1978_vm7, %v1922_v19, %v1961_v4  ;;  %v14735_v18 = vld [vmem:[%s20329_s3] ss:$20 sps:$4 sm:$0xff]  }
 0x2d1   : > { %v1995_v30 = vsel %vm291_vm0, %v21008_v54, %v1964_v2  ;;  %v1997_v45 = vsel %vm1978_vm7, %v1928_v36, %v1964_v2  ;;  %4774 = vmatprep.subr.bf16.mxu1 %v11867_v12  ;;  %v1991_v17 = vsel %vm1978_vm7, %v21005_v28, %v1990_v40  ;;  %2050 = vst [vmem:[#allocation4 + $0x2b8] sm:$0xf] %v1992_v48  ;;  %v1910_v32 = vpop.permute.xlu0 %1909  ;;  %v14741_v2 = vld [vmem:[%s20329_s3 + $0x2c] ss:$20 sps:$4 sm:$0xff]   ;;  %v21009_v12 = vld [vmem:[#allocation10_spill] sm:$0xff]  ;;  %v21011_v40 = vld [vmem:[#allocation15_spill] sm:$0xff] }
 0x2d2   : > { %v1996_v43 = vsel %vm1978_vm7, %v21007_v27, %v1995_v30  ;;  %2053 = vst [vmem:[#allocation4 + $0x2cc] sm:$0xf] %v1997_v45  ;;  %v1916_v46 = vpop.permute.xlu1 %1915  ;;  %4696 = vmatmul.mubr.bf16.vlgmr.msra.gmra.mxu0 %v14735_v18  ;;  %4775 = vmatpush1.bf16.msra.mxu1 %v11866_v58  ;;  %v1955_v44 = vrot.slane %v1910_v32, 4  ;;  %v21010_v28 = vrot.slane %v21009_v12, 4  ;;  %v21012_v48 = vrot.slane %v21011_v40, 4 }
 0x2d3   : > { %v1958_v19 = vrot.slane %v1916_v46, 4  ;;  %v11861_v36 = vcombine.low %v1991_v17, %v1996_v43  ;;  %v11862_v4 = vcombine.high %v1991_v17, %v1996_v43  ;;  %4705 = vmatprep.mubr.bf16.mxu0 %v14741_v2  ;;  %6545 = vrot.lane.b32.xlu0 %v14544_v25, %s12579_s7 }
 0x2d4   : > { %6547 = vrot.lane.b32.xlu1 %v14551_v13, %s12579_s7  ;;  %v1980_v58 = vsel %vm291_vm0, %v21010_v28, %v1955_v44  ;;  %v1982_v60 = vsel %vm1978_vm7, %v1910_v32, %v1955_v44  ;;  %v14765_v32 = vld [vmem:[%s20329_s3 + $0xc] ss:$20 sps:$4 sm:$0xff]  }
 0x2d5   : > { %v1985_v27 = vsel %vm291_vm0, %v21012_v48, %v1958_v19  ;;  %v1987_v54 = vsel %vm1978_vm7, %v1916_v46, %v1958_v19  ;;  %11960 = vmatmul.mubr.msk.bf16.gmra.mxu1 %vm4338_vm13, %v14726_v0  ;;  %v1981_v30 = vsel %vm1978_vm7, %v21009_v12, %v1980_v58  ;;  %2044 = vst [vmem:[#allocation4 + $0x290] sm:$0xf] %v1982_v60  ;;  %v2573_v17 = vpop.permute.xlu0 %2572  ;;  %v21013_v28 = vld [vmem:[#allocation44_spill] sm:$0xff] }
 0x2d6   : > { %v1986_v45 = vsel %vm1978_vm7, %v21011_v40, %v1985_v27  ;;  %2047 = vst [vmem:[#allocation4 + $0x2a4] sm:$0xf] %v1987_v54  ;;  %v2579_v43 = vpop.permute.xlu1 %2578  ;;  %4776 = vmatprep.subr.bf16.mxu1 %v11862_v4  ;;  %4796 = vmatprep.mubr.bf16.mxu1 %v14765_v32  ;;  %v2600_v46 = vrot.slane %v2573_v17, 4  ;;  %v21014_v4 = vrot.slane %v21013_v28, 4 }
 0x2d7   : > { %v2603_v44 = vrot.slane %v2579_v43, 4  ;;  %4777 = vmatpush1.bf16.msra.mxu1 %v11861_v36  ;;  %v11856_v19 = vcombine.low %v1981_v30, %v1986_v45  ;;  %v11857_v12 = vcombine.high %v1981_v30, %v1986_v45  ;;  %6549 = vrot.lane.b32.xlu0 %v14555_v20, %s12579_s7  ;;  %v14787_v45 = vld [vmem:[%s20329_s3 + $0x28] ss:$20 sps:$4 sm:$0xff]  }
 0x2d8   : > { %6551 = vrot.lane.b32.xlu1 %v14564_v5, %s12579_s7  ;;  %v2637_v58 = vsel %vm291_vm0, %v21014_v4, %v2600_v46  ;;  %v2639_v60 = vsel %vm2605_vm9, %v2573_v17, %v2600_v46  ;;  %v21017_v4 = vld [vmem:[#allocation38_spill] sm:$0xff] }
 0x2d9   : > { %v2642_v40 = vsel %vm291_vm0, %v2602_v1, %v2603_v44  ;;  %v2644_v36 = vsel %vm2605_vm9, %v2579_v43, %v2603_v44  ;;  %4778 = vmatprep.subr.bf16.mxu1 %v11857_v12  ;;  %v2638_v48 = vsel %vm2605_vm9, %v21013_v28, %v2637_v58  ;;  %2689 = vst [vmem:[#allocation4 + $0x4e8] sm:$0xf] %v2639_v60  ;;  %v2561_v54 = vpop.permute.xlu0 %2560  ;;  %v14793_v44 = vld [vmem:[%s20329_s3 + $0x54] ss:$20 sps:$4 sm:$0xff]   ;;  %v21018_v58 = vrot.slane %v21017_v4, 4 }
 0x2da   : > { %v2643_v27 = vsel %vm2605_vm9, %v13871_v51, %v2642_v40  ;;  %2692 = vst [vmem:[#allocation4 + $0x4fc] sm:$0xf] %v2644_v36  ;;  %v2567_v30 = vpop.permute.xlu1 %2566  ;;  %4706 = vmatmul.mubr.bf16.gmra.mxu0 %v14787_v45  ;;  %v2594_v1 = vrot.slane %v2561_v54, 4  ;;  %v21015_v51 = vld [vmem:[#allocation32_spill] sm:$0xff] }
 0x2db   : > { %v2597_v17 = vrot.slane %v2567_v30, 4  ;;  %4779 = vmatpush1.bf16.msra.mxu1 %v11856_v19  ;;  %v11931_v43 = vcombine.low %v2638_v48, %v2643_v27  ;;  %v11932_v46 = vcombine.high %v2638_v48, %v2643_v27  ;;  %4715 = vmatprep.mubr.bf16.mxu0 %v14793_v44  ;;  %v21016_v12 = vrot.slane %v21015_v51, 4 }
 0x2dc   : > { %6765 = vrot.lane.b32.xlu1 %v14529_v31, %s12580_s20  ;;  %6553 = vrot.lane.b32.xlu0 %v14580_v39, %s12579_s7  ;;  %v2629_v28 = vsel %vm2605_vm9, %v2561_v54, %v2594_v1  ;;  %s238_s7 = sand.u32 1, %s12555_s21  }
 0x2dd   : > { %v2627_v19 = vsel %vm291_vm0, %v21016_v12, %v2594_v1  ;;  %v2632_v60 = vsel %vm291_vm0, %v21018_v58, %v2597_v17  ;;  %v2634_v40 = vsel %vm2605_vm9, %v2567_v30, %v2597_v17  ;;  %4780 = vmatprep.subr.bf16.mxu1 %v11932_v46  ;;  %2683 = vst [vmem:[#allocation4 + $0x4c0] sm:$0xf] %v2629_v28  ;;  %v2549_v27 = vpop.permute.xlu0 %2548  ;;  %v21019_v30 = vld [vmem:[#allocation22_spill] sm:$0xff]  ;;  %s20281_s21 = smul.u32 80, %s238_s7 }
 0x2de   : > { %v2628_v36 = vsel %vm2605_vm9, %v21015_v51, %v2627_v19  ;;  %v2633_v48 = vsel %vm2605_vm9, %v21017_v4, %v2632_v60  ;;  %2686 = vst [vmem:[#allocation4 + $0x4d4] sm:$0xf] %v2634_v40  ;;  %v2555_v38 = vpop.permute.xlu1 %2554  ;;  %v2588_v12 = vrot.slane %v2549_v27, 4  ;;  %v21020_v17 = vrot.slane %v21019_v30, 4  ;;  %v21021_v19 = vld [vmem:[#allocation27_spill] sm:$0xff] }
 0x2df   : > { %v2591_v26 = vrot.slane %v2555_v38, 4  ;;  %4781 = vmatpush2.bf16.msra.mxu1 %v11931_v43  ;;  %v11926_v54 = vcombine.low %v2628_v36, %v2633_v48  ;;  %v11927_v1 = vcombine.high %v2628_v36, %v2633_v48  ;;  %v21022_v28 = vrot.slane %v21021_v19, 4  ;;  %v14831_v48 = vld [vmem:[%s20329_s3 + $0x50] ss:$20 sps:$4 sm:$0xff]  }
 0x2e0   : > { %6769 = vrot.lane.b32.xlu1 %v14551_v13, %s12580_s20  ;;  %6767 = vrot.lane.b32.xlu0 %v14544_v25, %s12580_s20  ;;  %v2617_v46 = vsel %vm291_vm0, %v21020_v17, %v2588_v12  ;;  %v2619_v51 = vsel %vm2605_vm9, %v2549_v27, %v2588_v12 }
 0x2e1   : > { %v2622_v4 = vsel %vm291_vm0, %v21022_v28, %v2591_v26  ;;  %v2624_v43 = vsel %vm2605_vm9, %v2555_v38, %v2591_v26  ;;  %4782 = vmatprep.subr.bf16.mxu1 %v11927_v1  ;;  %v2618_v58 = vsel %vm2605_vm9, %v21019_v30, %v2617_v46  ;;  %2677 = vst [vmem:[#allocation4 + $0x498] sm:$0xf] %v2619_v51  ;;  %v2537_v40 = vpop.permute.xlu0 %2536  ;;  %v14837_v1 = vld [vmem:[%s20329_s3 + $0x7c] ss:$20 sps:$4 sm:$0xff]   ;;  %v21023_v30 = vld [vmem:[#allocation12_spill] sm:$0xff]  ;;  %v21025_v51 = vld [vmem:[#allocation17_spill] sm:$0xff] }
 0x2e2   : > { %v2623_v60 = vsel %vm2605_vm9, %v21021_v19, %v2622_v4  ;;  %2680 = vst [vmem:[#allocation4 + $0x4ac] sm:$0xf] %v2624_v43  ;;  %v2543_v36 = vpop.permute.xlu1 %2542  ;;  %4716 = vmatmul.mubr.bf16.gmra.mxu0 %v14831_v48  ;;  %v2582_v27 = vrot.slane %v2537_v40, 4  ;;  %v21024_v17 = vrot.slane %v21023_v30, 4  ;;  %v21026_v19 = vrot.slane %v21025_v51, 4 }
 0x2e3   : > { %v2585_v26 = vrot.slane %v2543_v36, 4  ;;  %4783 = vmatpush2.bf16.msra.mxu1 %v11926_v54  ;;  %v11921_v38 = vcombine.low %v2618_v58, %v2623_v60  ;;  %v11922_v12 = vcombine.high %v2618_v58, %v2623_v60  ;;  %4725 = vmatprep.mubr.bf16.mxu0 %v14837_v1 }
 0x2e4   : > { %6773 = vrot.lane.b32.xlu1 %v14564_v5, %s12580_s20  ;;  %6771 = vrot.lane.b32.xlu0 %v14555_v20, %s12580_s20  ;;  %v2607_v46 = vsel %vm291_vm0, %v21024_v17, %v2582_v27  ;;  %v2609_v54 = vsel %vm2605_vm9, %v2537_v40, %v2582_v27 }
 0x2e5   : > { %v2612_v28 = vsel %vm291_vm0, %v21026_v19, %v2585_v26  ;;  %v2614_v4 = vsel %vm2605_vm9, %v2543_v36, %v2585_v26  ;;  %4784 = vmatprep.subr.bf16.mxu1 %v11922_v12  ;;  %v2608_v43 = vsel %vm2605_vm9, %v21023_v30, %v2607_v46  ;;  %2671 = vst [vmem:[#allocation4 + $0x470] sm:$0xf] %v2609_v54  ;;  %v2364_v60 = vpop.permute.xlu0 %2363  ;;  %v21027_v36 = vld [vmem:[#allocation46_spill] sm:$0xff] }
 0x2e6   : > { %v2613_v58 = vsel %vm2605_vm9, %v21025_v51, %v2612_v28  ;;  %2674 = vst [vmem:[#allocation4 + $0x484] sm:$0xf] %v2614_v4  ;;  %v2370_v49 = vpop.permute.xlu1 %2369  ;;  %v2391_v17 = vrot.slane %v2364_v60, 4  ;;  %v21028_v26 = vrot.slane %v21027_v36, 4  ;;  %v14875_v4 = vld [vmem:[%s20329_s3 + $0x78] ss:$20 sps:$4 sm:$0xff]  }
 0x2e7   : > { %v2394_v7 = vrot.slane %v2370_v49, 4  ;;  %4785 = vmatpush2.bf16.msra.mxu1 %v11921_v38  ;;  %v11916_v40 = vcombine.low %v2608_v43, %v2613_v58  ;;  %v11917_v27 = vcombine.high %v2608_v43, %v2613_v58  ;;  %v14881_v58 = vld [vmem:[%s20329_s3 + $0xa4] ss:$20 sps:$4 sm:$0xff]  }
 0x2e8   : > { %7011 = vrot.lane.b32.xlu1 %v14529_v31, %s12567_s9  ;;  %6775 = vrot.lane.b32.xlu0 %v14580_v39, %s12580_s20  ;;  %v2428_v12 = vsel %vm291_vm0, %v21028_v26, %v2391_v17  ;;  %v2430_v30 = vsel %vm2396_vm11, %v2364_v60, %v2391_v17 }
 0x2e9   : > { %v2433_v46 = vsel %vm291_vm0, %v2393_v53, %v2394_v7  ;;  %v2435_v38 = vsel %vm2396_vm11, %v2370_v49, %v2394_v7  ;;  %4786 = vmatprep.subr.bf16.mxu1 %v11917_v27  ;;  %v2429_v54 = vsel %vm2396_vm11, %v21027_v36, %v2428_v12  ;;  %2480 = vst [vmem:[#allocation4 + $0x448] sm:$0xf] %v2430_v30  ;;  %v2352_v19 = vpop.permute.xlu0 %2351 }
 0x2ea   : > { %v2434_v51 = vsel %vm2396_vm11, %v13915_v63, %v2433_v46  ;;  %2483 = vst [vmem:[#allocation4 + $0x45c] sm:$0xf] %v2435_v38  ;;  %v2358_v28 = vpop.permute.xlu1 %2357  ;;  %4726 = vmatmul.mubr.bf16.gmra.mxu0 %v14875_v4  ;;  %v2385_v53 = vrot.slane %v2352_v19, 4 }
 0x2eb   : > { %v2388_v7 = vrot.slane %v2358_v28, 4  ;;  %4787 = vmatpush2.bf16.msra.mxu1 %v11916_v40  ;;  %v11911_v49 = vcombine.low %v2429_v54, %v2434_v51  ;;  %v11912_v43 = vcombine.high %v2429_v54, %v2434_v51  ;;  %4735 = vmatprep.mubr.bf16.mxu0 %v14881_v58 }
 0x2ec   : > { %7015 = vrot.lane.b32.xlu1 %v14551_v13, %s12567_s9  ;;  %7013 = vrot.lane.b32.xlu0 %v14544_v25, %s12567_s9  ;;  %v2418_v63 = vsel %vm291_vm0, %v2384_v3, %v2385_v53  ;;  %v2420_v60 = vsel %vm2396_vm11, %v2352_v19, %v2385_v53 }
 0x2ed   : > { %v2423_v17 = vsel %vm291_vm0, %v2387_v29, %v2388_v7  ;;  %v2425_v40 = vsel %vm2396_vm11, %v2358_v28, %v2388_v7  ;;  %4788 = vmatprep.subr.bf16.mxu1 %v11912_v43  ;;  %v2419_v27 = vsel %vm2396_vm11, %v14033_v61, %v2418_v63  ;;  %2474 = vst [vmem:[#allocation4 + $0x420] sm:$0xf] %v2420_v60  ;;  %v2340_v26 = vpop.permute.xlu0 %2339 }
 0x2ee   : > { %v2424_v36 = vsel %vm2396_vm11, %v14104_v37, %v2423_v17  ;;  %2477 = vst [vmem:[#allocation4 + $0x434] sm:$0xf] %v2425_v40  ;;  %v2346_v12 = vpop.permute.xlu1 %2345  ;;  %v2379_v3 = vrot.slane %v2340_v26, 4 }
 0x2ef   : > { %v2382_v30 = vrot.slane %v2346_v12, 4  ;;  %4789 = vmatpush2.bf16.msra.mxu1 %v11911_v49  ;;  %v11906_v46 = vcombine.low %v2419_v27, %v2424_v36  ;;  %v11907_v38 = vcombine.high %v2419_v27, %v2424_v36 }
 0x2f0   : > { %7019 = vrot.lane.b32.xlu1 %v14564_v5, %s12567_s9  ;;  %7017 = vrot.lane.b32.xlu0 %v14555_v20, %s12567_s9  ;;  %v2408_v61 = vsel %vm291_vm0, %v2378_v6, %v2379_v3  ;;  %v2410_v37 = vsel %vm2396_vm11, %v2340_v26, %v2379_v3  ;;  %v14919_v6 = vld [vmem:[%s20329_s3 + $0xa0] ss:$20 sps:$4 sm:$0xff]  }
 0x2f1   : > { %v2413_v29 = vsel %vm291_vm0, %v2381_v50, %v2382_v30  ;;  %v2415_v54 = vsel %vm2396_vm11, %v2346_v12, %v2382_v30  ;;  %4790 = vmatprep.subr.bf16.mxu1 %v11907_v38  ;;  %v2409_v51 = vsel %vm2396_vm11, %v14142_v59, %v2408_v61  ;;  %2468 = vst [vmem:[#allocation4 + $0x3f8] sm:$0xf] %v2410_v37  ;;  %v2328_v28 = vpop.permute.xlu0 %2327  ;;  %v14925_v59 = vld [vmem:[%s20329_s3 + $0xcc] ss:$20 sps:$4 sm:$0xff]  }
 0x2f2   : > { %v2414_v19 = vsel %vm2396_vm11, %v14160_v42, %v2413_v29  ;;  %2471 = vst [vmem:[#allocation4 + $0x40c] sm:$0xf] %v2415_v54  ;;  %v2334_v53 = vpop.permute.xlu1 %2333  ;;  %4736 = vmatmul.mubr.bf16.gmra.mxu0 %v14919_v6  ;;  %v2373_v50 = vrot.slane %v2328_v28, 4 }
 0x2f3   : > { %v2376_v7 = vrot.slane %v2334_v53, 4  ;;  %4791 = vmatpush2.bf16.msra.mxu1 %v11906_v46  ;;  %v11901_v49 = vcombine.low %v2409_v51, %v2414_v19  ;;  %v11902_v43 = vcombine.high %v2409_v51, %v2414_v19  ;;  %4745 = vmatprep.mubr.bf16.mxu0 %v14925_v59  ;;  %v12324_v51 = vld [vmem:[#allocation4 + $0x268] ss:$20 sps:$4 sm:$0xff]  }
 0x2f4   : > { %7233 = vrot.lane.b32.xlu1 %v14529_v31, %s12568_s10  ;;  %7021 = vrot.lane.b32.xlu0 %v14580_v39, %s12567_s9  ;;  %v2398_v42 = vsel %vm291_vm0, %v2372_v21, %v2373_v50  ;;  %v2400_v63 = vsel %vm2396_vm11, %v2328_v28, %v2373_v50  ;;  %s12010_s9 = smul.u32 (%p12653_p4), 20, %s12641_s24 }
 0x2f5   : > { %v2403_v60 = vsel %vm291_vm0, %v2375_v52, %v2376_v7  ;;  %v2405_v17 = vsel %vm2396_vm11, %v2334_v53, %v2376_v7  ;;  %4792 = vmatprep.subr.bf16.mxu1 %v11902_v43  ;;  %v2399_v40 = vsel %vm2396_vm11, %v14178_v62, %v2398_v42  ;;  %2462 = vst [vmem:[#allocation4 + $0x3d0] sm:$0xf] %v2400_v63  ;;  %v2782_v36 = vpop.permute.xlu0 %2781  ;;  %v21029_v53 = vrot.slane %v14284_v22, 4  ;;  %v14986_v63 = vld [vmem:[%s20329_s3 + $0x8] ss:$20 sps:$4 sm:$0xff]  }
 0x2f6   : > { %v2404_v27 = vsel %vm2396_vm11, %v14192_v47, %v2403_v60  ;;  %2465 = vst [vmem:[#allocation4 + $0x3e4] sm:$0xf] %v2405_v17  ;;  %v2788_v26 = vpop.permute.xlu1 %2787  ;;  %v2809_v21 = vrot.slane %v2782_v36, 4 }
 0x2f7   : > { %v2812_v12 = vrot.slane %v2788_v26, 4  ;;  %4793 = vmatpush2.bf16.msra.mxu1 %v11901_v49  ;;  %v11896_v3 = vcombine.low %v2399_v40, %v2404_v27  ;;  %v11897_v30 = vcombine.high %v2399_v40, %v2404_v27  ;;  %v12325_v49 = vld [vmem:[#allocation4 + $0x128] ss:$20 sps:$4 sm:$0xff]  }
 0x2f8   : > { %7237 = vrot.lane.b32.xlu1 %v14551_v13, %s12568_s10  ;;  %7235 = vrot.lane.b32.xlu0 %v14544_v25, %s12568_s10  ;;  %v2846_v62 = vsel %vm291_vm0, %v2808_v34, %v2809_v21  ;;  %v2848_v47 = vsel %vm2814_vm12, %v2782_v36, %v2809_v21  ;;  %v14963_v34 = vld [vmem:[%s20329_s3 + $0xc8] ss:$20 sps:$4 sm:$0xff]   ;;  %v21031_v21 = vrot.slane %v14356_v41, 4 }
 0x2f9   : > { %v2851_v52 = vsel %vm291_vm0, %v2811_v23, %v2812_v12  ;;  %v2853_v46 = vsel %vm2814_vm12, %v2788_v26, %v2812_v12  ;;  %4794 = vmatprep.subr.bf16.mxu1 %v11897_v30  ;;  %v2847_v38 = vsel %vm2814_vm12, %v14228_v16, %v2846_v62  ;;  %2898 = vst [vmem:[#allocation4 + $0x588] sm:$0xf] %v2848_v47  ;;  %v2770_v37 = vpop.permute.xlu0 %2769  ;;  %v12327_v30 = vld [vmem:[#allocation4 + $0x100] ss:$20 sps:$4 sm:$0xff]  }
 0x2fa   : > { %v2852_v61 = vsel %vm2814_vm12, %v14245_v24, %v2851_v52  ;;  %2901 = vst [vmem:[#allocation4 + $0x59c] sm:$0xf] %v2853_v46  ;;  %v2776_v29 = vpop.permute.xlu1 %2775  ;;  %4746 = vmatmul.mubr.bf16.gmra.mxu0 %v14963_v34  ;;  %v2803_v23 = vrot.slane %v2770_v37, 4 }
 0x2fb   : > { %v2806_v54 = vrot.slane %v2776_v29, 4  ;;  %4795 = vmatpush2.bf16.msra.mxu1 %v11896_v3  ;;  %v11951_v19 = vcombine.low %v2847_v38, %v2852_v61  ;;  %v11952_v16 = vcombine.high %v2847_v38, %v2852_v61  ;;  %4755 = vmatprep.mubr.bf16.mxu0 %v14365_v55  ;;  %v12328_v61 = vld [vmem:[#allocation4 + $0x218] ss:$20 sps:$4 sm:$0xff]  }
 0x2fc   : > { %7241 = vrot.lane.b32.xlu1 %v14564_v5, %s12568_s10  ;;  %7239 = vrot.lane.b32.xlu0 %v14555_v20, %s12568_s10  ;;  %v2836_v24 = vsel %vm291_vm0, %v2802_v35, %v2803_v23  ;;  %v2838_v28 = vsel %vm2814_vm12, %v2770_v37, %v2803_v23 }
 0x2fd   : > { %v2841_v50 = vsel %vm291_vm0, %v21029_v53, %v2806_v54  ;;  %v2843_v7 = vsel %vm2814_vm12, %v2776_v29, %v2806_v54  ;;  %12011 = vmatprep.subr.bf16.mxu1 %v12324_v51  ;;  %v2837_v5 = vsel %vm2814_vm12, %v14263_v14, %v2836_v24  ;;  %2892 = vst [vmem:[#allocation4 + $0x560] sm:$0xf] %v2838_v28  ;;  %v2758_v42 = vpop.permute.xlu0 %2757  ;;  %v12326_v14 = vld [vmem:[#allocation4 + $0x240] ss:$20 sps:$4 sm:$0xff]   ;;  %v21033_v54 = vrot.slane %v14434_v33, 4 }
 0x2fe   : > { %v2842_v43 = vsel %vm2814_vm12, %v14284_v22, %v2841_v50  ;;  %2895 = vst [vmem:[#allocation4 + $0x574] sm:$0xf] %v2843_v7  ;;  %v2764_v35 = vpop.permute.xlu1 %2763  ;;  %4797 = vmatmul.mubr.bf16.vlgmr.msra.gmra.mxu1 %v14986_v63  ;;  %4873 = vmatprep.subr.bf16.mxu0 %v11952_v16  ;;  %v2797_v60 = vrot.slane %v2758_v42, 4  ;;  %v21030_v22 = vrot.slane %v14332_v56, 4  ;;  %v15025_v24 = vld [vmem:[%s20329_s3 + $0x34] ss:$20 sps:$4 sm:$0xff]  }
 0x2ff   : > { %v2800_v17 = vrot.slane %v2764_v35, 4  ;;  %4874 = vmatpush1.bf16.msra.mxu0 %v11951_v19  ;;  %12012 = vmatpush3.bf16.msra.mxu1 %v12325_v49  ;;  %v11946_v40 = vcombine.low %v2837_v5, %v2842_v43  ;;  %v11947_v27 = vcombine.high %v2837_v5, %v2842_v43  ;;  %v15031_v28 = vld [vmem:[%s20329_s3 + $0x30] ss:$20 sps:$4 sm:$0xff]   ;;  %v12330_v7 = vld [vmem:[#allocation4 + $0x1f0] ss:$20 sps:$4 sm:$0xff]  }
 0x300   : > { %7479 = vrot.lane.b32.xlu1 %v14529_v31, %s12573_s15  ;;  %7243 = vrot.lane.b32.xlu0 %v14580_v39, %s12568_s10  ;;  %v2826_v36 = vsel %vm291_vm0, %v21030_v22, %v2797_v60  ;;  %v2828_v26 = vsel %vm2814_vm12, %v2758_v42, %v2797_v60  ;;  %v15034_v50 = vld [vmem:[#allocation3 + $0x10] sm:$0xff]  ;;  %v12331_v5 = vld [vmem:[#allocation4 + $0xb0] ss:$20 sps:$4 sm:$0xff]   ;;  %v15047_v42 = vld [vmem:[#allocation3] sm:$0xff]  ;;  %s12590_s10 = smov 45  }
 0x301   : > { %v2831_v12 = vsel %vm291_vm0, %v21031_v21, %v2800_v17  ;;  %v2833_v3 = vsel %vm2814_vm12, %v2764_v35, %v2800_v17  ;;  %12013 = vmatprep.subr.bf16.mxu1 %v12326_v14  ;;  %v2827_v31 = vsel %vm2814_vm12, %v14332_v56, %v2826_v36  ;;  %2886 = vst [vmem:[#allocation4 + $0x538] sm:$0xf] %v2828_v26  ;;  %v2746_v47 = vpop.permute.xlu0 %2745  ;;  %v21032_v56 = vrot.slane %v14409_v10, 4  ;;  %v15043_v49 = vld [vmem:[%s20329_s3 + $0x5c] ss:$20 sps:$4 sm:$0xff]   ;;  %v15070_v26 = vld [vmem:[#allocation3 + $0x8] sm:$0xff] }
 0x302   : > { %v2832_v62 = vsel %vm2814_vm12, %v14356_v41, %v2831_v12  ;;  %2889 = vst [vmem:[#allocation4 + $0x54c] sm:$0xf] %v2833_v3  ;;  %v2752_v52 = vpop.permute.xlu1 %2751  ;;  %4756 = vmatmul.mubr.bf16.gmra.mxu0 %v14411_v11  ;;  %4875 = vmatprep.subr.bf16.mxu0 %v11947_v27  ;;  %v2791_v46 = vrot.slane %v2746_v47, 4  ;;  %v12333_v43 = vld [vmem:[#allocation4 + $0x4e8] ss:$20 sps:$4 sm:$0xff]  }
 0x303   : > { %v2794_v38 = vrot.slane %v2752_v52, 4  ;;  %4876 = vmatpush1.bf16.msra.mxu0 %v11946_v40  ;;  %12014 = vmatpush3.bf16.msra.mxu1 %v12327_v30  ;;  %v11941_v37 = vcombine.low %v2827_v31, %v2832_v62  ;;  %v11942_v29 = vcombine.high %v2827_v31, %v2832_v62  ;;  %v12332_v35 = vld [vmem:[#allocation4 + $0x1c8] ss:$20 sps:$4 sm:$0xff]   ;;  %v15056_v17 = vld [vmem:[%s20329_s3 + $0x10] ss:$20 sps:$4 sm:$0xff]  }
 0x304   : > { %7483 = vrot.lane.b32.xlu1 %v14551_v13, %s12573_s15  ;;  %7481 = vrot.lane.b32.xlu0 %v14544_v25, %s12573_s15  ;;  %v2816_v41 = vsel %vm291_vm0, %v21032_v56, %v2791_v46  ;;  %v2818_v23 = vsel %vm2814_vm12, %v2746_v47, %v2791_v46  ;;  %v12335_v60 = vld [vmem:[#allocation4 + $0x3a8] ss:$20 sps:$4 sm:$0xff]   ;;  %21034 = vst [vmem:[#allocation31_spill] sm:$0xff] %v15056_v17  ;;  %v15067_v27 = vld [vmem:[%s20329_s3 + $0x58] ss:$20 sps:$4 sm:$0xff]  }
 0x305   : > { %v2821_v51 = vsel %vm291_vm0, %v21033_v54, %v2794_v38  ;;  %v2823_v19 = vsel %vm2814_vm12, %v2752_v52, %v2794_v38  ;;  %12015 = vmatprep.subr.bf16.mxu1 %v12328_v61  ;;  %v2817_v16 = vsel %vm2814_vm12, %v14409_v10, %v2816_v41  ;;  %2880 = vst [vmem:[#allocation4 + $0x510] sm:$0xf] %v2818_v23  ;;  %v12329_v10 = vld [vmem:[#allocation4 + $0xd8] ss:$20 sps:$4 sm:$0xff]   ;;  %v12334_v22 = vld [vmem:[#allocation4 + $0x88] ss:$20 sps:$4 sm:$0xff]  }
 0x306   : > { %v2822_v13 = vsel %vm2814_vm12, %v14434_v33, %v2821_v51  ;;  %2883 = vst [vmem:[#allocation4 + $0x524] sm:$0xf] %v2823_v19  ;;  %4806 = vmatprep.mubr.bf16.mxu1 %v15025_v24  ;;  %4877 = vmatprep.subr.bf16.mxu0 %v11942_v29  ;;  %v12337_v36 = vld [vmem:[#allocation4 + $0x4c0] ss:$20 sps:$4 sm:$0xff]   ;;  %v12341_v47 = vld [vmem:[#allocation4 + $0x498] ss:$20 sps:$4 sm:$0xff]  }
 0x307   : > { %4807 = vmatmul.mubr.bf16.gmra.mxu1 %v15031_v28  ;;  %4878 = vmatpush1.bf16.msra.mxu0 %v11941_v37  ;;  %v11936_v53 = vcombine.low %v2817_v16, %v2822_v13  ;;  %v11937_v33 = vcombine.high %v2817_v16, %v2822_v13  ;;  %v12336_v21 = vld [vmem:[#allocation4 + $0x1a0] ss:$20 sps:$4 sm:$0xff]   ;;  %v12340_v52 = vld [vmem:[#allocation4 + $0x178] ss:$20 sps:$4 sm:$0xff]   ;;  %v15105_v29 = vld [vmem:[%s20329_s3 + $0x80] ss:$20 sps:$4 sm:$0xff]  }
 0x308   : > { %7487 = vrot.lane.b32.xlu1 %v15034_v50, %s12573_s15  ;;  %7485 = vrot.lane.b32.xlu0 %v14555_v20, %s12573_s15  ;;  %v12339_v12 = vld [vmem:[#allocation4 + $0x380] ss:$20 sps:$4 sm:$0xff]   ;;  %v12343_v46 = vld [vmem:[#allocation4 + $0x358] ss:$20 sps:$4 sm:$0xff]   ;;  %v12345_v41 = vld [vmem:[#allocation4 + $0x470] ss:$20 sps:$4 sm:$0xff]  }
 0x309   : > { %12016 = vmatpush3.bf16.msra.mxu1 %v12329_v10  ;;  %4879 = vmatprep.subr.bf16.mxu0 %v11937_v33  ;;  %v15079_v3 = vld [vmem:[%s20329_s3 + $0x84] ss:$20 sps:$4 sm:$0xff]   ;;  %v12344_v23 = vld [vmem:[#allocation4 + $0x150] ss:$20 sps:$4 sm:$0xff]   ;;  %v15115_v51 = vld [vmem:[%s20329_s3 + $0xac] ss:$20 sps:$4 sm:$0xff]  }
 0x30a   : > { %12017 = vmatprep.subr.bf16.mxu1 %v12330_v7  ;;  %4816 = vmatprep.mubr.bf16.mxu1 %v15043_v49  ;;  %v12338_v62 = vld [vmem:[#allocation4 + $0x60] ss:$20 sps:$4 sm:$0xff]   ;;  %v12342_v56 = vld [vmem:[#allocation4 + $0x38] ss:$20 sps:$4 sm:$0xff]   ;;  %v12347_v54 = vld [vmem:[#allocation4 + $0x330] ss:$20 sps:$4 sm:$0xff]  }
 0x30b   : > { %4880 = vmatpush1.bf16.msra.mxu0 %v11936_v53  ;;  %4897 = vmatprep.mubr.bf16.mxu0 %v20958_v8  ;;  %v15094_v38 = vld [vmem:[%s20329_s3 + $0x38] ss:$20 sps:$4 sm:$0xff]   ;;  %v12346_v13 = vld [vmem:[#allocation4 + $0x10] ss:$20 sps:$4 sm:$0xff]   ;;  %v12348_v10 = vld [vmem:[#allocation4 + $0x448] ss:$20 sps:$4 sm:$0xff]  }
 0x30c   : > { %7701 = vrot.lane.b32.xlu1 %v15047_v42, %s12581_s27  ;;  %7489 = vrot.lane.b32.xlu0 %v14580_v39, %s12573_s15  ;;  %21038 = vst [vmem:[#allocation41_spill] sm:$0xff] %v15094_v38  ;;  %v12349_v53 = vld [vmem:[#allocation4 + $0x308] ss:$20 sps:$4 sm:$0xff]   ;;  %v21042_v7 = vmov 0.0   ;;  %s12589_s15 = smov 46  }
 0x30d   : > { %12018 = vmatpush3.bf16.msra.mxu1 %v12331_v5  ;;  %12069 = vmatprep.subr.bf16.mxu0 %v12333_v43  ;;  %v15130_v33 = vld [vmem:[%s20329_s3 + $0x60] ss:$20 sps:$4 sm:$0xff]  }
 0x30e   : > { %12019 = vmatprep.subr.bf16.mxu1 %v12332_v35  ;;  %11961 = vmatmul.mubr.msk.bf16.vlgmr.msra.gmra.mxu0 %vm4338_vm13, %v15056_v17  ;;  %v15060_v14 = vpop.permute.xlu0 %3172  ;;  %21041 = vst [vmem:[#allocation29_spill] sm:$0xff] %v15130_v33  ;;  %v15142_v35 = vld [vmem:[%s20329_s3 + $0xa8] ss:$20 sps:$4 sm:$0xff]  }
 0x30f   : > { %21035 = vst [vmem:[#allocation37_spill] sm:$0xff] %v15060_v14  ;;  %v15062_v40 = vpop.permute.xlu1 %3177  ;;  %4817 = vmatmul.mubr.bf16.gmra.mxu1 %v15067_v27  ;;  %12070 = vmatpush3.bf16.msra.mxu0 %v12335_v60  ;;  %v12350_v60 = vld [vmem:[#allocation4 + $0x420] ss:$20 sps:$4 sm:$0xff]  }
 0x310   : > { %21036 = vst [vmem:[#allocation21_spill] sm:$0xff] %v15062_v40  ;;  %7705 = vrot.lane.b32.xlu1 %v15070_v26, %s12581_s27  ;;  %7703 = vrot.lane.b32.xlu0 %v14544_v25, %s12581_s27 }
 0x311   : > { %12020 = vmatpush3.bf16.msra.mxu1 %v12334_v22  ;;  %12071 = vmatprep.subr.bf16.mxu0 %v12337_v36  ;;  %v12351_v22 = vld [vmem:[#allocation4 + $0x2e0] ss:$20 sps:$4 sm:$0xff]   ;;  %v15152_v36 = vld [vmem:[%s20329_s3 + $0xd4] ss:$20 sps:$4 sm:$0xff]  }
 0x312   : > { %12021 = vmatprep.subr.bf16.mxu1 %v12336_v21  ;;  %4826 = vmatprep.mubr.bf16.mxu1 %v15079_v3  ;;  %v15082_v30 = vpop.permute.xlu0 %3182 }
 0x313   : > { %21037 = vst [vmem:[#allocation26_spill] sm:$0xff] %v15082_v30  ;;  %v15084_v31 = vpop.permute.xlu1 %3187  ;;  %12072 = vmatpush3.bf16.msra.mxu0 %v12339_v12  ;;  %4907 = vmatprep.mubr.bf16.mxu0 %v20958_v8 }
 0x314   : > { %7709 = vrot.lane.b32.xlu1 %v15034_v50, %s12581_s27  ;;  %7707 = vrot.lane.b32.xlu0 %v14555_v20, %s12581_s27 }
 0x315   : > { %12022 = vmatpush3.bf16.msra.mxu1 %v12338_v62  ;;  %12073 = vmatprep.subr.bf16.mxu0 %v12341_v47  ;;  %v12352_v62 = vld [vmem:[#allocation4 + $0x3f8] ss:$20 sps:$4 sm:$0xff]  }
 0x316   : > { %12023 = vmatprep.subr.bf16.mxu1 %v12340_v52  ;;  %11962 = vmatmul.mubr.msk.bf16.gmra.mxu0 %vm4338_vm13, %v15094_v38  ;;  %v15098_v61 = vpop.permute.xlu0 %3192  ;;  %v12353_v47 = vld [vmem:[#allocation4 + $0x2b8] ss:$20 sps:$4 sm:$0xff]   ;;  %v15167_v52 = vld [vmem:[%s20329_s3 + $0x88] ss:$20 sps:$4 sm:$0xff]  }
 0x317   : > { %v15100_v37 = vpop.permute.xlu1 %3197  ;;  %4827 = vmatmul.mubr.bf16.gmra.mxu1 %v15105_v29  ;;  %12074 = vmatpush3.bf16.msra.mxu0 %v12343_v46  ;;  %21047 = vst [vmem:[#allocation33_spill] sm:$0xff] %v15167_v52 }
 0x318   : > { %7947 = vrot.lane.b32.xlu1 %v15047_v42, %s12582_s26  ;;  %7711 = vrot.lane.b32.xlu0 %v14580_v39, %s12581_s27 }
 0x319   : > { %12024 = vmatpush3.bf16.msra.mxu1 %v12342_v56  ;;  %12075 = vmatprep.subr.bf16.mxu0 %v12345_v41  ;;  %v12354_v41 = vld [vmem:[#allocation4 + $0x3d0] ss:$20 sps:$4 sm:$0xff]  }
 0x31a   : > { %12025 = vmatprep.subr.bf16.mxu1 %v12344_v23  ;;  %4836 = vmatprep.mubr.bf16.mxu1 %v15115_v51  ;;  %v15118_v19 = vpop.permute.xlu0 %3202 }
 0x31b   : > { %21039 = vst [vmem:[#allocation11_spill] sm:$0xff] %v15118_v19  ;;  %v15120_v16 = vpop.permute.xlu1 %3207  ;;  %12076 = vmatpush3.bf16.msra.mxu0 %v12347_v54  ;;  %4917 = vmatprep.mubr.bf16.mxu0 %v20958_v8  ;;  %v12355_v54 = vld [vmem:[#allocation4 + $0x290] ss:$20 sps:$4 sm:$0xff]  }
 0x31c   : > { %21040 = vst [vmem:[#allocation16_spill] sm:$0xff] %v15120_v16  ;;  %7951 = vrot.lane.b32.xlu1 %v15070_v26, %s12582_s26  ;;  %7949 = vrot.lane.b32.xlu0 %v14544_v25, %s12582_s26 }
 0x31d   : > { %12026 = vmatpush3.bf16.msra.mxu1 %v12346_v13  ;;  %12077 = vmatprep.subr.bf16.mxu0 %v12348_v10 }
 0x31e   : > { %11963 = vmatmul.mubr.msk.bf16.gmra.mxu0 %vm4338_vm13, %v15130_v33  ;;  %12174 = vmatprep.subr.bf16.mxu1 %v21042_v7  ;;  %v15135_v5 = vpop.permute.xlu0 %3212  ;;  %v15249_v33 = vld [vmem:[#allocation4 + $0x560] ss:$20 sps:$4 sm:$0xff]  }
 0x31f   : > { %21043 = vst [vmem:[#allocation35_spill] sm:$0xff] %v15135_v5  ;;  %v15137_v43 = vpop.permute.xlu1 %3217  ;;  %4837 = vmatmul.mubr.bf16.gmra.mxu1 %v15142_v35  ;;  %12078 = vmatpush3.bf16.msra.mxu0 %v12349_v53 }
 0x320   : > { %21044 = vst [vmem:[#allocation45_spill] sm:$0xff] %v15137_v43  ;;  %7955 = vrot.lane.b32.xlu1 %v15034_v50, %s12582_s26  ;;  %7953 = vrot.lane.b32.xlu0 %v14555_v20, %s12582_s26 }
 0x321   : > { %12079 = vmatprep.subr.bf16.mxu0 %v12350_v60  ;;  %4846 = vmatprep.mubr.bf16.mxu1 %v15152_v36 }
 0x322   : > { %4927 = vmatprep.mubr.bf16.mxu0 %v20958_v8  ;;  %v15156_v21 = vpop.permute.xlu0 %3222 }
 0x323   : > { %21045 = vst [vmem:[#allocation19_spill] sm:$0xff] %v15156_v21  ;;  %v15158_v12 = vpop.permute.xlu1 %3227  ;;  %12080 = vmatpush3.bf16.msra.mxu0 %v12351_v22  ;;  %v15194_v22 = vld [vmem:[%s20329_s3 + $0xb0] ss:$20 sps:$4 sm:$0xff]  }
 0x324   : > { %21046 = vst [vmem:[#allocation24_spill] sm:$0xff] %v15158_v12  ;;  %8169 = vrot.lane.b32.xlu1 %v15047_v42, %s12571_s13  ;;  %7957 = vrot.lane.b32.xlu0 %v14580_v39, %s12582_s26  ;;  %21052 = vst [vmem:[#allocation28_spill] sm:$0xff] %v15194_v22  ;;  %s20284_s26 = scalar_lea.vmem [#allocation6], %s20281_s21 }
 0x325   : > { %12081 = vmatprep.subr.bf16.mxu0 %v12352_v62 }
 0x326   : > { %11964 = vmatmul.mubr.msk.bf16.gmra.mxu0 %vm4338_vm13, %v15167_v52  ;;  %v15171_v46 = vpop.permute.xlu0 %3232 }
 0x327   : > { %21048 = vst [vmem:[#allocation39_spill] sm:$0xff] %v15171_v46  ;;  %v15173_v56 = vpop.permute.xlu1 %5829  ;;  %4847 = vmatmul.mubr.bf16.gmra.mxu1 %v14458_v15  ;;  %12082 = vmatpush3.bf16.msra.mxu0 %v12353_v47 }
 0x328   : > { %21049 = vst [vmem:[#allocation9_spill] sm:$0xff] %v15173_v56  ;;  %8173 = vrot.lane.b32.xlu1 %v15070_v26, %s12571_s13  ;;  %8171 = vrot.lane.b32.xlu0 %v14544_v25, %s12571_s13  ;;  %v4394_v23 = vpop.f32.mrf.mxu1 }
 0x329   : > { %12083 = vmatprep.subr.bf16.mxu0 %v12354_v41  ;;  %4856 = vmatprep.mubr.bf16.mxu1 %v14460_v57  ;;  %v4395_v52 = vadd.f32 %v4394_v23, %v15060_v14 }
 0x32a   : > { %4937 = vmatprep.mubr.bf16.mxu0 %v20958_v8  ;;  %v15182_v13 = vpop.permute.xlu0 %5831  ;;  %v4396_v53 = vpop.f32.mrf.mxu1 }
 0x32b   : > { %21050 = vst [vmem:[#allocation14_spill] sm:$0xff] %v15182_v13  ;;  %v15184_v10 = vpop.permute.xlu1 %5833  ;;  %12084 = vmatpush3.bf16.msra.mxu0 %v12355_v54  ;;  %v12533_v54 = vld [vmem:[%s20329_s3 + $0x4] ss:$20 sps:$4 sm:$0xff]  }
 0x32c   : > { %21051 = vst [vmem:[#allocation23_spill] sm:$0xff] %v15184_v10  ;;  %8177 = vrot.lane.b32.xlu1 %v15034_v50, %s12571_s13  ;;  %8175 = vrot.lane.b32.xlu0 %v14555_v20, %s12571_s13  ;;  %v4398_v60 = vpop.f32.mrf.mxu1 }
 0x32d   : > { %12138 = vmatprep.subr.bf16.mxu0 %v21042_v7  ;;  %v4399_v57 = vadd.f32 %v4398_v60, %v15062_v40 }
 0x32e   : > { %11965 = vmatmul.mubr.msk.bf16.gmra.mxu0 %vm4338_vm13, %v15194_v22  ;;  %v15198_v62 = vpop.permute.xlu0 %5835  ;;  %v4400_v41 = vpop.f32.mrf.mxu1  ;;  %v15222_v22 = vld [vmem:[%s20329_s3 + $0xd8] ss:$20 sps:$4 sm:$0xff]  }
 0x32f   : > { %21053 = vst [vmem:[#allocation42_spill] sm:$0xff] %v15198_v62  ;;  %v15200_v47 = vpop.permute.xlu1 %5837  ;;  %4857 = vmatmul.mubr.bf16.gmra.mxu1 %v14504_v9  ;;  %4947 = vmatprep.mubr.bf16.mxu0 %v20958_v8  ;;  %21057 = vst [vmem:[#allocation36_spill] sm:$0xff] %v15222_v22 }
 0x330   : > { %21054 = vst [vmem:[#allocation13_spill] sm:$0xff] %v15200_v47  ;;  %8415 = vrot.lane.b32.xlu1 %v15047_v42, %s12570_s12  ;;  %8179 = vrot.lane.b32.xlu0 %v14580_v39, %s12571_s13  ;;  %v4404_v10 = vpop.f32.mrf.mxu1  ;;  %s11572_s13 = scalar_lea.vmem (%p12653_p4), %s20332_s6, %s12010_s9 }
 0x331   : > { %4998 = vmatprep.mubr.bf16.mxu1 %v12533_v54 }
 0x332   : > { %v15213_v47 = vpop.permute.xlu0 %5839  ;;  %v4406_v56 = vpop.f32.mrf.mxu1 }
 0x333   : > { %v15211_v62 = vpop.permute.xlu1 %6075  ;;  %21056 = vst [vmem:[#allocation30_spill] sm:$0xff] %v15213_v47  ;;  %v15231_v47 = vld [vmem:[#allocation4 + $0x588] ss:$20 sps:$4 sm:$0xff]  }
 0x334   : > { %21055 = vst [vmem:[#allocation18_spill] sm:$0xff] %v15211_v62  ;;  %8419 = vrot.lane.b32.xlu1 %v15070_v26, %s12570_s12  ;;  %8417 = vrot.lane.b32.xlu0 %v14544_v25, %s12570_s12  ;;  %v4408_v13 = vpop.f32.mrf.mxu1 }
 0x336   : > { %11966 = vmatmul.mubr.msk.bf16.gmra.mxu0 %vm4338_vm13, %v15222_v22  ;;  %v15228_v62 = vpop.permute.xlu0 %6077  ;;  %v4410_v17 = vpop.f32.mrf.mxu1 }
 0x337   : > { %v15226_v54 = vpop.permute.xlu1 %6079  ;;  %21059 = vst [vmem:[#allocation25_spill] sm:$0xff] %v15228_v62  ;;  %4999 = vmatmul.mubr.bf16.vlgmr.msra.gmra.mxu1 %v14735_v18  ;;  %4957 = vmatprep.mubr.bf16.mxu0 %v20958_v8  ;;  %v4397_v8 = vadd.f32 %v4396_v53, %v15060_v14 }
 0x338   : > { %21058 = vst [vmem:[#allocation20_spill] sm:$0xff] %v15226_v54  ;;  %8423 = vrot.lane.b32.xlu1 %v15034_v50, %s12570_s12  ;;  %8421 = vrot.lane.b32.xlu0 %v14555_v20, %s12570_s12  ;;  %v4414_v18 = vpop.f32.mrf.mxu1 }
 0x339   : > { %12178 = vmatpush3.bf16.msra.mxu1 %v15231_v47  ;;  %v4495_v54 = vpop.f32.mrf.mxu0  ;;  %5006 = vmatprep.mubr.bf16.mxu1 %v14741_v2 }
 0x33a   : > { %12175 = vmatprep.subr.bf16.mxu1 %v21042_v7  ;;  %v15242_v62 = vadd.f32 %v4495_v54, %v4395_v52  ;;  %v15247_v22 = vpop.permute.xlu0 %6081  ;;  %v4416_v2 = vpop.f32.mrf.mxu1 }
 0x33b   : > { %v15245_v23 = vpop.permute.xlu1 %6083  ;;  %21061 = vst [vmem:[#allocation15_spill] sm:$0xff] %v15247_v22  ;;  %v4497_v9 = vpop.f32.mrf.mxu0 }
 0x33c   : > { %21060 = vst [vmem:[#allocation10_spill] sm:$0xff] %v15245_v23  ;;  %8637 = vrot.lane.b32.xlu1 %v15047_v42, %s12569_s11  ;;  %8425 = vrot.lane.b32.xlu0 %v14580_v39, %s12570_s12  ;;  %v15257_v52 = vadd.f32 %v4497_v9, %v4397_v8  ;;  %v15260_v53 = vpop.f32.mrf.mxu1  ;;  %v4401_v23 = vadd.f32 %v4400_v41, %v15062_v40  ;;  %v15272_v9 = vld [vmem:[#allocation4 + $0x538] ss:$20 sps:$4 sm:$0xff]   ;;  %v15292_v40 = vld [vmem:[#allocation4 + $0x510] ss:$20 sps:$4 sm:$0xff]   ;;  %s12583_s12 = smov 84  }
 0x33d   : > { %12179 = vmatpush3.bf16.msra.mxu1 %v15249_v33  ;;  %v4499_v54 = vpop.f32.mrf.mxu0  ;;  %v4405_v41 = vadd.f32 %v4404_v10, %v15082_v30  ;;  %v4407_v8 = vadd.f32 %v4406_v56, %v15082_v30 }
 0x33e   : > { %12176 = vmatprep.subr.bf16.mxu1 %v21042_v7  ;;  %11967 = vmatmul.mubr.msk.bf16.gmra.mxu0 %vm4338_vm13, %v14726_v0  ;;  %v15267_v14 = vpop.permute.xlu0 %6085  ;;  %v15269_v38 = vadd.f32 %v4499_v54, %v4399_v57  ;;  %v4420_v0 = vpop.f32.mrf.mxu1 }
 0x33f   : > { %v15265_v22 = vpop.permute.xlu1 %6297  ;;  %21063 = vst [vmem:[#allocation32_spill] sm:$0xff] %v15267_v14  ;;  %5007 = vmatmul.mubr.bf16.gmra.mxu1 %v14787_v45  ;;  %5086 = vmatprep.mubr.bf16.mxu0 %v14765_v32  ;;  %v4501_v60 = vpop.f32.mrf.mxu0 }
 0x340   : > { %21062 = vst [vmem:[#allocation44_spill] sm:$0xff] %v15265_v22  ;;  %8641 = vrot.lane.b32.xlu1 %v15070_v26, %s12569_s11  ;;  %8639 = vrot.lane.b32.xlu0 %v14544_v25, %s12569_s11  ;;  %v15281_v57 = vadd.f32 %v4501_v60, %v4401_v23  ;;  %v4424_v45 = vpop.f32.mrf.mxu1  ;;  %v4409_v23 = vadd.f32 %v4408_v13, %v15084_v31 }
 0x341   : > { %12180 = vmatpush3.bf16.msra.mxu1 %v15272_v9  ;;  %5014 = vmatprep.mubr.bf16.mxu1 %v14793_v44  ;;  %v4505_v32 = vpop.f32.mrf.mxu0 }
 0x342   : > { %12177 = vmatprep.subr.bf16.mxu1 %v21042_v7  ;;  %v15288_v22 = vpop.permute.xlu0 %6299  ;;  %v15290_v14 = vadd.f32 %v4505_v32, %v4405_v41  ;;  %v4426_v44 = vpop.f32.mrf.mxu1  ;;  %v4411_v32 = vadd.f32 %v4410_v17, %v15084_v31  ;;  %v4415_v17 = vadd.f32 %v4414_v18, %v15098_v61 }
 0x343   : > { %v15286_v54 = vpop.permute.xlu1 %6301  ;;  %21065 = vst [vmem:[#allocation22_spill] sm:$0xff] %v15288_v22  ;;  %v4507_v10 = vpop.f32.mrf.mxu0 }
 0x344   : > { %21064 = vst [vmem:[#allocation38_spill] sm:$0xff] %v15286_v54  ;;  %8645 = vrot.lane.b32.xlu1 %v15034_v50, %s12569_s11  ;;  %8643 = vrot.lane.b32.xlu0 %v14555_v20, %s12569_s11  ;;  %v15300_v56 = vadd.f32 %v4507_v10, %v4407_v8  ;;  %v15302_v60 = vpop.f32.mrf.mxu1 }
 0x345   : > { %12181 = vmatpush3.bf16.msra.mxu1 %v15292_v40  ;;  %v4509_v41 = vpop.f32.mrf.mxu0 }
 0x346   : > { %5087 = vmatmul.mubr.bf16.vlgmr.msra.gmra.mxu0 %v14986_v63  ;;  %v15308_v22 = vpop.permute.xlu0 %6303  ;;  %v15310_v30 = vadd.f32 %v4509_v41, %v4409_v23  ;;  %v4430_v63 = vpop.f32.mrf.mxu1 }
 0x347   : > { %v15306_v54 = vpop.permute.xlu1 %6305  ;;  %21067 = vst [vmem:[#allocation12_spill] sm:$0xff] %v15308_v22  ;;  %5015 = vmatmul.mubr.bf16.gmra.mxu1 %v14831_v48  ;;  %12139 = vmatpush3.bf16.msra.mxu0 %v15231_v47  ;;  %v4511_v13 = vpop.f32.mrf.mxu0  ;;  %v4417_v47 = vadd.f32 %v4416_v2, %v15098_v61 }
 0x348   : > { %21066 = vst [vmem:[#allocation27_spill] sm:$0xff] %v15306_v54  ;;  %8883 = vrot.lane.b32.xlu1 %v15047_v42, %s12583_s12  ;;  %8647 = vrot.lane.b32.xlu0 %v14580_v39, %s12569_s11  ;;  %v15319_v8 = vadd.f32 %v4511_v13, %v4411_v32  ;;  %v4434_v48 = vpop.f32.mrf.mxu1  ;;  %s12584_s11 = smov 68  }
 0x349   : > { %12140 = vmatprep.subr.bf16.mxu0 %v21042_v7  ;;  %5022 = vmatprep.mubr.bf16.mxu1 %v14837_v1  ;;  %v4515_v10 = vpop.f32.mrf.mxu0 }
 0x34a   : > { %5094 = vmatprep.mubr.bf16.mxu0 %v15025_v24  ;;  %v15327_v41 = vpop.permute.xlu0 %6307  ;;  %v15329_v54 = vadd.f32 %v4515_v10, %v4415_v17  ;;  %v4436_v1 = vpop.f32.mrf.mxu1  ;;  %v4419_v24 = vadd.f32 %v15260_v53, %v15100_v37 }
 0x34b   : > { %v15325_v23 = vpop.permute.xlu1 %6543  ;;  %21069 = vst [vmem:[#allocation46_spill] sm:$0xff] %v15327_v41  ;;  %12141 = vmatpush3.bf16.msra.mxu0 %v15249_v33  ;;  %v4517_v18 = vpop.f32.mrf.mxu0  ;;  %v4421_v33 = vadd.f32 %v4420_v0, %v15100_v37  ;;  %v4425_v0 = vadd.f32 %v4424_v45, %v15118_v19 }
 0x34c   : > { %21068 = vst [vmem:[#allocation17_spill] sm:$0xff] %v15325_v23  ;;  %8887 = vrot.lane.b32.xlu1 %v15070_v26, %s12583_s12  ;;  %8885 = vrot.lane.b32.xlu0 %v14544_v25, %s12583_s12  ;;  %v15338_v2 = vadd.f32 %v4517_v18, %v4417_v47  ;;  %v4438_v32 = vpop.f32.mrf.mxu1 }
 0x34d   : > { %12142 = vmatprep.subr.bf16.mxu0 %v21042_v7  ;;  %v4519_v13 = vpop.f32.mrf.mxu0 }
 0x34e   : > { %5095 = vmatmul.mubr.bf16.gmra.mxu0 %v15031_v28  ;;  %v15345_v10 = vpop.permute.xlu0 %6545  ;;  %v15347_v23 = vadd.f32 %v4519_v13, %v4419_v24  ;;  %v4440_v53 = vpop.f32.mrf.mxu1 }
 0x34f   : > { %v15343_v17 = vpop.permute.xlu1 %6547  ;;  %21071 = vst [vmem:[#allocation49_spill] sm:$0xff] %v15345_v10  ;;  %5023 = vmatmul.mubr.bf16.gmra.mxu1 %v14875_v4  ;;  %12143 = vmatpush3.bf16.msra.mxu0 %v15272_v9  ;;  %v4521_v28 = vpop.f32.mrf.mxu0  ;;  %v4427_v9 = vadd.f32 %v4426_v44, %v15118_v19 }
 0x350   : > { %21070 = vst [vmem:[#allocation48_spill] sm:$0xff] %v15343_v17  ;;  %8891 = vrot.lane.b32.xlu1 %v15034_v50, %s12583_s12  ;;  %8889 = vrot.lane.b32.xlu0 %v14555_v20, %s12583_s12  ;;  %v15356_v47 = vadd.f32 %v4521_v28, %v4421_v33  ;;  %v4444_v18 = vpop.f32.mrf.mxu1 }
 0x351   : > { %12144 = vmatprep.subr.bf16.mxu0 %v21042_v7  ;;  %5030 = vmatprep.mubr.bf16.mxu1 %v14881_v58  ;;  %v4525_v4 = vpop.f32.mrf.mxu0 }
 0x352   : > { %5102 = vmatprep.mubr.bf16.mxu0 %v15043_v49  ;;  %v15364_v13 = vpop.permute.xlu0 %6549  ;;  %v15366_v17 = vadd.f32 %v4525_v4, %v4425_v0  ;;  %v4446_v58 = vpop.f32.mrf.mxu1  ;;  %v4429_v49 = vadd.f32 %v15302_v60, %v15120_v16 }
 0x353   : > { %v15362_v24 = vpop.permute.xlu1 %6551  ;;  %21073 = vst [vmem:[#allocation51_spill] sm:$0xff] %v15364_v13  ;;  %12145 = vmatpush3.bf16.msra.mxu0 %v15292_v40  ;;  %v4527_v45 = vpop.f32.mrf.mxu0  ;;  %v4431_v40 = vadd.f32 %v4430_v63, %v15120_v16  ;;  %v4435_v63 = vadd.f32 %v4434_v48, %v15135_v5 }
 0x354   : > { %21072 = vst [vmem:[#allocation50_spill] sm:$0xff] %v15362_v24  ;;  %9105 = vrot.lane.b32.xlu1 %v15047_v42, %s12584_s11  ;;  %8893 = vrot.lane.b32.xlu0 %v14580_v39, %s12583_s12  ;;  %v15375_v44 = vadd.f32 %v4527_v45, %v4427_v9  ;;  %v4448_v33 = vpop.f32.mrf.mxu1 }
 0x355   : > { %v4529_v28 = vpop.f32.mrf.mxu0 }
 0x356   : > { %5103 = vmatmul.mubr.bf16.gmra.mxu0 %v15067_v27  ;;  %v15381_v4 = vpop.permute.xlu0 %6553  ;;  %v15383_v24 = vadd.f32 %v4529_v28, %v4429_v49  ;;  %v4450_v60 = vpop.f32.mrf.mxu1 }
 0x357   : > { %v15379_v0 = vpop.permute.xlu1 %6765  ;;  %21075 = vst [vmem:[#allocation53_spill] sm:$0xff] %v15381_v4  ;;  %5031 = vmatmul.mubr.bf16.gmra.mxu1 %v14919_v6  ;;  %5110 = vmatprep.mubr.bf16.mxu0 %v15079_v3  ;;  %v4531_v27 = vpop.f32.mrf.mxu0  ;;  %v4437_v6 = vadd.f32 %v4436_v1, %v15135_v5 }
 0x358   : > { %21074 = vst [vmem:[#allocation52_spill] sm:$0xff] %v15379_v0  ;;  %9109 = vrot.lane.b32.xlu1 %v15070_v26, %s12584_s11  ;;  %9107 = vrot.lane.b32.xlu0 %v14544_v25, %s12584_s11  ;;  %v15392_v9 = vadd.f32 %v4531_v27, %v4431_v40  ;;  %v4454_v45 = vpop.f32.mrf.mxu1 }
 0x359   : > { %5038 = vmatprep.mubr.bf16.mxu1 %v14925_v59  ;;  %v4535_v49 = vpop.f32.mrf.mxu0  ;;  %v4439_v59 = vadd.f32 %v4438_v32, %v15137_v43 }
 0x35a   : > { %v15398_v3 = vpop.permute.xlu0 %6767  ;;  %v15400_v0 = vadd.f32 %v4535_v49, %v4435_v63  ;;  %v4456_v48 = vpop.f32.mrf.mxu1 }
 0x35b   : > { %v15396_v28 = vpop.permute.xlu1 %6769  ;;  %21077 = vst [vmem:[#allocation55_spill] sm:$0xff] %v15398_v3  ;;  %v4537_v40 = vpop.f32.mrf.mxu0 }
 0x35c   : > { %21076 = vst [vmem:[#allocation54_spill] sm:$0xff] %v15396_v28  ;;  %9113 = vrot.lane.b32.xlu1 %v15034_v50, %s12584_s11  ;;  %9111 = vrot.lane.b32.xlu0 %v14555_v20, %s12584_s11  ;;  %v15407_v27 = vadd.f32 %v4537_v40, %v4437_v6  ;;  %v4458_v1 = vpop.f32.mrf.mxu1  ;;  %v4441_v28 = vadd.f32 %v4440_v53, %v15137_v43 }
 0x35d   : > { %v4539_v4 = vpop.f32.mrf.mxu0  ;;  %v4445_v53 = vadd.f32 %v4444_v18, %v15156_v21  ;;  %v4447_v40 = vadd.f32 %v4446_v58, %v15156_v21 }
 0x35e   : > { %5111 = vmatmul.mubr.bf16.gmra.mxu0 %v15105_v29  ;;  %v15413_v49 = vpop.permute.xlu0 %6771  ;;  %v15415_v3 = vadd.f32 %v4539_v4, %v4439_v59  ;;  %v4459_v32 = vpop.f32.mrf.mxu1 }
 0x35f   : > { %v15411_v63 = vpop.permute.xlu1 %6773  ;;  %21079 = vst [vmem:[#allocation57_spill] sm:$0xff] %v15413_v49  ;;  %5039 = vmatmul.mubr.bf16.gmra.mxu1 %v14963_v34  ;;  %5118 = vmatprep.mubr.bf16.mxu0 %v15115_v51  ;;  %v4541_v29 = vpop.f32.mrf.mxu0  ;;  %v4451_v32 = vadd.f32 %v4450_v60, %v15158_v12 }
 0x360   : > { %21078 = vst [vmem:[#allocation56_spill] sm:$0xff] %v15411_v63  ;;  %9351 = vrot.lane.b32.xlu1 %v15047_v42, %s12574_s16  ;;  %9115 = vrot.lane.b32.xlu0 %v14580_v39, %s12584_s11  ;;  %v15424_v6 = vadd.f32 %v4541_v29, %v4441_v28  ;;  %v4449_v28 = vadd.f32 %v4448_v33, %v15158_v12 }
 0x361   : > { %5046 = vmatprep.mubr.bf16.mxu1 %v14365_v55  ;;  %v4545_v4 = vpop.f32.mrf.mxu0  ;;  %v4455_v33 = vadd.f32 %v4454_v45, %v15171_v46 }
 0x362   : > { %v15430_v51 = vpop.permute.xlu0 %6775  ;;  %v15432_v59 = vadd.f32 %v4545_v4, %v4445_v53 }
 0x363   : > { %v15428_v34 = vpop.permute.xlu1 %7011  ;;  %21081 = vst [vmem:[#allocation59_spill] sm:$0xff] %v15430_v51  ;;  %v4547_v18 = vpop.f32.mrf.mxu0 }
 0x364   : > { %21080 = vst [vmem:[#allocation58_spill] sm:$0xff] %v15428_v34  ;;  %9355 = vrot.lane.b32.xlu1 %v15070_v26, %s12574_s16  ;;  %9353 = vrot.lane.b32.xlu0 %v14544_v25, %s12574_s16  ;;  %v15439_v1 = vadd.f32 %v4547_v18, %v4447_v40  ;;  %v4457_v18 = vadd.f32 %v4456_v48, %v15171_v46 }
 0x365   : > { %v4596_v55 = vpop.f32.mrf.mxu1  ;;  %v4549_v29 = vpop.f32.mrf.mxu0 }
 0x366   : > { %v15442_v58 = vadd.f32 %v4596_v55, %v15242_v62  ;;  %5119 = vmatmul.mubr.bf16.gmra.mxu0 %v15142_v35  ;;  %v15448_v4 = vpop.permute.xlu0 %7013  ;;  %v15450_v34 = vadd.f32 %v4549_v29, %v4449_v28 }
 0x367   : > { %v15446_v53 = vpop.permute.xlu1 %7015  ;;  %21083 = vst [vmem:[#allocation61_spill] sm:$0xff] %v15448_v4  ;;  %5047 = vmatmul.mubr.bf16.gmra.mxu1 %v14411_v11  ;;  %5126 = vmatprep.mubr.bf16.mxu0 %v15152_v36  ;;  %v4551_v62 = vpop.f32.mrf.mxu0 }
 0x368   : > { %21082 = vst [vmem:[#allocation60_spill] sm:$0xff] %v15446_v53  ;;  %9359 = vrot.lane.b32.xlu1 %v15034_v50, %s12574_s16  ;;  %9357 = vrot.lane.b32.xlu0 %v14555_v20, %s12574_s16  ;;  %v4598_v35 = vpop.f32.mrf.mxu1  ;;  %v15459_v60 = vadd.f32 %v4551_v62, %v4451_v32  ;;  %v21088_v53 = vld [vmem:[#allocation41_spill] sm:$0xff] }
 0x369   : > { %v15462_v40 = vadd.f32 %v4598_v35, %v15257_v52  ;;  %12150 = vmatprep.mubr.msk.bf16.mxu1 %vm12585_vm14, %v21042_v7  ;;  %v4555_v11 = vpop.f32.mrf.mxu0 }
 0x36a   : > { %v4600_v36 = vpop.f32.mrf.mxu1  ;;  %v15469_v55 = vpop.permute.xlu0 %7017  ;;  %v15471_v29 = vadd.f32 %v4555_v11, %v4455_v33 }
 0x36b   : > { %v15467_v28 = vpop.permute.xlu1 %7019  ;;  %21085 = vst [vmem:[#allocation63_spill] sm:$0xff] %v15469_v55  ;;  %v15474_v45 = vadd.f32 %v4600_v36, %v15269_v38  ;;  %v4557_v52 = vpop.f32.mrf.mxu0 }
 0x36c   : > { %21084 = vst [vmem:[#allocation62_spill] sm:$0xff] %v15467_v28  ;;  %9573 = vrot.lane.b32.xlu1 %v15047_v42, %s12572_s14  ;;  %9361 = vrot.lane.b32.xlu0 %v14580_v39, %s12574_s16  ;;  %v4602_v32 = vpop.f32.mrf.mxu1  ;;  %v15482_v62 = vadd.f32 %v4557_v52, %v4457_v18  ;;  %v21089_v18 = vld [vmem:[#allocation34_spill] sm:$0xff]  ;;  %s12587_s16 = smov 48  }
 0x36d   : > { %v5305_v48 = vmax.f32 %v15442_v58, %v15474_v45  ;;  %v15485_v35 = vadd.f32 %v4602_v32, %v15281_v57  ;;  %v4559_v38 = vpop.f32.mrf.mxu0 }
 0x36e   : > { %v4606_v33 = vpop.f32.mrf.mxu1  ;;  %5127 = vmatmul.mubr.bf16.gmra.mxu0 %v14458_v15  ;;  %v15490_v36 = vpop.permute.xlu0 %7021 }
 0x36f   : > { %v15488_v11 = vpop.permute.xlu1 %7233  ;;  %21087 = vst [vmem:[#allocation65_spill] sm:$0xff] %v15490_v36  ;;  %v5306_v28 = vmax.f32 %v15462_v40, %v15485_v35  ;;  %v15495_v55 = vadd.f32 %v4606_v33, %v15290_v14  ;;  %12151 = vmatmul.mubr.msk.bf16.vlgmr.msra.gmra.mxu1 %vm4338_vm13, %v21088_v53  ;;  %5134 = vmatprep.mubr.bf16.mxu0 %v21089_v18  ;;  %v4560_v57 = vpop.f32.mrf.mxu0 }
 0x370   : > { %21086 = vst [vmem:[#allocation64_spill] sm:$0xff] %v15488_v11  ;;  %9577 = vrot.lane.b32.xlu1 %v15070_v26, %s12572_s14  ;;  %9575 = vrot.lane.b32.xlu0 %v14544_v25, %s12572_s14  ;;  %v4608_v15 = vpop.f32.mrf.mxu1 }
 0x371   : > { %v5315_v52 = vmax.f32 %v5305_v48, %v15495_v55  ;;  %v15506_v32 = vadd.f32 %v4608_v15, %v15300_v56  ;;  %12154 = vmatprep.mubr.msk.bf16.mxu1 %vm12585_vm14, %v21042_v7 }
 0x372   : > { %v4610_v14 = vpop.f32.mrf.mxu1  ;;  %v15512_v33 = vpop.permute.xlu0 %7235 }
 0x373   : > { %v15510_v53 = vpop.permute.xlu1 %7237  ;;  %21091 = vst [vmem:[#allocation34_spill] sm:$0xff] %v15512_v33  ;;  %v5316_v38 = vmax.f32 %v5306_v28, %v15506_v32  ;;  %v15516_v18 = vadd.f32 %v4610_v14, %v15310_v30  ;;  %v21095_v33 = vld [vmem:[#allocation29_spill] sm:$0xff] }
 0x374   : > { %21090 = vst [vmem:[#allocation41_spill] sm:$0xff] %v15510_v53  ;;  %9581 = vrot.lane.b32.xlu1 %v15034_v50, %s12572_s14  ;;  %9579 = vrot.lane.b32.xlu0 %v14555_v20, %s12572_s14  ;;  %v4612_v56 = vpop.f32.mrf.mxu1  ;;  %v21092_v53 = vld [vmem:[#allocation40_spill] sm:$0xff] }
 0x375   : > { %v5325_v48 = vmax.f32 %v5315_v52, %v15516_v18  ;;  %v15524_v15 = vadd.f32 %v4612_v56, %v15319_v8 }
 0x376   : > { %v4616_v57 = vpop.f32.mrf.mxu1  ;;  %5135 = vmatmul.mubr.bf16.gmra.mxu0 %v21092_v53  ;;  %v15529_v28 = vpop.permute.xlu0 %7239 }
 0x377   : > { %v15527_v11 = vpop.permute.xlu1 %7241  ;;  %21094 = vst [vmem:[#allocation66_spill] sm:$0xff] %v15529_v28  ;;  %v5326_v30 = vmax.f32 %v5316_v38, %v15524_v15  ;;  %v15533_v14 = vadd.f32 %v4616_v57, %v15329_v54  ;;  %12155 = vmatmul.mubr.msk.bf16.gmra.mxu1 %vm4338_vm13, %v21095_v33  ;;  %12146 = vmatprep.mubr.msk.bf16.mxu0 %vm12585_vm14, %v21042_v7  ;;  %v21101_v28 = vld [vmem:[#allocation33_spill] sm:$0xff] }
 0x378   : > { %21093 = vst [vmem:[#allocation40_spill] sm:$0xff] %v15527_v11  ;;  %9819 = vrot.lane.b32.xlu1 %v15047_v42, %s12575_s23  ;;  %9583 = vrot.lane.b32.xlu0 %v14580_v39, %s12572_s14  ;;  %v4618_v8 = vpop.f32.mrf.mxu1  ;;  %v21098_v11 = vld [vmem:[#allocation31_spill] sm:$0xff]  ;;  %s12586_s14 = smov 64  }
 0x379   : > { %v5335_v52 = vmax.f32 %v5325_v48, %v15533_v14  ;;  %v15545_v53 = vadd.f32 %v4618_v8, %v15338_v2  ;;  %12158 = vmatprep.mubr.msk.bf16.mxu1 %vm12585_vm14, %v21042_v7 }
 0x37a   : > { %v4620_v54 = vpop.f32.mrf.mxu1  ;;  %v15551_v38 = vpop.permute.xlu0 %7243 }
 0x37b   : > { %v15549_v33 = vpop.permute.xlu1 %7479  ;;  %21097 = vst [vmem:[#allocation67_spill] sm:$0xff] %v15551_v38  ;;  %v5336_v56 = vmax.f32 %v5326_v30, %v15545_v53  ;;  %v15555_v57 = vadd.f32 %v4620_v54, %v15347_v23 }
 0x37c   : > { %21096 = vst [vmem:[#allocation29_spill] sm:$0xff] %v15549_v33  ;;  %9823 = vrot.lane.b32.xlu1 %v15070_v26, %s12575_s23  ;;  %9821 = vrot.lane.b32.xlu0 %v14544_v25, %s12575_s23  ;;  %v4622_v2 = vpop.f32.mrf.mxu1 }
 0x37d   : > { %v5345_v48 = vmax.f32 %v5335_v52, %v15555_v57  ;;  %v15563_v8 = vadd.f32 %v4622_v2, %v15356_v47 }
 0x37e   : > { %v4626_v33 = vpop.f32.mrf.mxu1  ;;  %12147 = vmatmul.mubr.msk.bf16.vlgmr.msra.gmra.mxu0 %vm4338_vm13, %v21098_v11  ;;  %v15569_v23 = vpop.permute.xlu0 %7481 }
 0x37f   : > { %v15567_v30 = vpop.permute.xlu1 %7483  ;;  %21100 = vst [vmem:[#allocation68_spill] sm:$0xff] %v15569_v23  ;;  %v5346_v54 = vmax.f32 %v5336_v56, %v15563_v8  ;;  %v15573_v38 = vadd.f32 %v4626_v33, %v15366_v17  ;;  %12159 = vmatmul.mubr.msk.bf16.gmra.mxu1 %vm4338_vm13, %v21101_v28 }
 0x380   : > { %21099 = vst [vmem:[#allocation31_spill] sm:$0xff] %v15567_v30  ;;  %9827 = vrot.lane.b32.xlu1 %v15034_v50, %s12575_s23  ;;  %9825 = vrot.lane.b32.xlu0 %v14555_v20, %s12575_s23  ;;  %v4628_v47 = vpop.f32.mrf.mxu1 }
 0x381   : > { %v5355_v11 = vmax.f32 %v5345_v48, %v15573_v38  ;;  %v15583_v52 = vadd.f32 %v4628_v47, %v15375_v44  ;;  %12162 = vmatprep.mubr.msk.bf16.mxu1 %vm12585_vm14, %v21042_v7 }
 0x382   : > { %v4630_v17 = vpop.f32.mrf.mxu1  ;;  %v15589_v56 = vpop.permute.xlu0 %7485 }
 0x383   : > { %v15587_v33 = vpop.permute.xlu1 %7487  ;;  %21103 = vst [vmem:[#allocation69_spill] sm:$0xff] %v15589_v56  ;;  %v5356_v28 = vmax.f32 %v5346_v54, %v15583_v52  ;;  %v15593_v2 = vadd.f32 %v4630_v17, %v15383_v24  ;;  %v21105_v17 = vld [vmem:[#allocation28_spill] sm:$0xff] }
 0x384   : > { %21102 = vst [vmem:[#allocation33_spill] sm:$0xff] %v15587_v33  ;;  %10041 = vrot.lane.b32.xlu1 %v15047_v42, %s12586_s14  ;;  %9829 = vrot.lane.b32.xlu0 %v14580_v39, %s12575_s23  ;;  %v4632_v44 = vpop.f32.mrf.mxu1 }
 0x385   : > { %v5365_v48 = vmax.f32 %v5355_v11, %v15593_v2  ;;  %v15601_v47 = vadd.f32 %v4632_v44, %v15392_v9 }
 0x386   : > { %v4636_v33 = vpop.f32.mrf.mxu1  ;;  %v15603_v30 = vpop.permute.xlu0 %7489 }
 0x387   : > { %v7702_v56 = vpop.permute.xlu1 %7701  ;;  %21104 = vst [vmem:[#allocation70_spill] sm:$0xff] %v15603_v30  ;;  %v5366_v24 = vmax.f32 %v5356_v28, %v15601_v47  ;;  %v15607_v54 = vadd.f32 %v4636_v33, %v15400_v0  ;;  %12163 = vmatmul.mubr.msk.bf16.gmra.mxu1 %vm4338_vm13, %v21105_v17 }
 0x388   : > { %10045 = vrot.lane.b32.xlu1 %v15070_v26, %s12586_s14  ;;  %10043 = vrot.lane.b32.xlu0 %v14544_v25, %s12586_s14  ;;  %v4638_v9 = vpop.f32.mrf.mxu1 }
 0x389   : > { %v5375_v11 = vmax.f32 %v5365_v48, %v15607_v54  ;;  %v15617_v44 = vadd.f32 %v4638_v9, %v15407_v27  ;;  %12166 = vmatprep.mubr.msk.bf16.mxu1 %vm12585_vm14, %v21042_v7 }
 0x38a   : > { %v4640_v0 = vpop.f32.mrf.mxu1  ;;  %v7704_v28 = vpop.permute.xlu0 %7703 }
 0x38b   : > { %v7706_v33 = vpop.permute.xlu1 %7705  ;;  %v5376_v17 = vmax.f32 %v5366_v24, %v15617_v44  ;;  %v15623_v30 = vadd.f32 %v4640_v0, %v15415_v3  ;;  %v15626_v23 = vsel %vm7713_vm15, %v7702_v56, %v7704_v28 }
 0x38c   : > { %21106 = vst [vmem:[#allocation28_spill] sm:$0xff] %v15626_v23  ;;  %v15629_v36 = vsel %vm7713_vm15, %v7704_v28, %v7706_v33  ;;  %10049 = vrot.lane.b32.xlu1 %v15034_v50, %s12586_s14  ;;  %10047 = vrot.lane.b32.xlu0 %v14555_v20, %s12586_s14  ;;  %v4642_v27 = vpop.f32.mrf.mxu1 }
 0x38d   : > { %21107 = vst [vmem:[#allocation71_spill] sm:$0xff] %v15629_v36  ;;  %v5385_v48 = vmax.f32 %v5375_v11, %v15623_v30  ;;  %v15637_v24 = vadd.f32 %v4642_v27, %v15424_v6  ;;  %v21108_v36 = vld [vmem:[#allocation36_spill] sm:$0xff] }
 0x38e   : > { %v4646_v3 = vpop.f32.mrf.mxu1  ;;  %v7708_v0 = vpop.permute.xlu0 %7707 }
 0x38f   : > { %v7710_v9 = vpop.permute.xlu1 %7709  ;;  %v5386_v56 = vmax.f32 %v5376_v17, %v15637_v24  ;;  %v15641_v28 = vadd.f32 %v4646_v3, %v15432_v59  ;;  %12167 = vmatmul.mubr.msk.bf16.gmra.mxu1 %vm4338_vm13, %v21108_v36  ;;  %v15646_v23 = vsel %vm7713_vm15, %v7706_v33, %v7708_v0 }
 0x390   : > { %21109 = vst [vmem:[#allocation36_spill] sm:$0xff] %v15646_v23  ;;  %v15649_v4 = vsel %vm7713_vm15, %v7708_v0, %v7710_v9  ;;  %10286 = vrot.lane.b32.xlu1 %v15047_v42, %s12587_s16  ;;  %10051 = vrot.lane.b32.xlu0 %v14580_v39, %s12586_s14  ;;  %v4648_v6 = vpop.f32.mrf.mxu1  ;;  %v12535_v23 = vld [vmem:[%s20329_s3 + $0x100] ss:$0 sps:$4 sm:$0xff]  }
 0x391   : > { %21110 = vst [vmem:[#allocation72_spill] sm:$0xff] %v15649_v4  ;;  %v5395_v59 = vmax.f32 %v5385_v48, %v15641_v28  ;;  %v15657_v11 = vadd.f32 %v4648_v6, %v15439_v1  ;;  %12170 = vmatprep.mubr.msk.bf16.mxu1 %vm12585_vm14, %v21042_v7 }
 0x392   : > { %v4650_v36 = vpop.f32.mrf.mxu1  ;;  %v15661_v33 = vpop.f32.mrf.mxu0 }
 0x393   : > { %v7948_v17 = vpop.permute.xlu1 %7947  ;;  %v7712_v27 = vpop.permute.xlu0 %7711  ;;  %v5396_v3 = vmax.f32 %v5386_v56, %v15657_v11  ;;  %v15665_v0 = vadd.f32 %v4650_v36, %v15450_v34 }
 0x394   : > { %v15668_v4 = vsel %vm7713_vm15, %v7710_v9, %v7712_v27  ;;  %10290 = vrot.lane.b32.xlu1 %v15070_v26, %s12587_s16  ;;  %10288 = vrot.lane.b32.xlu0 %v14544_v25, %s12587_s16  ;;  %v4652_v7 = vpop.f32.mrf.mxu1  ;;  %v15674_v1 = vpop.f32.mrf.mxu0 }
 0x395   : > { %21111 = vst [vmem:[#allocation73_spill] sm:$0xff] %v15668_v4  ;;  %v5405_v48 = vmax.f32 %v5395_v59, %v15665_v0  ;;  %v15678_v56 = vadd.f32 %v4652_v7, %v15459_v60 }
 0x396   : > { %v4656_v34 = vpop.f32.mrf.mxu1  ;;  %v15680_v6 = vpop.f32.mrf.mxu0 }
 0x397   : > { %v7952_v9 = vpop.permute.xlu1 %7951  ;;  %v7950_v36 = vpop.permute.xlu0 %7949  ;;  %v5406_v27 = vmax.f32 %v5396_v3, %v15678_v56  ;;  %v15684_v4 = vadd.f32 %v4656_v34, %v15471_v29  ;;  %12171 = vmatmul.mubr.msk.bf16.gmra.mxu1 %vm4338_vm13, %v12535_v23 }
 0x398   : > { %v15691_v59 = vsel %vm7959_vm1, %v7948_v17, %v7950_v36  ;;  %v15694_v60 = vsel %vm7959_vm1, %v7950_v36, %v7952_v9  ;;  %10294 = vrot.lane.b32.xlu1 %v15034_v50, %s12587_s16  ;;  %10292 = vrot.lane.b32.xlu0 %v14555_v20, %s12587_s16  ;;  %v4658_v29 = vpop.f32.mrf.mxu1  ;;  %v15700_v3 = vpop.f32.mrf.mxu0 }
 0x399   : > { %21112 = vst [vmem:[#allocation74_spill] sm:$0xff] %v15691_v59  ;;  %21113 = vst [vmem:[#allocation75_spill] sm:$0xff] %v15694_v60  ;;  %v5415_v7 = vmax.f32 %v5405_v48, %v15684_v4  ;;  %v15704_v34 = vadd.f32 %v4658_v29, %v15482_v62 }
 0x39a   : > { %v15706_v23 = vpop.f32.mrf.mxu0  ;;  %v4660_v17 = vpop.f32.mrf.mxu1 }
 0x39b   : > { %v7956_v59 = vpop.permute.xlu1 %7955  ;;  %v7954_v36 = vpop.permute.xlu0 %7953  ;;  %v5425_v60 = vrot.slane %v5415_v7, 4  ;;  %v5416_v51 = vmax.f32 %v5406_v27, %v15704_v34 }
 0x39c   : > { %v15710_v50 = vsel %vm7959_vm1, %v7952_v9, %v7954_v36  ;;  %v15713_v63 = vsel %vm7959_vm1, %v7954_v36, %v7956_v59  ;;  %10508 = vrot.lane.b32.xlu1 %v15047_v42, %s12588_s17  ;;  %10296 = vrot.lane.b32.xlu0 %v14580_v39, %s12587_s16  ;;  %v15719_v62 = vpop.f32.mrf.mxu0  ;;  %v4661_v48 = vpop.f32.mrf.mxu1 }
 0x39d   : > { %21114 = vst [vmem:[#allocation76_spill] sm:$0xff] %v15710_v50  ;;  %21115 = vst [vmem:[#allocation77_spill] sm:$0xff] %v15713_v63  ;;  %v5435_v29 = vmax.f32 %v5415_v7, %v5425_v60  ;;  %v5426_v17 = vrot.slane %v5416_v51, 4 }
 0x39e   : > { %v15721_v49 = vpop.f32.mrf.mxu0 }
 0x39f   : > { %v5445_v27 = vrot.slane %v5435_v29, 4  ;;  %v8170_v9 = vpop.permute.xlu1 %8169  ;;  %v7958_v50 = vpop.permute.xlu0 %7957  ;;  %v5436_v13 = vmax.f32 %v5416_v51, %v5426_v17 }
 0x3a0   : > { %v15724_v36 = vsel %vm7959_vm1, %v7956_v59, %v7958_v50  ;;  %10512 = vrot.lane.b32.xlu1 %v15070_v26, %s12588_s17  ;;  %10510 = vrot.lane.b32.xlu0 %v14544_v25, %s12588_s17  ;;  %v15730_v42 = vpop.f32.mrf.mxu0 }
 0x3a1   : > { %21116 = vst [vmem:[#allocation78_spill] sm:$0xff] %v15724_v36  ;;  %v15733_v60 = vsel %vm291_vm0, %v5435_v29, %v5445_v27  ;;  %v5446_v63 = vrot.slane %v5436_v13, 4 }
 0x3a2   : > { %v5460_v7 = vsub.f32 %v15442_v58, %v15733_v60  ;;  %v5892_v51 = vsub.f32 %v15474_v45, %v15733_v60  ;;  %v6360_v59 = vsub.f32 %v15495_v55, %v15733_v60  ;;  %v6828_v26 = vsub.f32 %v15516_v18, %v15733_v60  ;;  %v15743_v50 = vpop.f32.mrf.mxu0 }
 0x3a3   : > { %v7296_v48 = vsub.f32 %v15533_v14, %v15733_v60  ;;  %v7764_v29 = vsub.f32 %v15555_v57, %v15733_v60  ;;  %v8232_v58 = vsub.f32 %v15573_v38, %v15733_v60  ;;  %v8700_v45 = vsub.f32 %v15593_v2, %v15733_v60  ;;  %v15753_v17 = vpop.permute.xlu1 %8173  ;;  %v15755_v55 = vpop.permute.xlu0 %8171  ;;  %v15759_v14 = vld [vmem:[#allocation3 + $0x10] sm:$0xff] }
 0x3a4   : > { %v5465_v27 = vmul.f32 1.442695, %v5460_v7  ;;  %v5897_v18 = vmul.f32 1.442695, %v5892_v51  ;;  %v9168_v36 = vsub.f32 %v15607_v54, %v15733_v60  ;;  %10516 = vrot.lane.b32.xlu1 %v15759_v14, %s12588_s17  ;;  %10514 = vrot.lane.b32.xlu0 %v14555_v20, %s12588_s17  ;;  %v15765_v38 = vpop.f32.mrf.mxu0  ;;  %v6365_v57 = vmul.f32 1.442695, %v6360_v59 }
 0x3a5   : > { %v9636_v2 = vsub.f32 %v15623_v30, %v15733_v60  ;;  %v6833_v54 = vmul.f32 1.442695, %v6828_v26  ;;  %v10103_v51 = vsub.f32 %v15641_v28, %v15733_v60  ;;  %v7301_v46 = vmul.f32 1.442695, %v7296_v48  ;;  %v15786_v26 = vld [vmem:[#allocation3] sm:$0xff] }
 0x3a6   : > { %12360 = vpow2.f32 %v5465_v27  ;;  %v15769_v7 = vpop.f32.mrf.mxu0  ;;  %v15780_v30 = vsel %vm291_vm0, %v5436_v13, %v5446_v63  ;;  %v15784_v27 = vsel %vm1769_vm8, %v8170_v9, %v15755_v55  ;;  %v7769_v48 = vmul.f32 1.442695, %v7764_v29 }
 0x3a7   : > { %12362 = vpow2.f32 %v5897_v18  ;;  %v15775_v41 = vpop.permute.xlu1 %8177  ;;  %v8176_v22 = vpop.permute.xlu0 %8175  ;;  %21117 = vst [vmem:[#allocation79_spill] sm:$0xff] %v15784_v27  ;;  %v5461_v13 = vsub.f32 %v15462_v40, %v15780_v30  ;;  %v8237_v63 = vmul.f32 1.442695, %v8232_v58  ;;  %v5893_v9 = vsub.f32 %v15485_v35, %v15780_v30  ;;  %v15808_v58 = vld [vmem:[#allocation3 + $0x8] sm:$0xff] }
 0x3a8   : > { %10754 = vrot.lane.b32.xlu1 %v15786_v26, %s12589_s15  ;;  %10518 = vrot.lane.b32.xlu0 %v14580_v39, %s12588_s17  ;;  %v15792_v28 = vpop.f32.mrf.mxu0  ;;  %12364 = vpow2.f32 %v6365_v57  ;;  %v6361_v18 = vsub.f32 %v15506_v32, %v15780_v30  ;;  %v8705_v10 = vmul.f32 1.442695, %v8700_v45  ;;  %v6829_v27 = vsub.f32 %v15524_v15, %v15780_v30 }
 0x3a9   : > { %12366 = vpow2.f32 %v6833_v54  ;;  %v7297_v29 = vsub.f32 %v15545_v53, %v15780_v30  ;;  %v9173_v40 = vmul.f32 1.442695, %v9168_v36  ;;  %v7765_v35 = vsub.f32 %v15563_v8, %v15780_v30 }
 0x3aa   : > { %v15800_v59 = vpop.f32.mrf.mxu0  ;;  %12368 = vpow2.f32 %v7301_v46  ;;  %v9641_v15 = vmul.f32 1.442695, %v9636_v2  ;;  %v8233_v53 = vsub.f32 %v15583_v52, %v15780_v30  ;;  %v10108_v46 = vmul.f32 1.442695, %v10103_v51 }
 0x3ab   : > { %v8416_v57 = vpop.permute.xlu1 %8415  ;;  %v8180_v12 = vpop.permute.xlu0 %8179  ;;  %12370 = vpow2.f32 %v7769_v48  ;;  %v5467_v54 = vmul.f32 1.442695, %v5461_v13  ;;  %v5899_v51 = vmul.f32 1.442695, %v5893_v9  ;;  %v6367_v13 = vmul.f32 1.442695, %v6361_v18 }
 0x3ac   : > { %10758 = vrot.lane.b32.xlu1 %v15808_v58, %s12589_s15  ;;  %10756 = vrot.lane.b32.xlu0 %v14544_v25, %s12589_s15  ;;  %v15814_v32 = vpop.f32.mrf.mxu0  ;;  %12372 = vpow2.f32 %v8237_v63  ;;  %v11040_v2 = vsub.f32 %v15704_v34, %v15780_v30  ;;  %v6835_v21 = vmul.f32 1.442695, %v6829_v27  ;;  %v15841_v9 = vsel %vm1769_vm8, %v15755_v55, %v15753_v17 }
 0x3ad   : > { %12374 = vpow2.f32 %v8705_v10  ;;  %21118 = vst [vmem:[#allocation80_spill] sm:$0xff] %v15841_v9  ;;  %v7303_v18 = vmul.f32 1.442695, %v7297_v29  ;;  %v15853_v34 = vsel %vm1769_vm8, %v8176_v22, %v15775_v41  ;;  %v7771_v55 = vmul.f32 1.442695, %v7765_v35 }
 0x3ae   : > { %v15822_v45 = vpop.f32.mrf.mxu0  ;;  %12376 = vpow2.f32 %v9173_v40  ;;  %v15845_v40 = vsel %vm1769_vm8, %v15753_v17, %v8176_v22  ;;  %21120 = vst [vmem:[#allocation82_spill] sm:$0xff] %v15853_v34  ;;  %v15859_v17 = vsel %vm1769_vm8, %v15775_v41, %v8180_v12  ;;  %v21123_v12 = vsub.f32 %v15665_v0, %v15733_v60 }
 0x3af   : > { %v8420_v48 = vpop.permute.xlu1 %8419  ;;  %v8418_v52 = vpop.permute.xlu0 %8417  ;;  %12378 = vpow2.f32 %v9641_v15  ;;  %21119 = vst [vmem:[#allocation81_spill] sm:$0xff] %v15845_v40  ;;  %21121 = vst [vmem:[#allocation83_spill] sm:$0xff] %v15859_v17  ;;  %vm6309_vm8 = vcmask 1022976  }
 0x3b0   : > { %10762 = vrot.lane.b32.xlu1 %v15759_v14, %s12589_s15  ;;  %10760 = vrot.lane.b32.xlu0 %v14555_v20, %s12589_s15  ;;  %v15834_v10 = vpop.f32.mrf.mxu0  ;;  %12380 = vpow2.f32 %v10108_v46  ;;  %v15870_v35 = vsel %vm1978_vm7, %v8416_v57, %v8418_v52  ;;  %v10576_v41 = vmul.f32 1.442695, %v21123_v12  ;;  %v15878_v8 = vsel %vm1978_vm7, %v8418_v52, %v8420_v48 }
 0x3b1   : > { %12382 = vpow2.f32 %v5467_v54  ;;  %v8239_v54 = vmul.f32 1.442695, %v8233_v53  ;;  %21122 = vst [vmem:[#allocation84_spill] sm:$0xff] %v15870_v35  ;;  %21124 = vst [vmem:[#allocation85_spill] sm:$0xff] %v15878_v8  ;;  %v11046_v12 = vmul.f32 1.442695, %v11040_v2 }
 0x3b2   : > { %v15847_v63 = vpop.f32.mrf.mxu0  ;;  %12384 = vpow2.f32 %v5899_v51 }
 0x3b3   : > { %v15849_v36 = vpop.eup %12360  ;;  %v8424_v27 = vpop.permute.xlu1 %8423  ;;  %12386 = vpow2.f32 %v6367_v13 }
 0x3b4   : > { %v8422_v15 = vpop.permute.xlu0 %8421  ;;  %v15855_v46 = vpop.eup %12362  ;;  %10976 = vrot.lane.b32.xlu1 %v15786_v26, %s12590_s10  ;;  %10764 = vrot.lane.b32.xlu0 %v14580_v39, %s12589_s15  ;;  %12388 = vpow2.f32 %v6835_v21 }
 0x3b5   : > { %v15865_v29 = vpop.f32.mrf.mxu0  ;;  %v5907_v22 = vadd.f32 %v15855_v46, %v15849_v36  ;;  %v15872_v51 = vpop.eup %12364  ;;  %12390 = vpow2.f32 %v7303_v18  ;;  %v15884_v53 = vsel %vm1978_vm7, %v8420_v48, %v8422_v15  ;;  %v15887_v57 = vsel %vm1978_vm7, %v8422_v15, %v8424_v27 }
 0x3b6   : > { %21125 = vst [vmem:[#allocation86_spill] sm:$0xff] %v15884_v53  ;;  %21126 = vst [vmem:[#allocation87_spill] sm:$0xff] %v15887_v57  ;;  %v15889_v40 = vpop.eup %12366  ;;  %12392 = vpow2.f32 %v7771_v55  ;;  %v21129_v18 = vsub.f32 %v15684_v4, %v15733_v60 }
 0x3b7   : > { %v15880_v17 = vpop.f32.mrf.mxu0  ;;  %v6375_v34 = vadd.f32 %v15872_v51, %v5907_v22  ;;  %v8638_v13 = vpop.permute.xlu1 %8637  ;;  %21127 = vst [vmem:[#allocation88_spill] sm:$0xff] %v15889_v40  ;;  %12394 = vpow2.f32 %v8239_v54 }
 0x3b8   : > { %v8426_v35 = vpop.permute.xlu0 %8425  ;;  %10980 = vrot.lane.b32.xlu1 %v15808_v58, %s12590_s10  ;;  %10978 = vrot.lane.b32.xlu0 %v14544_v25, %s12590_s10  ;;  %v15900_v48 = vpop.eup %12368  ;;  %v11044_v15 = vmul.f32 1.442695, %v21129_v18  ;;  %12396 = vpow2.f32 %v10576_v41 }
 0x3b9   : > { %v15892_v21 = vsel %vm1978_vm7, %v8424_v27, %v8426_v35  ;;  %v15898_v0 = vpop.f32.mrf.mxu0  ;;  %v6843_v52 = vadd.f32 %v15889_v40, %v6375_v34  ;;  %v15906_v55 = vpop.eup %12370  ;;  %v21134_v34 = vsub.f32 %v15601_v47, %v15780_v30  ;;  %v21155_v40 = vld [vmem:[#allocation21_spill] sm:$0xff]  ;;  %vm6087_vm7 = vcmask 1031168  }
 0x3ba   : > { %21128 = vst [vmem:[#allocation89_spill] sm:$0xff] %v15892_v21  ;;  %21130 = vst [vmem:[#allocation90_spill] sm:$0xff] %v15906_v55  ;;  %v15910_v22 = vpop.eup %12372  ;;  %12398 = vpow2.f32 %v11044_v15 }
 0x3bb   : > { %v15908_v27 = vpop.f32.mrf.mxu0  ;;  %21132 = vst [vmem:[#allocation92_spill] sm:$0xff] %v15910_v22  ;;  %v7311_v35 = vadd.f32 %v15900_v48, %v6843_v52  ;;  %v8642_v21 = vpop.permute.xlu1 %8641  ;;  %v8707_v4 = vmul.f32 1.442695, %v21134_v34  ;;  %v21139_v52 = vld [vmem:[#allocation37_spill] sm:$0xff]  ;;  %12400 = vpow2.f32 %v11046_v12 }
 0x3bc   : > { %21131 = vst [vmem:[#allocation91_spill] sm:$0xff] %v15908_v27  ;;  %v8640_v57 = vpop.permute.xlu0 %8639  ;;  %v15913_v53 = vpop.eup %12374  ;;  %10984 = vrot.lane.b32.xlu1 %v15759_v14, %s12590_s10  ;;  %10982 = vrot.lane.b32.xlu0 %v14555_v20, %s12590_s10  ;;  %v4698_v47 = vadd.f32 %v15661_v33, %v21139_v52  ;;  %v21144_v33 = vsub.f32 %v15637_v24, %v15780_v30 }
 0x3bd   : > { %21133 = vst [vmem:[#allocation93_spill] sm:$0xff] %v15913_v53  ;;  %v15919_v60 = vsel %vm2187_vm6, %v8638_v13, %v8640_v57  ;;  %v15922_v54 = vsel %vm2187_vm6, %v8640_v57, %v8642_v21  ;;  %v15928_v2 = vpop.f32.mrf.mxu0  ;;  %v15930_v41 = vpop.eup %12376  ;;  %v7779_v18 = vadd.f32 %v15906_v55, %v7311_v35  ;;  %v21140_v57 = vsub.f32 %v15617_v44, %v15780_v30 }
 0x3be   : > { %21135 = vst [vmem:[#allocation94_spill] sm:$0xff] %v15919_v60  ;;  %21136 = vst [vmem:[#allocation95_spill] sm:$0xff] %v15922_v54  ;;  %v15938_v34 = vpop.eup %12378  ;;  %v4700_v54 = vadd.f32 %v15674_v1, %v21139_v52  ;;  %v4798_v8 = vpop.f32.mrf.mxu1  ;;  %v9643_v15 = vmul.f32 1.442695, %v21144_v33  ;;  %12402 = vpow2.f32 %v8707_v4  ;;  %v21146_v1 = vsub.f32 %v15657_v11, %v15780_v30 }
 0x3bf   : > { %21137 = vst [vmem:[#allocation96_spill] sm:$0xff] %v15928_v2  ;;  %21138 = vst [vmem:[#allocation97_spill] sm:$0xff] %v15930_v41  ;;  %v9175_v13 = vmul.f32 1.442695, %v21140_v57  ;;  %v15942_v60 = vpop.f32.mrf.mxu0  ;;  %v15944_v9 = vpop.eup %12380  ;;  %v8247_v2 = vadd.f32 %v15910_v22, %v7779_v18  ;;  %v15952_v57 = vadd.f32 %v4798_v8, %v4698_v47 }
 0x3c0   : > { %21141 = vst [vmem:[#allocation98_spill] sm:$0xff] %v15938_v34  ;;  %21142 = vst [vmem:[#allocation99_spill] sm:$0xff] %v15942_v60  ;;  %v15950_v35 = vpop.permute.xlu1 %8645  ;;  %v8644_v44 = vpop.permute.xlu0 %8643  ;;  %v10110_v52 = vmul.f32 1.442695, %v21146_v1  ;;  %11222 = vrot.lane.b32.xlu1 %v15786_v26, %s12591_s18  ;;  %10986 = vrot.lane.b32.xlu0 %v14580_v39, %s12590_s10 }
 0x3c1   : > { %21143 = vst [vmem:[#allocation100_spill] sm:$0xff] %v15944_v9  ;;  %v15954_v27 = vpop.eup %12382  ;;  %v15960_v60 = vsel %vm2187_vm6, %v8642_v21, %v8644_v44  ;;  %v15964_v24 = vsel %vm2187_vm6, %v8644_v44, %v15950_v35  ;;  %v15970_v8 = vpop.f32.mrf.mxu0  ;;  %v8715_v11 = vadd.f32 %v15913_v53, %v8247_v2  ;;  %12404 = vpow2.f32 %v9175_v13 }
 0x3c2   : > { %21145 = vst [vmem:[#allocation101_spill] sm:$0xff] %v15954_v27  ;;  %21147 = vst [vmem:[#allocation102_spill] sm:$0xff] %v15960_v60  ;;  %v4800_v12 = vpop.f32.mrf.mxu1  ;;  %v15972_v4 = vpop.eup %12384  ;;  %12406 = vpow2.f32 %v9643_v15 }
 0x3c3   : > { %21148 = vst [vmem:[#allocation103_spill] sm:$0xff] %v15964_v24  ;;  %21149 = vst [vmem:[#allocation104_spill] sm:$0xff] %v15972_v4  ;;  %v15979_v18 = vpop.eup %12386  ;;  %v5908_v26 = vadd.f32 %v15972_v4, %v15954_v27  ;;  %v15987_v1 = vadd.f32 %v4800_v12, %v4700_v54  ;;  %v15989_v2 = vpop.f32.mrf.mxu0  ;;  %v9183_v13 = vadd.f32 %v15930_v41, %v8715_v11  ;;  %12408 = vpow2.f32 %v10110_v52 }
 0x3c4   : > { %v4802_v21 = vpop.f32.mrf.mxu1  ;;  %v15991_v24 = vpop.eup %12388  ;;  %v21151_v12 = vsub.f32 %v15678_v56, %v15780_v30  ;;  %11226 = vrot.lane.b32.xlu1 %v15808_v58, %s12591_s18  ;;  %11224 = vrot.lane.b32.xlu0 %v14544_v25, %s12591_s18 }
 0x3c5   : > { %v8884_v60 = vpop.permute.xlu1 %8883  ;;  %v8648_v53 = vpop.permute.xlu0 %8647  ;;  %v6376_v33 = vadd.f32 %v15979_v18, %v5908_v26  ;;  %v9651_v4 = vadd.f32 %v15938_v34, %v9183_v13 }
 0x3c6   : > { %v15996_v27 = vpop.eup %12390  ;;  %v10578_v44 = vmul.f32 1.442695, %v21151_v12  ;;  %v16006_v11 = vpop.f32.mrf.mxu0 }
 0x3c7   : > { %21150 = vst [vmem:[#allocation105_spill] sm:$0xff] %v15996_v27  ;;  %v4804_v47 = vpop.f32.mrf.mxu1  ;;  %v16008_v41 = vpop.eup %12392  ;;  %v6844_v30 = vadd.f32 %v15991_v24, %v6376_v33  ;;  %v10118_v26 = vadd.f32 %v15944_v9, %v9651_v4  ;;  %v4702_v33 = vadd.f32 %v15680_v6, %v21155_v40  ;;  %v4704_v6 = vadd.f32 %v15700_v3, %v21155_v40 }
 0x3c8   : > { %21152 = vst [vmem:[#allocation106_spill] sm:$0xff] %v16008_v41  ;;  %v16017_v56 = vpop.eup %12394  ;;  %v4761_v13 = vpop.f32.mrf.mxu0  ;;  %12410 = vpow2.f32 %v10578_v44  ;;  %11230 = vrot.lane.b32.xlu1 %v15759_v14, %s12591_s18  ;;  %11228 = vrot.lane.b32.xlu0 %v14555_v20, %s12591_s18  ;;  %v11493_v14 = vld [vmem:[%s20331_s5] sm:$0xf]  ;;  %v16055_v9 = vsel %vm2187_vm6, %v15950_v35, %v8648_v53  ;;  %vm5841_vm6 = vcmask 1039360  }
 0x3c9   : > { %21153 = vst [vmem:[#allocation107_spill] sm:$0xff] %v16017_v56  ;;  %v8888_v54 = vpop.permute.xlu1 %8887  ;;  %v8886_v34 = vpop.permute.xlu0 %8885  ;;  %v7312_v58 = vadd.f32 %v15996_v27, %v6844_v30  ;;  %v21157_v30 = vld [vmem:[#allocation26_spill] sm:$0xff]  ;;  %v4805_v35 = vadd.f32 %v4804_v47, %v4704_v6 }
 0x3ca   : > { %v16027_v25 = vpop.eup %12396  ;;  %v4808_v52 = vpop.f32.mrf.mxu1  ;;  %21158 = vst [vmem:[#allocation26_spill] sm:$0xff] %v16055_v9  ;;  %v16058_v3 = vsel %vm8895_vm2, %v8884_v60, %v8886_v34  ;;  %v16066_v20 = vsel %vm8895_vm2, %v8886_v34, %v8888_v54  ;;  %v4712_v60 = vadd.f32 %v15721_v49, %v15084_v31  ;;  %v4718_v34 = vadd.f32 %v15743_v50, %v15098_v61 }
 0x3cb   : > { %21154 = vst [vmem:[#allocation108_spill] sm:$0xff] %v16027_v25  ;;  %v4762_v4 = vpop.f32.mrf.mxu0  ;;  %v10586_v13 = vadd.f32 %v16027_v25, %v10118_v26  ;;  %v16048_v44 = vpop.eup %12398  ;;  %v7780_v26 = vadd.f32 %v16008_v41, %v7312_v58  ;;  %21159 = vst [vmem:[#allocation110_spill] sm:$0xff] %v16058_v3  ;;  %v4710_v25 = vadd.f32 %v15719_v62, %v21157_v30 }
 0x3cc   : > { %21156 = vst [vmem:[#allocation109_spill] sm:$0xff] %v16048_v44  ;;  %v4708_v4 = vadd.f32 %v15706_v23, %v21157_v30  ;;  %v4810_v15 = vpop.f32.mrf.mxu1  ;;  %21160 = vst [vmem:[#allocation111_spill] sm:$0xff] %v16066_v20  ;;  %v4803_v58 = vadd.f32 %v4802_v21, %v4702_v33  ;;  %v16068_v40 = vpop.eup %12400  ;;  %11496 = vperm.xlu1 %12237, %v11493_v14   ;;  %v4714_v21 = vadd.f32 %v15730_v42, %v15084_v31 }
 0x3cd   : > { %v16061_v12 = vadd.f32 %v16048_v44, %v10586_v13  ;;  %v8892_v22 = vpop.permute.xlu1 %8891  ;;  %v8890_v23 = vpop.permute.xlu0 %8889  ;;  %21161 = vst [vmem:[#allocation112_spill] sm:$0xff] %v16068_v40  ;;  %v8248_v53 = vadd.f32 %v16017_v56, %v7780_v26  ;;  %11232 = vrot.lane.b32.xlu0 %v14580_v39, %s12591_s18  ;;  %v4811_v6 = vadd.f32 %v4810_v15, %v4710_v25 }
 0x3ce   : > { %v16074_v13 = vsel %vm8895_vm2, %v8888_v54, %v8890_v23  ;;  %v4812_v3 = vpop.f32.mrf.mxu1  ;;  %v16076_v62 = vpop.eup %12402  ;;  %v16083_v33 = vsel %vm8895_vm2, %v8890_v23, %v8892_v22  ;;  %v4809_v49 = vadd.f32 %v4808_v52, %v4708_v4 }
 0x3cf   : > { %21162 = vst [vmem:[#allocation113_spill] sm:$0xff] %v16074_v13  ;;  %21163 = vst [vmem:[#allocation114_spill] sm:$0xff] %v16076_v62  ;;  %v16087_v47 = vpop.eup %12404  ;;  %v8716_v54 = vadd.f32 %v16076_v62, %v8248_v53  ;;  %v16090_v14 = vadd.f32 %v4812_v3, %v4712_v60  ;;  %v4899_v13 = vpop.f32.mrf.mxu0  ;;  %v4720_v3 = vadd.f32 %v15765_v38, %v15098_v61 }
 0x3d0   : > { %21164 = vst [vmem:[#allocation115_spill] sm:$0xff] %v16083_v33  ;;  %21165 = vst [vmem:[#allocation116_spill] sm:$0xff] %v16087_v47  ;;  %v4814_v26 = vpop.f32.mrf.mxu1  ;;  %v16097_v33 = vadd.f32 %v4899_v13, %v15952_v57  ;;  %v16103_v4 = vpop.eup %12406 }
 0x3d1   : > { %v9106_v42 = vpop.permute.xlu1 %9105  ;;  %v8894_v20 = vpop.permute.xlu0 %8893  ;;  %v16094_v23 = vadd.f32 %v4814_v26, %v4714_v21  ;;  %v9184_v39 = vadd.f32 %v16087_v47, %v8716_v54  ;;  %21167 = vst [vmem:[#allocation118_spill] sm:$0xff] %v16103_v4 }
 0x3d2   : > { %v16101_v52 = vsel %vm8895_vm2, %v8892_v22, %v8894_v20  ;;  %v4818_v25 = vpop.f32.mrf.mxu1  ;;  %v4901_v15 = vpop.f32.mrf.mxu0  ;;  %v4722_v20 = vadd.f32 %v15769_v7, %v15100_v37 }
 0x3d3   : > { %21166 = vst [vmem:[#allocation117_spill] sm:$0xff] %v16101_v52  ;;  %v16107_v50 = vadd.f32 %v4818_v25, %v4718_v34  ;;  %v16110_v53 = vadd.f32 %v4901_v15, %v15987_v1  ;;  %v9652_v57 = vadd.f32 %v16103_v4, %v9184_v39  ;;  %v16113_v21 = vpop.eup %12408  ;;  %v4724_v1 = vadd.f32 %v15792_v28, %v15100_v37 }
 0x3d4   : > { %v4820_v60 = vpop.f32.mrf.mxu1  ;;  %v4903_v13 = vpop.f32.mrf.mxu0  ;;  %21168 = vst [vmem:[#allocation119_spill] sm:$0xff] %v16113_v21 }
 0x3d5   : > { %v9110_v22 = vpop.permute.xlu1 %9109  ;;  %v9108_v54 = vpop.permute.xlu0 %9107  ;;  %v16117_v26 = vadd.f32 %v4820_v60, %v4720_v3  ;;  %v16119_v38 = vadd.f32 %v4903_v13, %v4803_v58  ;;  %v10119_v34 = vadd.f32 %v16113_v21, %v9652_v57  ;;  %v11290_v3 = vrot.slane %v16061_v12, 4 }
 0x3d6   : > { %v16125_v39 = vsel %vm9117_vm3, %v9106_v42, %v9108_v54  ;;  %v16128_v25 = vsel %vm9117_vm3, %v9108_v54, %v9110_v22  ;;  %v4822_v15 = vpop.f32.mrf.mxu1  ;;  %v4905_v4 = vpop.f32.mrf.mxu0  ;;  %v4728_v54 = vadd.f32 %v15800_v59, %v15118_v19 }
 0x3d7   : > { %21169 = vst [vmem:[#allocation120_spill] sm:$0xff] %v16125_v39  ;;  %21170 = vst [vmem:[#allocation121_spill] sm:$0xff] %v16128_v25  ;;  %v16130_v7 = vpop.eup %12410  ;;  %v16133_v60 = vadd.f32 %v4822_v15, %v4722_v20  ;;  %v5307_v58 = vmax.f32 %v16097_v33, %v16119_v38  ;;  %v16137_v57 = vadd.f32 %v4905_v4, %v4805_v35 }
 0x3d8   : > { %21171 = vst [vmem:[#allocation122_spill] sm:$0xff] %v16130_v7  ;;  %v10587_v28 = vadd.f32 %v16130_v7, %v10119_v34  ;;  %v4824_v42 = vpop.f32.mrf.mxu1  ;;  %v4909_v13 = vpop.f32.mrf.mxu0  ;;  %v4730_v35 = vadd.f32 %v15814_v32, %v15118_v19  ;;  %v4732_v32 = vadd.f32 %v15822_v45, %v15120_v16 }
 0x3d9   : > { %v9114_v21 = vpop.permute.xlu1 %9113  ;;  %v9112_v25 = vpop.permute.xlu0 %9111  ;;  %v16142_v39 = vadd.f32 %v4824_v42, %v4724_v1  ;;  %v5308_v20 = vmax.f32 %v16110_v53, %v16137_v57  ;;  %v16146_v15 = vadd.f32 %v4909_v13, %v4809_v49  ;;  %v11300_v1 = vadd.f32 %v11290_v3, %v16061_v12 }
 0x3da   : > { %v11055_v52 = vadd.f32 %v16068_v40, %v10587_v28  ;;  %v16152_v4 = vsel %vm9117_vm3, %v9110_v22, %v9112_v25  ;;  %v16155_v34 = vsel %vm9117_vm3, %v9112_v25, %v9114_v21  ;;  %v4828_v59 = vpop.f32.mrf.mxu1  ;;  %v4911_v7 = vpop.f32.mrf.mxu0  ;;  %v4734_v3 = vadd.f32 %v15834_v10, %v15120_v16 }
 0x3db   : > { %21172 = vst [vmem:[#allocation123_spill] sm:$0xff] %v16152_v4  ;;  %21173 = vst [vmem:[#allocation124_spill] sm:$0xff] %v16155_v34  ;;  %v4829_v42 = vadd.f32 %v4828_v59, %v4728_v54  ;;  %v5317_v9 = vmax.f32 %v5307_v58, %v16146_v15  ;;  %v16159_v49 = vadd.f32 %v4911_v7, %v4811_v6  ;;  %12412 = vrcp.f32 %v11300_v1 }
 0x3dc   : > { %v11291_v13 = vrot.slane %v11055_v52, 4  ;;  %v4830_v28 = vpop.f32.mrf.mxu1  ;;  %v4913_v47 = vpop.f32.mrf.mxu0 }
 0x3dd   : > { %v9352_v22 = vpop.permute.xlu1 %9351  ;;  %v9116_v4 = vpop.permute.xlu0 %9115  ;;  %v4831_v56 = vadd.f32 %v4830_v28, %v4730_v35  ;;  %v5318_v25 = vmax.f32 %v5308_v20, %v16159_v49  ;;  %v16165_v34 = vadd.f32 %v4913_v47, %v16090_v14  ;;  %v4738_v14 = vadd.f32 %v15847_v63, %v15135_v5 }
 0x3de   : > { %v11301_v12 = vadd.f32 %v11291_v13, %v11055_v52  ;;  %v16170_v6 = vsel %vm9117_vm3, %v9114_v21, %v9116_v4  ;;  %v4832_v7 = vpop.f32.mrf.mxu1  ;;  %v4915_v58 = vpop.f32.mrf.mxu0  ;;  %v4740_v28 = vadd.f32 %v15865_v29, %v15135_v5 }
 0x3df   : > { %21174 = vst [vmem:[#allocation125_spill] sm:$0xff] %v16170_v6  ;;  %v4833_v54 = vadd.f32 %v4832_v7, %v4732_v32  ;;  %v5327_v45 = vmax.f32 %v5317_v9, %v16165_v34  ;;  %v16174_v35 = vadd.f32 %v4915_v58, %v16094_v23 }
 0x3e0   : > { %12414 = vrcp.f32 %v11301_v12  ;;  %v4834_v20 = vpop.f32.mrf.mxu1  ;;  %v4919_v47 = vpop.f32.mrf.mxu0 }
 0x3e1   : > { %v9356_v52 = vpop.permute.xlu1 %9355  ;;  %v9354_v10 = vpop.permute.xlu0 %9353  ;;  %v4835_v59 = vadd.f32 %v4834_v20, %v4734_v3  ;;  %v5328_v21 = vmax.f32 %v5318_v25, %v16174_v35  ;;  %v16180_v4 = vadd.f32 %v4919_v47, %v16107_v50 }
 0x3e2   : > { %v16183_v1 = vsel %vm2396_vm11, %v9352_v22, %v9354_v10  ;;  %v16186_v9 = vsel %vm2396_vm11, %v9354_v10, %v9356_v52  ;;  %v4838_v23 = vpop.f32.mrf.mxu1  ;;  %v4921_v13 = vpop.f32.mrf.mxu0  ;;  %v4742_v22 = vadd.f32 %v15880_v17, %v15137_v43  ;;  %v4744_v10 = vadd.f32 %v15898_v0, %v15137_v43 }
 0x3e3   : > { %21175 = vst [vmem:[#allocation126_spill] sm:$0xff] %v16183_v1  ;;  %21176 = vst [vmem:[#allocation127_spill] sm:$0xff] %v16186_v9  ;;  %v4839_v63 = vadd.f32 %v4838_v23, %v4738_v14  ;;  %v5337_v32 = vmax.f32 %v5327_v45, %v16180_v4  ;;  %v16192_v12 = vadd.f32 %v4921_v13, %v16117_v26 }
 0x3e4   : > { %v4840_v25 = vpop.f32.mrf.mxu1  ;;  %v4923_v50 = vpop.f32.mrf.mxu0 }
 0x3e5   : > { %v9360_v3 = vpop.permute.xlu1 %9359  ;;  %v9358_v7 = vpop.permute.xlu0 %9357  ;;  %v4841_v58 = vadd.f32 %v4840_v25, %v4740_v28  ;;  %v5338_v20 = vmax.f32 %v5328_v21, %v16192_v12  ;;  %v16198_v47 = vadd.f32 %v4923_v50, %v16133_v60  ;;  %v21179_v28 = vld [vmem:[#allocation19_spill] sm:$0xff] }
 0x3e6   : > { %v16201_v29 = vsel %vm2396_vm11, %v9356_v52, %v9358_v7  ;;  %v16204_v45 = vsel %vm2396_vm11, %v9358_v7, %v9360_v3  ;;  %v4842_v26 = vpop.f32.mrf.mxu1  ;;  %v4925_v14 = vpop.f32.mrf.mxu0  ;;  %v21180_v25 = vld [vmem:[#allocation91_spill] sm:$0xff] }
 0x3e7   : > { %21177 = vst [vmem:[#allocation128_spill] sm:$0xff] %v16201_v29  ;;  %21178 = vst [vmem:[#allocation129_spill] sm:$0xff] %v16204_v45  ;;  %v4843_v17 = vadd.f32 %v4842_v26, %v4742_v22  ;;  %v5347_v23 = vmax.f32 %v5337_v32, %v16198_v47  ;;  %v16210_v13 = vadd.f32 %v4925_v14, %v16142_v39  ;;  %v21182_v39 = vld [vmem:[#allocation96_spill] sm:$0xff] }
 0x3e8   : > { %v4844_v21 = vpop.f32.mrf.mxu1  ;;  %v4929_v60 = vpop.f32.mrf.mxu0  ;;  %v4748_v52 = vadd.f32 %v21180_v25, %v21179_v28  ;;  %v4750_v26 = vadd.f32 %v21182_v39, %v21179_v28 }
 0x3e9   : > { %v9574_v50 = vpop.permute.xlu1 %9573  ;;  %v9362_v29 = vpop.permute.xlu0 %9361  ;;  %v4845_v7 = vadd.f32 %v4844_v21, %v4744_v10  ;;  %v5348_v45 = vmax.f32 %v5338_v20, %v16210_v13  ;;  %v16215_v9 = vadd.f32 %v4929_v60, %v4829_v42  ;;  %v21185_v42 = vld [vmem:[#allocation24_spill] sm:$0xff]  ;;  %v21186_v60 = vld [vmem:[#allocation99_spill] sm:$0xff] }
 0x3ea   : > { %v16218_v0 = vsel %vm2396_vm11, %v9360_v3, %v9362_v29  ;;  %v4848_v22 = vpop.f32.mrf.mxu1  ;;  %v4931_v32 = vpop.f32.mrf.mxu0  ;;  %v4752_v3 = vadd.f32 %v21186_v60, %v21185_v42  ;;  %v4754_v60 = vadd.f32 %v15970_v8, %v21185_v42  ;;  %vm6777_vm11 = vcmask 883712  }
 0x3eb   : > { %21181 = vst [vmem:[#allocation91_spill] sm:$0xff] %v16218_v0  ;;  %v4849_v14 = vadd.f32 %v4848_v22, %v4748_v52  ;;  %v5357_v1 = vmax.f32 %v5347_v23, %v16215_v9  ;;  %v16223_v6 = vadd.f32 %v4931_v32, %v4831_v56  ;;  %v16225_v25 = vpop.eup %12412 }
 0x3ec   : > { %21183 = vst [vmem:[#allocation96_spill] sm:$0xff] %v16225_v25  ;;  %v4850_v10 = vpop.f32.mrf.mxu1  ;;  %v4933_v21 = vpop.f32.mrf.mxu0 }
 0x3ed   : > { %v16227_v20 = vpop.eup %12414  ;;  %v9578_v29 = vpop.permute.xlu1 %9577  ;;  %v4851_v62 = vadd.f32 %v4850_v10, %v4750_v26  ;;  %v5358_v43 = vmax.f32 %v5348_v45, %v16223_v6  ;;  %v16232_v39 = vadd.f32 %v4933_v21, %v4833_v54  ;;  %v21189_v21 = vld [vmem:[#allocation39_spill] sm:$0xff] }
 0x3ee   : > { %21184 = vst [vmem:[#allocation130_spill] sm:$0xff] %v16227_v20  ;;  %v9576_v0 = vpop.permute.xlu0 %9575  ;;  %v4852_v22 = vpop.f32.mrf.mxu1  ;;  %v4758_v56 = vadd.f32 %v15989_v2, %v21189_v21 }
 0x3ef   : > { %v16237_v23 = vsel %vm2605_vm9, %v9574_v50, %v9576_v0  ;;  %v16240_v52 = vsel %vm2605_vm9, %v9576_v0, %v9578_v29  ;;  %v4935_v32 = vpop.f32.mrf.mxu0  ;;  %v4853_v28 = vadd.f32 %v4852_v22, %v4752_v3  ;;  %v5367_v26 = vmax.f32 %v5357_v1, %v16232_v39 }
 0x3f0   : > { %21187 = vst [vmem:[#allocation99_spill] sm:$0xff] %v16237_v23  ;;  %21188 = vst [vmem:[#allocation131_spill] sm:$0xff] %v16240_v52  ;;  %v16245_v45 = vadd.f32 %v4935_v32, %v4835_v59  ;;  %v4854_v54 = vpop.f32.mrf.mxu1  ;;  %v4760_v3 = vadd.f32 %v16006_v11, %v21189_v21 }
 0x3f1   : > { %v4939_v10 = vpop.f32.mrf.mxu0  ;;  %v9582_v50 = vpop.permute.xlu1 %9581  ;;  %v4855_v20 = vadd.f32 %v4854_v54, %v4754_v60 }
 0x3f2   : > { %v9580_v23 = vpop.permute.xlu0 %9579  ;;  %v5368_v0 = vmax.f32 %v5358_v43, %v16245_v45  ;;  %v16250_v52 = vadd.f32 %v4939_v10, %v4839_v63  ;;  %v4858_v59 = vpop.f32.mrf.mxu1 }
 0x3f3   : > { %v16253_v25 = vsel %vm2605_vm9, %v9578_v29, %v9580_v23  ;;  %v16256_v8 = vsel %vm2605_vm9, %v9580_v23, %v9582_v50  ;;  %v4941_v1 = vpop.f32.mrf.mxu0  ;;  %v4859_v22 = vadd.f32 %v4858_v59, %v4758_v56 }
 0x3f4   : > { %21190 = vst [vmem:[#allocation132_spill] sm:$0xff] %v16253_v25  ;;  %21191 = vst [vmem:[#allocation133_spill] sm:$0xff] %v16256_v8  ;;  %v5377_v2 = vmax.f32 %v5367_v26, %v16250_v52  ;;  %v16261_v32 = vadd.f32 %v4941_v1, %v4841_v58  ;;  %v4860_v60 = vpop.f32.mrf.mxu1 }
 0x3f5   : > { %v4943_v43 = vpop.f32.mrf.mxu0  ;;  %v9820_v63 = vpop.permute.xlu1 %9819  ;;  %v4861_v10 = vadd.f32 %v4860_v60, %v4760_v3 }
 0x3f6   : > { %v9584_v54 = vpop.permute.xlu0 %9583  ;;  %v5378_v29 = vmax.f32 %v5368_v0, %v16261_v32  ;;  %v16264_v25 = vadd.f32 %v4943_v43, %v4843_v17  ;;  %v4862_v8 = vpop.f32.mrf.mxu1 }
 0x3f7   : > { %v16267_v23 = vsel %vm2605_vm9, %v9582_v50, %v9584_v54  ;;  %v4945_v42 = vpop.f32.mrf.mxu0  ;;  %vm6555_vm9 = vcmask 1014784  }
 0x3f8   : > { %21192 = vst [vmem:[#allocation134_spill] sm:$0xff] %v16267_v23  ;;  %v5387_v11 = vmax.f32 %v5377_v2, %v16264_v25  ;;  %v16270_v56 = vadd.f32 %v4945_v42, %v4845_v7  ;;  %v4863_v58 = vpop.f32.mrf.mxu1 }
 0x3f9   : > { %v4949_v26 = vpop.f32.mrf.mxu0  ;;  %v9824_v59 = vpop.permute.xlu1 %9823 }
 0x3fa   : > { %v9822_v1 = vpop.permute.xlu0 %9821  ;;  %v5388_v21 = vmax.f32 %v5378_v29, %v16270_v56  ;;  %v16273_v3 = vadd.f32 %v4949_v26, %v4849_v14  ;;  %v12027_v0 = vpop.f32.mrf.mxu1 }
 0x3fb   : > { %v16276_v17 = vsel %vm2814_vm12, %v9820_v63, %v9822_v1  ;;  %v16279_v50 = vsel %vm2814_vm12, %v9822_v1, %v9824_v59  ;;  %v4951_v8 = vpop.f32.mrf.mxu0 }
 0x3fc   : > { %21193 = vst [vmem:[#allocation135_spill] sm:$0xff] %v16276_v17  ;;  %21194 = vst [vmem:[#allocation136_spill] sm:$0xff] %v16279_v50  ;;  %v5397_v2 = vmax.f32 %v5387_v11, %v16273_v3  ;;  %v16282_v7 = vadd.f32 %v4951_v8, %v4851_v62  ;;  %v12028_v42 = vpop.f32.mrf.mxu1 }
 0x3fd   : > { %v4953_v60 = vpop.f32.mrf.mxu0  ;;  %v16287_v14 = vadd.f32 %v12028_v42, %v12027_v0 }
 0x3fe   : > { %v16284_v43 = vpop.permute.xlu0 %9825  ;;  %v5398_v54 = vmax.f32 %v5388_v21, %v16282_v7  ;;  %v16289_v29 = vadd.f32 %v4953_v60, %v4853_v28  ;;  %v12030_v58 = vpop.f32.mrf.mxu1 }
 0x3ff   : > { %21195 = vst [vmem:[#allocation137_spill] sm:$0xff] %v16284_v43  ;;  %21196 = vst [vmem:[#allocation138_spill] sm:$0xff] %v16287_v14  ;;  %v16293_v63 = vsel %vm2814_vm12, %v9824_v59, %v16284_v43  ;;  %v4955_v26 = vpop.f32.mrf.mxu0  ;;  %v21200_v14 = vld [vmem:[#allocation7_spill] sm:$0xff] }
 0x400   : > { %21197 = vst [vmem:[#allocation139_spill] sm:$0xff] %v16293_v63  ;;  %v5407_v11 = vmax.f32 %v5397_v2, %v16289_v29  ;;  %v16296_v62 = vadd.f32 %v4955_v26, %v4855_v20  ;;  %v12031_v1 = vpop.f32.mrf.mxu1 }
 0x401   : > { %v4959_v8 = vpop.f32.mrf.mxu0  ;;  %v16299_v17 = vadd.f32 %v12031_v1, %v12030_v58 }
 0x402   : > { %v5408_v50 = vmax.f32 %v5398_v54, %v16296_v62  ;;  %v16301_v21 = vadd.f32 %v4959_v8, %v4859_v22  ;;  %v12033_v28 = vpop.f32.mrf.mxu1 }
 0x403   : > { %21198 = vst [vmem:[#allocation140_spill] sm:$0xff] %v16299_v17  ;;  %v4961_v0 = vpop.f32.mrf.mxu0 }
 0x404   : > { %v5417_v42 = vmax.f32 %v5407_v11, %v16301_v21  ;;  %v16304_v59 = vadd.f32 %v4961_v0, %v4861_v10  ;;  %v12034_v60 = vpop.f32.mrf.mxu1 }
 0x405   : > { %v4963_v63 = vpop.f32.mrf.mxu0  ;;  %v16307_v2 = vadd.f32 %v12034_v60, %v12033_v28 }
 0x406   : > { %v5427_v23 = vrot.slane %v5417_v42, 4  ;;  %v5418_v20 = vmax.f32 %v5408_v50, %v16304_v59  ;;  %v12036_v26 = vpop.f32.mrf.mxu1 }
 0x407   : > { %v4964_v43 = vpop.f32.mrf.mxu0 }
 0x408   : > { %v5437_v54 = vmax.f32 %v5417_v42, %v5427_v23  ;;  %v5428_v58 = vrot.slane %v5418_v20, 4  ;;  %v12037_v1 = vpop.f32.mrf.mxu1 }
 0x409   : > { %v12085_v22 = vpop.f32.mrf.mxu0  ;;  %v16309_v5 = vadd.f32 %v12037_v1, %v12036_v26 }
 0x40a   : > { %v5447_v8 = vrot.slane %v5437_v54, 4  ;;  %v5438_v16 = vmax.f32 %v5418_v20, %v5428_v58  ;;  %v16311_v11 = vpop.f32.mrf.mxu1 }
 0x40b   : > { %v12086_v10 = vpop.f32.mrf.mxu0 }
 0x40c   : > { %v16314_v63 = vsel %vm291_vm0, %v5437_v54, %v5447_v8  ;;  %v16316_v0 = vadd.f32 %v12086_v10, %v12085_v22  ;;  %v16326_v42 = vpop.f32.mrf.mxu1  ;;  %v5448_v58 = vrot.slane %v5438_v16, 4  ;;  %v12592_v8 = vmov 1966171168  }
 0x40d   : > { %v5462_v50 = vsub.f32 %v16097_v33, %v16314_v63  ;;  %v5894_v23 = vsub.f32 %v16119_v38, %v16314_v63  ;;  %v6362_v43 = vsub.f32 %v16146_v15, %v16314_v63  ;;  %v6830_v28 = vsub.f32 %v16165_v34, %v16314_v63  ;;  %v16328_v60 = vpop.f32.mrf.mxu0 }
 0x40e   : > { %21199 = vst [vmem:[#allocation141_spill] sm:$0xff] %v16316_v0  ;;  %v7298_v20 = vsub.f32 %v16180_v4, %v16314_v63  ;;  %v7766_v26 = vsub.f32 %v16198_v47, %v16314_v63  ;;  %v8234_v33 = vsub.f32 %v16215_v9, %v16314_v63  ;;  %v8702_v38 = vsub.f32 %v16232_v39, %v16314_v63  ;;  %v16340_v1 = vpop.f32.mrf.mxu1 }
 0x40f   : > { %v5469_v15 = vmul.f32 1.442695, %v5462_v50  ;;  %v5901_v54 = vmul.f32 1.442695, %v5894_v23  ;;  %v9170_v34 = vsub.f32 %v16250_v52, %v16314_v63  ;;  %v16342_v22 = vpop.f32.mrf.mxu0  ;;  %v6369_v4 = vmul.f32 1.442695, %v6362_v43 }
 0x410   : > { %v9638_v47 = vsub.f32 %v16264_v25, %v16314_v63  ;;  %v5486_v10 = vunpack.c.l.s4 %v12592_v8  ;;  %v12043_v9 = vpop.f32.mrf.mxu1  ;;  %v6837_v39 = vmul.f32 1.442695, %v6830_v28  ;;  %v10105_v52 = vsub.f32 %v16273_v3, %v16314_v63 }
 0x411   : > { %12416 = vpow2.f32 %v5469_v15  ;;  %v16346_v0 = vpop.f32.mrf.mxu0  ;;  %v10573_v50 = vsub.f32 %v16289_v29, %v16314_v63  ;;  %v16355_v43 = vsel %vm291_vm0, %v5438_v16, %v5448_v58  ;;  %v7305_v8 = vmul.f32 1.442695, %v7298_v20 }
 0x412   : > { %12418 = vpow2.f32 %v5901_v54  ;;  %v16357_v25 = vpop.f32.mrf.mxu1  ;;  %v5463_v28 = vsub.f32 %v16110_v53, %v16355_v43  ;;  %v5487_v54 = vunpack.c.0.s8 %v5486_v10  ;;  %v5895_v3 = vsub.f32 %v16137_v57, %v16355_v43 }
 0x413   : > { %v16359_v15 = vpop.f32.mrf.mxu0  ;;  %12420 = vpow2.f32 %v6369_v4  ;;  %v6363_v29 = vsub.f32 %v16159_v49, %v16355_v43  ;;  %v7773_v16 = vmul.f32 1.442695, %v7766_v26  ;;  %v6831_v58 = vsub.f32 %v16174_v35, %v16355_v43 }
 0x414   : > { %v12046_v23 = vpop.f32.mrf.mxu1  ;;  %12422 = vpow2.f32 %v6837_v39  ;;  %v7299_v20 = vsub.f32 %v16192_v12, %v16355_v43  ;;  %v8241_v4 = vmul.f32 1.442695, %v8234_v33  ;;  %v8709_v57 = vmul.f32 1.442695, %v8702_v38  ;;  %v21206_v12 = vld [vmem:[#allocation104_spill] sm:$0xff] }
 0x415   : > { %v12094_v19 = vpop.f32.mrf.mxu0  ;;  %12424 = vpow2.f32 %v7305_v8  ;;  %v16376_v39 = vsub.s32 %v5487_v54, %v21200_v14  ;;  %v9177_v26 = vmul.f32 1.442695, %v9170_v34  ;;  %v5471_v53 = vmul.f32 1.442695, %v5463_v28  ;;  %v21202_v28 = vld [vmem:[#allocation101_spill] sm:$0xff] }
 0x416   : > { %v12048_v10 = vpop.f32.mrf.mxu1  ;;  %12426 = vpow2.f32 %v7773_v16  ;;  %v5903_v54 = vmul.f32 1.442695, %v5895_v3  ;;  %v6371_v14 = vmul.f32 1.442695, %v6363_v29  ;;  %v21203_v16 = vcombine.low %v15849_v36, %v21202_v28 }
 0x417   : > { %v12095_v17 = vpop.f32.mrf.mxu0  ;;  %21201 = vst [vmem:[#allocation142_spill] sm:$0xff] %v16376_v39  ;;  %12428 = vpow2.f32 %v8241_v4  ;;  %v21204_v3 = vcombine.high %v15849_v36, %v21202_v28  ;;  %v21207_v44 = vcombine.low %v15855_v46, %v21206_v12  ;;  %v9645_v41 = vmul.f32 1.442695, %v9638_v47 }
 0x418   : > { %v12049_v33 = vpop.f32.mrf.mxu1  ;;  %12430 = vpow2.f32 %v8709_v57  ;;  %v16394_v38 = vrot.slane %v21203_v16, %v16376_v39  ;;  %v12041_v57 = vadd.f32 %v16326_v42, %v16311_v11  ;;  %v12044_v36 = vadd.f32 %v12043_v9, %v16340_v1 }
 0x419   : > { %v12097_v40 = vpop.f32.mrf.mxu0  ;;  %v16400_v4 = vrot.slane %v21204_v3, %v16376_v39  ;;  %12432 = vpow2.f32 %v9177_v26  ;;  %v16410_v16 = vrot.slane %v21207_v44, %v16376_v39  ;;  %v21209_v11 = vcombine.high %v15855_v46, %v21206_v12 }
 0x41a   : > { %v12051_v49 = vpop.f32.mrf.mxu1  ;;  %12434 = vpow2.f32 %v5471_v53  ;;  %v10112_v26 = vmul.f32 1.442695, %v10105_v52  ;;  %v16423_v3 = vadd.f32 %v16342_v22, %v16328_v60  ;;  %v21212_v1 = vcombine.low %v15872_v51, %v15979_v18 }
 0x41b   : > { %v12098_v35 = vpop.f32.mrf.mxu0  ;;  %21205 = vst [vmem:[#allocation101_spill] sm:$0xff] %v16400_v4  ;;  %21208 = vst [vmem:[#allocation104_spill] sm:$0xff] %v16410_v16  ;;  %v16419_v42 = vrot.slane %v21209_v11, %v16376_v39  ;;  %12436 = vpow2.f32 %v5903_v54  ;;  %v10580_v46 = vmul.f32 1.442695, %v10573_v50  ;;  %v21214_v52 = vsub.f32 %v16301_v21, %v16314_v63 }
 0x41c   : > { %v12052_v29 = vpop.f32.mrf.mxu1  ;;  %21211 = vst [vmem:[#allocation144_spill] sm:$0xff] %v16423_v3  ;;  %v16429_v47 = vrot.slane %v21212_v1, %v16376_v39  ;;  %12438 = vpow2.f32 %v6371_v14  ;;  %v6839_v22 = vmul.f32 1.442695, %v6831_v58  ;;  %v16439_v12 = vadd.f32 %v12046_v23, %v16357_v25 }
 0x41d   : > { %v12100_v34 = vpop.f32.mrf.mxu0  ;;  %21210 = vst [vmem:[#allocation143_spill] sm:$0xff] %v16419_v42  ;;  %v11048_v60 = vmul.f32 1.442695, %v21214_v52  ;;  %v12093_v54 = vadd.f32 %v16359_v15, %v16346_v0  ;;  %12440 = vpow2.f32 %v9645_v41  ;;  %v16444_v50 = vadd.f32 %v12049_v33, %v12048_v10 }
 0x41e   : > { %v16404_v8 = vpop.eup %12416  ;;  %v12054_v44 = vpop.f32.mrf.mxu1  ;;  %21213 = vst [vmem:[#allocation145_spill] sm:$0xff] %v16429_v47  ;;  %v12096_v14 = vadd.f32 %v12095_v17, %v12094_v19  ;;  %v21215_v21 = vcombine.high %v15872_v51, %v15979_v18  ;;  %12442 = vpow2.f32 %v10112_v26  ;;  %v7307_v23 = vmul.f32 1.442695, %v7299_v20 }
 0x41f   : > { %v16413_v28 = vpop.eup %12418  ;;  %v12101_v55 = vpop.f32.mrf.mxu0  ;;  %v5009_v0 = vadd.f32 %v16307_v2, %v21157_v30  ;;  %12444 = vpow2.f32 %v10580_v46  ;;  %v5012_v19 = vadd.f32 %v16309_v5, %v15084_v31  ;;  %v16459_v17 = vadd.f32 %v12052_v29, %v12051_v49 }
 0x420   : > { %v5909_v9 = vadd.f32 %v16413_v28, %v16404_v8  ;;  %v16433_v53 = vpop.eup %12420  ;;  %v12055_v11 = vpop.f32.mrf.mxu1  ;;  %v16452_v63 = vrot.slane %v21215_v21, %v16376_v39  ;;  %12446 = vpow2.f32 %v6839_v22  ;;  %v21217_v51 = vsub.f32 %v16210_v13, %v16355_v43 }
 0x421   : > { %v12103_v1 = vpop.f32.mrf.mxu0  ;;  %v16446_v27 = vpop.eup %12422  ;;  %v21218_v30 = vsub.f32 %v16223_v6, %v16355_v43  ;;  %v12099_v20 = vadd.f32 %v12098_v35, %v12097_v40  ;;  %12448 = vpow2.f32 %v11048_v60  ;;  %v21219_v31 = vsub.f32 %v16245_v45, %v16355_v43 }
 0x422   : > { %v6377_v3 = vadd.f32 %v16433_v53, %v5909_v9  ;;  %21216 = vst [vmem:[#allocation146_spill] sm:$0xff] %v16452_v63  ;;  %v12057_v25 = vpop.f32.mrf.mxu1  ;;  %v16461_v58 = vpop.eup %12424  ;;  %v7775_v18 = vmul.f32 1.442695, %v21217_v51  ;;  %v16473_v49 = vadd.f32 %v12055_v11, %v12054_v44  ;;  %12450 = vpow2.f32 %v7307_v23 }
 0x423   : > { %v12104_v15 = vpop.f32.mrf.mxu0  ;;  %v8243_v2 = vmul.f32 1.442695, %v21218_v30  ;;  %v8711_v5 = vmul.f32 1.442695, %v21219_v31  ;;  %v16475_v29 = vpop.eup %12426  ;;  %v21220_v13 = vsub.f32 %v16261_v32, %v16355_v43  ;;  %v12102_v40 = vadd.f32 %v12101_v55, %v12100_v34 }
 0x424   : > { %v6845_v41 = vadd.f32 %v16446_v27, %v6377_v3  ;;  %v12058_v10 = vpop.f32.mrf.mxu1  ;;  %v16484_v46 = vpop.eup %12428  ;;  %v21221_v44 = vsub.f32 %v16304_v59, %v16355_v43  ;;  %v5017_v60 = vadd.f32 %v12041_v57, %v15098_v61  ;;  %v16491_v22 = vadd.f32 %v12104_v15, %v12103_v1 }
 0x425   : > { %v12106_v33 = vpop.f32.mrf.mxu0  ;;  %v16480_v6 = vmul.f32 1.442695, %v21220_v13  ;;  %v16482_v35 = vadd.f32 %v12058_v10, %v12057_v25  ;;  %v16493_v32 = vpop.eup %12430  ;;  %12452 = vpow2.f32 %v7775_v18  ;;  %v5020_v55 = vadd.f32 %v12044_v36, %v15100_v37 }
 0x426   : > { %v7313_v26 = vadd.f32 %v16461_v58, %v6845_v41  ;;  %v12060_v3 = vpop.f32.mrf.mxu1  ;;  %v11050_v52 = vmul.f32 1.442695, %v21221_v44  ;;  %21222 = vst [vmem:[#allocation147_spill] sm:$0xff] %v16493_v32  ;;  %v16498_v23 = vadd.f32 %v12093_v54, %v5009_v0  ;;  %v16500_v25 = vpop.eup %12432  ;;  %12454 = vpow2.f32 %v8243_v2 }
 0x427   : > { %v12107_v9 = vpop.f32.mrf.mxu0  ;;  %21223 = vst [vmem:[#allocation148_spill] sm:$0xff] %v16500_v25  ;;  %v16505_v61 = vadd.f32 %v12096_v14, %v5012_v19  ;;  %v12435_v57 = vpop.eup %12434  ;;  %12456 = vpow2.f32 %v8711_v5  ;;  %v21224_v37 = vsub.f32 %v16270_v56, %v16355_v43  ;;  %v16512_v54 = vadd.f32 %v12099_v20, %v5017_v60 }
 0x428   : > { %v7781_v45 = vadd.f32 %v16475_v29, %v7313_v26  ;;  %v12061_v34 = vpop.f32.mrf.mxu1  ;;  %v16496_v11 = vadd.f32 %v12107_v9, %v12106_v33  ;;  %v16514_v0 = vadd.f32 %v12102_v40, %v5020_v55  ;;  %v12437_v51 = vpop.eup %12436  ;;  %v5484_v19 = vcombine.low %v16404_v8, %v12435_v57 }
 0x429   : > { %v12109_v21 = vpop.f32.mrf.mxu0  ;;  %v16503_v41 = vadd.f32 %v12061_v34, %v12060_v3  ;;  %v9647_v36 = vmul.f32 1.442695, %v21224_v37  ;;  %v16516_v18 = vpop.permute.xlu1 %9827  ;;  %v5669_v2 = vcombine.high %v16404_v8, %v12435_v57  ;;  %12458 = vpow2.f32 %v11050_v52 }
 0x42a   : > { %v8249_v59 = vadd.f32 %v16484_v46, %v7781_v45  ;;  %v16510_v1 = vpop.f32.mrf.mxu1  ;;  %v16518_v30 = vpop.permute.xlu0 %9829  ;;  %v5910_v10 = vadd.f32 %v12437_v51, %v12435_v57  ;;  %v5918_v33 = vcombine.low %v16413_v28, %v12437_v51  ;;  %v6139_v20 = vcombine.high %v16413_v28, %v12437_v51 }
 0x42b   : > { %v12110_v15 = vpop.f32.mrf.mxu0  ;;  %v12439_v56 = vpop.eup %12438  ;;  %v16533_v40 = vrot.slane %v5484_v19, %v16376_v39  ;;  %v16536_v8 = vrot.slane %v5669_v2, %v16376_v39  ;;  %12460 = vpow2.f32 %v16480_v6 }
 0x42c   : > { %v8717_v14 = vadd.f32 %v16493_v32, %v8249_v59  ;;  %v16525_v26 = vpop.f32.mrf.mxu1  ;;  %v16527_v31 = vadd.f32 %v12110_v15, %v12109_v21  ;;  %v6386_v3 = vcombine.low %v16433_v53, %v12439_v56  ;;  %v16539_v9 = vpop.eup %12440  ;;  %v16542_v28 = vrot.slane %v5918_v33, %v16376_v39  ;;  %v21232_v33 = vld [vmem:[#allocation88_spill] sm:$0xff] }
 0x42d   : > { %v16529_v5 = vpop.f32.mrf.mxu0  ;;  %21225 = vst [vmem:[#allocation149_spill] sm:$0xff] %v16533_v40  ;;  %21226 = vst [vmem:[#allocation150_spill] sm:$0xff] %v16536_v8  ;;  %v16545_v45 = vrot.slane %v6139_v20, %v16376_v39  ;;  %v6378_v44 = vadd.f32 %v12439_v56, %v5910_v10  ;;  %v6607_v52 = vcombine.high %v16433_v53, %v12439_v56  ;;  %v16550_v34 = vpop.eup %12442  ;;  %12462 = vpow2.f32 %v9647_v36 }
 0x42e   : > { %v9185_v13 = vadd.f32 %v16500_v25, %v8717_v14  ;;  %21227 = vst [vmem:[#allocation151_spill] sm:$0xff] %v16539_v9  ;;  %21228 = vst [vmem:[#allocation152_spill] sm:$0xff] %v16542_v28  ;;  %v12066_v60 = vpop.f32.mrf.mxu1  ;;  %v16559_v15 = vpop.eup %12444  ;;  %v21233_v20 = vcombine.low %v21232_v33, %v15991_v24 }
 0x42f   : > { %21229 = vst [vmem:[#allocation153_spill] sm:$0xff] %v16545_v45  ;;  %v16548_v55 = vpop.f32.mrf.mxu0  ;;  %21230 = vst [vmem:[#allocation154_spill] sm:$0xff] %v16550_v34  ;;  %v12447_v10 = vpop.eup %12446  ;;  %v21235_v60 = vcombine.high %v21232_v33, %v15991_v24  ;;  %v21238_v24 = vsub.f32 %v16282_v7, %v16355_v43 }
 0x430   : > { %v9653_v21 = vadd.f32 %v16539_v9, %v9185_v13  ;;  %21231 = vst [vmem:[#allocation155_spill] sm:$0xff] %v16559_v15  ;;  %v12067_v2 = vpop.f32.mrf.mxu1  ;;  %v16575_v13 = vrot.slane %v21233_v20, %v16376_v39  ;;  %v16583_v59 = vpop.permute.xlu1 %10041  ;;  %v16593_v20 = vrot.slane %v6386_v3, %v16376_v39  ;;  %v16608_v3 = vrot.slane %v6607_v52, %v16376_v39 }
 0x431   : > { %v16569_v56 = vpop.f32.mrf.mxu0  ;;  %v16581_v51 = vrot.slane %v21235_v60, %v16376_v39  ;;  %v16585_v14 = vpop.permute.xlu0 %10043  ;;  %v10114_v33 = vmul.f32 1.442695, %v21238_v24  ;;  %v21239_v60 = vsub.f32 %v16296_v62, %v16355_v43  ;;  %v6846_v9 = vadd.f32 %v12447_v10, %v6378_v44 }
 0x432   : > { %21234 = vst [vmem:[#allocation88_spill] sm:$0xff] %v16575_v13  ;;  %v10120_v2 = vadd.f32 %v16550_v34, %v9653_v21  ;;  %v16590_v53 = vpop.eup %12448  ;;  %21237 = vst [vmem:[#allocation157_spill] sm:$0xff] %v16593_v20  ;;  %v16602_v57 = vpop.f32.mrf.mxu1  ;;  %v6854_v62 = vcombine.low %v16446_v27, %v12447_v10  ;;  %v7075_v43 = vcombine.high %v16446_v27, %v12447_v10  ;;  %v21261_v13 = vld [vmem:[#allocation37_spill] sm:$0xff] }
 0x433   : > { %21236 = vst [vmem:[#allocation156_spill] sm:$0xff] %v16581_v51  ;;  %v10582_v37 = vmul.f32 1.442695, %v21239_v60  ;;  %v16604_v21 = vpop.f32.mrf.mxu0  ;;  %v12451_v19 = vpop.eup %12450  ;;  %21240 = vst [vmem:[#allocation158_spill] sm:$0xff] %v16608_v3  ;;  %12464 = vpow2.f32 %v10114_v33  ;;  %v21252_v51 = vld [vmem:[#allocation106_spill] sm:$0xff]  ;;  %v12114_v8 = vadd.f32 %v16548_v55, %v16529_v5 }
 0x434   : > { %v10588_v34 = vadd.f32 %v16559_v15, %v10120_v2  ;;  %v12152_v24 = vpop.f32.mrf.mxu1  ;;  %v16618_v25 = vpop.eup %12452  ;;  %v7314_v2 = vadd.f32 %v12451_v19, %v6846_v9  ;;  %v16630_v6 = vrot.slane %v6854_v62, %v16376_v39  ;;  %v16633_v27 = vrot.slane %v7075_v43, %v16376_v39  ;;  %v21244_v9 = vld [vmem:[#allocation105_spill] sm:$0xff] }
 0x435   : > { %v16616_v60 = vpop.f32.mrf.mxu0  ;;  %v16627_v7 = vpop.eup %12454  ;;  %v7322_v10 = vcombine.low %v16461_v58, %v12451_v19  ;;  %v21245_v44 = vcombine.low %v15900_v48, %v21244_v9  ;;  %v7543_v43 = vcombine.high %v16461_v58, %v12451_v19  ;;  %12466 = vpow2.f32 %v10582_v37 }
 0x436   : > { %v16621_v52 = vadd.f32 %v16590_v53, %v10588_v34  ;;  %21241 = vst [vmem:[#allocation159_spill] sm:$0xff] %v16630_v6  ;;  %21242 = vst [vmem:[#allocation160_spill] sm:$0xff] %v16633_v27  ;;  %v16636_v34 = vpop.f32.mrf.mxu1  ;;  %v16640_v36 = vpop.eup %12456  ;;  %v21247_v58 = vcombine.high %v15900_v48, %v21244_v9  ;;  %v7782_v63 = vadd.f32 %v16618_v25, %v7314_v2  ;;  %v21251_v27 = vld [vmem:[#allocation90_spill] sm:$0xff] }
 0x437   : > { %v16638_v24 = vpop.f32.mrf.mxu0  ;;  %21243 = vst [vmem:[#allocation161_spill] sm:$0xff] %v16640_v36  ;;  %v16646_v15 = vrot.slane %v21245_v44, %v16376_v39  ;;  %v16648_v62 = vpop.permute.xlu1 %10045  ;;  %v16670_v19 = vrot.slane %v7322_v10, %v16376_v39  ;;  %v16673_v3 = vrot.slane %v7543_v43, %v16376_v39  ;;  %v7790_v20 = vcombine.low %v16475_v29, %v16618_v25  ;;  %v21255_v10 = vld [vmem:[#allocation109_spill] sm:$0xff] }
 0x438   : > { %v16651_v32 = vpop.permute.xlu0 %10047  ;;  %v16653_v33 = vpop.eup %12458  ;;  %v16667_v37 = vrot.slane %v21247_v58, %v16376_v39  ;;  %v21253_v6 = vcombine.low %v21251_v27, %v21252_v51 }
 0x439   : > { %21246 = vst [vmem:[#allocation105_spill] sm:$0xff] %v16646_v15  ;;  %v12153_v47 = vpop.f32.mrf.mxu1  ;;  %v12121_v45 = vpop.f32.mrf.mxu0  ;;  %21249 = vst [vmem:[#allocation163_spill] sm:$0xff] %v16670_v19  ;;  %v16693_v58 = vrot.slane %v7790_v20, %v16376_v39  ;;  %v11065_v2 = vcombine.low %v16590_v53, %v16653_v33  ;;  %v12065_v15 = vadd.f32 %v16525_v26, %v16510_v1 }
 0x43a   : > { %21248 = vst [vmem:[#allocation162_spill] sm:$0xff] %v16667_v37  ;;  %21250 = vst [vmem:[#allocation164_spill] sm:$0xff] %v16673_v3  ;;  %v16682_v48 = vrot.slane %v21253_v6, %v16376_v39  ;;  %v8250_v6 = vadd.f32 %v16627_v7, %v7782_v63  ;;  %v16711_v3 = vpop.eup %12460  ;;  %v21256_v37 = vld [vmem:[#allocation112_spill] sm:$0xff]  ;;  %v16739_v26 = vadd.f32 %v16602_v57, %v16498_v23  ;;  %v21268_v23 = vld [vmem:[#allocation35_spill] sm:$0xff] }
 0x43b   : > { %v5192_v44 = vpop.f32.mrf.mxu1  ;;  %v12122_v47 = vpop.f32.mrf.mxu0  ;;  %21254 = vst [vmem:[#allocation90_spill] sm:$0xff] %v16711_v3  ;;  %v21257_v9 = vcombine.low %v21255_v10, %v21256_v37  ;;  %v16720_v53 = vrot.slane %v11065_v2, %v16376_v39  ;;  %v21263_v10 = vld [vmem:[#allocation21_spill] sm:$0xff]  ;;  %v5033_v57 = vadd.f32 %v16459_v17, %v21268_v23 }
 0x43c   : > { %v16704_v43 = vpop.permute.xlu1 %10049  ;;  %v16706_v20 = vpop.permute.xlu0 %10051  ;;  %v8718_v63 = vadd.f32 %v16640_v36, %v8250_v6  ;;  %v21262_v6 = vld [vmem:[#allocation138_spill] sm:$0xff]  ;;  %v12123_v17 = vadd.f32 %v12122_v47, %v12121_v45 }
 0x43d   : > { %v12156_v42 = vpop.f32.mrf.mxu1  ;;  %v12124_v28 = vpop.f32.mrf.mxu0  ;;  %v16717_v19 = vrot.slane %v21257_v9, %v16376_v39  ;;  %21259 = vst [vmem:[#allocation109_spill] sm:$0xff] %v16720_v53  ;;  %v5001_v36 = vadd.f32 %v21262_v6, %v21261_v13  ;;  %v21264_v9 = vld [vmem:[#allocation140_spill] sm:$0xff]  ;;  %v12117_v6 = vadd.f32 %v16604_v21, %v16569_v56  ;;  %v12120_v56 = vadd.f32 %v16638_v24, %v16616_v60 }
 0x43e   : > { %v16724_v16 = vpop.eup %12462  ;;  %v5004_v40 = vadd.f32 %v21264_v9, %v21263_v10 }
 0x43f   : > { %v5195_v42 = vpop.f32.mrf.mxu1  ;;  %v12125_v28 = vpop.f32.mrf.mxu0  ;;  %21258 = vst [vmem:[#allocation106_spill] sm:$0xff] %v16717_v19  ;;  %21260 = vst [vmem:[#allocation112_spill] sm:$0xff] %v16724_v16  ;;  %v16770_v19 = vadd.f32 %v5192_v44, %v16512_v54  ;;  %v21276_v44 = vld [vmem:[#allocation144_spill] sm:$0xff] }
 0x440   : > { %v9186_v28 = vadd.f32 %v16711_v3, %v8718_v63  ;;  %v21265_v63 = vld [vmem:[#allocation11_spill] sm:$0xff]  ;;  %v16748_v2 = vpop.eup %12464  ;;  %v16750_v1 = vpop.permute.xlu1 %10286  ;;  %v5092_v45 = vadd.f32 %v21276_v44, %v5004_v40 }
 0x441   : > { %v12157_v4 = vpop.f32.mrf.mxu1  ;;  %v5176_v37 = vpop.f32.mrf.mxu0  ;;  %v5025_v5 = vadd.f32 %v16439_v12, %v21265_v63  ;;  %21267 = vst [vmem:[#allocation37_spill] sm:$0xff] %v16748_v2 }
 0x442   : > { %v9654_v13 = vadd.f32 %v16724_v16, %v9186_v28  ;;  %v21266_v4 = vld [vmem:[#allocation16_spill] sm:$0xff]  ;;  %v16752_v53 = vpop.permute.xlu0 %10288  ;;  %v21269_v28 = vld [vmem:[#allocation45_spill] sm:$0xff]  ;;  %v16764_v21 = vpop.eup %12466 }
 0x443   : > { %v5028_v55 = vadd.f32 %v16444_v50, %v21266_v4  ;;  %v5200_v10 = vpop.f32.mrf.mxu1  ;;  %v12148_v9 = vpop.f32.mrf.mxu0  ;;  %v5036_v12 = vadd.f32 %v16473_v49, %v21269_v28  ;;  %v16760_v50 = vadd.f32 %v16636_v34, %v16505_v61  ;;  %21270 = vst [vmem:[#allocation138_spill] sm:$0xff] %v16764_v21  ;;  %v21271_v4 = vld [vmem:[#allocation19_spill] sm:$0xff]  ;;  %v11292_v28 = vrot.slane %v16621_v52, 4  ;;  %v21273_v34 = vld [vmem:[#allocation141_spill] sm:$0xff] }
 0x444   : > { %v10121_v63 = vadd.f32 %v16748_v2, %v9654_v13  ;;  %v5041_v9 = vadd.f32 %v16482_v35, %v21271_v4  ;;  %v16774_v61 = vadd.f32 %v5195_v42, %v16514_v0  ;;  %v5089_v60 = vadd.f32 %v21273_v34, %v5001_v36  ;;  %v21274_v2 = vld [vmem:[#allocation24_spill] sm:$0xff]  ;;  %v21275_v4 = vld [vmem:[#allocation39_spill] sm:$0xff]  ;;  %v16793_v40 = vpop.permute.xlu1 %10290 }
 0x445   : > { %v12160_v23 = vpop.f32.mrf.mxu1  ;;  %v5179_v49 = vpop.f32.mrf.mxu0  ;;  %v5113_v24 = vadd.f32 %v16491_v22, %v5025_v5  ;;  %v5044_v35 = vadd.f32 %v16503_v41, %v21274_v2  ;;  %v5049_v54 = vadd.f32 %v12065_v15, %v21275_v4  ;;  %v5116_v0 = vadd.f32 %v16496_v11, %v5028_v55 }
 0x446   : > { %21272 = vst [vmem:[#allocation21_spill] sm:$0xff] %v16774_v61  ;;  %v10589_v13 = vadd.f32 %v16764_v21, %v10121_v63  ;;  %v16783_v16 = vadd.f32 %v5176_v37, %v5089_v60  ;;  %v5121_v36 = vadd.f32 %v16527_v31, %v5033_v57  ;;  %v16790_v42 = vadd.f32 %v5179_v49, %v5092_v45  ;;  %v16795_v63 = vpop.permute.xlu0 %10292  ;;  %v21310_v21 = vld [vmem:[#allocation22_spill] sm:$0xff] }
 0x447   : > { %v5203_v47 = vpop.f32.mrf.mxu1  ;;  %v12149_v23 = vpop.f32.mrf.mxu0  ;;  %v16785_v3 = vadd.f32 %v5200_v10, %v5113_v24  ;;  %v5124_v41 = vadd.f32 %v12114_v8, %v5036_v12  ;;  %v5129_v2 = vadd.f32 %v12117_v6, %v5041_v9  ;;  %v11302_v15 = vadd.f32 %v11292_v28, %v16621_v52  ;;  %v21280_v52 = vld [vmem:[#allocation114_spill] sm:$0xff]  ;;  %v21281_v12 = vld [vmem:[#allocation93_spill] sm:$0xff] }
 0x448   : > { %v11057_v22 = vadd.f32 %v16653_v33, %v10589_v13  ;;  %v16797_v37 = vadd.f32 %v5203_v47, %v5116_v0  ;;  %v5132_v10 = vadd.f32 %v12120_v56, %v5044_v35  ;;  %v5137_v34 = vadd.f32 %v12123_v17, %v5049_v54  ;;  %v16809_v28 = vpop.permute.xlu1 %10294 }
 0x449   : > { %21277 = vst [vmem:[#allocation140_spill] sm:$0xff] %v16785_v3  ;;  %v12161_v5 = vpop.f32.mrf.mxu1  ;;  %v5309_v31 = vmax.f32 %v16783_v16, %v16790_v42  ;;  %12468 = vrcp.f32 %v11302_v15  ;;  %v21284_v0 = vcombine.high %v16475_v29, %v16618_v25 }
 0x44a   : > { %21278 = vst [vmem:[#allocation11_spill] sm:$0xff] %v16797_v37  ;;  %v11293_v11 = vrot.slane %v11057_v22, 4  ;;  %v16811_v60 = vpop.permute.xlu0 %10296 }
 0x44b   : > { %v5208_v33 = vpop.f32.mrf.mxu1  ;;  %v5319_v8 = vmax.f32 %v5309_v31, %v16739_v26 }
 0x44c   : > { %v16801_v55 = vadd.f32 %v5208_v33, %v5121_v36  ;;  %v11303_v57 = vadd.f32 %v11293_v11, %v11057_v22  ;;  %v16826_v36 = vrot.slane %v21284_v0, %v16376_v39  ;;  %v16828_v22 = vpop.permute.xlu1 %10508 }
 0x44d   : > { %v12164_v6 = vpop.f32.mrf.mxu1  ;;  %v5329_v56 = vmax.f32 %v5319_v8, %v16760_v50 }
 0x44e   : > { %21279 = vst [vmem:[#allocation16_spill] sm:$0xff] %v16801_v55  ;;  %12470 = vrcp.f32 %v11303_v57  ;;  %v16830_v5 = vpop.permute.xlu0 %10510  ;;  %v21287_v6 = vld [vmem:[#allocation14_spill] sm:$0xff] }
 0x44f   : > { %v5211_v17 = vpop.f32.mrf.mxu1  ;;  %v5339_v13 = vmax.f32 %v5329_v56, %v16770_v19  ;;  %v21288_v56 = vld [vmem:[#allocation9_spill] sm:$0xff]  ;;  %v21295_v57 = vld [vmem:[#allocation18_spill] sm:$0xff] }
 0x450   : > { %v16813_v24 = vadd.f32 %v5211_v17, %v5124_v41  ;;  %v16850_v17 = vsel %vm5841_vm6, %v21288_v56, %v21287_v6 }
 0x451   : > { %v12165_v35 = vpop.f32.mrf.mxu1  ;;  %v5349_v4 = vmax.f32 %v5339_v13, %v16774_v61  ;;  %v21289_v13 = vld [vmem:[#allocation23_spill] sm:$0xff] }
 0x452   : > { %21282 = vst [vmem:[#allocation35_spill] sm:$0xff] %v16813_v24  ;;  %v16855_v35 = vsel %vm5841_vm6, %v21287_v6, %v21289_v13 }
 0x453   : > { %v5216_v54 = vpop.f32.mrf.mxu1  ;;  %v5359_v47 = vmax.f32 %v5349_v4, %v16785_v3  ;;  %v21290_v4 = vld [vmem:[#allocation42_spill] sm:$0xff] }
 0x454   : > { %v16819_v45 = vadd.f32 %v5216_v54, %v5129_v2  ;;  %v21285_v2 = vcombine.high %v21251_v27, %v21252_v51  ;;  %v16860_v54 = vsel %vm5841_vm6, %v21289_v13, %v21290_v4  ;;  %v21294_v13 = vld [vmem:[#allocation25_spill] sm:$0xff] }
 0x455   : > { %v12168_v23 = vpop.f32.mrf.mxu1  ;;  %v5369_v41 = vmax.f32 %v5359_v47, %v16797_v37  ;;  %v16862_v47 = vpop.permute.xlu1 %10512  ;;  %v16882_v33 = vsel %vm6087_vm7, %v21295_v57, %v21294_v13 }
 0x456   : > { %21283 = vst [vmem:[#allocation45_spill] sm:$0xff] %v16819_v45  ;;  %v16837_v11 = vrot.slane %v21285_v2, %v16376_v39  ;;  %v12469_v8 = vpop.eup %12468  ;;  %v16864_v23 = vpop.permute.xlu0 %10514  ;;  %v21293_v2 = vld [vmem:[#allocation30_spill] sm:$0xff]  ;;  %21296 = vst [vmem:[#allocation24_spill] sm:$0xff] %v16882_v33 }
 0x457   : > { %v5219_v15 = vpop.f32.mrf.mxu1  ;;  %v5379_v29 = vmax.f32 %v5369_v41, %v16801_v55  ;;  %v21292_v41 = vld [vmem:[#allocation13_spill] sm:$0xff] }
 0x458   : > { %v16839_v31 = vadd.f32 %v5219_v15, %v5132_v10  ;;  %v16871_v15 = vsel %vm5841_vm6, %v21290_v4, %v21292_v41  ;;  %v21299_v4 = vld [vmem:[#allocation15_spill] sm:$0xff]  ;;  %v21322_v55 = vld [vmem:[#allocation17_spill] sm:$0xff] }
 0x459   : > { %v12169_v25 = vpop.f32.mrf.mxu1  ;;  %v5389_v51 = vmax.f32 %v5379_v29, %v16813_v24  ;;  %v16876_v29 = vsel %vm5841_vm6, %v21292_v41, %v21293_v2  ;;  %v21301_v41 = vld [vmem:[#allocation10_spill] sm:$0xff] }
 0x45a   : > { %21286 = vst [vmem:[#allocation19_spill] sm:$0xff] %v16839_v31  ;;  %v21306_v2 = vld [vmem:[#allocation130_spill] sm:$0xff] }
 0x45b   : > { %v5224_v27 = vpop.f32.mrf.mxu1  ;;  %v12471_v10 = vpop.eup %12470  ;;  %v5399_v6 = vmax.f32 %v5389_v51, %v16819_v45  ;;  %v21303_v51 = vld [vmem:[#allocation32_spill] sm:$0xff]  ;;  %v21313_v24 = vld [vmem:[#allocation38_spill] sm:$0xff] }
 0x45c   : > { %v16866_v0 = vadd.f32 %v5224_v27, %v5137_v34  ;;  %v11316_v25 = vcombine.low %v12469_v8, %v12471_v10  ;;  %v21297_v34 = vld [vmem:[#allocation20_spill] sm:$0xff]  ;;  %v16897_v8 = vsel %vm6087_vm7, %v21299_v4, %v21301_v41  ;;  %v16902_v57 = vsel %vm6087_vm7, %v21301_v41, %v21303_v51 }
 0x45d   : > { %v12172_v56 = vpop.f32.mrf.mxu1  ;;  %v16887_v27 = vsel %vm6087_vm7, %v21294_v13, %v21297_v34  ;;  %v16892_v49 = vsel %vm6087_vm7, %v21297_v34, %v21299_v4  ;;  %21302 = vst [vmem:[#allocation114_spill] sm:$0xff] %v16897_v8  ;;  %21304 = vst [vmem:[#allocation93_spill] sm:$0xff] %v16902_v57  ;;  %v21305_v10 = vld [vmem:[#allocation96_spill] sm:$0xff]  ;;  %v5409_v34 = vmax.f32 %v5399_v6, %v16839_v31  ;;  %v21321_v31 = vld [vmem:[#allocation49_spill] sm:$0xff] }
 0x45e   : > { %21291 = vst [vmem:[#allocation141_spill] sm:$0xff] %v16866_v0  ;;  %21298 = vst [vmem:[#allocation39_spill] sm:$0xff] %v16887_v27  ;;  %v21307_v56 = vcombine.low %v21305_v10, %v21306_v2  ;;  %v16911_v9 = vrot.slane %v11316_v25, %v16376_v39  ;;  %v21311_v4 = vld [vmem:[#allocation44_spill] sm:$0xff]  ;;  %v16922_v41 = vsel %vm6309_vm8, %v21310_v21, %v21313_v24  ;;  %v21317_v25 = vld [vmem:[#allocation27_spill] sm:$0xff] }
 0x45f   : > { %21300 = vst [vmem:[#allocation144_spill] sm:$0xff] %v16892_v49  ;;  %v5227_v44 = vpop.f32.mrf.mxu1  ;;  %v16917_v45 = vsel %vm6309_vm8, %v21311_v4, %v21310_v21  ;;  %21314 = vst [vmem:[#allocation42_spill] sm:$0xff] %v16922_v41  ;;  %v21315_v51 = vld [vmem:[#allocation12_spill] sm:$0xff]  ;;  %v5419_v4 = vmax.f32 %v5409_v34, %v16866_v0  ;;  %v16947_v37 = vsel %vm6555_vm9, %v21322_v55, %v21321_v31  ;;  %v16966_v21 = vpop.permute.xlu0 %10518  ;;  %v21330_v55 = vld [vmem:[#allocation53_spill] sm:$0xff] }
 0x460   : > { %v16908_v13 = vrot.slane %v21307_v56, %v16376_v39  ;;  %21309 = vst [vmem:[#allocation9_spill] sm:$0xff] %v16911_v9  ;;  %21312 = vst [vmem:[#allocation23_spill] sm:$0xff] %v16917_v45  ;;  %v16927_v10 = vsel %vm6309_vm8, %v21313_v24, %v21315_v51  ;;  %v16932_v6 = vsel %vm6309_vm8, %v21315_v51, %v21317_v25  ;;  %v21319_v44 = vld [vmem:[#allocation46_spill] sm:$0xff]  ;;  %v21324_v51 = vld [vmem:[#allocation48_spill] sm:$0xff] }
 0x461   : > { %21316 = vst [vmem:[#allocation13_spill] sm:$0xff] %v16927_v10  ;;  %21318 = vst [vmem:[#allocation30_spill] sm:$0xff] %v16932_v6  ;;  %v16937_v2 = vsel %vm6309_vm8, %v21317_v25, %v21319_v44  ;;  %v12173_v24 = vpop.f32.mrf.mxu1  ;;  %v16952_v3 = vsel %vm6555_vm9, %v21321_v31, %v21324_v51  ;;  %v21326_v25 = vld [vmem:[#allocation51_spill] sm:$0xff]  ;;  %v21328_v56 = vld [vmem:[#allocation50_spill] sm:$0xff] }
 0x462   : > { %21308 = vst [vmem:[#allocation14_spill] sm:$0xff] %v16908_v13  ;;  %21320 = vst [vmem:[#allocation25_spill] sm:$0xff] %v16937_v2  ;;  %v16957_v44 = vsel %vm6555_vm9, %v21324_v51, %v21326_v25  ;;  %v16962_v34 = vsel %vm6555_vm9, %v21326_v25, %v21328_v56  ;;  %v16964_v24 = vpop.permute.xlu1 %10516  ;;  %v16971_v9 = vsel %vm6555_vm9, %v21328_v56, %v21330_v55  ;;  %v21332_v31 = vld [vmem:[#allocation55_spill] sm:$0xff]  ;;  %v21333_v13 = vld [vmem:[#allocation52_spill] sm:$0xff]  ;;  %v5429_v25 = vrot.slane %v5419_v4, 4 }
 0x463   : > { %21323 = vst [vmem:[#allocation18_spill] sm:$0xff] %v16947_v37  ;;  %21325 = vst [vmem:[#allocation20_spill] sm:$0xff] %v16952_v3  ;;  %v16976_v0 = vsel %vm6777_vm11, %v21333_v13, %v21332_v31  ;;  %v21335_v51 = vld [vmem:[#allocation54_spill] sm:$0xff]  ;;  %v21339_v3 = vld [vmem:[#allocation56_spill] sm:$0xff]  ;;  %v10757_v41 = vpop.permute.xlu0 %10756 }
 0x464   : > { %21327 = vst [vmem:[#allocation15_spill] sm:$0xff] %v16957_v44  ;;  %21329 = vst [vmem:[#allocation10_spill] sm:$0xff] %v16962_v34  ;;  %v16981_v61 = vsel %vm6777_vm11, %v21332_v31, %v21335_v51  ;;  %v21337_v34 = vld [vmem:[#allocation57_spill] sm:$0xff]  ;;  %v21341_v55 = vld [vmem:[#allocation59_spill] sm:$0xff] }
 0x465   : > { %21331 = vst [vmem:[#allocation32_spill] sm:$0xff] %v16971_v9  ;;  %21334 = vst [vmem:[#allocation96_spill] sm:$0xff] %v16976_v0  ;;  %v16986_v44 = vsel %vm6777_vm11, %v21335_v51, %v21337_v34  ;;  %v16991_v56 = vsel %vm6777_vm11, %v21337_v34, %v21339_v3  ;;  %v16996_v13 = vsel %vm6777_vm11, %v21339_v3, %v21341_v55  ;;  %v21343_v0 = vld [vmem:[#allocation61_spill] sm:$0xff]  ;;  %v21344_v9 = vld [vmem:[#allocation58_spill] sm:$0xff] }
 0x466   : > { %21336 = vst [vmem:[#allocation130_spill] sm:$0xff] %v16981_v61  ;;  %21338 = vst [vmem:[#allocation22_spill] sm:$0xff] %v16986_v44  ;;  %v17001_v31 = vsel %vm1142_vm4, %v21344_v9, %v21343_v0  ;;  %v21346_v61 = vld [vmem:[#allocation60_spill] sm:$0xff]  ;;  %v21348_v44 = vld [vmem:[#allocation63_spill] sm:$0xff]  ;;  %v5439_v55 = vmax.f32 %v5419_v4, %v5429_v25  ;;  %v10755_v10 = vpop.permute.xlu1 %10754 }
 0x467   : > { %21340 = vst [vmem:[#allocation44_spill] sm:$0xff] %v16991_v56  ;;  %21342 = vst [vmem:[#allocation38_spill] sm:$0xff] %v16996_v13  ;;  %v17006_v51 = vsel %vm1142_vm4, %v21343_v0, %v21346_v61  ;;  %v17011_v34 = vsel %vm1142_vm4, %v21346_v61, %v21348_v44  ;;  %v21350_v56 = vld [vmem:[#allocation62_spill] sm:$0xff]  ;;  %v21352_v13 = vld [vmem:[#allocation65_spill] sm:$0xff] }
 0x468   : > { %21345 = vst [vmem:[#allocation12_spill] sm:$0xff] %v17001_v31  ;;  %21347 = vst [vmem:[#allocation27_spill] sm:$0xff] %v17006_v51  ;;  %v17016_v3 = vsel %vm1142_vm4, %v21348_v44, %v21350_v56  ;;  %v17021_v9 = vsel %vm1142_vm4, %v21350_v56, %v21352_v13  ;;  %v21354_v31 = vld [vmem:[#allocation34_spill] sm:$0xff]  ;;  %v21355_v37 = vld [vmem:[#allocation64_spill] sm:$0xff]  ;;  %v5449_v56 = vrot.slane %v5439_v55, 4  ;;  %vm10520_vm4 = vcmask 384000  }
 0x469   : > { %21349 = vst [vmem:[#allocation46_spill] sm:$0xff] %v17011_v34  ;;  %21351 = vst [vmem:[#allocation49_spill] sm:$0xff] %v17016_v3  ;;  %v17026_v0 = vsel %vm1351_vm5, %v21355_v37, %v21354_v31  ;;  %v21357_v51 = vld [vmem:[#allocation41_spill] sm:$0xff]  ;;  %v21359_v34 = vld [vmem:[#allocation66_spill] sm:$0xff] }
 0x46a   : > { %21353 = vst [vmem:[#allocation17_spill] sm:$0xff] %v17021_v9  ;;  %21356 = vst [vmem:[#allocation48_spill] sm:$0xff] %v17026_v0  ;;  %v17031_v61 = vsel %vm1351_vm5, %v21354_v31, %v21357_v51  ;;  %v17036_v44 = vsel %vm1351_vm5, %v21357_v51, %v21359_v34  ;;  %v21361_v4 = vld [vmem:[#allocation40_spill] sm:$0xff]  ;;  %v21364_v37 = vld [vmem:[#allocation107_spill] sm:$0xff]  ;;  %v21366_v31 = vcombine.low %v16484_v46, %v16627_v7 }
 0x46b   : > { %21358 = vst [vmem:[#allocation51_spill] sm:$0xff] %v17031_v61  ;;  %21360 = vst [vmem:[#allocation50_spill] sm:$0xff] %v17036_v44  ;;  %v17041_v25 = vsel %vm1351_vm5, %v21359_v34, %v21361_v4  ;;  %v21363_v13 = vld [vmem:[#allocation92_spill] sm:$0xff]  ;;  %v21367_v51 = vld [vmem:[#allocation67_spill] sm:$0xff] }
 0x46c   : > { %21362 = vst [vmem:[#allocation53_spill] sm:$0xff] %v17041_v25  ;;  %v21365_v0 = vcombine.low %v21363_v13, %v21364_v37  ;;  %v17053_v61 = vrot.slane %v21366_v31, %v16376_v39  ;;  %v17058_v44 = vsel %vm1351_vm5, %v21361_v4, %v21367_v51  ;;  %v21369_v34 = vld [vmem:[#allocation68_spill] sm:$0xff]  ;;  %v21370_v25 = vld [vmem:[#allocation29_spill] sm:$0xff]  ;;  %v21372_v2 = vld [vmem:[#allocation31_spill] sm:$0xff]  ;;  %vm10766_vm5 = vcmask 375808  }
 0x46d   : > { %21368 = vst [vmem:[#allocation55_spill] sm:$0xff] %v17058_v44  ;;  %v17063_v3 = vsel %vm1560_vm10, %v21370_v25, %v21369_v34  ;;  %v21374_v6 = vld [vmem:[#allocation69_spill] sm:$0xff]  ;;  %v17081_v25 = vsel %vm291_vm0, %v5439_v55, %v5449_v56  ;;  %vm10298_vm0 = vcmask 392192   ;;  %v21379_v56 = vld [vmem:[#allocation70_spill] sm:$0xff] }
 0x46e   : > { %v17047_v9 = vrot.slane %v21365_v0, %v16376_v39  ;;  %21371 = vst [vmem:[#allocation52_spill] sm:$0xff] %v17063_v3  ;;  %v17068_v0 = vsel %vm1560_vm10, %v21369_v34, %v21372_v2  ;;  %v17073_v31 = vsel %vm1560_vm10, %v21372_v2, %v21374_v6  ;;  %v21376_v45 = vld [vmem:[#allocation33_spill] sm:$0xff]  ;;  %21378 = vst [vmem:[#allocation59_spill] sm:$0xff] %v17081_v25  ;;  %v21384_v3 = vld [vmem:[#allocation7_spill] sm:$0xff] }
 0x46f   : > { %21373 = vst [vmem:[#allocation54_spill] sm:$0xff] %v17068_v0  ;;  %21375 = vst [vmem:[#allocation57_spill] sm:$0xff] %v17073_v31  ;;  %v17078_v4 = vsel %vm1560_vm10, %v21374_v6, %v21376_v45  ;;  %v5464_v2 = vsub.f32 %v16783_v16, %v17081_v25  ;;  %v5896_v31 = vsub.f32 %v16790_v42, %v17081_v25  ;;  %v17116_v44 = vsub.s32 1, %v21384_v3 }
 0x470   : > { %21377 = vst [vmem:[#allocation56_spill] sm:$0xff] %v17078_v4  ;;  %v6364_v0 = vsub.f32 %v16739_v26, %v17081_v25  ;;  %v6832_v6 = vsub.f32 %v16760_v50, %v17081_v25  ;;  %v7300_v55 = vsub.f32 %v16770_v19, %v17081_v25  ;;  %v17100_v34 = vsel %vm1560_vm10, %v21376_v45, %v21379_v56  ;;  %v21381_v4 = vld [vmem:[#allocation137_spill] sm:$0xff] }
 0x471   : > { %21380 = vst [vmem:[#allocation61_spill] sm:$0xff] %v17100_v34  ;;  %v5473_v16 = vmul.f32 1.442695, %v5464_v2  ;;  %v5905_v51 = vmul.f32 1.442695, %v5896_v31  ;;  %v17105_v26 = vsel %vm2814_vm12, %v21381_v4, %v16516_v18  ;;  %v17110_v50 = vsel %vm2814_vm12, %v16516_v18, %v16518_v30  ;;  %21386 = vst [vmem:[#allocation62_spill] sm:$0xff] %v17116_v44  ;;  %v10761_v31 = vpop.permute.xlu0 %10760 }
 0x472   : > { %v6373_v42 = vmul.f32 1.442695, %v6364_v0  ;;  %21382 = vst [vmem:[#allocation58_spill] sm:$0xff] %v17105_v26  ;;  %21383 = vst [vmem:[#allocation60_spill] sm:$0xff] %v17110_v50  ;;  %v17113_v19 = vsub.s32 0, %v21384_v3  ;;  %v17121_v45 = vsel %vm4338_vm13, %v16583_v59, %v16585_v14  ;;  %v10759_v0 = vpop.permute.xlu1 %10758  ;;  %v17124_v4 = vsub.s32 2, %v21384_v3 }
 0x473   : > { %21387 = vst [vmem:[#allocation65_spill] sm:$0xff] %v17121_v45  ;;  %12472 = vpow2.f32 %v5473_v16  ;;  %v17127_v18 = vsub.s32 3, %v21384_v3  ;;  %v17132_v30 = vsel %vm4338_vm13, %v16585_v14, %v16648_v62  ;;  %v17137_v2 = vsel %vm4338_vm13, %v16648_v62, %v16651_v32 }
 0x474   : > { %21385 = vst [vmem:[#allocation63_spill] sm:$0xff] %v17113_v19  ;;  %21388 = vst [vmem:[#allocation34_spill] sm:$0xff] %v17124_v4  ;;  %v17142_v59 = vsel %vm4338_vm13, %v16651_v32, %v16704_v43  ;;  %12474 = vpow2.f32 %v5905_v51  ;;  %v17147_v3 = vsel %vm4338_vm13, %v16704_v43, %v16706_v20  ;;  %v17152_v14 = vsel %vm10298_vm0, %v16750_v1, %v16752_v53  ;;  %v21406_v51 = vld [vmem:[#allocation101_spill] sm:$0xff] }
 0x475   : > { %21389 = vst [vmem:[#allocation64_spill] sm:$0xff] %v17127_v18  ;;  %21390 = vst [vmem:[#allocation41_spill] sm:$0xff] %v17132_v30  ;;  %v17157_v62 = vsel %vm10298_vm0, %v16752_v53, %v16793_v40  ;;  %12476 = vpow2.f32 %v6373_v42  ;;  %v17162_v32 = vsel %vm10298_vm0, %v16793_v40, %v16795_v63  ;;  %v17167_v43 = vsel %vm10298_vm0, %v16795_v63, %v16809_v28 }
 0x476   : > { %21391 = vst [vmem:[#allocation66_spill] sm:$0xff] %v17137_v2  ;;  %21392 = vst [vmem:[#allocation40_spill] sm:$0xff] %v17142_v59  ;;  %v17172_v20 = vsel %vm10298_vm0, %v16809_v28, %v16811_v60  ;;  %v17177_v53 = vsel %vm10520_vm4, %v16828_v22, %v16830_v5  ;;  %v17182_v1 = vsel %vm10520_vm4, %v16830_v5, %v16862_v47  ;;  %v21404_v60 = vld [vmem:[#allocation149_spill] sm:$0xff]  ;;  %v21436_v2 = vld [vmem:[#allocation160_spill] sm:$0xff]  ;;  %vm10988_vm10 = vcmask 367616  }
 0x477   : > { %21393 = vst [vmem:[#allocation92_spill] sm:$0xff] %v17147_v3  ;;  %21394 = vst [vmem:[#allocation107_spill] sm:$0xff] %v17152_v14  ;;  %v17187_v40 = vsel %vm10520_vm4, %v16862_v47, %v16864_v23  ;;  %v17192_v63 = vsel %vm10520_vm4, %v16864_v23, %v16964_v24  ;;  %v17197_v28 = vsel %vm10520_vm4, %v16964_v24, %v16966_v21  ;;  %v21407_v47 = vld [vmem:[#allocation150_spill] sm:$0xff]  ;;  %v21432_v14 = vld [vmem:[#allocation159_spill] sm:$0xff]  ;;  %vm11234_vm12 = vcmask 359424  }
 0x478   : > { %21395 = vst [vmem:[#allocation67_spill] sm:$0xff] %v17157_v62  ;;  %21396 = vst [vmem:[#allocation68_spill] sm:$0xff] %v17162_v32  ;;  %v21405_v22 = vcombine.high %v16394_v38, %v21404_v60  ;;  %v21408_v56 = vcombine.low %v21406_v51, %v21407_v47  ;;  %v17212_v23 = vsel %vm10766_vm5, %v10755_v10, %v10757_v41  ;;  %v21426_v32 = vld [vmem:[#allocation158_spill] sm:$0xff] }
 0x479   : > { %21397 = vst [vmem:[#allocation29_spill] sm:$0xff] %v17167_v43  ;;  %21398 = vst [vmem:[#allocation31_spill] sm:$0xff] %v17172_v20  ;;  %v17215_v42 = vsel %vm10766_vm5, %v10757_v41, %v10759_v0  ;;  %v21411_v21 = vcombine.high %v21406_v51, %v21407_v47  ;;  %v10763_v51 = vpop.permute.xlu1 %10762  ;;  %v10765_v47 = vpop.permute.xlu0 %10764  ;;  %v21425_v43 = vld [vmem:[#allocation146_spill] sm:$0xff]  ;;  %v17284_v34 = vsel %vm10766_vm5, %v10759_v0, %v10761_v31 }
 0x47a   : > { %21399 = vst [vmem:[#allocation69_spill] sm:$0xff] %v17177_v53  ;;  %21400 = vst [vmem:[#allocation33_spill] sm:$0xff] %v17182_v1  ;;  %v17203_v5 = vrot.slane %v21405_v22, %v16376_v39  ;;  %v17209_v16 = vrot.slane %v21408_v56, %v16376_v39  ;;  %v21412_v22 = vld [vmem:[#allocation104_spill] sm:$0xff]  ;;  %v21415_v56 = vld [vmem:[#allocation143_spill] sm:$0xff]  ;;  %v21427_v62 = vcombine.low %v21425_v43, %v21426_v32 }
 0x47b   : > { %21401 = vst [vmem:[#allocation70_spill] sm:$0xff] %v17187_v40  ;;  %21402 = vst [vmem:[#allocation137_spill] sm:$0xff] %v17192_v63  ;;  %v17221_v24 = vrot.slane %v21411_v21, %v16376_v39  ;;  %v21416_v1 = vld [vmem:[#allocation153_spill] sm:$0xff]  ;;  %v17287_v25 = vsel %vm10766_vm5, %v10761_v31, %v10763_v51 }
 0x47c   : > { %21403 = vst [vmem:[#allocation7_spill] sm:$0xff] %v17197_v28  ;;  %21409 = vst [vmem:[#allocation149_spill] sm:$0xff] %v17212_v23  ;;  %v21413_v28 = vld [vmem:[#allocation152_spill] sm:$0xff]  ;;  %v21417_v10 = vcombine.low %v21415_v56, %v21416_v1  ;;  %v21419_v41 = vcombine.high %v21415_v56, %v21416_v1  ;;  %v21421_v21 = vld [vmem:[#allocation145_spill] sm:$0xff]  ;;  %v21429_v1 = vcombine.high %v21425_v43, %v21426_v32 }
 0x47d   : > { %21410 = vst [vmem:[#allocation101_spill] sm:$0xff] %v17215_v42  ;;  %v21414_v63 = vcombine.high %v21412_v22, %v21413_v28  ;;  %v21422_v53 = vld [vmem:[#allocation157_spill] sm:$0xff]  ;;  %v21442_v43 = vld [vmem:[#allocation163_spill] sm:$0xff]  ;;  %21446 = vst [vmem:[#allocation159_spill] sm:$0xff] %v17287_v25 }
 0x47e   : > { %v17233_v23 = vrot.slane %v21417_v10, %v16376_v39  ;;  %v17239_v42 = vrot.slane %v21419_v41, %v16376_v39  ;;  %v21423_v20 = vcombine.high %v21421_v21, %v21422_v53  ;;  %v17251_v10 = vrot.slane %v21427_v62, %v16376_v39  ;;  %v21431_v41 = vld [vmem:[#allocation88_spill] sm:$0xff]  ;;  %v21441_v32 = vld [vmem:[#allocation105_spill] sm:$0xff] }
 0x47f   : > { %v17227_v40 = vrot.slane %v21414_v63, %v16376_v39  ;;  %v17257_v56 = vrot.slane %v21429_v1, %v16376_v39  ;;  %v21433_v3 = vcombine.high %v21431_v41, %v21432_v14  ;;  %v21443_v1 = vcombine.high %v21441_v32, %v21442_v43  ;;  %21445 = vst [vmem:[#allocation88_spill] sm:$0xff] %v17284_v34 }
 0x480   : > { %21418 = vst [vmem:[#allocation150_spill] sm:$0xff] %v17233_v23  ;;  %21420 = vst [vmem:[#allocation104_spill] sm:$0xff] %v17239_v42  ;;  %v17245_v63 = vrot.slane %v21423_v20, %v16376_v39  ;;  %v21435_v20 = vld [vmem:[#allocation156_spill] sm:$0xff]  ;;  %v21450_v0 = vcombine.low %v21421_v21, %v21422_v53 }
 0x481   : > { %21428 = vst [vmem:[#allocation143_spill] sm:$0xff] %v17251_v10  ;;  %21430 = vst [vmem:[#allocation153_spill] sm:$0xff] %v17257_v56  ;;  %v17263_v59 = vrot.slane %v21433_v3, %v16376_v39  ;;  %v21437_v30 = vcombine.low %v21435_v20, %v21436_v2  ;;  %v21439_v62 = vcombine.high %v21435_v20, %v21436_v2  ;;  %v6841_v3 = vmul.f32 1.442695, %v6832_v6  ;;  %v12540_v56 = vld [vmem:[#allocation3 + $0x8] sm:$0xff] }
 0x482   : > { %21424 = vst [vmem:[#allocation152_spill] sm:$0xff] %v17245_v63  ;;  %v17281_v26 = vrot.slane %v21443_v1, %v16376_v39  ;;  %v21448_v2 = vcombine.low %v16394_v38, %v21404_v60  ;;  %v17304_v31 = vrot.slane %v21450_v0, %v16376_v39  ;;  %v21454_v38 = vcombine.low %v21441_v32, %v21442_v43 }
 0x483   : > { %21434 = vst [vmem:[#allocation145_spill] sm:$0xff] %v17263_v59  ;;  %v17269_v45 = vrot.slane %v21437_v30, %v16376_v39  ;;  %v17275_v50 = vrot.slane %v21439_v62, %v16376_v39  ;;  %v17290_v30 = vsel %vm10766_vm5, %v10763_v51, %v10765_v47  ;;  %v21449_v62 = vcombine.low %v21412_v22, %v21413_v28  ;;  %v21456_v28 = vld [vmem:[#allocation162_spill] sm:$0xff]  ;;  %v21457_v22 = vld [vmem:[#allocation164_spill] sm:$0xff] }
 0x484   : > { %21444 = vst [vmem:[#allocation158_spill] sm:$0xff] %v17281_v26  ;;  %21447 = vst [vmem:[#allocation156_spill] sm:$0xff] %v17290_v30  ;;  %v5515_v20 = vrot.slane %v21448_v2, %v16376_v39  ;;  %v17316_v60 = vrot.slane %v21454_v38, %v16376_v39  ;;  %v21458_v47 = vcombine.low %v21456_v28, %v21457_v22  ;;  %12478 = vpow2.f32 %v6841_v3 }
 0x485   : > { %21438 = vst [vmem:[#allocation157_spill] sm:$0xff] %v17269_v45  ;;  %21440 = vst [vmem:[#allocation146_spill] sm:$0xff] %v17275_v50  ;;  %v7309_v45 = vmul.f32 1.442695, %v7300_v55  ;;  %v5949_v6 = vrot.slane %v21449_v62, %v16376_v39  ;;  %v21452_v55 = vcombine.low %v21431_v41, %v21432_v14  ;;  %v21460_v53 = vcombine.high %v21456_v28, %v21457_v22  ;;  %v21488_v50 = vld [vmem:[#allocation47_spill] sm:$0xff] }
 0x486   : > { %21451 = vst [vmem:[#allocation160_spill] sm:$0xff] %v17304_v31  ;;  %21455 = vst [vmem:[#allocation163_spill] sm:$0xff] %v17316_v60  ;;  %v17322_v1 = vrot.slane %v21458_v47, %v16376_v39  ;;  %v21462_v14 = vcombine.high %v21363_v13, %v21364_v37  ;;  %v21464_v32 = vcombine.low %v16682_v48, %v16693_v58  ;;  %v12473_v37 = vpop.eup %12472 }
 0x487   : > { %v17310_v51 = vrot.slane %v21452_v55, %v16376_v39  ;;  %v17328_v21 = vrot.slane %v21460_v53, %v16376_v39  ;;  %v21466_v2 = vcombine.low %v21281_v12, %v21280_v52  ;;  %v21468_v0 = vcombine.high %v21281_v12, %v21280_v52  ;;  %v12475_v22 = vpop.eup %12474 }
 0x488   : > { %21459 = vst [vmem:[#allocation162_spill] sm:$0xff] %v17322_v1  ;;  %v17334_v41 = vrot.slane %v21462_v14, %v16376_v39  ;;  %v17340_v43 = vrot.slane %v21464_v32, %v16376_v39  ;;  %12480 = vpow2.f32 %v7309_v45  ;;  %v21470_v3 = vcombine.high %v16682_v48, %v16693_v58  ;;  %v17385_v32 = vpop.eup %12476  ;;  %v5477_v1 = vld [vmem:[#allocation3 + $0x10] sm:$0xf] }
 0x489   : > { %21453 = vst [vmem:[#allocation105_spill] sm:$0xff] %v17310_v51  ;;  %21461 = vst [vmem:[#allocation164_spill] sm:$0xff] %v17328_v21  ;;  %v17346_v62 = vrot.slane %v21466_v2, %v16376_v39  ;;  %v17352_v13 = vrot.slane %v21468_v0, %v16376_v39  ;;  %v21472_v38 = vcombine.low %v16837_v11, %v16826_v36  ;;  %v21490_v51 = vld [vmem:[#allocation43_spill] sm:$0xff] }
 0x48a   : > { %21463 = vst [vmem:[#allocation165_spill] sm:$0xff] %v17334_v41  ;;  %21465 = vst [vmem:[#allocation166_spill] sm:$0xff] %v17340_v43  ;;  %v17358_v55 = vrot.slane %v21470_v3, %v16376_v39  ;;  %v21474_v52 = vcombine.high %v16837_v11, %v16826_v36  ;;  %v5505_v45 = vrot.slane %v12473_v37, %v16376_v39 }
 0x48b   : > { %21467 = vst [vmem:[#allocation167_spill] sm:$0xff] %v17346_v62  ;;  %21469 = vst [vmem:[#allocation168_spill] sm:$0xff] %v17352_v13  ;;  %v17364_v28 = vrot.slane %v21472_v38, %v16376_v39  ;;  %v5670_v47 = vcombine.high %v12473_v37, %v12473_v37  ;;  %v21476_v48 = vcombine.low %v17047_v9, %v17053_v61 }
 0x48c   : > { %21471 = vst [vmem:[#allocation169_spill] sm:$0xff] %v17358_v55  ;;  %v17370_v12 = vrot.slane %v21474_v52, %v16376_v39  ;;  %v21478_v53 = vcombine.high %v17047_v9, %v17053_v61  ;;  %21480 = vst [vmem:[#allocation174_spill] sm:$0xff] %v17385_v32  ;;  %v5911_v36 = vadd.f32 %v12475_v22, %v12473_v37 }
 0x48d   : > { %21473 = vst [vmem:[#allocation170_spill] sm:$0xff] %v17364_v28  ;;  %v17377_v58 = vrot.slane %v21476_v48, %v16376_v39  ;;  %v5939_v11 = vrot.slane %v12475_v22, %v16376_v39  ;;  %v6140_v2 = vcombine.high %v12475_v22, %v12475_v22  ;;  %v21481_v0 = vcombine.high %v16484_v46, %v16627_v7 }
 0x48e   : > { %21475 = vst [vmem:[#allocation171_spill] sm:$0xff] %v17370_v12  ;;  %v17383_v14 = vrot.slane %v21478_v53, %v16376_v39  ;;  %v5508_v38 = vcombine.high %v5505_v45, %v5505_v45  ;;  %v5529_v52 = vrot.slane %v5505_v45, %v16376_v39  ;;  %v5691_v48 = vrot.slane %v5670_v47, %v16376_v39 }
 0x48f   : > { %21477 = vst [vmem:[#allocation172_spill] sm:$0xff] %v17377_v58  ;;  %v17392_v3 = vrot.slane %v21481_v0, %v16376_v39  ;;  %v17398_v9 = vrot.slane %v17385_v32, %v16376_v39  ;;  %v5942_v61 = vcombine.high %v5939_v11, %v5939_v11  ;;  %v5963_v37 = vrot.slane %v5939_v11, %v16376_v39 }
 0x490   : > { %21479 = vst [vmem:[#allocation173_spill] sm:$0xff] %v17383_v14  ;;  %v17402_v22 = vrot.slane %v6140_v2, %v16376_v39  ;;  %v17405_v53 = vadd.f32 %v17385_v32, %v5911_v36  ;;  %v5536_v46 = vrot.slane %v5508_v38, %v16376_v39  ;;  %v5537_v7 = vcombine.low %v5515_v20, %v5529_v52 }
 0x491   : > { %21482 = vst [vmem:[#allocation175_spill] sm:$0xff] %v17392_v3  ;;  %21483 = vst [vmem:[#allocation176_spill] sm:$0xff] %v17398_v9  ;;  %v5538_v0 = vcombine.high %v5515_v20, %v5529_v52  ;;  %v5694_v45 = vcombine.high %v5691_v48, %v5691_v48  ;;  %v5715_v47 = vrot.slane %v5691_v48, %v16376_v39  ;;  %v21486_v52 = vld [vmem:[#allocation8_spill] sm:$0xff]  ;;  %v17434_v21 = vpop.eup %12478 }
 0x492   : > { %21484 = vst [vmem:[#allocation177_spill] sm:$0xff] %v17402_v22  ;;  %21485 = vst [vmem:[#allocation178_spill] sm:$0xff] %v17405_v53  ;;  %v5970_v30 = vrot.slane %v5942_v61, %v16376_v39  ;;  %v17410_v25 = vcombine.low %v5949_v6, %v5963_v37  ;;  %v17412_v34 = vcombine.high %v5949_v6, %v5963_v37  ;;  %v12539_v3 = vld [vmem:[#allocation3] sm:$0xff] }
 0x493   : > { %v5539_v11 = vcombine.low %v17203_v5, %v5536_v46  ;;  %v5540_v2 = vcombine.high %v17203_v5, %v5536_v46  ;;  %v5544_v36 = vrot.slane %v5537_v7, %v17113_v19  ;;  %v5548_v14 = vrot.slane %v5537_v7, %v17116_v44  ;;  %21487 = vst [vmem:[#allocation179_spill] sm:$0xff] %v17434_v21 }
 0x494   : > { %v5552_v38 = vrot.slane %v5537_v7, %v17124_v4  ;;  %v5556_v20 = vrot.slane %v5537_v7, %v17127_v18  ;;  %v5560_v48 = vrot.slane %v5537_v7, %v21486_v52  ;;  %v5584_v61 = vrot.slane %v5538_v0, %v17113_v19 }
 0x495   : > { %v5564_v58 = vrot.slane %v5539_v11, %v17113_v19  ;;  %v5568_v6 = vrot.slane %v5539_v11, %v17116_v44  ;;  %v5572_v37 = vrot.slane %v5539_v11, %v17124_v4  ;;  %v5576_v5 = vrot.slane %v5539_v11, %v17127_v18 }
 0x496   : > { %v5580_v46 = vrot.slane %v5539_v11, %v21486_v52  ;;  %v5588_v12 = vrot.slane %v5538_v0, %v17116_v44  ;;  %v5592_v28 = vrot.slane %v5538_v0, %v17124_v4  ;;  %v5596_v55 = vrot.slane %v5538_v0, %v17127_v18 }
 0x497   : > { %v5600_v7 = vrot.slane %v5538_v0, %v21486_v52  ;;  %v5604_v13 = vrot.slane %v5540_v2, %v17113_v19  ;;  %v5608_v43 = vrot.slane %v5540_v2, %v17116_v44  ;;  %v5612_v62 = vrot.slane %v5540_v2, %v17124_v4  ;;  %v17443_v0 = vpop.eup %12480 }
 0x498   : > { %v5616_v41 = vrot.slane %v5540_v2, %v17127_v18  ;;  %v5620_v11 = vrot.slane %v5540_v2, %v21486_v52  ;;  %v17438_v26 = vmul.f32 %v12539_v3, %v5544_v36  ;;  %v17441_v60 = vmul.f32 %v21488_v50, %v5548_v14  ;;  %21489 = vst [vmem:[#allocation47_spill] sm:$0xff] %v17443_v0 }
 0x499   : > { %v17445_v59 = vmul.f32 %v12540_v56, %v5552_v38  ;;  %v17448_v10 = vmul.f32 %v21490_v51, %v5556_v20  ;;  %v17450_v63 = vmul.f32 %v5560_v48, %v5477_v1  ;;  %v17452_v42 = vmul.f32 %v12539_v3, %v5564_v58 }
 0x49a   : > { %v17455_v2 = vmul.f32 %v21488_v50, %v5568_v6  ;;  %v17457_v36 = vmul.f32 %v12540_v56, %v5572_v37  ;;  %v17460_v14 = vmul.f32 %v21490_v51, %v5576_v5  ;;  %v17462_v31 = vmul.f32 %v5580_v46, %v5477_v1 }
 0x49b   : > { %v17464_v0 = vmul.f32 %v12539_v3, %v5584_v61  ;;  %v17467_v38 = vmul.f32 %v21488_v50, %v5588_v12  ;;  %v17469_v20 = vmul.f32 %v12540_v56, %v5592_v28  ;;  %v17472_v58 = vmul.f32 %v21490_v51, %v5596_v55 }
 0x49c   : > { %v17474_v48 = vmul.f32 %v5600_v7, %v5477_v1  ;;  %v17476_v6 = vmul.f32 %v12539_v3, %v5604_v13  ;;  %v17479_v37 = vmul.f32 %v21488_v50, %v5608_v43  ;;  %v17481_v5 = vmul.f32 %v12540_v56, %v5612_v62 }
 0x49d   : > { %v17484_v61 = vmul.f32 %v21490_v51, %v5616_v41  ;;  %v17486_v46 = vmul.f32 %v5620_v11, %v5477_v1  ;;  %v5722_v28 = vrot.slane %v5694_v45, %v16376_v39  ;;  %v5723_v12 = vcombine.low %v17209_v16, %v5715_v47 }
 0x49e   : > { %v5724_v55 = vcombine.high %v17209_v16, %v5715_v47  ;;  %v17492_v7 = vcombine.low %v17227_v40, %v5970_v30  ;;  %v17495_v13 = vcombine.high %v17227_v40, %v5970_v30 }
 0x49f   : > { %v5725_v56 = vcombine.low %v17221_v24, %v5722_v28  ;;  %v5726_v51 = vcombine.high %v17221_v24, %v5722_v28  ;;  %v5730_v1 = vrot.slane %v5723_v12, %v17113_v19  ;;  %v5734_v41 = vrot.slane %v5723_v12, %v17116_v44 }
 0x4a0   : > { %v5738_v43 = vrot.slane %v5723_v12, %v17124_v4  ;;  %v5742_v16 = vrot.slane %v5723_v12, %v17127_v18  ;;  %v5746_v62 = vrot.slane %v5723_v12, %v21486_v52  ;;  %v5770_v40 = vrot.slane %v5724_v55, %v17113_v19 }
 0x4a1   : > { %v5750_v30 = vrot.slane %v5725_v56, %v17113_v19  ;;  %v5754_v3 = vrot.slane %v5725_v56, %v17116_v44  ;;  %v5758_v45 = vrot.slane %v5725_v56, %v17124_v4  ;;  %v5762_v24 = vrot.slane %v5725_v56, %v17127_v18 }
 0x4a2   : > { %v5766_v47 = vrot.slane %v5725_v56, %v21486_v52  ;;  %v5774_v11 = vrot.slane %v5724_v55, %v17116_v44  ;;  %v5778_v28 = vrot.slane %v5724_v55, %v17124_v4  ;;  %v5782_v50 = vrot.slane %v5724_v55, %v17127_v18 }
 0x4a3   : > { %v5786_v12 = vrot.slane %v5724_v55, %v21486_v52  ;;  %v5790_v23 = vrot.slane %v5726_v51, %v17113_v19  ;;  %v5794_v21 = vrot.slane %v5726_v51, %v17116_v44  ;;  %v5798_v53 = vrot.slane %v5726_v51, %v17124_v4 }
 0x4a4   : > { %v5802_v32 = vrot.slane %v5726_v51, %v17127_v18  ;;  %v5806_v9 = vrot.slane %v5726_v51, %v21486_v52  ;;  %v5852_v56 = vmul.f32 %v16850_v17, %v5730_v1  ;;  %v5853_v39 = vmul.f32 %v16855_v35, %v5734_v41 }
 0x4a5   : > { %v5854_v22 = vmul.f32 %v16860_v54, %v5738_v43  ;;  %v5855_v57 = vmul.f32 %v16871_v15, %v5742_v16  ;;  %v5856_v55 = vmul.f32 %v16876_v29, %v5746_v62  ;;  %v5857_v8 = vmul.f32 %v16850_v17, %v5750_v30 }
 0x4a6   : > { %v5858_v49 = vmul.f32 %v16855_v35, %v5754_v3  ;;  %v5859_v27 = vmul.f32 %v16860_v54, %v5758_v45  ;;  %v5860_v33 = vmul.f32 %v16871_v15, %v5762_v24  ;;  %v5861_v51 = vmul.f32 %v16876_v29, %v5766_v47 }
 0x4a7   : > { %v5862_v1 = vmul.f32 %v16850_v17, %v5770_v40  ;;  %v5863_v41 = vmul.f32 %v16855_v35, %v5774_v11  ;;  %v5864_v43 = vmul.f32 %v16860_v54, %v5778_v28  ;;  %v5865_v16 = vmul.f32 %v16871_v15, %v5782_v50 }
 0x4a8   : > { %v5866_v62 = vmul.f32 %v16876_v29, %v5786_v12  ;;  %v5867_v30 = vmul.f32 %v16850_v17, %v5790_v23  ;;  %v5868_v3 = vmul.f32 %v16855_v35, %v5794_v21  ;;  %v5869_v45 = vmul.f32 %v16860_v54, %v5798_v53 }
 0x4a9   : > { %v5870_v24 = vmul.f32 %v16871_v15, %v5802_v32  ;;  %v5871_v47 = vmul.f32 %v16876_v29, %v5806_v9  ;;  %v5872_v40 = vadd.f32 %v5852_v56, %v17438_v26  ;;  %v5873_v11 = vadd.f32 %v5853_v39, %v17441_v60  ;;  %v21494_v56 = vld [vmem:[#allocation144_spill] sm:$0xff] }
 0x4aa   : > { %v5874_v28 = vadd.f32 %v5854_v22, %v17445_v59  ;;  %v5875_v50 = vadd.f32 %v5855_v57, %v17448_v10  ;;  %v5876_v12 = vadd.f32 %v5856_v55, %v17450_v63  ;;  %v5877_v17 = vadd.f32 %v5857_v8, %v17452_v42 }
 0x4ab   : > { %v5878_v35 = vadd.f32 %v5858_v49, %v17455_v2  ;;  %v5879_v54 = vadd.f32 %v5859_v27, %v17457_v36  ;;  %v5880_v15 = vadd.f32 %v5860_v33, %v17460_v14  ;;  %v5881_v29 = vadd.f32 %v5861_v51, %v17462_v31  ;;  %v21495_v51 = vld [vmem:[#allocation114_spill] sm:$0xff] }
 0x4ac   : > { %v5882_v26 = vadd.f32 %v5862_v1, %v17464_v0  ;;  %v5883_v39 = vadd.f32 %v5863_v41, %v17467_v38  ;;  %v5884_v59 = vadd.f32 %v5864_v43, %v17469_v20  ;;  %v5885_v57 = vadd.f32 %v5865_v16, %v17472_v58  ;;  %v21496_v41 = vld [vmem:[#allocation93_spill] sm:$0xff] }
 0x4ad   : > { %v5886_v23 = vadd.f32 %v5866_v62, %v17474_v48  ;;  %v5887_v8 = vadd.f32 %v5867_v30, %v17476_v6  ;;  %v5888_v49 = vadd.f32 %v5868_v3, %v17479_v37  ;;  %v5889_v27 = vadd.f32 %v5869_v45, %v17481_v5 }
 0x4ae   : > { %v5890_v33 = vadd.f32 %v5870_v24, %v17484_v61  ;;  %v5891_v42 = vadd.f32 %v5871_v47, %v17486_v46  ;;  %v5982_v63 = vrot.slane %v17410_v25, %v17116_v44  ;;  %v5986_v10 = vrot.slane %v17410_v25, %v17124_v4  ;;  %v21492_v61 = vld [vmem:[#allocation24_spill] sm:$0xff]  ;;  %v21493_v46 = vld [vmem:[#allocation39_spill] sm:$0xff] }
 0x4af   : > { %v5990_v31 = vrot.slane %v17410_v25, %v17127_v18  ;;  %v5994_v60 = vrot.slane %v17410_v25, %v21486_v52  ;;  %v5998_v21 = vrot.slane %v17492_v7, %v17113_v19  ;;  %v6002_v32 = vrot.slane %v17492_v7, %v17116_v44 }
 0x4b0   : > { %v6006_v9 = vrot.slane %v17492_v7, %v17124_v4  ;;  %v6010_v22 = vrot.slane %v17492_v7, %v17127_v18  ;;  %v6014_v53 = vrot.slane %v17492_v7, %v21486_v52  ;;  %v6018_v0 = vrot.slane %v17412_v34, %v17113_v19 }
 0x4b1   : > { %v6022_v2 = vrot.slane %v17412_v34, %v17116_v44  ;;  %v6026_v36 = vrot.slane %v17412_v34, %v17124_v4  ;;  %v6030_v14 = vrot.slane %v17412_v34, %v17127_v18  ;;  %v6034_v38 = vrot.slane %v17412_v34, %v21486_v52 }
 0x4b2   : > { %v6038_v20 = vrot.slane %v17495_v13, %v17113_v19  ;;  %v6042_v58 = vrot.slane %v17495_v13, %v17116_v44  ;;  %v6046_v48 = vrot.slane %v17495_v13, %v17124_v4  ;;  %v6050_v6 = vrot.slane %v17495_v13, %v17127_v18 }
 0x4b3   : > { %v6054_v37 = vrot.slane %v17495_v13, %v21486_v52  ;;  %v21491_v5 = vrot.slane %v17410_v25, %v17113_v19  ;;  %v6099_v7 = vmul.f32 %v21493_v46, %v5982_v63  ;;  %v6100_v55 = vmul.f32 %v21494_v56, %v5986_v10 }
 0x4b4   : > { %v6101_v1 = vmul.f32 %v21495_v51, %v5990_v31  ;;  %v6102_v43 = vmul.f32 %v21496_v41, %v5994_v60  ;;  %v6103_v16 = vmul.f32 %v21492_v61, %v5998_v21  ;;  %v6104_v62 = vmul.f32 %v21493_v46, %v6002_v32 }
 0x4b5   : > { %v6098_v34 = vmul.f32 %v21492_v61, %v21491_v5  ;;  %v6105_v30 = vmul.f32 %v21494_v56, %v6006_v9  ;;  %v6106_v13 = vmul.f32 %v21495_v51, %v6010_v22  ;;  %v6107_v25 = vmul.f32 %v21496_v41, %v6014_v53 }
 0x4b6   : > { %v6108_v3 = vmul.f32 %v21492_v61, %v6018_v0  ;;  %v6109_v45 = vmul.f32 %v21493_v46, %v6022_v2  ;;  %v6110_v24 = vmul.f32 %v21494_v56, %v6026_v36  ;;  %v6111_v47 = vmul.f32 %v21495_v51, %v6030_v14 }
 0x4b7   : > { %v6112_v63 = vmul.f32 %v21496_v41, %v6034_v38  ;;  %v6113_v10 = vmul.f32 %v21492_v61, %v6038_v20  ;;  %v6114_v31 = vmul.f32 %v21493_v46, %v6042_v58  ;;  %v6115_v60 = vmul.f32 %v21494_v56, %v6046_v48  ;;  %v21498_v48 = vld [vmem:[#allocation142_spill] sm:$0xff]  ;;  %v21506_v56 = vld [vmem:[#allocation160_spill] sm:$0xff] }
 0x4b8   : > { %v6116_v21 = vmul.f32 %v21495_v51, %v6050_v6  ;;  %v6117_v32 = vmul.f32 %v21496_v41, %v6054_v37  ;;  %v17622_v9 = vadd.f32 %v6098_v34, %v5872_v40  ;;  %v17624_v22 = vadd.f32 %v6099_v7, %v5873_v11  ;;  %v21501_v6 = vld [vmem:[#allocation178_spill] sm:$0xff]  ;;  %v21512_v41 = vld [vmem:[#allocation25_spill] sm:$0xff] }
 0x4b9   : > { %v17626_v53 = vadd.f32 %v6100_v55, %v5874_v28  ;;  %v17628_v0 = vadd.f32 %v6101_v1, %v5875_v50  ;;  %v17630_v2 = vadd.f32 %v6102_v43, %v5876_v12  ;;  %v17632_v36 = vadd.f32 %v6103_v16, %v5877_v17  ;;  %v21505_v61 = vld [vmem:[#allocation150_spill] sm:$0xff]  ;;  %v21507_v43 = vld [vmem:[#allocation104_spill] sm:$0xff] }
 0x4ba   : > { %v17634_v14 = vadd.f32 %v6104_v62, %v5878_v35  ;;  %v17636_v38 = vadd.f32 %v6105_v30, %v5879_v54  ;;  %v17638_v20 = vadd.f32 %v6106_v13, %v5880_v15  ;;  %v17640_v58 = vadd.f32 %v6107_v25, %v5881_v29 }
 0x4bb   : > { %v17642_v40 = vadd.f32 %v6108_v3, %v5882_v26  ;;  %v17644_v11 = vadd.f32 %v6109_v45, %v5883_v39  ;;  %v17646_v28 = vadd.f32 %v6110_v24, %v5884_v59  ;;  %v17648_v50 = vadd.f32 %v6111_v47, %v5885_v57  ;;  %v21497_v26 = vld [vmem:[#allocation177_spill] sm:$0xff]  ;;  %v21499_v57 = vld [vmem:[#allocation176_spill] sm:$0xff] }
 0x4bc   : > { %v17650_v12 = vadd.f32 %v6112_v63, %v5886_v23  ;;  %v17652_v17 = vadd.f32 %v6113_v10, %v5887_v8  ;;  %v17654_v35 = vadd.f32 %v6114_v31, %v5888_v49  ;;  %v17656_v54 = vadd.f32 %v6115_v60, %v5889_v27  ;;  %v21500_v49 = vld [vmem:[#allocation174_spill] sm:$0xff] }
 0x4bd   : > { %v17658_v15 = vadd.f32 %v6116_v21, %v5890_v33  ;;  %v17660_v29 = vadd.f32 %v6117_v32, %v5891_v42  ;;  %v6164_v39 = vcombine.high %v21497_v26, %v21497_v26  ;;  %v6185_v59 = vrot.slane %v21497_v26, %v21498_v48  ;;  %v21502_v33 = vld [vmem:[#allocation179_spill] sm:$0xff] }
 0x4be   : > { %v6410_v23 = vcombine.high %v21499_v57, %v21499_v57  ;;  %v6431_v8 = vrot.slane %v21499_v57, %v21498_v48  ;;  %v6608_v27 = vcombine.high %v21500_v49, %v21500_v49  ;;  %v17674_v37 = vadd.f32 %v21502_v33, %v21501_v6 }
 0x4bf   : > { %v17678_v42 = vrot.slane %v21502_v33, %v21498_v48  ;;  %v6192_v5 = vrot.slane %v6164_v39, %v21498_v48  ;;  %v6193_v34 = vcombine.low %v21505_v61, %v6185_v59  ;;  %v6194_v46 = vcombine.high %v21505_v61, %v6185_v59 }
 0x4c0   : > { %21503 = vst [vmem:[#allocation43_spill] sm:$0xff] %v17674_v37  ;;  %v17684_v7 = vrot.slane %v6410_v23, %v21498_v48  ;;  %v17687_v55 = vcombine.low %v21506_v56, %v6431_v8  ;;  %v17690_v51 = vcombine.high %v21506_v56, %v6431_v8  ;;  %v17693_v1 = vrot.slane %v6608_v27, %v21498_v48  ;;  %v21508_v27 = vld [vmem:[#allocation23_spill] sm:$0xff] }
 0x4c1   : > { %21504 = vst [vmem:[#allocation24_spill] sm:$0xff] %v17678_v42  ;;  %v6195_v16 = vcombine.low %v21507_v43, %v6192_v5  ;;  %v6196_v62 = vcombine.high %v21507_v43, %v6192_v5  ;;  %v6200_v30 = vrot.slane %v6193_v34, %v17113_v19  ;;  %v6204_v13 = vrot.slane %v6193_v34, %v17116_v44  ;;  %v21509_v5 = vld [vmem:[#allocation42_spill] sm:$0xff] }
 0x4c2   : > { %v6208_v25 = vrot.slane %v6193_v34, %v17124_v4  ;;  %v6212_v3 = vrot.slane %v6193_v34, %v17127_v18  ;;  %v6216_v45 = vrot.slane %v6193_v34, %v21486_v52  ;;  %v6240_v24 = vrot.slane %v6194_v46, %v17113_v19  ;;  %v21510_v34 = vld [vmem:[#allocation13_spill] sm:$0xff]  ;;  %v21511_v43 = vld [vmem:[#allocation30_spill] sm:$0xff] }
 0x4c3   : > { %v6220_v47 = vrot.slane %v6195_v16, %v17113_v19  ;;  %v6224_v63 = vrot.slane %v6195_v16, %v17116_v44  ;;  %v6228_v10 = vrot.slane %v6195_v16, %v17124_v4  ;;  %v6232_v31 = vrot.slane %v6195_v16, %v17127_v18 }
 0x4c4   : > { %v6236_v60 = vrot.slane %v6195_v16, %v21486_v52  ;;  %v6244_v21 = vrot.slane %v6194_v46, %v17116_v44  ;;  %v6248_v32 = vrot.slane %v6194_v46, %v17124_v4  ;;  %v6252_v26 = vrot.slane %v6194_v46, %v17127_v18 }
 0x4c5   : > { %v6256_v39 = vrot.slane %v6194_v46, %v21486_v52  ;;  %v6260_v59 = vrot.slane %v6196_v62, %v17113_v19  ;;  %v6264_v57 = vrot.slane %v6196_v62, %v17116_v44  ;;  %v6268_v23 = vrot.slane %v6196_v62, %v17124_v4 }
 0x4c6   : > { %v6272_v8 = vrot.slane %v6196_v62, %v17127_v18  ;;  %v6276_v49 = vrot.slane %v6196_v62, %v21486_v52  ;;  %v6320_v6 = vmul.f32 %v21508_v27, %v6200_v30  ;;  %v6321_v61 = vmul.f32 %v21509_v5, %v6204_v13 }
 0x4c7   : > { %v6322_v56 = vmul.f32 %v21510_v34, %v6208_v25  ;;  %v6323_v16 = vmul.f32 %v21511_v43, %v6212_v3  ;;  %v6324_v46 = vmul.f32 %v21512_v41, %v6216_v45  ;;  %v6325_v37 = vmul.f32 %v21508_v27, %v6220_v47 }
 0x4c8   : > { %v6326_v33 = vmul.f32 %v21509_v5, %v6224_v63  ;;  %v6327_v42 = vmul.f32 %v21510_v34, %v6228_v10  ;;  %v6328_v48 = vmul.f32 %v21511_v43, %v6232_v31  ;;  %v6329_v62 = vmul.f32 %v21512_v41, %v6236_v60 }
 0x4c9   : > { %v6330_v30 = vmul.f32 %v21508_v27, %v6240_v24  ;;  %v6331_v13 = vmul.f32 %v21509_v5, %v6244_v21  ;;  %v6332_v25 = vmul.f32 %v21510_v34, %v6248_v32  ;;  %v6333_v3 = vmul.f32 %v21511_v43, %v6252_v26 }
 0x4ca   : > { %v6334_v45 = vmul.f32 %v21512_v41, %v6256_v39  ;;  %v6335_v47 = vmul.f32 %v21508_v27, %v6260_v59  ;;  %v6336_v63 = vmul.f32 %v21509_v5, %v6264_v57  ;;  %v6337_v10 = vmul.f32 %v21510_v34, %v6268_v23 }
 0x4cb   : > { %v6338_v31 = vmul.f32 %v21511_v43, %v6272_v8  ;;  %v6339_v60 = vmul.f32 %v21512_v41, %v6276_v49  ;;  %v6340_v24 = vadd.f32 %v6320_v6, %v17622_v9  ;;  %v6341_v21 = vadd.f32 %v6321_v61, %v17624_v22  ;;  %v21514_v43 = vld [vmem:[#allocation18_spill] sm:$0xff] }
 0x4cc   : > { %v6342_v32 = vadd.f32 %v6322_v56, %v17626_v53  ;;  %v6343_v26 = vadd.f32 %v6323_v16, %v17628_v0  ;;  %v6344_v39 = vadd.f32 %v6324_v46, %v17630_v2  ;;  %v6345_v59 = vadd.f32 %v6325_v37, %v17632_v36  ;;  %v21515_v46 = vld [vmem:[#allocation20_spill] sm:$0xff] }
 0x4cd   : > { %v6346_v57 = vadd.f32 %v6326_v33, %v17634_v14  ;;  %v6347_v23 = vadd.f32 %v6327_v42, %v17636_v38  ;;  %v6348_v8 = vadd.f32 %v6328_v48, %v17638_v20  ;;  %v6349_v41 = vadd.f32 %v6329_v62, %v17640_v58 }
 0x4ce   : > { %v6350_v9 = vadd.f32 %v6330_v30, %v17642_v40  ;;  %v6351_v22 = vadd.f32 %v6331_v13, %v17644_v11  ;;  %v6352_v53 = vadd.f32 %v6332_v25, %v17646_v28  ;;  %v6353_v0 = vadd.f32 %v6333_v3, %v17648_v50  ;;  %v21513_v40 = vld [vmem:[#allocation152_spill] sm:$0xff]  ;;  %v21516_v30 = vld [vmem:[#allocation15_spill] sm:$0xff]  ;;  %v21517_v25 = vld [vmem:[#allocation10_spill] sm:$0xff] }
 0x4cf   : > { %v6354_v2 = vadd.f32 %v6334_v45, %v17650_v12  ;;  %v6355_v36 = vadd.f32 %v6335_v47, %v17652_v17  ;;  %v6356_v14 = vadd.f32 %v6336_v63, %v17654_v35  ;;  %v6357_v38 = vadd.f32 %v6337_v10, %v17656_v54  ;;  %v21518_v45 = vld [vmem:[#allocation32_spill] sm:$0xff] }
 0x4d0   : > { %v6358_v20 = vadd.f32 %v6338_v31, %v17658_v15  ;;  %v6359_v58 = vadd.f32 %v6339_v60, %v17660_v29  ;;  %v6441_v48 = vcombine.low %v21513_v40, %v17684_v7  ;;  %v6442_v11 = vcombine.high %v21513_v40, %v17684_v7 }
 0x4d1   : > { %v6446_v28 = vrot.slane %v17687_v55, %v17113_v19  ;;  %v6450_v50 = vrot.slane %v17687_v55, %v17116_v44  ;;  %v6454_v12 = vrot.slane %v17687_v55, %v17124_v4  ;;  %v6458_v17 = vrot.slane %v17687_v55, %v17127_v18 }
 0x4d2   : > { %v6462_v35 = vrot.slane %v17687_v55, %v21486_v52  ;;  %v6466_v54 = vrot.slane %v6441_v48, %v17113_v19  ;;  %v6470_v15 = vrot.slane %v6441_v48, %v17116_v44  ;;  %v6474_v29 = vrot.slane %v6441_v48, %v17124_v4 }
 0x4d3   : > { %v6478_v33 = vrot.slane %v6441_v48, %v17127_v18  ;;  %v6482_v37 = vrot.slane %v6441_v48, %v21486_v52  ;;  %v6486_v42 = vrot.slane %v17690_v51, %v17113_v19  ;;  %v6490_v7 = vrot.slane %v17690_v51, %v17116_v44 }
 0x4d4   : > { %v6494_v49 = vrot.slane %v17690_v51, %v17124_v4  ;;  %v6498_v55 = vrot.slane %v17690_v51, %v17127_v18  ;;  %v6502_v27 = vrot.slane %v17690_v51, %v21486_v52  ;;  %v6506_v6 = vrot.slane %v6442_v11, %v17113_v19 }
 0x4d5   : > { %v6510_v5 = vrot.slane %v6442_v11, %v17116_v44  ;;  %v6514_v61 = vrot.slane %v6442_v11, %v17124_v4  ;;  %v6518_v34 = vrot.slane %v6442_v11, %v17127_v18  ;;  %v6522_v56 = vrot.slane %v6442_v11, %v21486_v52 }
 0x4d6   : > { %v6566_v16 = vmul.f32 %v21514_v43, %v6446_v28  ;;  %v6567_v62 = vmul.f32 %v21515_v46, %v6450_v50  ;;  %v6568_v13 = vmul.f32 %v21516_v30, %v6454_v12  ;;  %v6569_v3 = vmul.f32 %v21517_v25, %v6458_v17 }
 0x4d7   : > { %v6570_v51 = vmul.f32 %v21518_v45, %v6462_v35  ;;  %v6571_v47 = vmul.f32 %v21514_v43, %v6466_v54  ;;  %v6572_v63 = vmul.f32 %v21515_v46, %v6470_v15  ;;  %v6573_v10 = vmul.f32 %v21516_v30, %v6474_v29 }
 0x4d8   : > { %v6574_v31 = vmul.f32 %v21517_v25, %v6478_v33  ;;  %v6575_v60 = vmul.f32 %v21518_v45, %v6482_v37  ;;  %v6576_v40 = vmul.f32 %v21514_v43, %v6486_v42  ;;  %v6577_v48 = vmul.f32 %v21515_v46, %v6490_v7 }
 0x4d9   : > { %v6578_v11 = vmul.f32 %v21516_v30, %v6494_v49  ;;  %v6579_v28 = vmul.f32 %v21517_v25, %v6498_v55  ;;  %v6580_v50 = vmul.f32 %v21518_v45, %v6502_v27  ;;  %v6581_v12 = vmul.f32 %v21514_v43, %v6506_v6 }
 0x4da   : > { %v6582_v17 = vmul.f32 %v21515_v46, %v6510_v5  ;;  %v6583_v35 = vmul.f32 %v21516_v30, %v6514_v61  ;;  %v6584_v54 = vmul.f32 %v21517_v25, %v6518_v34  ;;  %v6585_v15 = vmul.f32 %v21518_v45, %v6522_v56  ;;  %v21523_v61 = vld [vmem:[#allocation43_spill] sm:$0xff]  ;;  %v21528_v30 = vld [vmem:[#allocation105_spill] sm:$0xff] }
 0x4db   : > { %v17813_v29 = vadd.f32 %v6566_v16, %v6340_v24  ;;  %v17815_v33 = vadd.f32 %v6567_v62, %v6341_v21  ;;  %v17817_v37 = vadd.f32 %v6568_v13, %v6342_v32  ;;  %v17819_v42 = vadd.f32 %v6569_v3, %v6343_v26  ;;  %v21527_v16 = vld [vmem:[#allocation143_spill] sm:$0xff]  ;;  %v21529_v3 = vld [vmem:[#allocation145_spill] sm:$0xff] }
 0x4dc   : > { %v17821_v7 = vadd.f32 %v6570_v51, %v6344_v39  ;;  %v17823_v49 = vadd.f32 %v6571_v47, %v6345_v59  ;;  %v17825_v55 = vadd.f32 %v6572_v63, %v6346_v57  ;;  %v17827_v27 = vadd.f32 %v6573_v10, %v6347_v23  ;;  %v21531_v63 = vld [vmem:[#allocation153_spill] sm:$0xff] }
 0x4dd   : > { %v17829_v6 = vadd.f32 %v6574_v31, %v6348_v8  ;;  %v17831_v5 = vadd.f32 %v6575_v60, %v6349_v41  ;;  %v17833_v24 = vadd.f32 %v6576_v40, %v6350_v9  ;;  %v17835_v21 = vadd.f32 %v6577_v48, %v6351_v22  ;;  %v21519_v22 = vld [vmem:[#allocation142_spill] sm:$0xff] }
 0x4de   : > { %v17837_v32 = vadd.f32 %v6578_v11, %v6352_v53  ;;  %v17839_v26 = vadd.f32 %v6579_v28, %v6353_v0  ;;  %v17841_v39 = vadd.f32 %v6580_v50, %v6354_v2  ;;  %v17843_v59 = vadd.f32 %v6581_v12, %v6355_v36  ;;  %v21520_v0 = vld [vmem:[#allocation24_spill] sm:$0xff] }
 0x4df   : > { %v17845_v57 = vadd.f32 %v6582_v17, %v6356_v14  ;;  %v17847_v23 = vadd.f32 %v6583_v35, %v6357_v38  ;;  %v17849_v8 = vadd.f32 %v6584_v54, %v6358_v20  ;;  %v17851_v41 = vadd.f32 %v6585_v15, %v6359_v58  ;;  %v21522_v38 = vld [vmem:[#allocation179_spill] sm:$0xff] }
 0x4e0   : > { %v6632_v9 = vcombine.high %v17693_v1, %v17693_v1  ;;  %v6653_v53 = vrot.slane %v17693_v1, %v21519_v22  ;;  %v6899_v2 = vrot.slane %v21520_v0, %v21519_v22  ;;  %v21521_v36 = vcombine.high %v21520_v0, %v21520_v0  ;;  %v21524_v58 = vld [vmem:[#allocation47_spill] sm:$0xff] }
 0x4e1   : > { %v7076_v20 = vcombine.high %v21522_v38, %v21522_v38  ;;  %v17867_v34 = vadd.f32 %v21524_v58, %v21523_v61  ;;  %v17871_v56 = vrot.slane %v21524_v58, %v21519_v22 }
 0x4e2   : > { %v6906_v14 = vrot.slane %v21521_v36, %v21519_v22  ;;  %v6660_v43 = vrot.slane %v6632_v9, %v21519_v22  ;;  %v6661_v46 = vcombine.low %v21527_v16, %v6653_v53  ;;  %v6662_v62 = vcombine.high %v21527_v16, %v6653_v53 }
 0x4e3   : > { %21525 = vst [vmem:[#allocation39_spill] sm:$0xff] %v17867_v34  ;;  %21526 = vst [vmem:[#allocation144_spill] sm:$0xff] %v17871_v56  ;;  %v17879_v13 = vcombine.low %v21528_v30, %v6899_v2  ;;  %v17882_v25 = vcombine.high %v21528_v30, %v6899_v2  ;;  %v17891_v47 = vrot.slane %v7076_v20, %v21519_v22  ;;  %v21536_v34 = vld [vmem:[#allocation38_spill] sm:$0xff] }
 0x4e4   : > { %v17885_v45 = vcombine.low %v21529_v3, %v6906_v14  ;;  %v17888_v51 = vcombine.high %v21529_v3, %v6906_v14  ;;  %v6663_v10 = vcombine.low %v21531_v63, %v6660_v43  ;;  %v6664_v31 = vcombine.high %v21531_v63, %v6660_v43  ;;  %v21532_v43 = vld [vmem:[#allocation96_spill] sm:$0xff]  ;;  %v21534_v3 = vld [vmem:[#allocation22_spill] sm:$0xff] }
 0x4e5   : > { %21530 = vst [vmem:[#allocation114_spill] sm:$0xff] %v17891_v47  ;;  %v6668_v60 = vrot.slane %v6661_v46, %v17113_v19  ;;  %v6672_v40 = vrot.slane %v6661_v46, %v17116_v44  ;;  %v6676_v48 = vrot.slane %v6661_v46, %v17124_v4  ;;  %v6680_v11 = vrot.slane %v6661_v46, %v17127_v18 }
 0x4e6   : > { %v6684_v28 = vrot.slane %v6661_v46, %v21486_v52  ;;  %v6708_v50 = vrot.slane %v6662_v62, %v17113_v19  ;;  %v6688_v12 = vrot.slane %v6663_v10, %v17113_v19  ;;  %v6692_v17 = vrot.slane %v6663_v10, %v17116_v44  ;;  %v21533_v46 = vld [vmem:[#allocation130_spill] sm:$0xff] }
 0x4e7   : > { %v6696_v35 = vrot.slane %v6663_v10, %v17124_v4  ;;  %v6700_v54 = vrot.slane %v6663_v10, %v17127_v18  ;;  %v6704_v15 = vrot.slane %v6663_v10, %v21486_v52  ;;  %v6712_v9 = vrot.slane %v6662_v62, %v17116_v44  ;;  %v21535_v10 = vld [vmem:[#allocation44_spill] sm:$0xff] }
 0x4e8   : > { %v6716_v53 = vrot.slane %v6662_v62, %v17124_v4  ;;  %v6720_v0 = vrot.slane %v6662_v62, %v17127_v18  ;;  %v6724_v2 = vrot.slane %v6662_v62, %v21486_v52  ;;  %v6728_v36 = vrot.slane %v6664_v31, %v17113_v19 }
 0x4e9   : > { %v6732_v14 = vrot.slane %v6664_v31, %v17116_v44  ;;  %v6736_v38 = vrot.slane %v6664_v31, %v17124_v4  ;;  %v6740_v20 = vrot.slane %v6664_v31, %v17127_v18  ;;  %v6744_v61 = vrot.slane %v6664_v31, %v21486_v52 }
 0x4ea   : > { %v6788_v16 = vmul.f32 %v21532_v43, %v6668_v60  ;;  %v6789_v30 = vmul.f32 %v21533_v46, %v6672_v40  ;;  %v6790_v63 = vmul.f32 %v21534_v3, %v6676_v48  ;;  %v6791_v1 = vmul.f32 %v21535_v10, %v6680_v11 }
 0x4eb   : > { %v6792_v62 = vmul.f32 %v21536_v34, %v6684_v28  ;;  %v6793_v58 = vmul.f32 %v21532_v43, %v6688_v12  ;;  %v6794_v56 = vmul.f32 %v21533_v46, %v6692_v17  ;;  %v6795_v22 = vmul.f32 %v21534_v3, %v6696_v35 }
 0x4ec   : > { %v6796_v47 = vmul.f32 %v21535_v10, %v6700_v54  ;;  %v6797_v31 = vmul.f32 %v21536_v34, %v6704_v15  ;;  %v6798_v60 = vmul.f32 %v21532_v43, %v6708_v50  ;;  %v6799_v40 = vmul.f32 %v21533_v46, %v6712_v9 }
 0x4ed   : > { %v6800_v48 = vmul.f32 %v21534_v3, %v6716_v53  ;;  %v6801_v11 = vmul.f32 %v21535_v10, %v6720_v0  ;;  %v6802_v28 = vmul.f32 %v21536_v34, %v6724_v2  ;;  %v6803_v12 = vmul.f32 %v21532_v43, %v6728_v36 }
 0x4ee   : > { %v6804_v17 = vmul.f32 %v21533_v46, %v6732_v14  ;;  %v6805_v35 = vmul.f32 %v21534_v3, %v6736_v38  ;;  %v6806_v54 = vmul.f32 %v21535_v10, %v6740_v20  ;;  %v6807_v15 = vmul.f32 %v21536_v34, %v6744_v61  ;;  %v21537_v46 = vld [vmem:[#allocation12_spill] sm:$0xff]  ;;  %v21538_v3 = vld [vmem:[#allocation27_spill] sm:$0xff] }
 0x4ef   : > { %v6808_v50 = vadd.f32 %v6788_v16, %v17813_v29  ;;  %v6809_v9 = vadd.f32 %v6789_v30, %v17815_v33  ;;  %v6810_v53 = vadd.f32 %v6790_v63, %v17817_v37  ;;  %v6811_v0 = vadd.f32 %v6791_v1, %v17819_v42 }
 0x4f0   : > { %v6812_v2 = vadd.f32 %v6792_v62, %v17821_v7  ;;  %v6813_v36 = vadd.f32 %v6793_v58, %v17823_v49  ;;  %v6814_v14 = vadd.f32 %v6794_v56, %v17825_v55  ;;  %v6815_v38 = vadd.f32 %v6795_v22, %v17827_v27  ;;  %v21540_v62 = vld [vmem:[#allocation49_spill] sm:$0xff] }
 0x4f1   : > { %v6816_v20 = vadd.f32 %v6796_v47, %v17829_v6  ;;  %v6817_v34 = vadd.f32 %v6797_v31, %v17831_v5  ;;  %v6818_v29 = vadd.f32 %v6798_v60, %v17833_v24  ;;  %v6819_v33 = vadd.f32 %v6799_v40, %v17835_v21  ;;  %v21541_v60 = vld [vmem:[#allocation17_spill] sm:$0xff] }
 0x4f2   : > { %v6820_v37 = vadd.f32 %v6800_v48, %v17837_v32  ;;  %v6821_v42 = vadd.f32 %v6801_v11, %v17839_v26  ;;  %v6822_v7 = vadd.f32 %v6802_v28, %v17841_v39  ;;  %v6823_v49 = vadd.f32 %v6803_v12, %v17843_v59 }
 0x4f3   : > { %v6824_v55 = vadd.f32 %v6804_v17, %v17845_v57  ;;  %v6825_v27 = vadd.f32 %v6805_v35, %v17847_v23  ;;  %v6826_v6 = vadd.f32 %v6806_v54, %v17849_v8  ;;  %v6827_v5 = vadd.f32 %v6807_v15, %v17851_v41 }
 0x4f4   : > { %v6914_v24 = vrot.slane %v17879_v13, %v17113_v19  ;;  %v6918_v21 = vrot.slane %v17879_v13, %v17116_v44  ;;  %v6922_v32 = vrot.slane %v17879_v13, %v17124_v4  ;;  %v6926_v26 = vrot.slane %v17879_v13, %v17127_v18 }
 0x4f5   : > { %v6930_v39 = vrot.slane %v17879_v13, %v21486_v52  ;;  %v6934_v59 = vrot.slane %v17885_v45, %v17113_v19  ;;  %v6938_v57 = vrot.slane %v17885_v45, %v17116_v44  ;;  %v6942_v23 = vrot.slane %v17885_v45, %v17124_v4 }
 0x4f6   : > { %v6946_v8 = vrot.slane %v17885_v45, %v17127_v18  ;;  %v6950_v41 = vrot.slane %v17885_v45, %v21486_v52  ;;  %v6954_v22 = vrot.slane %v17882_v25, %v17113_v19  ;;  %v6958_v58 = vrot.slane %v17882_v25, %v17116_v44 }
 0x4f7   : > { %v6962_v56 = vrot.slane %v17882_v25, %v17124_v4  ;;  %v6966_v1 = vrot.slane %v17882_v25, %v17127_v18  ;;  %v6970_v13 = vrot.slane %v17882_v25, %v21486_v52  ;;  %v6974_v47 = vrot.slane %v17888_v51, %v17113_v19  ;;  %v21539_v25 = vld [vmem:[#allocation46_spill] sm:$0xff] }
 0x4f8   : > { %v6978_v45 = vrot.slane %v17888_v51, %v17116_v44  ;;  %v6982_v61 = vrot.slane %v17888_v51, %v17124_v4  ;;  %v6986_v43 = vrot.slane %v17888_v51, %v17127_v18  ;;  %v6990_v16 = vrot.slane %v17888_v51, %v21486_v52 }
 0x4f9   : > { %v7034_v30 = vmul.f32 %v21537_v46, %v6914_v24  ;;  %v7035_v63 = vmul.f32 %v21538_v3, %v6918_v21  ;;  %v7036_v10 = vmul.f32 %v21539_v25, %v6922_v32  ;;  %v7037_v31 = vmul.f32 %v21540_v62, %v6926_v26 }
 0x4fa   : > { %v7038_v40 = vmul.f32 %v21541_v60, %v6930_v39  ;;  %v7039_v48 = vmul.f32 %v21537_v46, %v6934_v59  ;;  %v7040_v11 = vmul.f32 %v21538_v3, %v6938_v57  ;;  %v7041_v28 = vmul.f32 %v21539_v25, %v6942_v23 }
 0x4fb   : > { %v7042_v12 = vmul.f32 %v21540_v62, %v6946_v8  ;;  %v7043_v51 = vmul.f32 %v21541_v60, %v6950_v41  ;;  %v7044_v17 = vmul.f32 %v21537_v46, %v6954_v22  ;;  %v7045_v35 = vmul.f32 %v21538_v3, %v6958_v58 }
 0x4fc   : > { %v7046_v54 = vmul.f32 %v21539_v25, %v6962_v56  ;;  %v7047_v15 = vmul.f32 %v21540_v62, %v6966_v1  ;;  %v7048_v24 = vmul.f32 %v21541_v60, %v6970_v13  ;;  %v7049_v21 = vmul.f32 %v21537_v46, %v6974_v47  ;;  %v21550_v46 = vld [vmem:[#allocation157_spill] sm:$0xff] }
 0x4fd   : > { %v7050_v32 = vmul.f32 %v21538_v3, %v6978_v45  ;;  %v7051_v26 = vmul.f32 %v21539_v25, %v6982_v61  ;;  %v7052_v39 = vmul.f32 %v21540_v62, %v6986_v43  ;;  %v7053_v59 = vmul.f32 %v21541_v60, %v6990_v16  ;;  %v21543_v45 = vld [vmem:[#allocation142_spill] sm:$0xff]  ;;  %v21552_v62 = vld [vmem:[#allocation163_spill] sm:$0xff]  ;;  %v21557_v25 = vld [vmem:[#allocation53_spill] sm:$0xff] }
 0x4fe   : > { %v18015_v57 = vadd.f32 %v7034_v30, %v6808_v50  ;;  %v18017_v23 = vadd.f32 %v7035_v63, %v6809_v9  ;;  %v18019_v8 = vadd.f32 %v7036_v10, %v6810_v53  ;;  %v18021_v41 = vadd.f32 %v7037_v31, %v6811_v0 }
 0x4ff   : > { %v18023_v22 = vadd.f32 %v7038_v40, %v6812_v2  ;;  %v18025_v58 = vadd.f32 %v7039_v48, %v6813_v36  ;;  %v18027_v56 = vadd.f32 %v7040_v11, %v6814_v14  ;;  %v18029_v1 = vadd.f32 %v7041_v28, %v6815_v38  ;;  %v21553_v48 = vld [vmem:[#allocation146_spill] sm:$0xff]  ;;  %v21558_v40 = vld [vmem:[#allocation55_spill] sm:$0xff] }
 0x500   : > { %v18031_v13 = vadd.f32 %v7042_v12, %v6816_v20  ;;  %v18033_v47 = vadd.f32 %v7043_v51, %v6817_v34  ;;  %v18035_v50 = vadd.f32 %v7044_v17, %v6818_v29  ;;  %v18037_v9 = vadd.f32 %v7045_v35, %v6819_v33  ;;  %v21542_v29 = vld [vmem:[#allocation114_spill] sm:$0xff] }
 0x501   : > { %v18039_v53 = vadd.f32 %v7046_v54, %v6820_v37  ;;  %v18041_v0 = vadd.f32 %v7047_v15, %v6821_v42  ;;  %v18043_v2 = vadd.f32 %v7048_v24, %v6822_v7  ;;  %v18045_v36 = vadd.f32 %v7049_v21, %v6823_v49  ;;  %v21544_v42 = vld [vmem:[#allocation144_spill] sm:$0xff] }
 0x502   : > { %v18047_v14 = vadd.f32 %v7050_v32, %v6824_v55  ;;  %v18049_v38 = vadd.f32 %v7051_v26, %v6825_v27  ;;  %v18051_v20 = vadd.f32 %v7052_v39, %v6826_v6  ;;  %v18053_v34 = vadd.f32 %v7053_v59, %v6827_v5  ;;  %v21545_v55 = vld [vmem:[#allocation47_spill] sm:$0xff] }
 0x503   : > { %v7100_v33 = vcombine.high %v21542_v29, %v21542_v29  ;;  %v7121_v37 = vrot.slane %v21542_v29, %v21543_v45  ;;  %v7346_v7 = vcombine.high %v21544_v42, %v21544_v42  ;;  %v7367_v49 = vrot.slane %v21544_v42, %v21543_v45 }
 0x504   : > { %v21546_v27 = vcombine.high %v21545_v55, %v21545_v55 }
 0x505   : > { %v7128_v16 = vrot.slane %v7100_v33, %v21543_v45  ;;  %v7129_v30 = vcombine.low %v21550_v46, %v7121_v37  ;;  %v7130_v3 = vcombine.high %v21550_v46, %v7121_v37  ;;  %v18077_v10 = vrot.slane %v7346_v7, %v21543_v45 }
 0x506   : > { %v18067_v6 = vrot.slane %v21546_v27, %v21543_v45  ;;  %v18080_v31 = vcombine.low %v21552_v62, %v7367_v49  ;;  %v18083_v60 = vcombine.high %v21552_v62, %v7367_v49 }
 0x507   : > { %v7131_v11 = vcombine.low %v21553_v48, %v7128_v16  ;;  %v7132_v28 = vcombine.high %v21553_v48, %v7128_v16  ;;  %v7136_v12 = vrot.slane %v7129_v30, %v17113_v19  ;;  %v7140_v51 = vrot.slane %v7129_v30, %v17116_v44  ;;  %v21554_v16 = vld [vmem:[#allocation48_spill] sm:$0xff]  ;;  %v21556_v48 = vld [vmem:[#allocation50_spill] sm:$0xff] }
 0x508   : > { %21547 = vst [vmem:[#allocation93_spill] sm:$0xff] %v18067_v6  ;;  %v7144_v17 = vrot.slane %v7129_v30, %v17124_v4  ;;  %v7148_v35 = vrot.slane %v7129_v30, %v17127_v18  ;;  %v7152_v54 = vrot.slane %v7129_v30, %v21486_v52  ;;  %v7176_v15 = vrot.slane %v7130_v3, %v17113_v19  ;;  %v21555_v30 = vld [vmem:[#allocation51_spill] sm:$0xff] }
 0x509   : > { %v7156_v24 = vrot.slane %v7131_v11, %v17113_v19  ;;  %v7160_v21 = vrot.slane %v7131_v11, %v17116_v44  ;;  %v7164_v32 = vrot.slane %v7131_v11, %v17124_v4  ;;  %v7168_v26 = vrot.slane %v7131_v11, %v17127_v18 }
 0x50a   : > { %v7172_v39 = vrot.slane %v7131_v11, %v21486_v52  ;;  %v7180_v59 = vrot.slane %v7130_v3, %v17116_v44  ;;  %v7184_v29 = vrot.slane %v7130_v3, %v17124_v4  ;;  %v7188_v33 = vrot.slane %v7130_v3, %v17127_v18 }
 0x50b   : > { %v7192_v37 = vrot.slane %v7130_v3, %v21486_v52  ;;  %v7196_v42 = vrot.slane %v7132_v28, %v17113_v19  ;;  %v7200_v7 = vrot.slane %v7132_v28, %v17116_v44  ;;  %v7204_v49 = vrot.slane %v7132_v28, %v17124_v4 }
 0x50c   : > { %v7208_v55 = vrot.slane %v7132_v28, %v17127_v18  ;;  %v7212_v27 = vrot.slane %v7132_v28, %v21486_v52  ;;  %v7256_v46 = vmul.f32 %v21554_v16, %v7136_v12  ;;  %v7257_v62 = vmul.f32 %v21555_v30, %v7140_v51 }
 0x50d   : > { %v7258_v11 = vmul.f32 %v21556_v48, %v7144_v17  ;;  %v7259_v43 = vmul.f32 %v21557_v25, %v7148_v35  ;;  %v7260_v3 = vmul.f32 %v21558_v40, %v7152_v54  ;;  %v7261_v63 = vmul.f32 %v21554_v16, %v7156_v24 }
 0x50e   : > { %v7262_v5 = vmul.f32 %v21555_v30, %v7160_v21  ;;  %v7263_v61 = vmul.f32 %v21556_v48, %v7164_v32  ;;  %v7264_v6 = vmul.f32 %v21557_v25, %v7168_v26  ;;  %v7265_v28 = vmul.f32 %v21558_v40, %v7172_v39 }
 0x50f   : > { %v7266_v12 = vmul.f32 %v21554_v16, %v7176_v15  ;;  %v7267_v51 = vmul.f32 %v21555_v30, %v7180_v59  ;;  %v7268_v17 = vmul.f32 %v21556_v48, %v7184_v29  ;;  %v7269_v35 = vmul.f32 %v21557_v25, %v7188_v33 }
 0x510   : > { %v7270_v54 = vmul.f32 %v21558_v40, %v7192_v37  ;;  %v7271_v24 = vmul.f32 %v21554_v16, %v7196_v42  ;;  %v7272_v21 = vmul.f32 %v21555_v30, %v7200_v7  ;;  %v7273_v32 = vmul.f32 %v21556_v48, %v7204_v49  ;;  %v21560_v48 = vld [vmem:[#allocation52_spill] sm:$0xff] }
 0x511   : > { %v7274_v26 = vmul.f32 %v21557_v25, %v7208_v55  ;;  %v7275_v39 = vmul.f32 %v21558_v40, %v7212_v27  ;;  %v7276_v15 = vadd.f32 %v7256_v46, %v18015_v57  ;;  %v7277_v59 = vadd.f32 %v7257_v62, %v18017_v23 }
 0x512   : > { %v7278_v29 = vadd.f32 %v7258_v11, %v18019_v8  ;;  %v7279_v33 = vadd.f32 %v7259_v43, %v18021_v41  ;;  %v7280_v37 = vadd.f32 %v7260_v3, %v18023_v22  ;;  %v7281_v42 = vadd.f32 %v7261_v63, %v18025_v58  ;;  %v21561_v3 = vld [vmem:[#allocation54_spill] sm:$0xff] }
 0x513   : > { %v7282_v7 = vadd.f32 %v7262_v5, %v18027_v56  ;;  %v7283_v49 = vadd.f32 %v7263_v61, %v18029_v1  ;;  %v7284_v25 = vadd.f32 %v7264_v6, %v18031_v13  ;;  %v7285_v40 = vadd.f32 %v7265_v28, %v18033_v47 }
 0x514   : > { %v7286_v57 = vadd.f32 %v7266_v12, %v18035_v50  ;;  %v7287_v23 = vadd.f32 %v7267_v51, %v18037_v9  ;;  %v7288_v8 = vadd.f32 %v7268_v17, %v18039_v53  ;;  %v7289_v41 = vadd.f32 %v7269_v35, %v18041_v0  ;;  %v21559_v50 = vld [vmem:[#allocation158_spill] sm:$0xff]  ;;  %v21562_v12 = vld [vmem:[#allocation57_spill] sm:$0xff]  ;;  %v21563_v17 = vld [vmem:[#allocation56_spill] sm:$0xff] }
 0x515   : > { %v7290_v22 = vadd.f32 %v7270_v54, %v18043_v2  ;;  %v7291_v58 = vadd.f32 %v7271_v24, %v18045_v36  ;;  %v7292_v56 = vadd.f32 %v7272_v21, %v18047_v14  ;;  %v7293_v1 = vadd.f32 %v7273_v32, %v18049_v38  ;;  %v21564_v54 = vld [vmem:[#allocation61_spill] sm:$0xff] }
 0x516   : > { %v7294_v13 = vadd.f32 %v7274_v26, %v18051_v20  ;;  %v7295_v47 = vadd.f32 %v7275_v39, %v18053_v34  ;;  %v7377_v6 = vcombine.low %v21559_v50, %v18077_v10  ;;  %v7378_v9 = vcombine.high %v21559_v50, %v18077_v10 }
 0x517   : > { %v7382_v53 = vrot.slane %v18080_v31, %v17113_v19  ;;  %v7386_v0 = vrot.slane %v18080_v31, %v17116_v44  ;;  %v7390_v2 = vrot.slane %v18080_v31, %v17124_v4  ;;  %v7394_v36 = vrot.slane %v18080_v31, %v17127_v18 }
 0x518   : > { %v7398_v14 = vrot.slane %v18080_v31, %v21486_v52  ;;  %v7402_v38 = vrot.slane %v7377_v6, %v17113_v19  ;;  %v7406_v20 = vrot.slane %v7377_v6, %v17116_v44  ;;  %v7410_v34 = vrot.slane %v7377_v6, %v17124_v4 }
 0x519   : > { %v7414_v5 = vrot.slane %v7377_v6, %v17127_v18  ;;  %v7418_v61 = vrot.slane %v7377_v6, %v21486_v52  ;;  %v7422_v43 = vrot.slane %v18083_v60, %v17113_v19  ;;  %v7426_v63 = vrot.slane %v18083_v60, %v17116_v44 }
 0x51a   : > { %v7430_v10 = vrot.slane %v18083_v60, %v17124_v4  ;;  %v7434_v31 = vrot.slane %v18083_v60, %v17127_v18  ;;  %v7438_v55 = vrot.slane %v18083_v60, %v21486_v52  ;;  %v7442_v27 = vrot.slane %v7378_v9, %v17113_v19 }
 0x51b   : > { %v7446_v16 = vrot.slane %v7378_v9, %v17116_v44  ;;  %v7450_v46 = vrot.slane %v7378_v9, %v17124_v4  ;;  %v7454_v30 = vrot.slane %v7378_v9, %v17127_v18  ;;  %v7458_v62 = vrot.slane %v7378_v9, %v21486_v52 }
 0x51c   : > { %v7502_v11 = vmul.f32 %v21560_v48, %v7382_v53  ;;  %v7503_v28 = vmul.f32 %v21561_v3, %v7386_v0  ;;  %v7504_v51 = vmul.f32 %v21562_v12, %v7390_v2  ;;  %v7505_v35 = vmul.f32 %v21563_v17, %v7394_v36 }
 0x51d   : > { %v7506_v60 = vmul.f32 %v21564_v54, %v7398_v14  ;;  %v7507_v24 = vmul.f32 %v21560_v48, %v7402_v38  ;;  %v7508_v21 = vmul.f32 %v21561_v3, %v7406_v20  ;;  %v7509_v32 = vmul.f32 %v21562_v12, %v7410_v34 }
 0x51e   : > { %v7510_v26 = vmul.f32 %v21563_v17, %v7414_v5  ;;  %v7511_v39 = vmul.f32 %v21564_v54, %v7418_v61  ;;  %v7512_v50 = vmul.f32 %v21560_v48, %v7422_v43  ;;  %v7513_v6 = vmul.f32 %v21561_v3, %v7426_v63 }
 0x51f   : > { %v7514_v9 = vmul.f32 %v21562_v12, %v7430_v10  ;;  %v7515_v53 = vmul.f32 %v21563_v17, %v7434_v31  ;;  %v7516_v0 = vmul.f32 %v21564_v54, %v7438_v55  ;;  %v7517_v2 = vmul.f32 %v21560_v48, %v7442_v27 }
 0x520   : > { %v7518_v36 = vmul.f32 %v21561_v3, %v7446_v16  ;;  %v7519_v14 = vmul.f32 %v21562_v12, %v7450_v46  ;;  %v7520_v38 = vmul.f32 %v21563_v17, %v7454_v30  ;;  %v7521_v20 = vmul.f32 %v21564_v54, %v7458_v62  ;;  %v21568_v46 = vld [vmem:[#allocation59_spill] sm:$0xff]  ;;  %v21575_v12 = vld [vmem:[#allocation161_spill] sm:$0xff] }
 0x521   : > { %v18203_v34 = vadd.f32 %v7502_v11, %v7276_v15  ;;  %v18205_v5 = vadd.f32 %v7503_v28, %v7277_v59  ;;  %v18207_v61 = vadd.f32 %v7504_v51, %v7278_v29  ;;  %v18209_v43 = vadd.f32 %v7505_v35, %v7279_v33  ;;  %v21574_v3 = vld [vmem:[#allocation11_spill] sm:$0xff]  ;;  %v21577_v35 = vld [vmem:[#allocation162_spill] sm:$0xff]  ;;  %v21585_v17 = vld [vmem:[#allocation73_spill] sm:$0xff] }
 0x522   : > { %v18211_v63 = vadd.f32 %v7506_v60, %v7280_v37  ;;  %v18213_v10 = vadd.f32 %v7507_v24, %v7281_v42  ;;  %v18215_v31 = vadd.f32 %v7508_v21, %v7282_v7  ;;  %v18217_v55 = vadd.f32 %v7509_v32, %v7283_v49  ;;  %v21576_v51 = vld [vmem:[#allocation147_spill] sm:$0xff]  ;;  %v21578_v24 = vld [vmem:[#allocation164_spill] sm:$0xff] }
 0x523   : > { %v18219_v27 = vadd.f32 %v7510_v26, %v7284_v25  ;;  %v18221_v16 = vadd.f32 %v7511_v39, %v7285_v40  ;;  %v18223_v15 = vadd.f32 %v7512_v50, %v7286_v57  ;;  %v18225_v59 = vadd.f32 %v7513_v6, %v7287_v23  ;;  %v21565_v57 = vld [vmem:[#allocation93_spill] sm:$0xff] }
 0x524   : > { %v18227_v29 = vadd.f32 %v7514_v9, %v7288_v8  ;;  %v18229_v33 = vadd.f32 %v7515_v53, %v7289_v41  ;;  %v18231_v37 = vadd.f32 %v7516_v0, %v7290_v22  ;;  %v18233_v42 = vadd.f32 %v7517_v2, %v7291_v58  ;;  %v21567_v22 = vld [vmem:[#allocation21_spill] sm:$0xff] }
 0x525   : > { %v18235_v7 = vadd.f32 %v7518_v36, %v7292_v56  ;;  %v18237_v49 = vadd.f32 %v7519_v14, %v7293_v1  ;;  %v18239_v25 = vadd.f32 %v7520_v38, %v7294_v13  ;;  %v18241_v40 = vadd.f32 %v7521_v20, %v7295_v47  ;;  %v21570_v56 = vld [vmem:[#allocation140_spill] sm:$0xff]  ;;  %v21572_v13 = vld [vmem:[#allocation175_spill] sm:$0xff]  ;;  %v21573_v47 = vld [vmem:[#allocation165_spill] sm:$0xff] }
 0x526   : > { %v7589_v23 = vrot.slane %v21565_v57, %v21543_v45  ;;  %v21566_v8 = vcombine.high %v21565_v57, %v21565_v57  ;;  %v21569_v58 = vsub.f32 %v21567_v22, %v21568_v46  ;;  %v21571_v1 = vsub.f32 %v21570_v56, %v21568_v46 }
 0x527   : > { %v8502_v48 = vcombine.low %v21573_v47, %v21572_v13  ;;  %v8503_v11 = vcombine.high %v21573_v47, %v21572_v13  ;;  %v8704_v28 = vsub.f32 %v21574_v3, %v21568_v46  ;;  %v21582_v3 = vld [vmem:[#allocation71_spill] sm:$0xff] }
 0x528   : > { %v7596_v41 = vrot.slane %v21566_v8, %v21543_v45  ;;  %v7777_v30 = vmul.f32 1.442695, %v21569_v58  ;;  %v18255_v62 = vmul.f32 1.442695, %v21571_v1  ;;  %v7597_v54 = vcombine.low %v21577_v35, %v7589_v23 }
 0x529   : > { %v7598_v60 = vcombine.high %v21577_v35, %v7589_v23  ;;  %v18270_v26 = vrot.slane %v8502_v48, %v21543_v45  ;;  %v18273_v39 = vrot.slane %v8503_v11, %v21543_v45  ;;  %v18275_v50 = vmul.f32 1.442695, %v8704_v28  ;;  %v21581_v48 = vld [vmem:[#allocation28_spill] sm:$0xff] }
 0x52a   : > { %v7599_v21 = vcombine.low %v21578_v24, %v7596_v41  ;;  %v7600_v32 = vcombine.high %v21578_v24, %v7596_v41  ;;  %12482 = vpow2.f32 %v7777_v30  ;;  %v7604_v6 = vrot.slane %v7597_v54, %v17113_v19  ;;  %v21583_v35 = vld [vmem:[#allocation36_spill] sm:$0xff] }
 0x52b   : > { %21579 = vst [vmem:[#allocation177_spill] sm:$0xff] %v18270_v26  ;;  %21580 = vst [vmem:[#allocation176_spill] sm:$0xff] %v18273_v39  ;;  %v7608_v9 = vrot.slane %v7597_v54, %v17116_v44  ;;  %v7612_v53 = vrot.slane %v7597_v54, %v17124_v4  ;;  %v7616_v0 = vrot.slane %v7597_v54, %v17127_v18  ;;  %v21584_v24 = vld [vmem:[#allocation72_spill] sm:$0xff]  ;;  %12484 = vpow2.f32 %v18255_v62  ;;  %v21604_v62 = vld [vmem:[#allocation77_spill] sm:$0xff] }
 0x52c   : > { %v7620_v2 = vrot.slane %v7597_v54, %v21486_v52  ;;  %v7624_v36 = vrot.slane %v7599_v21, %v17113_v19  ;;  %v7628_v14 = vrot.slane %v7599_v21, %v17116_v44  ;;  %v7632_v38 = vrot.slane %v7599_v21, %v17124_v4 }
 0x52d   : > { %v7636_v20 = vrot.slane %v7599_v21, %v17127_v18  ;;  %v7640_v57 = vrot.slane %v7599_v21, %v21486_v52  ;;  %v7644_v23 = vrot.slane %v7598_v60, %v17113_v19  ;;  %v7648_v8 = vrot.slane %v7598_v60, %v17116_v44 }
 0x52e   : > { %v7652_v41 = vrot.slane %v7598_v60, %v17124_v4  ;;  %v7656_v22 = vrot.slane %v7598_v60, %v17127_v18  ;;  %v7660_v58 = vrot.slane %v7598_v60, %v21486_v52  ;;  %v7664_v30 = vrot.slane %v7600_v32, %v17113_v19 }
 0x52f   : > { %v7668_v56 = vrot.slane %v7600_v32, %v17116_v44  ;;  %v7672_v1 = vrot.slane %v7600_v32, %v17124_v4  ;;  %v7676_v13 = vrot.slane %v7600_v32, %v17127_v18  ;;  %v7680_v47 = vrot.slane %v7600_v32, %v21486_v52 }
 0x530   : > { %v7724_v11 = vmul.f32 %v21581_v48, %v7604_v6  ;;  %v7725_v28 = vmul.f32 %v21582_v3, %v7608_v9  ;;  %v7726_v54 = vmul.f32 %v21583_v35, %v7612_v53  ;;  %v7727_v21 = vmul.f32 %v21584_v24, %v7616_v0 }
 0x531   : > { %v7728_v60 = vmul.f32 %v21585_v17, %v7620_v2  ;;  %v7729_v39 = vmul.f32 %v21581_v48, %v7624_v36  ;;  %v7730_v26 = vmul.f32 %v21582_v3, %v7628_v14  ;;  %v7731_v4 = vmul.f32 %v21583_v35, %v7632_v38 }
 0x532   : > { %v7732_v18 = vmul.f32 %v21584_v24, %v7636_v20  ;;  %v7733_v32 = vmul.f32 %v21585_v17, %v7640_v57  ;;  %v7734_v6 = vmul.f32 %v21581_v48, %v7644_v23  ;;  %v7735_v9 = vmul.f32 %v21582_v3, %v7648_v8 }
 0x533   : > { %v7736_v53 = vmul.f32 %v21583_v35, %v7652_v41  ;;  %v7737_v0 = vmul.f32 %v21584_v24, %v7656_v22  ;;  %v7738_v2 = vmul.f32 %v21585_v17, %v7660_v58  ;;  %v7739_v36 = vmul.f32 %v21581_v48, %v7664_v30 }
 0x534   : > { %v7740_v14 = vmul.f32 %v21582_v3, %v7668_v56  ;;  %v7741_v38 = vmul.f32 %v21583_v35, %v7672_v1  ;;  %v7742_v20 = vmul.f32 %v21584_v24, %v7676_v13  ;;  %v7743_v57 = vmul.f32 %v21585_v17, %v7680_v47  ;;  %v21591_v47 = vld [vmem:[#allocation167_spill] sm:$0xff]  ;;  %v21603_v24 = vld [vmem:[#allocation76_spill] sm:$0xff] }
 0x535   : > { %v18318_v23 = vadd.f32 %v7724_v11, %v18203_v34  ;;  %v18321_v8 = vadd.f32 %v7725_v28, %v18205_v5  ;;  %v18324_v41 = vadd.f32 %v7726_v54, %v18207_v61  ;;  %v18327_v22 = vadd.f32 %v7727_v21, %v18209_v43  ;;  %v21594_v28 = vld [vmem:[#allocation166_spill] sm:$0xff] }
 0x536   : > { %v18330_v58 = vadd.f32 %v7728_v60, %v18211_v63  ;;  %v18333_v30 = vadd.f32 %v7729_v39, %v18213_v10  ;;  %v18336_v17 = vadd.f32 %v7730_v26, %v18215_v31  ;;  %v18339_v34 = vadd.f32 %v7731_v4, %v18217_v55 }
 0x537   : > { %v12483_v5 = vpop.eup %12482  ;;  %v18342_v56 = vadd.f32 %v7732_v18, %v18219_v27  ;;  %v18345_v61 = vadd.f32 %v7733_v32, %v18221_v16  ;;  %v18348_v43 = vadd.f32 %v7734_v6, %v18223_v15  ;;  %v18351_v63 = vadd.f32 %v7735_v9, %v18225_v59  ;;  %v21586_v59 = vld [vmem:[#allocation39_spill] sm:$0xff] }
 0x538   : > { %v18354_v10 = vadd.f32 %v7736_v53, %v18227_v29  ;;  %v18357_v31 = vadd.f32 %v7737_v0, %v18229_v33  ;;  %v18360_v4 = vadd.f32 %v7738_v2, %v18231_v37  ;;  %v18363_v18 = vadd.f32 %v7739_v36, %v18233_v42  ;;  %v21598_v53 = vld [vmem:[#allocation169_spill] sm:$0xff] }
 0x539   : > { %v18366_v55 = vadd.f32 %v7740_v14, %v18235_v7  ;;  %v18369_v27 = vadd.f32 %v7741_v38, %v18237_v49  ;;  %v18372_v16 = vadd.f32 %v7742_v20, %v18239_v25  ;;  %v18375_v15 = vadd.f32 %v7743_v57, %v18241_v40  ;;  %v21588_v25 = vld [vmem:[#allocation16_spill] sm:$0xff]  ;;  %v21599_v38 = vld [vmem:[#allocation34_spill] sm:$0xff] }
 0x53a   : > { %v18378_v29 = vadd.f32 %v12483_v5, %v21586_v59  ;;  %v7811_v33 = vrot.slane %v12483_v5, %v21543_v45  ;;  %v8012_v37 = vcombine.high %v12483_v5, %v12483_v5  ;;  %12486 = vpow2.f32 %v18275_v50  ;;  %v21600_v57 = vld [vmem:[#allocation64_spill] sm:$0xff]  ;;  %v21602_v50 = vld [vmem:[#allocation75_spill] sm:$0xff] }
 0x53b   : > { %v21587_v42 = vcombine.low %v21576_v51, %v21575_v12  ;;  %v8947_v49 = vcombine.high %v21576_v51, %v21575_v12  ;;  %v9172_v40 = vsub.f32 %v21588_v25, %v21568_v46 }
 0x53c   : > { %v7814_v26 = vcombine.high %v7811_v33, %v7811_v33  ;;  %v7835_v39 = vrot.slane %v7811_v33, %v21543_v45  ;;  %v18393_v1 = vrot.slane %v8012_v37, %v21543_v45 }
 0x53d   : > { %v8740_v7 = vrot.slane %v21587_v42, %v21543_v45  ;;  %v18400_v3 = vrot.slane %v8947_v49, %v21543_v45  ;;  %v18402_v12 = vmul.f32 1.442695, %v9172_v40 }
 0x53e   : > { %v7842_v51 = vrot.slane %v7814_v26, %v21543_v45  ;;  %v7843_v35 = vcombine.low %v21594_v28, %v7835_v39  ;;  %v7844_v54 = vcombine.high %v21594_v28, %v7835_v39  ;;  %v18411_v21 = vrot.slane %v18393_v1, %v21543_v45 }
 0x53f   : > { %v8748_v48 = vcombine.low %v21591_v47, %v8740_v7  ;;  %v8749_v11 = vcombine.high %v21591_v47, %v8740_v7  ;;  %21592 = vst [vmem:[#allocation174_spill] sm:$0xff] %v18400_v3  ;;  %21593 = vst [vmem:[#allocation178_spill] sm:$0xff] %v18402_v12  ;;  %v21605_v12 = vld [vmem:[#allocation78_spill] sm:$0xff] }
 0x540   : > { %v7845_v0 = vcombine.low %v21598_v53, %v7842_v51  ;;  %v7846_v2 = vcombine.high %v21598_v53, %v7842_v51  ;;  %v7850_v36 = vrot.slane %v7843_v35, %v17113_v19  ;;  %v7854_v14 = vrot.slane %v7843_v35, %v17116_v44  ;;  %v21601_v53 = vld [vmem:[#allocation74_spill] sm:$0xff] }
 0x541   : > { %v18414_v60 = vrot.slane %v8748_v48, %v21543_v45  ;;  %v18417_v32 = vrot.slane %v8749_v11, %v21543_v45  ;;  %v7858_v20 = vrot.slane %v7843_v35, %v21599_v38  ;;  %v7862_v5 = vrot.slane %v7843_v35, %v21600_v57 }
 0x542   : > { %v7866_v59 = vrot.slane %v7843_v35, %v21486_v52  ;;  %v7890_v33 = vrot.slane %v7844_v54, %v17113_v19  ;;  %v7870_v37 = vrot.slane %v7845_v0, %v17113_v19  ;;  %v7874_v42 = vrot.slane %v7845_v0, %v17116_v44 }
 0x543   : > { %21595 = vst [vmem:[#allocation150_spill] sm:$0xff] %v18414_v60  ;;  %21596 = vst [vmem:[#allocation160_spill] sm:$0xff] %v18417_v32  ;;  %v7878_v7 = vrot.slane %v7845_v0, %v21599_v38  ;;  %v7882_v49 = vrot.slane %v7845_v0, %v21600_v57  ;;  %v7886_v25 = vrot.slane %v7845_v0, %v21486_v52  ;;  %v18449_v60 = vpop.eup %12484 }
 0x544   : > { %v7894_v40 = vrot.slane %v7844_v54, %v17116_v44  ;;  %v7898_v26 = vrot.slane %v7844_v54, %v21599_v38  ;;  %v7902_v39 = vrot.slane %v7844_v54, %v21600_v57  ;;  %v7906_v47 = vrot.slane %v7844_v54, %v21486_v52 }
 0x545   : > { %v7910_v48 = vrot.slane %v7846_v2, %v17113_v19  ;;  %v7914_v11 = vrot.slane %v7846_v2, %v17116_v44  ;;  %v7918_v51 = vrot.slane %v7846_v2, %v21599_v38  ;;  %v7922_v28 = vrot.slane %v7846_v2, %v21600_v57 }
 0x546   : > { %v7926_v35 = vrot.slane %v7846_v2, %v21486_v52  ;;  %v7970_v0 = vmul.f32 %v21601_v53, %v7850_v36  ;;  %v7971_v9 = vmul.f32 %v21602_v50, %v7854_v14  ;;  %v7972_v46 = vmul.f32 %v21603_v24, %v7858_v20 }
 0x547   : > { %v7973_v13 = vmul.f32 %v21604_v62, %v7862_v5  ;;  %v7974_v54 = vmul.f32 %v21605_v12, %v7866_v59  ;;  %v7975_v32 = vmul.f32 %v21601_v53, %v7870_v37  ;;  %v7976_v6 = vmul.f32 %v21602_v50, %v7874_v42  ;;  %v18455_v52 = vpop.eup %12486 }
 0x548   : > { %v7977_v3 = vmul.f32 %v21603_v24, %v7878_v7  ;;  %v7978_v2 = vmul.f32 %v21604_v62, %v7882_v49  ;;  %v7979_v36 = vmul.f32 %v21605_v12, %v7886_v25  ;;  %21606 = vst [vmem:[#allocation104_spill] sm:$0xff] %v18455_v52  ;;  %v7980_v14 = vmul.f32 %v21601_v53, %v7890_v33 }
 0x549   : > { %v7981_v20 = vmul.f32 %v21602_v50, %v7894_v40  ;;  %v7982_v5 = vmul.f32 %v21603_v24, %v7898_v26  ;;  %v7983_v59 = vmul.f32 %v21604_v62, %v7902_v39  ;;  %v7984_v37 = vmul.f32 %v21605_v12, %v7906_v47 }
 0x54a   : > { %v7985_v42 = vmul.f32 %v21601_v53, %v7910_v48  ;;  %v7986_v7 = vmul.f32 %v21602_v50, %v7914_v11  ;;  %v7987_v49 = vmul.f32 %v21603_v24, %v7918_v51  ;;  %v7988_v25 = vmul.f32 %v21604_v62, %v7922_v28 }
 0x54b   : > { %v7989_v52 = vmul.f32 %v21605_v12, %v7926_v35  ;;  %v18468_v33 = vadd.f32 %v7970_v0, %v18318_v23  ;;  %v18471_v40 = vadd.f32 %v7971_v9, %v18321_v8  ;;  %v18474_v26 = vadd.f32 %v7972_v46, %v18324_v41 }
 0x54c   : > { %v18477_v39 = vadd.f32 %v7973_v13, %v18327_v22  ;;  %v18480_v50 = vadd.f32 %v7974_v54, %v18330_v58  ;;  %v18483_v24 = vadd.f32 %v7975_v32, %v18333_v30  ;;  %v18486_v62 = vadd.f32 %v7976_v6, %v18336_v17  ;;  %v21610_v32 = vld [vmem:[#allocation8_spill] sm:$0xff] }
 0x54d   : > { %v18489_v23 = vadd.f32 %v7977_v3, %v18339_v34  ;;  %v18492_v8 = vadd.f32 %v7978_v2, %v18342_v56  ;;  %v18495_v46 = vadd.f32 %v7979_v36, %v18345_v61  ;;  %v18498_v41 = vadd.f32 %v7980_v14, %v18348_v43 }
 0x54e   : > { %v18501_v22 = vadd.f32 %v7981_v20, %v18351_v63  ;;  %v18504_v58 = vadd.f32 %v7982_v5, %v18354_v10  ;;  %v18507_v30 = vadd.f32 %v7983_v59, %v18357_v31  ;;  %v18510_v17 = vadd.f32 %v7984_v37, %v18360_v4  ;;  %v21608_v4 = vld [vmem:[#allocation170_spill] sm:$0xff]  ;;  %v21611_v59 = vld [vmem:[#allocation79_spill] sm:$0xff] }
 0x54f   : > { %v18513_v34 = vadd.f32 %v7985_v42, %v18363_v18  ;;  %v18516_v56 = vadd.f32 %v7986_v7, %v18366_v55  ;;  %v18519_v61 = vadd.f32 %v7987_v49, %v18369_v27  ;;  %v18522_v43 = vadd.f32 %v7988_v25, %v18372_v16  ;;  %v21612_v42 = vld [vmem:[#allocation80_spill] sm:$0xff]  ;;  %v21613_v49 = vld [vmem:[#allocation81_spill] sm:$0xff] }
 0x550   : > { %v18525_v63 = vadd.f32 %v7989_v52, %v18375_v15  ;;  %v21607_v10 = vcombine.high %v18393_v1, %v18393_v1  ;;  %v8065_v18 = vcombine.low %v21608_v4, %v18411_v21  ;;  %v8066_v55 = vcombine.high %v21608_v4, %v18411_v21  ;;  %v21609_v15 = vld [vmem:[#allocation171_spill] sm:$0xff] }
 0x551   : > { %v18537_v27 = vadd.f32 %v18449_v60, %v18378_v29  ;;  %v18541_v16 = vrot.slane %v18449_v60, %v21543_v45  ;;  %v21615_v4 = vld [vmem:[#allocation83_spill] sm:$0xff] }
 0x552   : > { %v8064_v31 = vrot.slane %v21607_v10, %v21543_v45  ;;  %v8072_v3 = vrot.slane %v8065_v18, %v17113_v19  ;;  %v8076_v12 = vrot.slane %v8065_v18, %v17116_v44  ;;  %v8080_v21 = vrot.slane %v8065_v18, %v21599_v38  ;;  %v21614_v10 = vld [vmem:[#allocation82_spill] sm:$0xff] }
 0x553   : > { %v8084_v29 = vrot.slane %v8065_v18, %v21600_v57  ;;  %v8088_v6 = vrot.slane %v8065_v18, %v21610_v32  ;;  %v8112_v9 = vrot.slane %v8066_v55, %v17113_v19  ;;  %v8116_v35 = vrot.slane %v8066_v55, %v17116_v44 }
 0x554   : > { %v8067_v1 = vcombine.low %v21609_v15, %v8064_v31  ;;  %v8068_v13 = vcombine.high %v21609_v15, %v8064_v31  ;;  %v8120_v53 = vrot.slane %v8066_v55, %v21599_v38  ;;  %v8124_v0 = vrot.slane %v8066_v55, %v21600_v57 }
 0x555   : > { %v8128_v54 = vrot.slane %v8066_v55, %v21610_v32  ;;  %v8192_v37 = vmul.f32 %v21611_v59, %v8072_v3  ;;  %v8193_v7 = vmul.f32 %v21612_v42, %v8076_v12  ;;  %v8194_v25 = vmul.f32 %v21613_v49, %v8080_v21 }
 0x556   : > { %v8092_v47 = vrot.slane %v8067_v1, %v17113_v19  ;;  %v8096_v48 = vrot.slane %v8067_v1, %v17116_v44  ;;  %v8100_v11 = vrot.slane %v8067_v1, %v21599_v38  ;;  %v8104_v51 = vrot.slane %v8067_v1, %v21600_v57 }
 0x557   : > { %v8108_v28 = vrot.slane %v8067_v1, %v21610_v32  ;;  %v8132_v2 = vrot.slane %v8068_v13, %v17113_v19  ;;  %v8136_v36 = vrot.slane %v8068_v13, %v17116_v44  ;;  %v8140_v14 = vrot.slane %v8068_v13, %v21599_v38 }
 0x558   : > { %v8144_v20 = vrot.slane %v8068_v13, %v21600_v57  ;;  %v8148_v5 = vrot.slane %v8068_v13, %v21610_v32  ;;  %v8195_v31 = vmul.f32 %v21614_v10, %v8084_v29  ;;  %v8196_v18 = vmul.f32 %v21615_v4, %v8088_v6 }
 0x559   : > { %v8197_v55 = vmul.f32 %v21611_v59, %v8092_v47  ;;  %v8198_v15 = vmul.f32 %v21612_v42, %v8096_v48  ;;  %v8199_v1 = vmul.f32 %v21613_v49, %v8100_v11  ;;  %v8200_v52 = vmul.f32 %v21614_v10, %v8104_v51 }
 0x55a   : > { %v8201_v13 = vmul.f32 %v21615_v4, %v8108_v28  ;;  %v8202_v3 = vmul.f32 %v21611_v59, %v8112_v9  ;;  %v8203_v12 = vmul.f32 %v21612_v42, %v8116_v35  ;;  %v8204_v21 = vmul.f32 %v21613_v49, %v8120_v53 }
 0x55b   : > { %v8205_v29 = vmul.f32 %v21614_v10, %v8124_v0  ;;  %v8206_v6 = vmul.f32 %v21615_v4, %v8128_v54  ;;  %v8207_v47 = vmul.f32 %v21611_v59, %v8132_v2  ;;  %v8208_v48 = vmul.f32 %v21612_v42, %v8136_v36 }
 0x55c   : > { %v8209_v11 = vmul.f32 %v21613_v49, %v8140_v14  ;;  %v8210_v51 = vmul.f32 %v21614_v10, %v8144_v20  ;;  %v8211_v28 = vmul.f32 %v21615_v4, %v8148_v5  ;;  %v18588_v9 = vadd.f32 %v8192_v37, %v18468_v33  ;;  %v21625_v37 = vld [vmem:[#allocation86_spill] sm:$0xff] }
 0x55d   : > { %v18591_v35 = vadd.f32 %v8193_v7, %v18471_v40  ;;  %v18594_v53 = vadd.f32 %v8194_v25, %v18474_v26  ;;  %v18597_v0 = vadd.f32 %v8195_v31, %v18477_v39  ;;  %v18600_v54 = vadd.f32 %v8196_v18, %v18480_v50  ;;  %v21622_v25 = vld [vmem:[#allocation173_spill] sm:$0xff]  ;;  %v21626_v7 = vld [vmem:[#allocation87_spill] sm:$0xff] }
 0x55e   : > { %v18603_v2 = vadd.f32 %v8197_v55, %v18483_v24  ;;  %v18606_v36 = vadd.f32 %v8198_v15, %v18486_v62  ;;  %v18609_v33 = vadd.f32 %v8199_v1, %v18489_v23  ;;  %v18612_v40 = vadd.f32 %v8200_v52, %v18492_v8 }
 0x55f   : > { %v18615_v26 = vadd.f32 %v8201_v13, %v18495_v46  ;;  %v18618_v39 = vadd.f32 %v8202_v3, %v18498_v41  ;;  %v18621_v50 = vadd.f32 %v8203_v12, %v18501_v22  ;;  %v18624_v24 = vadd.f32 %v8204_v21, %v18504_v58 }
 0x560   : > { %v18627_v62 = vadd.f32 %v8205_v29, %v18507_v30  ;;  %v18630_v23 = vadd.f32 %v8206_v6, %v18510_v17  ;;  %v18633_v8 = vadd.f32 %v8207_v47, %v18513_v34  ;;  %v18636_v46 = vadd.f32 %v8208_v48, %v18516_v56 }
 0x561   : > { %v18639_v41 = vadd.f32 %v8209_v11, %v18519_v61  ;;  %v18642_v22 = vadd.f32 %v8210_v51, %v18522_v43  ;;  %v18645_v58 = vadd.f32 %v8211_v28, %v18525_v63  ;;  %v8282_v30 = vcombine.high %v18541_v16, %v18541_v16  ;;  %v21617_v61 = vld [vmem:[#allocation104_spill] sm:$0xff] }
 0x562   : > { %v8303_v17 = vrot.slane %v18541_v16, %v21543_v45  ;;  %v21616_v34 = vcombine.high %v18449_v60, %v18449_v60  ;;  %v18659_v52 = vadd.f32 %v21617_v61, %v18537_v27  ;;  %v18663_v43 = vrot.slane %v21617_v61, %v21543_v45  ;;  %v21619_v16 = vld [vmem:[#allocation172_spill] sm:$0xff] }
 0x563   : > { %v8310_v14 = vrot.slane %v8282_v30, %v21543_v45 }
 0x564   : > { %v18655_v56 = vrot.slane %v21616_v34, %v21543_v45  ;;  %21618 = vst [vmem:[#allocation23_spill] sm:$0xff] %v18659_v52  ;;  %v8311_v20 = vcombine.low %v21619_v16, %v8303_v17  ;;  %v8312_v5 = vcombine.high %v21619_v16, %v8303_v17  ;;  %v18682_v49 = vrot.slane %v18663_v43, %v21543_v45  ;;  %v21623_v16 = vld [vmem:[#allocation84_spill] sm:$0xff]  ;;  %v21627_v52 = vld [vmem:[#allocation89_spill] sm:$0xff] }
 0x565   : > { %v8313_v10 = vcombine.low %v21622_v25, %v8310_v14  ;;  %v8314_v31 = vcombine.high %v21622_v25, %v8310_v14  ;;  %v21624_v25 = vld [vmem:[#allocation85_spill] sm:$0xff] }
 0x566   : > { %v18676_v42 = vrot.slane %v18655_v56, %v21543_v45  ;;  %v8318_v4 = vrot.slane %v8311_v20, %v17113_v19  ;;  %v8322_v18 = vrot.slane %v8311_v20, %v17116_v44  ;;  %v8326_v55 = vrot.slane %v8311_v20, %v21599_v38 }
 0x567   : > { %v8330_v15 = vrot.slane %v8311_v20, %v21600_v57  ;;  %v8334_v1 = vrot.slane %v8311_v20, %v21610_v32  ;;  %v8358_v13 = vrot.slane %v8312_v5, %v17113_v19  ;;  %v8338_v3 = vrot.slane %v8313_v10, %v17113_v19 }
 0x568   : > { %v8342_v12 = vrot.slane %v8313_v10, %v17116_v44  ;;  %v8346_v21 = vrot.slane %v8313_v10, %v21599_v38  ;;  %v8350_v29 = vrot.slane %v8313_v10, %v21600_v57  ;;  %v8354_v6 = vrot.slane %v8313_v10, %v21610_v32 }
 0x569   : > { %v8362_v47 = vrot.slane %v8312_v5, %v17116_v44  ;;  %v8366_v48 = vrot.slane %v8312_v5, %v21599_v38  ;;  %v8370_v11 = vrot.slane %v8312_v5, %v21600_v57  ;;  %v8374_v51 = vrot.slane %v8312_v5, %v21610_v32 }
 0x56a   : > { %v8378_v28 = vrot.slane %v8314_v31, %v17113_v19  ;;  %v8382_v30 = vrot.slane %v8314_v31, %v17116_v44  ;;  %v8386_v17 = vrot.slane %v8314_v31, %v21599_v38  ;;  %v8390_v34 = vrot.slane %v8314_v31, %v21600_v57 }
 0x56b   : > { %v8394_v14 = vrot.slane %v8314_v31, %v21610_v32  ;;  %v8438_v20 = vmul.f32 %v21623_v16, %v8318_v4  ;;  %v8439_v10 = vmul.f32 %v21624_v25, %v8322_v18  ;;  %v8440_v63 = vmul.f32 %v21625_v37, %v8326_v55 }
 0x56c   : > { %v8441_v27 = vmul.f32 %v21626_v7, %v8330_v15  ;;  %v8442_v5 = vmul.f32 %v21627_v52, %v8334_v1  ;;  %v8443_v60 = vmul.f32 %v21623_v16, %v8338_v3  ;;  %v8444_v59 = vmul.f32 %v21624_v25, %v8342_v12 }
 0x56d   : > { %v8445_v61 = vmul.f32 %v21625_v37, %v8346_v21  ;;  %v8446_v57 = vmul.f32 %v21626_v7, %v8350_v29  ;;  %v8447_v31 = vmul.f32 %v21627_v52, %v8354_v6  ;;  %v8448_v4 = vmul.f32 %v21623_v16, %v8358_v13 }
 0x56e   : > { %v8449_v18 = vmul.f32 %v21624_v25, %v8362_v47  ;;  %v8450_v55 = vmul.f32 %v21625_v37, %v8366_v48  ;;  %v8451_v15 = vmul.f32 %v21626_v7, %v8370_v11  ;;  %v8452_v1 = vmul.f32 %v21627_v52, %v8374_v51 }
 0x56f   : > { %v8453_v3 = vmul.f32 %v21623_v16, %v8378_v28  ;;  %v8454_v12 = vmul.f32 %v21624_v25, %v8382_v30  ;;  %v8455_v21 = vmul.f32 %v21625_v37, %v8386_v17  ;;  %v8456_v29 = vmul.f32 %v21626_v7, %v8390_v34  ;;  %v21633_v7 = vld [vmem:[#allocation64_spill] sm:$0xff] }
 0x570   : > { %v8457_v6 = vmul.f32 %v21627_v52, %v8394_v14  ;;  %v18727_v13 = vadd.f32 %v8438_v20, %v18588_v9  ;;  %v18730_v47 = vadd.f32 %v8439_v10, %v18591_v35  ;;  %v18733_v48 = vadd.f32 %v8440_v63, %v18594_v53  ;;  %v21632_v63 = vld [vmem:[#allocation176_spill] sm:$0xff] }
 0x571   : > { %v18736_v11 = vadd.f32 %v8441_v27, %v18597_v0  ;;  %v18739_v51 = vadd.f32 %v8442_v5, %v18600_v54  ;;  %v18742_v37 = vadd.f32 %v8443_v60, %v18603_v2  ;;  %v18745_v52 = vadd.f32 %v8444_v59, %v18606_v36 }
 0x572   : > { %v18748_v9 = vadd.f32 %v8445_v61, %v18609_v33  ;;  %v18751_v35 = vadd.f32 %v8446_v57, %v18612_v40  ;;  %v18754_v53 = vadd.f32 %v8447_v31, %v18615_v26  ;;  %v18757_v0 = vadd.f32 %v8448_v4, %v18618_v39 }
 0x573   : > { %v18760_v54 = vadd.f32 %v8449_v18, %v18621_v50  ;;  %v18763_v2 = vadd.f32 %v8450_v55, %v18624_v24  ;;  %v18766_v36 = vadd.f32 %v8451_v15, %v18627_v62  ;;  %v18769_v33 = vadd.f32 %v8452_v1, %v18630_v23  ;;  %v21629_v23 = vld [vmem:[#allocation177_spill] sm:$0xff] }
 0x574   : > { %v18772_v57 = vadd.f32 %v8453_v3, %v18633_v8  ;;  %v18775_v40 = vadd.f32 %v8454_v12, %v18636_v46  ;;  %v18778_v26 = vadd.f32 %v8455_v21, %v18639_v41  ;;  %v18781_v39 = vadd.f32 %v8456_v29, %v18642_v22  ;;  %v21634_v3 = vld [vmem:[#allocation94_spill] sm:$0xff]  ;;  %v21635_v21 = vld [vmem:[#allocation95_spill] sm:$0xff] }
 0x575   : > { %v18784_v50 = vadd.f32 %v8457_v6, %v18645_v58  ;;  %v21628_v24 = vcombine.high %v18655_v56, %v18655_v56  ;;  %v8533_v8 = vcombine.low %v21629_v23, %v18676_v42  ;;  %v8534_v46 = vcombine.high %v21629_v23, %v18676_v42  ;;  %v21631_v58 = vld [vmem:[#allocation150_spill] sm:$0xff] }
 0x576   : > { %v21630_v41 = vcombine.high %v18663_v43, %v18663_v43  ;;  %v18802_v61 = vcombine.low %v21631_v58, %v18682_v49  ;;  %v18806_v56 = vcombine.high %v21631_v58, %v18682_v49  ;;  %v21636_v6 = vld [vmem:[#allocation102_spill] sm:$0xff] }
 0x577   : > { %v8532_v62 = vrot.slane %v21628_v24, %v21543_v45  ;;  %v8540_v27 = vrot.slane %v8533_v8, %v17113_v19  ;;  %v8544_v42 = vrot.slane %v8533_v8, %v17116_v44  ;;  %v8548_v43 = vrot.slane %v8533_v8, %v21599_v38 }
 0x578   : > { %v18798_v22 = vrot.slane %v21630_v41, %v21543_v45  ;;  %v8552_v28 = vrot.slane %v8533_v8, %v21633_v7  ;;  %v8556_v30 = vrot.slane %v8533_v8, %v21610_v32  ;;  %v8580_v17 = vrot.slane %v8534_v46, %v17113_v19  ;;  %v21638_v8 = vld [vmem:[#allocation26_spill] sm:$0xff] }
 0x579   : > { %v8535_v60 = vcombine.low %v21632_v63, %v8532_v62  ;;  %v8536_v59 = vcombine.high %v21632_v63, %v8532_v62  ;;  %v8584_v25 = vrot.slane %v8534_v46, %v17116_v44  ;;  %v8588_v10 = vrot.slane %v8534_v46, %v21599_v38  ;;  %v21637_v62 = vld [vmem:[#allocation103_spill] sm:$0xff] }
 0x57a   : > { %v8592_v5 = vrot.slane %v8534_v46, %v21633_v7  ;;  %v8596_v31 = vrot.slane %v8534_v46, %v21610_v32  ;;  %v8660_v12 = vmul.f32 %v21634_v3, %v8540_v27  ;;  %v8661_v29 = vmul.f32 %v21635_v21, %v8544_v42 }
 0x57b   : > { %v8560_v34 = vrot.slane %v8535_v60, %v17113_v19  ;;  %v8564_v49 = vrot.slane %v8535_v60, %v17116_v44  ;;  %v8568_v14 = vrot.slane %v8535_v60, %v21599_v38  ;;  %v8572_v16 = vrot.slane %v8535_v60, %v21633_v7 }
 0x57c   : > { %v8576_v20 = vrot.slane %v8535_v60, %v21610_v32  ;;  %v8600_v4 = vrot.slane %v8536_v59, %v17113_v19  ;;  %v8604_v18 = vrot.slane %v8536_v59, %v17116_v44  ;;  %v8608_v55 = vrot.slane %v8536_v59, %v21599_v38 }
 0x57d   : > { %v8612_v15 = vrot.slane %v8536_v59, %v21633_v7  ;;  %v8616_v1 = vrot.slane %v8536_v59, %v21610_v32  ;;  %v8662_v24 = vmul.f32 %v21636_v6, %v8548_v43  ;;  %v8663_v23 = vmul.f32 %v21637_v62, %v8552_v28 }
 0x57e   : > { %v8664_v46 = vmul.f32 %v21638_v8, %v8556_v30  ;;  %v8665_v41 = vmul.f32 %v21634_v3, %v8560_v34  ;;  %v8666_v58 = vmul.f32 %v21635_v21, %v8564_v49  ;;  %v8667_v63 = vmul.f32 %v21636_v6, %v8568_v14 }
 0x57f   : > { %v8668_v60 = vmul.f32 %v21637_v62, %v8572_v16  ;;  %v8669_v59 = vmul.f32 %v21638_v8, %v8576_v20  ;;  %v8670_v27 = vmul.f32 %v21634_v3, %v8580_v17  ;;  %v8671_v42 = vmul.f32 %v21635_v21, %v8584_v25 }
 0x580   : > { %v8672_v43 = vmul.f32 %v21636_v6, %v8588_v10  ;;  %v8673_v28 = vmul.f32 %v21637_v62, %v8592_v5  ;;  %v8674_v30 = vmul.f32 %v21638_v8, %v8596_v31  ;;  %v8675_v34 = vmul.f32 %v21634_v3, %v8600_v4 }
 0x581   : > { %v8676_v49 = vmul.f32 %v21635_v21, %v8604_v18  ;;  %v8677_v14 = vmul.f32 %v21636_v6, %v8608_v55  ;;  %v8678_v16 = vmul.f32 %v21637_v62, %v8612_v15  ;;  %v8679_v20 = vmul.f32 %v21638_v8, %v8616_v1 }
 0x582   : > { %v8680_v17 = vadd.f32 %v8660_v12, %v18727_v13  ;;  %v8681_v25 = vadd.f32 %v8661_v29, %v18730_v47  ;;  %v8682_v10 = vadd.f32 %v8662_v24, %v18733_v48  ;;  %v8683_v5 = vadd.f32 %v8663_v23, %v18736_v11 }
 0x583   : > { %v8684_v31 = vadd.f32 %v8664_v46, %v18739_v51  ;;  %v8685_v4 = vadd.f32 %v8665_v41, %v18742_v37  ;;  %v8686_v18 = vadd.f32 %v8666_v58, %v18745_v52  ;;  %v8687_v55 = vadd.f32 %v8667_v63, %v18748_v9  ;;  %v21640_v58 = vld [vmem:[#allocation110_spill] sm:$0xff] }
 0x584   : > { %v8688_v15 = vadd.f32 %v8668_v60, %v18751_v35  ;;  %v8689_v1 = vadd.f32 %v8669_v59, %v18754_v53  ;;  %v8690_v13 = vadd.f32 %v8670_v27, %v18757_v0  ;;  %v8691_v47 = vadd.f32 %v8671_v42, %v18760_v54  ;;  %v21639_v0 = vld [vmem:[#allocation160_spill] sm:$0xff]  ;;  %v21641_v60 = vld [vmem:[#allocation111_spill] sm:$0xff]  ;;  %v21642_v27 = vld [vmem:[#allocation113_spill] sm:$0xff] }
 0x585   : > { %v8692_v48 = vadd.f32 %v8672_v43, %v18763_v2  ;;  %v8693_v11 = vadd.f32 %v8673_v28, %v18766_v36  ;;  %v8694_v51 = vadd.f32 %v8674_v30, %v18769_v33  ;;  %v8695_v37 = vadd.f32 %v8675_v34, %v18772_v57  ;;  %v21643_v43 = vld [vmem:[#allocation115_spill] sm:$0xff]  ;;  %v21644_v30 = vld [vmem:[#allocation117_spill] sm:$0xff] }
 0x586   : > { %v8696_v52 = vadd.f32 %v8676_v49, %v18775_v40  ;;  %v8697_v9 = vadd.f32 %v8677_v14, %v18778_v26  ;;  %v8698_v35 = vadd.f32 %v8678_v16, %v18781_v39  ;;  %v8699_v53 = vadd.f32 %v8679_v20, %v18784_v50 }
 0x587   : > { %v8781_v3 = vcombine.low %v21639_v0, %v18798_v22  ;;  %v8782_v54 = vcombine.high %v21639_v0, %v18798_v22  ;;  %v8786_v2 = vrot.slane %v18802_v61, %v17113_v19  ;;  %v8790_v36 = vrot.slane %v18802_v61, %v17116_v44 }
 0x588   : > { %v8794_v33 = vrot.slane %v18802_v61, %v21599_v38  ;;  %v8798_v57 = vrot.slane %v18802_v61, %v21633_v7  ;;  %v8802_v40 = vrot.slane %v18802_v61, %v21610_v32  ;;  %v8826_v21 = vrot.slane %v18806_v56, %v17113_v19 }
 0x589   : > { %v8806_v26 = vrot.slane %v8781_v3, %v17113_v19  ;;  %v8810_v39 = vrot.slane %v8781_v3, %v17116_v44  ;;  %v8814_v50 = vrot.slane %v8781_v3, %v21599_v38  ;;  %v8818_v22 = vrot.slane %v8781_v3, %v21633_v7 }
 0x58a   : > { %v8822_v12 = vrot.slane %v8781_v3, %v21610_v32  ;;  %v8830_v29 = vrot.slane %v18806_v56, %v17116_v44  ;;  %v8834_v6 = vrot.slane %v18806_v56, %v21599_v38  ;;  %v8838_v61 = vrot.slane %v18806_v56, %v21633_v7 }
 0x58b   : > { %v8842_v24 = vrot.slane %v18806_v56, %v21610_v32  ;;  %v8846_v62 = vrot.slane %v8782_v54, %v17113_v19  ;;  %v8850_v23 = vrot.slane %v8782_v54, %v17116_v44  ;;  %v8854_v8 = vrot.slane %v8782_v54, %v21599_v38 }
 0x58c   : > { %v8858_v46 = vrot.slane %v8782_v54, %v21633_v7  ;;  %v8862_v41 = vrot.slane %v8782_v54, %v21610_v32  ;;  %v8906_v63 = vmul.f32 %v21640_v58, %v8786_v2  ;;  %v8907_v59 = vmul.f32 %v21641_v60, %v8790_v36 }
 0x58d   : > { %v8908_v42 = vmul.f32 %v21642_v27, %v8794_v33  ;;  %v8909_v28 = vmul.f32 %v21643_v43, %v8798_v57  ;;  %v8910_v56 = vmul.f32 %v21644_v30, %v8802_v40  ;;  %v8911_v34 = vmul.f32 %v21640_v58, %v8806_v26 }
 0x58e   : > { %v8912_v49 = vmul.f32 %v21641_v60, %v8810_v39  ;;  %v8913_v14 = vmul.f32 %v21642_v27, %v8814_v50  ;;  %v8914_v16 = vmul.f32 %v21643_v43, %v8818_v22  ;;  %v8915_v20 = vmul.f32 %v21644_v30, %v8822_v12 }
 0x58f   : > { %v8916_v0 = vmul.f32 %v21640_v58, %v8826_v21  ;;  %v8917_v3 = vmul.f32 %v21641_v60, %v8830_v29  ;;  %v8918_v54 = vmul.f32 %v21642_v27, %v8834_v6  ;;  %v8919_v2 = vmul.f32 %v21643_v43, %v8838_v61 }
 0x590   : > { %v8920_v36 = vmul.f32 %v21644_v30, %v8842_v24  ;;  %v8921_v33 = vmul.f32 %v21640_v58, %v8846_v62  ;;  %v8922_v57 = vmul.f32 %v21641_v60, %v8850_v23  ;;  %v8923_v40 = vmul.f32 %v21642_v27, %v8854_v8  ;;  %v21648_v8 = vld [vmem:[#allocation174_spill] sm:$0xff]  ;;  %v21654_v58 = vld [vmem:[#allocation97_spill] sm:$0xff] }
 0x591   : > { %v8924_v26 = vmul.f32 %v21643_v43, %v8858_v46  ;;  %v8925_v39 = vmul.f32 %v21644_v30, %v8862_v41  ;;  %v18924_v50 = vadd.f32 %v8906_v63, %v8680_v17  ;;  %v18926_v22 = vadd.f32 %v8907_v59, %v8681_v25  ;;  %v21655_v63 = vld [vmem:[#allocation116_spill] sm:$0xff]  ;;  %v21657_v30 = vld [vmem:[#allocation59_spill] sm:$0xff] }
 0x592   : > { %v18928_v12 = vadd.f32 %v8908_v42, %v8682_v10  ;;  %v18930_v21 = vadd.f32 %v8909_v28, %v8683_v5  ;;  %v18932_v29 = vadd.f32 %v8910_v56, %v8684_v31  ;;  %v18934_v6 = vadd.f32 %v8911_v34, %v8685_v4  ;;  %v21658_v56 = vld [vmem:[#allocation35_spill] sm:$0xff] }
 0x593   : > { %v18936_v61 = vadd.f32 %v8912_v49, %v8686_v18  ;;  %v18938_v24 = vadd.f32 %v8913_v14, %v8687_v55  ;;  %v18940_v62 = vadd.f32 %v8914_v16, %v8688_v15  ;;  %v18942_v23 = vadd.f32 %v8915_v20, %v8689_v1  ;;  %v21660_v14 = vld [vmem:[#allocation98_spill] sm:$0xff]  ;;  %v21663_v16 = vld [vmem:[#allocation120_spill] sm:$0xff] }
 0x594   : > { %v18944_v17 = vadd.f32 %v8916_v0, %v8690_v13  ;;  %v18946_v25 = vadd.f32 %v8917_v3, %v8691_v47  ;;  %v18948_v10 = vadd.f32 %v8918_v54, %v8692_v48  ;;  %v18950_v5 = vadd.f32 %v8919_v2, %v8693_v11  ;;  %v21645_v13 = vld [vmem:[#allocation104_spill] sm:$0xff]  ;;  %v21667_v2 = vld [vmem:[#allocation125_spill] sm:$0xff] }
 0x595   : > { %v18952_v31 = vadd.f32 %v8920_v36, %v8694_v51  ;;  %v18954_v4 = vadd.f32 %v8921_v33, %v8695_v37  ;;  %v18956_v18 = vadd.f32 %v8922_v57, %v8696_v52  ;;  %v18958_v55 = vadd.f32 %v8923_v40, %v8697_v9  ;;  %v21647_v11 = vld [vmem:[#allocation168_spill] sm:$0xff]  ;;  %v21651_v9 = vld [vmem:[#allocation178_spill] sm:$0xff] }
 0x596   : > { %v18960_v15 = vadd.f32 %v8924_v26, %v8698_v35  ;;  %v18962_v1 = vadd.f32 %v8925_v39, %v8699_v53  ;;  %v21646_v47 = vcombine.high %v21645_v13, %v21645_v13  ;;  %v21649_v51 = vcombine.low %v21647_v11, %v21648_v8  ;;  %v21652_v35 = vld [vmem:[#allocation90_spill] sm:$0xff]  ;;  %v21653_v53 = vld [vmem:[#allocation148_spill] sm:$0xff]  ;;  %v21665_v13 = vld [vmem:[#allocation123_spill] sm:$0xff] }
 0x597   : > { %v21650_v37 = vcombine.high %v21647_v11, %v21648_v8  ;;  %12488 = vpow2.f32 %v21651_v9  ;;  %v9194_v41 = vcombine.low %v21653_v53, %v21652_v35  ;;  %v21656_v60 = vcombine.low %v21654_v58, %v21655_v63 }
 0x598   : > { %v8969_v48 = vrot.slane %v21646_v47, %v21543_v45  ;;  %v8979_v46 = vrot.slane %v21649_v51, %v21543_v45  ;;  %v9414_v27 = vcombine.high %v21654_v58, %v21655_v63  ;;  %v9415_v42 = vcombine.high %v21653_v53, %v21652_v35 }
 0x599   : > { %v8986_v52 = vrot.slane %v21650_v37, %v21543_v45  ;;  %v18983_v59 = vrot.slane %v21656_v60, %v21543_v45  ;;  %v9640_v34 = vsub.f32 %v21658_v56, %v21657_v30  ;;  %v18995_v20 = vrot.slane %v9194_v41, %v21543_v45  ;;  %v21666_v30 = vld [vmem:[#allocation124_spill] sm:$0xff] }
 0x59a   : > { %v8972_v43 = vcombine.high %v8969_v48, %v8969_v48  ;;  %v8993_v28 = vrot.slane %v8969_v48, %v21543_v45  ;;  %v18998_v0 = vrot.slane %v9414_v27, %v21543_v45  ;;  %v19001_v3 = vrot.slane %v9415_v42, %v21543_v45  ;;  %v21664_v48 = vld [vmem:[#allocation121_spill] sm:$0xff] }
 0x59b   : > { %v19006_v26 = vmul.f32 1.442695, %v9640_v34 }
 0x59c   : > { %v9000_v33 = vrot.slane %v8972_v43, %v21543_v45  ;;  %v9001_v57 = vcombine.low %v8979_v46, %v8993_v28  ;;  %v9002_v40 = vcombine.high %v8979_v46, %v8993_v28 }
 0x59d   : > { %12490 = vpow2.f32 %v19006_v26 }
 0x59e   : > { %v9003_v11 = vcombine.low %v8986_v52, %v9000_v33  ;;  %v9004_v8 = vcombine.high %v8986_v52, %v9000_v33  ;;  %v9008_v51 = vrot.slane %v9001_v57, %v17113_v19  ;;  %v9012_v46 = vrot.slane %v9001_v57, %v17116_v44 }
 0x59f   : > { %v9016_v37 = vrot.slane %v9001_v57, %v21599_v38  ;;  %v9020_v9 = vrot.slane %v9001_v57, %v21633_v7  ;;  %v9024_v35 = vrot.slane %v9001_v57, %v21610_v32  ;;  %v9048_v53 = vrot.slane %v9002_v40, %v17113_v19 }
 0x5a0   : > { %v9028_v41 = vrot.slane %v9003_v11, %v17113_v19  ;;  %v9032_v58 = vrot.slane %v9003_v11, %v17116_v44  ;;  %v9036_v63 = vrot.slane %v9003_v11, %v21599_v38  ;;  %v9040_v52 = vrot.slane %v9003_v11, %v21633_v7 }
 0x5a1   : > { %v9044_v60 = vrot.slane %v9003_v11, %v21610_v32  ;;  %v9052_v27 = vrot.slane %v9002_v40, %v17116_v44  ;;  %v9056_v42 = vrot.slane %v9002_v40, %v21599_v38  ;;  %v9060_v43 = vrot.slane %v9002_v40, %v21633_v7 }
 0x5a2   : > { %v9064_v28 = vrot.slane %v9002_v40, %v21610_v32  ;;  %v9068_v56 = vrot.slane %v9004_v8, %v17113_v19  ;;  %v9072_v34 = vrot.slane %v9004_v8, %v17116_v44  ;;  %v9076_v33 = vrot.slane %v9004_v8, %v21599_v38 }
 0x5a3   : > { %v9080_v57 = vrot.slane %v9004_v8, %v21633_v7  ;;  %v9084_v36 = vrot.slane %v9004_v8, %v21610_v32  ;;  %v9128_v11 = vmul.f32 %v21663_v16, %v9008_v51  ;;  %v9129_v47 = vmul.f32 %v21664_v48, %v9012_v46 }
 0x5a4   : > { %v9130_v39 = vmul.f32 %v21665_v13, %v9016_v37  ;;  %v9131_v54 = vmul.f32 %v21666_v30, %v9020_v9  ;;  %v9132_v40 = vmul.f32 %v21667_v2, %v9024_v35  ;;  %v9133_v19 = vmul.f32 %v21663_v16, %v9028_v41  ;;  %v12489_v49 = vpop.eup %12488 }
 0x5a5   : > { %v9134_v44 = vmul.f32 %v21664_v48, %v9032_v58  ;;  %v9135_v38 = vmul.f32 %v21665_v13, %v9036_v63  ;;  %v9136_v7 = vmul.f32 %v21666_v30, %v9040_v52  ;;  %v9137_v8 = vmul.f32 %v21667_v2, %v9044_v60 }
 0x5a6   : > { %v9138_v51 = vmul.f32 %v21663_v16, %v9048_v53  ;;  %v9139_v46 = vmul.f32 %v21664_v48, %v9052_v27  ;;  %v9140_v37 = vmul.f32 %v21665_v13, %v9056_v42  ;;  %v9141_v9 = vmul.f32 %v21666_v30, %v9060_v43 }
 0x5a7   : > { %v9142_v35 = vmul.f32 %v21667_v2, %v9064_v28  ;;  %v9143_v41 = vmul.f32 %v21663_v16, %v9068_v56  ;;  %v9144_v58 = vmul.f32 %v21664_v48, %v9072_v34  ;;  %v9145_v63 = vmul.f32 %v21665_v13, %v9076_v33  ;;  %v21676_v48 = vld [vmem:[#allocation112_spill] sm:$0xff] }
 0x5a8   : > { %v9146_v52 = vmul.f32 %v21666_v30, %v9080_v57  ;;  %v9147_v60 = vmul.f32 %v21667_v2, %v9084_v36  ;;  %v19057_v53 = vadd.f32 %v9128_v11, %v18924_v50  ;;  %v19060_v27 = vadd.f32 %v9129_v47, %v18926_v22  ;;  %v21675_v47 = vld [vmem:[#allocation151_spill] sm:$0xff]  ;;  %v21684_v57 = vld [vmem:[#allocation128_spill] sm:$0xff] }
 0x5a9   : > { %v19063_v42 = vadd.f32 %v9130_v39, %v18928_v12  ;;  %v19066_v43 = vadd.f32 %v9131_v54, %v18930_v21  ;;  %v19069_v16 = vadd.f32 %v9132_v40, %v18932_v29  ;;  %v19072_v13 = vadd.f32 %v9133_v19, %v18934_v6 }
 0x5aa   : > { %v19075_v30 = vadd.f32 %v9134_v44, %v18936_v61  ;;  %v19078_v50 = vadd.f32 %v9135_v38, %v18938_v24  ;;  %v19081_v22 = vadd.f32 %v9136_v7, %v18940_v62  ;;  %v19084_v12 = vadd.f32 %v9137_v8, %v18942_v23  ;;  %v21668_v23 = vld [vmem:[#allocation23_spill] sm:$0xff] }
 0x5ab   : > { %v19087_v21 = vadd.f32 %v9138_v51, %v18944_v17  ;;  %v19090_v29 = vadd.f32 %v9139_v46, %v18946_v25  ;;  %v19093_v19 = vadd.f32 %v9140_v37, %v18948_v10  ;;  %v19096_v44 = vadd.f32 %v9141_v9, %v18950_v5  ;;  %v21678_v37 = vld [vmem:[#allocation63_spill] sm:$0xff] }
 0x5ac   : > { %v19099_v38 = vadd.f32 %v9142_v35, %v18952_v31  ;;  %v19102_v7 = vadd.f32 %v9143_v41, %v18954_v4  ;;  %v19105_v6 = vadd.f32 %v9144_v58, %v18956_v18  ;;  %v19108_v61 = vadd.f32 %v9145_v63, %v18958_v55  ;;  %v21679_v35 = vld [vmem:[#allocation62_spill] sm:$0xff]  ;;  %v21683_v8 = vld [vmem:[#allocation127_spill] sm:$0xff] }
 0x5ad   : > { %v19111_v24 = vadd.f32 %v9146_v52, %v18960_v15  ;;  %v19114_v62 = vadd.f32 %v9147_v60, %v18962_v1  ;;  %v19117_v17 = vadd.f32 %v12489_v49, %v21668_v23  ;;  %v9215_v25 = vrot.slane %v12489_v49, %v21543_v45  ;;  %v21680_v58 = vld [vmem:[#allocation34_spill] sm:$0xff]  ;;  %v21681_v52 = vld [vmem:[#allocation64_spill] sm:$0xff] }
 0x5ae   : > { %v21669_v10 = vcombine.low %v18983_v59, %v18995_v20  ;;  %v21670_v31 = vcombine.high %v18983_v59, %v18995_v20  ;;  %v9416_v18 = vcombine.high %v12489_v49, %v12489_v49  ;;  %v21671_v55 = vcombine.low %v18998_v0, %v19001_v3  ;;  %v21673_v49 = vld [vmem:[#allocation118_spill] sm:$0xff] }
 0x5af   : > { %v9218_v1 = vcombine.high %v9215_v25, %v9215_v25  ;;  %v9239_v54 = vrot.slane %v9215_v25, %v21543_v45  ;;  %v21672_v2 = vcombine.high %v18998_v0, %v19001_v3  ;;  %v21674_v20 = vcombine.low %v21660_v14, %v21673_v49  ;;  %v21682_v0 = vld [vmem:[#allocation126_spill] sm:$0xff]  ;;  %v21686_v14 = vld [vmem:[#allocation91_spill] sm:$0xff] }
 0x5b0   : > { %v9225_v5 = vrot.slane %v21669_v10, %v21543_v45  ;;  %v9232_v4 = vrot.slane %v21670_v31, %v21543_v45  ;;  %v19132_v15 = vrot.slane %v21671_v55, %v21543_v45  ;;  %v19143_v59 = vrot.slane %v9416_v18, %v21543_v45 }
 0x5b1   : > { %v19139_v36 = vrot.slane %v21672_v2, %v21543_v45  ;;  %v19149_v39 = vrot.slane %v21674_v20, %v21543_v45  ;;  %v21677_v28 = vcombine.low %v21675_v47, %v21676_v48  ;;  %v9246_v3 = vrot.slane %v9218_v1, %v21543_v45  ;;  %v21685_v47 = vld [vmem:[#allocation129_spill] sm:$0xff] }
 0x5b2   : > { %v9247_v26 = vcombine.low %v9225_v5, %v9239_v54  ;;  %v9248_v34 = vcombine.high %v9225_v5, %v9239_v54  ;;  %v19166_v11 = vrot.slane %v19143_v59, %v21543_v45 }
 0x5b3   : > { %v19155_v56 = vrot.slane %v21677_v28, %v21543_v45  ;;  %v9249_v51 = vcombine.low %v9232_v4, %v9246_v3  ;;  %v9250_v46 = vcombine.high %v9232_v4, %v9246_v3 }
 0x5b4   : > { %v9254_v9 = vrot.slane %v9247_v26, %v21678_v37  ;;  %v9258_v41 = vrot.slane %v9247_v26, %v21679_v35  ;;  %v9262_v63 = vrot.slane %v9247_v26, %v21680_v58  ;;  %v9266_v60 = vrot.slane %v9247_v26, %v21681_v52 }
 0x5b5   : > { %v9270_v23 = vrot.slane %v9247_v26, %v21610_v32  ;;  %v9294_v25 = vrot.slane %v9248_v34, %v21678_v37  ;;  %v9274_v10 = vrot.slane %v9249_v51, %v21678_v37  ;;  %v9278_v5 = vrot.slane %v9249_v51, %v21679_v35 }
 0x5b6   : > { %v9282_v31 = vrot.slane %v9249_v51, %v21680_v58  ;;  %v9286_v4 = vrot.slane %v9249_v51, %v21681_v52  ;;  %v9290_v18 = vrot.slane %v9249_v51, %v21610_v32  ;;  %v9298_v55 = vrot.slane %v9248_v34, %v21679_v35 }
 0x5b7   : > { %v9302_v1 = vrot.slane %v9248_v34, %v21680_v58  ;;  %v9306_v54 = vrot.slane %v9248_v34, %v21681_v52  ;;  %v9310_v2 = vrot.slane %v9248_v34, %v21610_v32  ;;  %v9314_v20 = vrot.slane %v9250_v46, %v21678_v37 }
 0x5b8   : > { %v9318_v28 = vrot.slane %v9250_v46, %v21679_v35  ;;  %v9322_v3 = vrot.slane %v9250_v46, %v21680_v58  ;;  %v9326_v26 = vrot.slane %v9250_v46, %v21681_v52  ;;  %v9330_v33 = vrot.slane %v9250_v46, %v21610_v32  ;;  %v19206_v32 = vpop.eup %12490 }
 0x5b9   : > { %v9374_v51 = vmul.f32 %v21682_v0, %v9254_v9  ;;  %v9375_v40 = vmul.f32 %v21683_v8, %v9258_v41  ;;  %v9376_v48 = vmul.f32 %v21684_v57, %v9262_v63  ;;  %v9377_v49 = vmul.f32 %v21685_v47, %v9266_v60 }
 0x5ba   : > { %v9378_v34 = vmul.f32 %v21686_v14, %v9270_v23  ;;  %v9379_v37 = vmul.f32 %v21682_v0, %v9274_v10  ;;  %v9380_v35 = vmul.f32 %v21683_v8, %v9278_v5  ;;  %v9381_v58 = vmul.f32 %v21684_v57, %v9282_v31 }
 0x5bb   : > { %v9382_v52 = vmul.f32 %v21685_v47, %v9286_v4  ;;  %v9383_v46 = vmul.f32 %v21686_v14, %v9290_v18  ;;  %v9384_v9 = vmul.f32 %v21682_v0, %v9294_v25  ;;  %v9385_v41 = vmul.f32 %v21683_v8, %v9298_v55 }
 0x5bc   : > { %v9386_v63 = vmul.f32 %v21684_v57, %v9302_v1  ;;  %v9387_v60 = vmul.f32 %v21685_v47, %v9306_v54  ;;  %v9388_v23 = vmul.f32 %v21686_v14, %v9310_v2  ;;  %v9389_v10 = vmul.f32 %v21682_v0, %v9314_v20 }
 0x5bd   : > { %v9390_v5 = vmul.f32 %v21683_v8, %v9318_v28  ;;  %v9391_v31 = vmul.f32 %v21684_v57, %v9322_v3  ;;  %v9392_v4 = vmul.f32 %v21685_v47, %v9326_v26  ;;  %v9393_v25 = vmul.f32 %v21686_v14, %v9330_v33  ;;  %v21691_v33 = vld [vmem:[#allocation62_spill] sm:$0xff]  ;;  %v21693_v8 = vld [vmem:[#allocation64_spill] sm:$0xff] }
 0x5be   : > { %v19215_v18 = vadd.f32 %v9374_v51, %v19057_v53  ;;  %v19218_v55 = vadd.f32 %v9375_v40, %v19060_v27  ;;  %v19221_v1 = vadd.f32 %v9376_v48, %v19063_v42  ;;  %v19224_v54 = vadd.f32 %v9377_v49, %v19066_v43  ;;  %v21690_v48 = vld [vmem:[#allocation63_spill] sm:$0xff] }
 0x5bf   : > { %v19227_v0 = vadd.f32 %v9378_v34, %v19069_v16  ;;  %v19230_v57 = vadd.f32 %v9379_v37, %v19072_v13  ;;  %v19233_v14 = vadd.f32 %v9380_v35, %v19075_v30  ;;  %v19236_v53 = vadd.f32 %v9381_v58, %v19078_v50  ;;  %v21694_v35 = vld [vmem:[#allocation8_spill] sm:$0xff] }
 0x5c0   : > { %v19239_v27 = vadd.f32 %v9382_v52, %v19081_v22  ;;  %v19242_v42 = vadd.f32 %v9383_v46, %v19084_v12  ;;  %v19245_v43 = vadd.f32 %v9384_v9, %v19087_v21  ;;  %v19248_v16 = vadd.f32 %v9385_v41, %v19090_v29 }
 0x5c1   : > { %v19251_v13 = vadd.f32 %v9386_v63, %v19093_v19  ;;  %v19254_v30 = vadd.f32 %v9387_v60, %v19096_v44  ;;  %v19257_v50 = vadd.f32 %v9388_v23, %v19099_v38  ;;  %v19260_v22 = vadd.f32 %v9389_v10, %v19102_v7  ;;  %v21695_v10 = vld [vmem:[#allocation99_spill] sm:$0xff] }
 0x5c2   : > { %v19263_v12 = vadd.f32 %v9390_v5, %v19105_v6  ;;  %v19266_v21 = vadd.f32 %v9391_v31, %v19108_v61  ;;  %v19269_v29 = vadd.f32 %v9392_v4, %v19111_v24  ;;  %v19272_v19 = vadd.f32 %v9393_v25, %v19114_v62  ;;  %v21696_v31 = vld [vmem:[#allocation131_spill] sm:$0xff]  ;;  %v21697_v25 = vld [vmem:[#allocation132_spill] sm:$0xff] }
 0x5c3   : > { %v21687_v44 = vcombine.high %v19143_v59, %v19143_v59  ;;  %v9469_v7 = vcombine.low %v19132_v15, %v19166_v11  ;;  %v9470_v6 = vcombine.high %v19132_v15, %v19166_v11  ;;  %v19284_v61 = vadd.f32 %v19206_v32, %v19117_v17  ;;  %v21692_v17 = vld [vmem:[#allocation34_spill] sm:$0xff] }
 0x5c4   : > { %v19288_v24 = vrot.slane %v19206_v32, %v21543_v45  ;;  %v21689_v62 = vcombine.low %v19149_v39, %v19155_v56 }
 0x5c5   : > { %v9468_v38 = vrot.slane %v21687_v44, %v21543_v45  ;;  %21688 = vst [vmem:[#allocation42_spill] sm:$0xff] %v19284_v61  ;;  %v9476_v15 = vrot.slane %v9469_v7, %v21690_v48  ;;  %v9480_v11 = vrot.slane %v9469_v7, %v21691_v33  ;;  %v9484_v40 = vrot.slane %v9469_v7, %v21692_v17 }
 0x5c6   : > { %v19294_v59 = vrot.slane %v21689_v62, %v21543_v45  ;;  %v9488_v37 = vrot.slane %v9469_v7, %v21693_v8  ;;  %v9492_v58 = vrot.slane %v9469_v7, %v21694_v35  ;;  %v9516_v52 = vrot.slane %v9470_v6, %v21690_v48  ;;  %v21699_v62 = vld [vmem:[#allocation134_spill] sm:$0xff] }
 0x5c7   : > { %v9471_v49 = vcombine.low %v19139_v36, %v9468_v38  ;;  %v9472_v47 = vcombine.high %v19139_v36, %v9468_v38  ;;  %v9520_v26 = vrot.slane %v9470_v6, %v21691_v33  ;;  %v9524_v51 = vrot.slane %v9470_v6, %v21692_v17  ;;  %v21698_v38 = vld [vmem:[#allocation133_spill] sm:$0xff] }
 0x5c8   : > { %v9528_v34 = vrot.slane %v9470_v6, %v21693_v8  ;;  %v9532_v46 = vrot.slane %v9470_v6, %v21694_v35  ;;  %v9596_v5 = vmul.f32 %v21695_v10, %v9476_v15  ;;  %v9597_v4 = vmul.f32 %v21696_v31, %v9480_v11 }
 0x5c9   : > { %v9496_v2 = vrot.slane %v9471_v49, %v21690_v48  ;;  %v9500_v20 = vrot.slane %v9471_v49, %v21691_v33  ;;  %v9504_v28 = vrot.slane %v9471_v49, %v21692_v17  ;;  %v9508_v36 = vrot.slane %v9471_v49, %v21693_v8 }
 0x5ca   : > { %v9512_v3 = vrot.slane %v9471_v49, %v21694_v35  ;;  %v9536_v9 = vrot.slane %v9472_v47, %v21690_v48  ;;  %v9540_v41 = vrot.slane %v9472_v47, %v21691_v33  ;;  %v9544_v63 = vrot.slane %v9472_v47, %v21692_v17 }
 0x5cb   : > { %v9548_v60 = vrot.slane %v9472_v47, %v21693_v8  ;;  %v9552_v23 = vrot.slane %v9472_v47, %v21694_v35  ;;  %v9598_v44 = vmul.f32 %v21697_v25, %v9484_v40  ;;  %v9599_v7 = vmul.f32 %v21698_v38, %v9488_v37 }
 0x5cc   : > { %v9600_v6 = vmul.f32 %v21699_v62, %v9492_v58  ;;  %v9601_v49 = vmul.f32 %v21695_v10, %v9496_v2  ;;  %v9602_v61 = vmul.f32 %v21696_v31, %v9500_v20  ;;  %v9603_v17 = vmul.f32 %v21697_v25, %v9504_v28 }
 0x5cd   : > { %v9604_v8 = vmul.f32 %v21698_v38, %v9508_v36  ;;  %v9605_v47 = vmul.f32 %v21699_v62, %v9512_v3  ;;  %v9606_v15 = vmul.f32 %v21695_v10, %v9516_v52  ;;  %v9607_v11 = vmul.f32 %v21696_v31, %v9520_v26 }
 0x5ce   : > { %v9608_v40 = vmul.f32 %v21697_v25, %v9524_v51  ;;  %v9609_v37 = vmul.f32 %v21698_v38, %v9528_v34  ;;  %v9610_v58 = vmul.f32 %v21699_v62, %v9532_v46  ;;  %v9611_v2 = vmul.f32 %v21695_v10, %v9536_v9  ;;  %v21708_v10 = vld [vmem:[#allocation45_spill] sm:$0xff] }
 0x5cf   : > { %v9612_v20 = vmul.f32 %v21696_v31, %v9540_v41  ;;  %v9613_v28 = vmul.f32 %v21697_v25, %v9544_v63  ;;  %v9614_v36 = vmul.f32 %v21698_v38, %v9548_v60  ;;  %v9615_v3 = vmul.f32 %v21699_v62, %v9552_v23  ;;  %v21705_v63 = vld [vmem:[#allocation112_spill] sm:$0xff]  ;;  %v21712_v25 = vld [vmem:[#allocation154_spill] sm:$0xff] }
 0x5d0   : > { %v19339_v52 = vadd.f32 %v9596_v5, %v19215_v18  ;;  %v19342_v26 = vadd.f32 %v9597_v4, %v19218_v55  ;;  %v19345_v51 = vadd.f32 %v9598_v44, %v19221_v1  ;;  %v19348_v34 = vadd.f32 %v9599_v7, %v19224_v54  ;;  %v21709_v5 = vld [vmem:[#allocation119_spill] sm:$0xff]  ;;  %v21710_v31 = vld [vmem:[#allocation100_spill] sm:$0xff] }
 0x5d1   : > { %v19351_v46 = vadd.f32 %v9600_v6, %v19227_v0  ;;  %v19354_v9 = vadd.f32 %v9601_v49, %v19230_v57  ;;  %v19357_v41 = vadd.f32 %v9602_v61, %v19233_v14  ;;  %v19360_v18 = vadd.f32 %v9603_v17, %v19236_v53  ;;  %v21702_v61 = vld [vmem:[#allocation118_spill] sm:$0xff]  ;;  %v21719_v4 = vld [vmem:[#allocation60_spill] sm:$0xff] }
 0x5d2   : > { %v19363_v55 = vadd.f32 %v9604_v8, %v19239_v27  ;;  %v19366_v1 = vadd.f32 %v9605_v47, %v19242_v42  ;;  %v19369_v54 = vadd.f32 %v9606_v15, %v19245_v43  ;;  %v19372_v0 = vadd.f32 %v9607_v11, %v19248_v16  ;;  %v21704_v8 = vld [vmem:[#allocation151_spill] sm:$0xff]  ;;  %v21718_v6 = vld [vmem:[#allocation58_spill] sm:$0xff] }
 0x5d3   : > { %v19375_v57 = vadd.f32 %v9608_v40, %v19251_v13  ;;  %v19378_v14 = vadd.f32 %v9609_v37, %v19254_v30  ;;  %v19381_v53 = vadd.f32 %v9610_v58, %v19257_v50  ;;  %v19384_v27 = vadd.f32 %v9611_v2, %v19260_v22  ;;  %v21713_v58 = vld [vmem:[#allocation34_spill] sm:$0xff] }
 0x5d4   : > { %v19387_v42 = vadd.f32 %v9612_v20, %v19263_v12  ;;  %v19390_v43 = vadd.f32 %v9613_v28, %v19266_v21  ;;  %v19393_v16 = vadd.f32 %v9614_v36, %v19269_v29  ;;  %v19396_v13 = vadd.f32 %v9615_v3, %v19272_v19  ;;  %v21701_v29 = vld [vmem:[#allocation98_spill] sm:$0xff] }
 0x5d5   : > { %v9686_v30 = vcombine.high %v19288_v24, %v19288_v24  ;;  %v21700_v50 = vcombine.high %v19149_v39, %v19155_v56  ;;  %v9707_v12 = vrot.slane %v19288_v24, %v21543_v45  ;;  %v9884_v21 = vcombine.high %v19206_v32, %v19206_v32  ;;  %v21707_v56 = vld [vmem:[#allocation59_spill] sm:$0xff] }
 0x5d6   : > { %v21703_v17 = vcombine.high %v21701_v29, %v21702_v61  ;;  %v21706_v60 = vcombine.high %v21704_v8, %v21705_v63  ;;  %v10107_v24 = vsub.f32 %v21708_v10, %v21707_v56  ;;  %v21717_v32 = vld [vmem:[#allocation139_spill] sm:$0xff] }
 0x5d7   : > { %v9700_v22 = vrot.slane %v21700_v50, %v21543_v45  ;;  %v9714_v39 = vrot.slane %v9686_v30, %v21543_v45  ;;  %v9715_v38 = vcombine.low %v19294_v59, %v9707_v12  ;;  %v9716_v7 = vcombine.high %v19294_v59, %v9707_v12  ;;  %v21714_v59 = vld [vmem:[#allocation64_spill] sm:$0xff] }
 0x5d8   : > { %v19412_v19 = vrot.slane %v21703_v17, %v21543_v45  ;;  %v19418_v23 = vrot.slane %v21706_v60, %v21543_v45  ;;  %v19430_v62 = vrot.slane %v9884_v21, %v21543_v45  ;;  %v19436_v11 = vmul.f32 1.442695, %v10107_v24  ;;  %v21715_v24 = vld [vmem:[#allocation135_spill] sm:$0xff] }
 0x5d9   : > { %v9717_v49 = vcombine.low %v9700_v22, %v9714_v39  ;;  %v9718_v47 = vcombine.high %v9700_v22, %v9714_v39  ;;  %v9722_v40 = vrot.slane %v9715_v38, %v21690_v48  ;;  %v9726_v37 = vrot.slane %v9715_v38, %v21691_v33 }
 0x5da   : > { %v9730_v2 = vrot.slane %v9715_v38, %v21713_v58  ;;  %v9734_v20 = vrot.slane %v9715_v38, %v21714_v59  ;;  %v9738_v28 = vrot.slane %v9715_v38, %v21694_v35  ;;  %v9762_v12 = vrot.slane %v9716_v7, %v21690_v48 }
 0x5db   : > { %v9742_v36 = vrot.slane %v9717_v49, %v21690_v48  ;;  %v9746_v3 = vrot.slane %v9717_v49, %v21691_v33  ;;  %v9750_v30 = vrot.slane %v9717_v49, %v21713_v58  ;;  %v9754_v50 = vrot.slane %v9717_v49, %v21714_v59 }
 0x5dc   : > { %v9758_v22 = vrot.slane %v9717_v49, %v21694_v35  ;;  %v9766_v21 = vrot.slane %v9716_v7, %v21691_v33  ;;  %v9770_v29 = vrot.slane %v9716_v7, %v21713_v58  ;;  %v9774_v61 = vrot.slane %v9716_v7, %v21714_v59  ;;  %v21716_v49 = vld [vmem:[#allocation136_spill] sm:$0xff] }
 0x5dd   : > { %v9778_v17 = vrot.slane %v9716_v7, %v21694_v35  ;;  %v9782_v8 = vrot.slane %v9718_v47, %v21690_v48  ;;  %v9786_v63 = vrot.slane %v9718_v47, %v21691_v33  ;;  %v9790_v60 = vrot.slane %v9718_v47, %v21713_v58 }
 0x5de   : > { %v9794_v39 = vrot.slane %v9718_v47, %v21714_v59  ;;  %v9798_v10 = vrot.slane %v9718_v47, %v21694_v35  ;;  %v9842_v38 = vmul.f32 %v21715_v24, %v9722_v40  ;;  %v9843_v44 = vmul.f32 %v21716_v49, %v9726_v37 }
 0x5df   : > { %v9844_v15 = vmul.f32 %v21717_v32, %v9730_v2  ;;  %v9845_v56 = vmul.f32 %v21718_v6, %v9734_v20  ;;  %v9846_v7 = vmul.f32 %v21719_v4, %v9738_v28  ;;  %v9847_v48 = vmul.f32 %v21715_v24, %v9742_v36 }
 0x5e0   : > { %v9848_v33 = vmul.f32 %v21716_v49, %v9746_v3  ;;  %v9849_v58 = vmul.f32 %v21717_v32, %v9750_v30  ;;  %v9850_v59 = vmul.f32 %v21718_v6, %v9754_v50  ;;  %v9851_v47 = vmul.f32 %v21719_v4, %v9758_v22 }
 0x5e1   : > { %v9852_v40 = vmul.f32 %v21715_v24, %v9762_v12  ;;  %v9853_v37 = vmul.f32 %v21716_v49, %v9766_v21  ;;  %v9854_v2 = vmul.f32 %v21717_v32, %v9770_v29  ;;  %v9855_v20 = vmul.f32 %v21718_v6, %v9774_v61 }
 0x5e2   : > { %v9856_v28 = vmul.f32 %v21719_v4, %v9778_v17  ;;  %v9857_v36 = vmul.f32 %v21715_v24, %v9782_v8  ;;  %v9858_v3 = vmul.f32 %v21716_v49, %v9786_v63  ;;  %v9859_v30 = vmul.f32 %v21717_v32, %v9790_v60  ;;  %v21725_v8 = vld [vmem:[#allocation59_spill] sm:$0xff]  ;;  %v21728_v24 = vld [vmem:[#allocation62_spill] sm:$0xff] }
 0x5e3   : > { %v9860_v50 = vmul.f32 %v21718_v6, %v9794_v39  ;;  %v9861_v22 = vmul.f32 %v21719_v4, %v9798_v10  ;;  %v19479_v12 = vadd.f32 %v9842_v38, %v19339_v52  ;;  %v19482_v21 = vadd.f32 %v9843_v44, %v19342_v26  ;;  %v21726_v63 = vld [vmem:[#allocation19_spill] sm:$0xff]  ;;  %v21729_v49 = vld [vmem:[#allocation34_spill] sm:$0xff] }
 0x5e4   : > { %v19485_v29 = vadd.f32 %v9844_v15, %v19345_v51  ;;  %v19488_v61 = vadd.f32 %v9845_v56, %v19348_v34  ;;  %v19491_v17 = vadd.f32 %v9846_v7, %v19351_v46  ;;  %v19494_v32 = vadd.f32 %v9847_v48, %v19354_v9  ;;  %v21727_v39 = vld [vmem:[#allocation63_spill] sm:$0xff]  ;;  %v21734_v15 = vld [vmem:[#allocation40_spill] sm:$0xff] }
 0x5e5   : > { %v19497_v4 = vadd.f32 %v9848_v33, %v19357_v41  ;;  %v19500_v52 = vadd.f32 %v9849_v58, %v19360_v18  ;;  %v19503_v26 = vadd.f32 %v9850_v59, %v19363_v55  ;;  %v19506_v51 = vadd.f32 %v9851_v47, %v19366_v1  ;;  %v21730_v47 = vld [vmem:[#allocation64_spill] sm:$0xff] }
 0x5e6   : > { %v19509_v34 = vadd.f32 %v9852_v40, %v19369_v54  ;;  %v19512_v46 = vadd.f32 %v9853_v37, %v19372_v0  ;;  %v19515_v48 = vadd.f32 %v9854_v2, %v19375_v57  ;;  %v19518_v33 = vadd.f32 %v9855_v20, %v19378_v14 }
 0x5e7   : > { %v19521_v9 = vadd.f32 %v9856_v28, %v19381_v53  ;;  %v19524_v41 = vadd.f32 %v9857_v36, %v19384_v27  ;;  %v19527_v18 = vadd.f32 %v9858_v3, %v19387_v42  ;;  %v19530_v55 = vadd.f32 %v9859_v30, %v19390_v43 }
 0x5e8   : > { %v19533_v1 = vadd.f32 %v9860_v50, %v19393_v16  ;;  %v19536_v54 = vadd.f32 %v9861_v22, %v19396_v13  ;;  %v9908_v0 = vcombine.high %v19430_v62, %v19430_v62  ;;  %v21720_v57 = vcombine.low %v19412_v19, %v19418_v23  ;;  %v21723_v13 = vld [vmem:[#allocation37_spill] sm:$0xff] }
 0x5e9   : > { %v21721_v53 = vcombine.high %v19412_v19, %v19418_v23  ;;  %v9929_v42 = vrot.slane %v19430_v62, %v21543_v45  ;;  %12492 = vpow2.f32 %v19436_v11  ;;  %v21722_v43 = vcombine.low %v21710_v31, %v21709_v5  ;;  %v21735_v11 = vld [vmem:[#allocation92_spill] sm:$0xff] }
 0x5ea   : > { %v9915_v14 = vrot.slane %v21720_v57, %v21543_v45  ;;  %v21724_v56 = vcombine.low %v21712_v25, %v21723_v13  ;;  %v10349_v19 = vcombine.high %v21710_v31, %v21709_v5  ;;  %v9936_v23 = vrot.slane %v9908_v0, %v21543_v45 }
 0x5eb   : > { %v9922_v27 = vrot.slane %v21721_v53, %v21543_v45  ;;  %v19555_v16 = vrot.slane %v21722_v43, %v21543_v45 }
 0x5ec   : > { %v19561_v44 = vrot.slane %v21724_v56, %v21543_v45  ;;  %v9937_v62 = vcombine.low %v9915_v14, %v9929_v42  ;;  %v9938_v6 = vcombine.high %v9915_v14, %v9929_v42  ;;  %v19573_v59 = vrot.slane %v10349_v19, %v21543_v45  ;;  %v21731_v56 = vld [vmem:[#allocation65_spill] sm:$0xff] }
 0x5ed   : > { %v9939_v5 = vcombine.low %v9922_v27, %v9936_v23  ;;  %v9940_v31 = vcombine.high %v9922_v27, %v9936_v23  ;;  %v21732_v23 = vld [vmem:[#allocation41_spill] sm:$0xff] }
 0x5ee   : > { %v9944_v10 = vrot.slane %v9937_v62, %v21727_v39  ;;  %v9948_v38 = vrot.slane %v9937_v62, %v21728_v24  ;;  %v9952_v7 = vrot.slane %v9937_v62, %v21729_v49  ;;  %v9956_v40 = vrot.slane %v9937_v62, %v21730_v47 }
 0x5ef   : > { %v9960_v37 = vrot.slane %v9937_v62, %v21694_v35  ;;  %v9984_v2 = vrot.slane %v9938_v6, %v21727_v39  ;;  %v9964_v20 = vrot.slane %v9939_v5, %v21727_v39  ;;  %v9968_v28 = vrot.slane %v9939_v5, %v21728_v24 }
 0x5f0   : > { %v9972_v36 = vrot.slane %v9939_v5, %v21729_v49  ;;  %v9976_v3 = vrot.slane %v9939_v5, %v21730_v47  ;;  %v9980_v30 = vrot.slane %v9939_v5, %v21694_v35  ;;  %v9988_v50 = vrot.slane %v9938_v6, %v21728_v24  ;;  %v21733_v5 = vld [vmem:[#allocation66_spill] sm:$0xff] }
 0x5f1   : > { %v9992_v22 = vrot.slane %v9938_v6, %v21729_v49  ;;  %v9996_v0 = vrot.slane %v9938_v6, %v21730_v47  ;;  %v10000_v57 = vrot.slane %v9938_v6, %v21694_v35  ;;  %v10004_v14 = vrot.slane %v9940_v31, %v21727_v39 }
 0x5f2   : > { %v10008_v53 = vrot.slane %v9940_v31, %v21728_v24  ;;  %v10012_v27 = vrot.slane %v9940_v31, %v21729_v49  ;;  %v10016_v42 = vrot.slane %v9940_v31, %v21730_v47  ;;  %v10020_v43 = vrot.slane %v9940_v31, %v21694_v35 }
 0x5f3   : > { %v10063_v19 = vmul.f32 %v21731_v56, %v9944_v10  ;;  %v10064_v62 = vmul.f32 %v21732_v23, %v9948_v38  ;;  %v10065_v60 = vmul.f32 %v21733_v5, %v9952_v7  ;;  %v10066_v58 = vmul.f32 %v21734_v15, %v9956_v40 }
 0x5f4   : > { %v10067_v6 = vmul.f32 %v21735_v11, %v9960_v37  ;;  %v10068_v39 = vmul.f32 %v21731_v56, %v9964_v20  ;;  %v10069_v24 = vmul.f32 %v21732_v23, %v9968_v28  ;;  %v10070_v49 = vmul.f32 %v21733_v5, %v9972_v36 }
 0x5f5   : > { %v10071_v47 = vmul.f32 %v21734_v15, %v9976_v3  ;;  %v10072_v31 = vmul.f32 %v21735_v11, %v9980_v30  ;;  %v10073_v10 = vmul.f32 %v21731_v56, %v9984_v2  ;;  %v10074_v38 = vmul.f32 %v21732_v23, %v9988_v50 }
 0x5f6   : > { %v10075_v7 = vmul.f32 %v21733_v5, %v9992_v22  ;;  %v10076_v40 = vmul.f32 %v21734_v15, %v9996_v0  ;;  %v10077_v37 = vmul.f32 %v21735_v11, %v10000_v57  ;;  %v10078_v20 = vmul.f32 %v21731_v56, %v10004_v14  ;;  %v12493_v35 = vpop.eup %12492 }
 0x5f7   : > { %v10079_v28 = vmul.f32 %v21732_v23, %v10008_v53  ;;  %v10080_v36 = vmul.f32 %v21733_v5, %v10012_v27  ;;  %v10081_v3 = vmul.f32 %v21734_v15, %v10016_v42  ;;  %v10082_v30 = vmul.f32 %v21735_v11, %v10020_v43  ;;  %v21741_v53 = vld [vmem:[#allocation122_spill] sm:$0xff]  ;;  %v21742_v27 = vld [vmem:[#allocation108_spill] sm:$0xff] }
 0x5f8   : > { %v19618_v2 = vadd.f32 %v10063_v19, %v19479_v12  ;;  %v19621_v50 = vadd.f32 %v10064_v62, %v19482_v21  ;;  %v19624_v22 = vadd.f32 %v10065_v60, %v19485_v29  ;;  %v19627_v0 = vadd.f32 %v10066_v58, %v19488_v61  ;;  %v21753_v42 = vld [vmem:[#allocation68_spill] sm:$0xff] }
 0x5f9   : > { %v19630_v57 = vadd.f32 %v10067_v6, %v19491_v17  ;;  %v19633_v14 = vadd.f32 %v10068_v39, %v19494_v32  ;;  %v19636_v15 = vadd.f32 %v10069_v24, %v19497_v4  ;;  %v19639_v12 = vadd.f32 %v10070_v49, %v19500_v52 }
 0x5fa   : > { %v19642_v21 = vadd.f32 %v10071_v47, %v19503_v26  ;;  %v19645_v29 = vadd.f32 %v10072_v31, %v19506_v51  ;;  %v19648_v61 = vadd.f32 %v10073_v10, %v19509_v34  ;;  %v19651_v17 = vadd.f32 %v10074_v38, %v19512_v46  ;;  %v21746_v10 = vld [vmem:[#allocation63_spill] sm:$0xff] }
 0x5fb   : > { %v19654_v32 = vadd.f32 %v10075_v7, %v19515_v48  ;;  %v19657_v4 = vadd.f32 %v10076_v40, %v19518_v33  ;;  %v19660_v52 = vadd.f32 %v10077_v37, %v19521_v9  ;;  %v19663_v26 = vadd.f32 %v10078_v20, %v19524_v41  ;;  %v21736_v33 = vld [vmem:[#allocation42_spill] sm:$0xff] }
 0x5fc   : > { %v19666_v51 = vadd.f32 %v10079_v28, %v19527_v18  ;;  %v19669_v34 = vadd.f32 %v10080_v36, %v19530_v55  ;;  %v19672_v46 = vadd.f32 %v10081_v3, %v19533_v1  ;;  %v19675_v48 = vadd.f32 %v10082_v30, %v19536_v54  ;;  %v21747_v7 = vld [vmem:[#allocation62_spill] sm:$0xff]  ;;  %v21749_v28 = vld [vmem:[#allocation64_spill] sm:$0xff] }
 0x5fd   : > { %v19678_v11 = vadd.f32 %v12493_v35, %v21736_v33  ;;  %v10150_v9 = vrot.slane %v12493_v35, %v21543_v45  ;;  %v21737_v41 = vcombine.low %v19555_v16, %v19561_v44  ;;  %v21738_v55 = vcombine.high %v19555_v16, %v19561_v44  ;;  %v21748_v37 = vld [vmem:[#allocation34_spill] sm:$0xff]  ;;  %v21750_v3 = vld [vmem:[#allocation8_spill] sm:$0xff]  ;;  %v21755_v44 = vld [vmem:[#allocation31_spill] sm:$0xff] }
 0x5fe   : > { %v10351_v1 = vcombine.high %v12493_v35, %v12493_v35  ;;  %v21739_v54 = vcombine.high %v21712_v25, %v21723_v13  ;;  %v21740_v49 = vsub.f32 %v21726_v63, %v21725_v8  ;;  %v21744_v25 = vld [vmem:[#allocation155_spill] sm:$0xff]  ;;  %v21754_v8 = vld [vmem:[#allocation29_spill] sm:$0xff] }
 0x5ff   : > { %v10160_v18 = vrot.slane %v21737_v41, %v21543_v45  ;;  %v10167_v58 = vrot.slane %v21738_v55, %v21543_v45  ;;  %v10153_v39 = vcombine.high %v10150_v9, %v10150_v9  ;;  %v10174_v24 = vrot.slane %v10150_v9, %v21543_v45 }
 0x600   : > { %v10365_v60 = vrot.slane %v21739_v54, %v21543_v45  ;;  %v10584_v47 = vmul.f32 1.442695, %v21740_v49  ;;  %v19700_v43 = vrot.slane %v10351_v1, %v21543_v45 }
 0x601   : > { %v10181_v56 = vrot.slane %v10153_v39, %v21543_v45  ;;  %v10182_v19 = vcombine.low %v10160_v18, %v10174_v24  ;;  %v10183_v23 = vcombine.high %v10160_v18, %v10174_v24 }
 0x602   : > { %v10373_v35 = vcombine.low %v19573_v59, %v10365_v60  ;;  %v10374_v16 = vcombine.high %v19573_v59, %v10365_v60  ;;  %12494 = vpow2.f32 %v10584_v47  ;;  %v19717_v59 = vrot.slane %v19700_v43, %v21543_v45 }
 0x603   : > { %v10184_v6 = vcombine.low %v10167_v58, %v10181_v56  ;;  %v10185_v31 = vcombine.high %v10167_v58, %v10181_v56  ;;  %v10189_v38 = vrot.slane %v10182_v19, %v21746_v10  ;;  %v10193_v40 = vrot.slane %v10182_v19, %v21747_v7  ;;  %v21751_v56 = vld [vmem:[#allocation107_spill] sm:$0xff] }
 0x604   : > { %v19710_v62 = vrot.slane %v10373_v35, %v21543_v45  ;;  %v19713_v5 = vrot.slane %v10374_v16, %v21543_v45  ;;  %v10197_v20 = vrot.slane %v10182_v19, %v21748_v37  ;;  %v10201_v36 = vrot.slane %v10182_v19, %v21749_v28 }
 0x605   : > { %v10205_v30 = vrot.slane %v10182_v19, %v21750_v3  ;;  %v10229_v33 = vrot.slane %v10183_v23, %v21746_v10  ;;  %v10209_v9 = vrot.slane %v10184_v6, %v21746_v10  ;;  %v10213_v41 = vrot.slane %v10184_v6, %v21747_v7 }
 0x606   : > { %21745 = vst [vmem:[#allocation13_spill] sm:$0xff] %v19713_v5  ;;  %v10217_v18 = vrot.slane %v10184_v6, %v21748_v37  ;;  %v10221_v55 = vrot.slane %v10184_v6, %v21749_v28  ;;  %v10225_v58 = vrot.slane %v10184_v6, %v21750_v3  ;;  %v10233_v1 = vrot.slane %v10183_v23, %v21747_v7  ;;  %v21752_v6 = vld [vmem:[#allocation67_spill] sm:$0xff] }
 0x607   : > { %v10237_v54 = vrot.slane %v10183_v23, %v21748_v37  ;;  %v10241_v60 = vrot.slane %v10183_v23, %v21749_v28  ;;  %v10245_v39 = vrot.slane %v10183_v23, %v21750_v3  ;;  %v10249_v24 = vrot.slane %v10185_v31, %v21746_v10 }
 0x608   : > { %v10253_v49 = vrot.slane %v10185_v31, %v21747_v7  ;;  %v10257_v47 = vrot.slane %v10185_v31, %v21748_v37  ;;  %v10261_v35 = vrot.slane %v10185_v31, %v21749_v28  ;;  %v10265_v16 = vrot.slane %v10185_v31, %v21750_v3 }
 0x609   : > { %v10309_v19 = vmul.f32 %v21751_v56, %v10189_v38  ;;  %v10310_v13 = vmul.f32 %v21752_v6, %v10193_v40  ;;  %v10311_v63 = vmul.f32 %v21753_v42, %v10197_v20  ;;  %v10312_v5 = vmul.f32 %v21754_v8, %v10201_v36 }
 0x60a   : > { %v10313_v23 = vmul.f32 %v21755_v44, %v10205_v30  ;;  %v10314_v10 = vmul.f32 %v21751_v56, %v10209_v9  ;;  %v10315_v7 = vmul.f32 %v21752_v6, %v10213_v41  ;;  %v10316_v37 = vmul.f32 %v21753_v42, %v10217_v18 }
 0x60b   : > { %v10317_v28 = vmul.f32 %v21754_v8, %v10221_v55  ;;  %v10318_v31 = vmul.f32 %v21755_v44, %v10225_v58  ;;  %v10319_v38 = vmul.f32 %v21751_v56, %v10229_v33  ;;  %v10320_v40 = vmul.f32 %v21752_v6, %v10233_v1 }
 0x60c   : > { %v10321_v20 = vmul.f32 %v21753_v42, %v10237_v54  ;;  %v10322_v36 = vmul.f32 %v21754_v8, %v10241_v60  ;;  %v10323_v30 = vmul.f32 %v21755_v44, %v10245_v39  ;;  %v10324_v9 = vmul.f32 %v21751_v56, %v10249_v24 }
 0x60d   : > { %v10325_v41 = vmul.f32 %v21752_v6, %v10253_v49  ;;  %v10326_v18 = vmul.f32 %v21753_v42, %v10257_v47  ;;  %v10327_v55 = vmul.f32 %v21754_v8, %v10261_v35  ;;  %v10328_v58 = vmul.f32 %v21755_v44, %v10265_v16  ;;  %v21765_v49 = vld [vmem:[#allocation64_spill] sm:$0xff] }
 0x60e   : > { %v19760_v33 = vadd.f32 %v10309_v19, %v19618_v2  ;;  %v19763_v1 = vadd.f32 %v10310_v13, %v19621_v50  ;;  %v19768_v60 = vadd.f32 %v10311_v63, %v19624_v22  ;;  %v19771_v39 = vadd.f32 %v10312_v5, %v19627_v0  ;;  %v21761_v5 = vld [vmem:[#allocation13_spill] sm:$0xff] }
 0x60f   : > { %v19765_v54 = vpop.eup %12494  ;;  %v19774_v42 = vadd.f32 %v10313_v23, %v19630_v57  ;;  %v19777_v8 = vadd.f32 %v10314_v10, %v19633_v14  ;;  %v19780_v2 = vadd.f32 %v10315_v7, %v19636_v15  ;;  %v19783_v50 = vadd.f32 %v10316_v37, %v19639_v12 }
 0x610   : > { %v19786_v44 = vadd.f32 %v10317_v28, %v19642_v21  ;;  %v19789_v22 = vadd.f32 %v10318_v31, %v19645_v29  ;;  %v19792_v0 = vadd.f32 %v10319_v38, %v19648_v61  ;;  %v19795_v57 = vadd.f32 %v10320_v40, %v19651_v17  ;;  %v21764_v28 = vld [vmem:[#allocation34_spill] sm:$0xff] }
 0x611   : > { %v19798_v14 = vadd.f32 %v10321_v20, %v19654_v32  ;;  %v19801_v15 = vadd.f32 %v10322_v36, %v19657_v4  ;;  %v19804_v12 = vadd.f32 %v10323_v30, %v19660_v52  ;;  %v19807_v21 = vadd.f32 %v10324_v9, %v19663_v26 }
 0x612   : > { %v19810_v29 = vadd.f32 %v10325_v41, %v19666_v51  ;;  %v19813_v61 = vadd.f32 %v10326_v18, %v19669_v34  ;;  %v19816_v17 = vadd.f32 %v10327_v55, %v19672_v46  ;;  %v19819_v32 = vadd.f32 %v10328_v58, %v19675_v48  ;;  %v21766_v58 = vld [vmem:[#allocation69_spill] sm:$0xff] }
 0x613   : > { %v21756_v4 = vcombine.high %v19700_v43, %v19700_v43  ;;  %v10404_v26 = vcombine.low %v19710_v62, %v19717_v59  ;;  %v10405_v51 = vcombine.high %v19710_v62, %v19717_v59  ;;  %v19831_v34 = vadd.f32 %v19765_v54, %v19678_v11  ;;  %v21759_v43 = vld [vmem:[#allocation138_spill] sm:$0xff]  ;;  %v21762_v59 = vld [vmem:[#allocation63_spill] sm:$0xff] }
 0x614   : > { %v21758_v46 = vcombine.low %v21742_v27, %v21741_v53  ;;  %v21760_v13 = vcombine.low %v21744_v25, %v21759_v43  ;;  %v21763_v11 = vld [vmem:[#allocation62_spill] sm:$0xff] }
 0x615   : > { %v10403_v52 = vrot.slane %v21756_v4, %v21543_v45  ;;  %21757 = vst [vmem:[#allocation30_spill] sm:$0xff] %v19831_v34  ;;  %v10411_v7 = vrot.slane %v10404_v26, %v21762_v59  ;;  %v10415_v37 = vrot.slane %v10404_v26, %v21763_v11  ;;  %v10419_v24 = vrot.slane %v10404_v26, %v21764_v28  ;;  %v21770_v34 = vld [vmem:[#allocation7_spill] sm:$0xff] }
 0x616   : > { %v19837_v48 = vrot.slane %v21758_v46, %v21543_v45  ;;  %v19843_v63 = vrot.slane %v21760_v13, %v21543_v45  ;;  %v10423_v47 = vrot.slane %v10404_v26, %v21765_v49  ;;  %v10427_v35 = vrot.slane %v10404_v26, %v21750_v3  ;;  %v21768_v46 = vld [vmem:[#allocation70_spill] sm:$0xff] }
 0x617   : > { %v10406_v10 = vcombine.low %v21761_v5, %v10403_v52  ;;  %v10407_v62 = vcombine.high %v21761_v5, %v10403_v52  ;;  %v10451_v16 = vrot.slane %v10405_v51, %v21762_v59  ;;  %v10455_v38 = vrot.slane %v10405_v51, %v21763_v11  ;;  %v21767_v52 = vld [vmem:[#allocation33_spill] sm:$0xff] }
 0x618   : > { %v10459_v40 = vrot.slane %v10405_v51, %v21764_v28  ;;  %v10463_v20 = vrot.slane %v10405_v51, %v21765_v49  ;;  %v10467_v36 = vrot.slane %v10405_v51, %v21750_v3  ;;  %v10531_v4 = vmul.f32 %v21766_v58, %v10411_v7  ;;  %v21769_v5 = vld [vmem:[#allocation137_spill] sm:$0xff] }
 0x619   : > { %v10431_v56 = vrot.slane %v10406_v10, %v21762_v59  ;;  %v10435_v19 = vrot.slane %v10406_v10, %v21763_v11  ;;  %v10439_v6 = vrot.slane %v10406_v10, %v21764_v28  ;;  %v10443_v23 = vrot.slane %v10406_v10, %v21765_v49 }
 0x61a   : > { %v10447_v31 = vrot.slane %v10406_v10, %v21750_v3  ;;  %v10471_v30 = vrot.slane %v10407_v62, %v21762_v59  ;;  %v10475_v9 = vrot.slane %v10407_v62, %v21763_v11  ;;  %v10479_v41 = vrot.slane %v10407_v62, %v21764_v28 }
 0x61b   : > { %v10483_v18 = vrot.slane %v10407_v62, %v21765_v49  ;;  %v10487_v55 = vrot.slane %v10407_v62, %v21750_v3  ;;  %v10532_v26 = vmul.f32 %v21767_v52, %v10415_v37  ;;  %v10533_v13 = vmul.f32 %v21768_v46, %v10419_v24 }
 0x61c   : > { %v10534_v10 = vmul.f32 %v21769_v5, %v10423_v47  ;;  %v10535_v51 = vmul.f32 %v21770_v34, %v10427_v35  ;;  %v10536_v59 = vmul.f32 %v21766_v58, %v10431_v56  ;;  %v10537_v11 = vmul.f32 %v21767_v52, %v10435_v19 }
 0x61d   : > { %v10538_v28 = vmul.f32 %v21768_v46, %v10439_v6  ;;  %v10539_v49 = vmul.f32 %v21769_v5, %v10443_v23  ;;  %v10540_v62 = vmul.f32 %v21770_v34, %v10447_v31  ;;  %v10541_v7 = vmul.f32 %v21766_v58, %v10451_v16 }
 0x61e   : > { %v10542_v37 = vmul.f32 %v21767_v52, %v10455_v38  ;;  %v10543_v24 = vmul.f32 %v21768_v46, %v10459_v40  ;;  %v10544_v47 = vmul.f32 %v21769_v5, %v10463_v20  ;;  %v10545_v35 = vmul.f32 %v21770_v34, %v10467_v36 }
 0x61f   : > { %v10546_v56 = vmul.f32 %v21766_v58, %v10471_v30  ;;  %v10547_v19 = vmul.f32 %v21767_v52, %v10475_v9  ;;  %v10548_v6 = vmul.f32 %v21768_v46, %v10479_v41  ;;  %v10549_v23 = vmul.f32 %v21769_v5, %v10483_v18  ;;  %v21774_v46 = vld [vmem:[#allocation63_spill] sm:$0xff]  ;;  %v21775_v5 = vld [vmem:[#allocation62_spill] sm:$0xff] }
 0x620   : > { %v10550_v31 = vmul.f32 %v21770_v34, %v10487_v55  ;;  %v19888_v16 = vadd.f32 %v10531_v4, %v19760_v33  ;;  %v19891_v38 = vadd.f32 %v10532_v26, %v19763_v1  ;;  %v19894_v40 = vadd.f32 %v10533_v13, %v19768_v60  ;;  %v21781_v58 = vld [vmem:[#allocation159_spill] sm:$0xff] }
 0x621   : > { %v19897_v20 = vadd.f32 %v10534_v10, %v19771_v39  ;;  %v19900_v36 = vadd.f32 %v10535_v51, %v19774_v42  ;;  %v19903_v30 = vadd.f32 %v10536_v59, %v19777_v8  ;;  %v19906_v34 = vadd.f32 %v10537_v11, %v19780_v2  ;;  %v21776_v51 = vld [vmem:[#allocation34_spill] sm:$0xff] }
 0x622   : > { %v19909_v33 = vadd.f32 %v10538_v28, %v19783_v50  ;;  %v19912_v1 = vadd.f32 %v10539_v49, %v19786_v44  ;;  %v19915_v60 = vadd.f32 %v10540_v62, %v19789_v22  ;;  %v19918_v39 = vadd.f32 %v10541_v7, %v19792_v0  ;;  %v21771_v28 = vld [vmem:[#allocation59_spill] sm:$0xff]  ;;  %v21772_v49 = vld [vmem:[#allocation141_spill] sm:$0xff]  ;;  %v21777_v7 = vld [vmem:[#allocation64_spill] sm:$0xff] }
 0x623   : > { %v19921_v42 = vadd.f32 %v10542_v37, %v19795_v57  ;;  %v19924_v8 = vadd.f32 %v10543_v24, %v19798_v14  ;;  %v19927_v2 = vadd.f32 %v10544_v47, %v19801_v15  ;;  %v19930_v50 = vadd.f32 %v10545_v35, %v19804_v12  ;;  %v19992_v35 = vpop.permute.xlu1 %10976 }
 0x624   : > { %v19933_v44 = vadd.f32 %v10546_v56, %v19807_v21  ;;  %v19936_v22 = vadd.f32 %v10547_v19, %v19810_v29  ;;  %v19939_v0 = vadd.f32 %v10548_v6, %v19813_v61  ;;  %v19942_v57 = vadd.f32 %v10549_v23, %v19816_v17 }
 0x625   : > { %v19945_v14 = vadd.f32 %v10550_v31, %v19819_v32  ;;  %v10618_v15 = vrot.slane %v19765_v54, %v21543_v45  ;;  %v10619_v12 = vcombine.low %v19837_v48, %v19843_v63  ;;  %v10620_v21 = vcombine.high %v19837_v48, %v19843_v63  ;;  %v10979_v31 = vpop.permute.xlu0 %10978 }
 0x626   : > { %v10817_v29 = vcombine.high %v21742_v27, %v21741_v53  ;;  %v10818_v61 = vcombine.high %v21744_v25, %v21759_v43  ;;  %v10819_v17 = vcombine.high %v19765_v54, %v19765_v54  ;;  %v11043_v9 = vsub.f32 %v21772_v49, %v21771_v28  ;;  %v21778_v49 = vld [vmem:[#allocation149_spill] sm:$0xff] }
 0x627   : > { %v10621_v32 = vcombine.high %v10618_v15, %v10618_v15  ;;  %v10628_v59 = vrot.slane %v10619_v12, %v21543_v45  ;;  %v10642_v11 = vrot.slane %v10618_v15, %v21543_v45  ;;  %v10635_v41 = vrot.slane %v10620_v21, %v21543_v45 }
 0x628   : > { %v19965_v48 = vrot.slane %v10817_v29, %v21543_v45  ;;  %v19968_v53 = vrot.slane %v10818_v61, %v21543_v45  ;;  %v19971_v27 = vrot.slane %v10819_v17, %v21543_v45  ;;  %v19974_v63 = vmul.f32 1.442695, %v11043_v9 }
 0x629   : > { %v10649_v25 = vrot.slane %v10621_v32, %v21543_v45  ;;  %v10650_v54 = vcombine.low %v10628_v59, %v10642_v11  ;;  %v10651_v43 = vcombine.high %v10628_v59, %v10642_v11 }
 0x62a   : > { %21773 = vst [vmem:[#allocation25_spill] sm:$0xff] %v19974_v63  ;;  %v19984_v4 = vrot.slane %v19971_v27, %v21543_v45 }
 0x62b   : > { %v10652_v52 = vcombine.low %v10635_v41, %v10649_v25  ;;  %v10653_v26 = vcombine.high %v10635_v41, %v10649_v25  ;;  %v10657_v13 = vrot.slane %v10650_v54, %v21774_v46  ;;  %v10661_v10 = vrot.slane %v10650_v54, %v21775_v5  ;;  %v21779_v41 = vld [vmem:[#allocation101_spill] sm:$0xff] }
 0x62c   : > { %v10665_v62 = vrot.slane %v10650_v54, %v21776_v51  ;;  %v10669_v37 = vrot.slane %v10650_v54, %v21777_v7  ;;  %v10673_v24 = vrot.slane %v10650_v54, %v21750_v3  ;;  %v10697_v47 = vrot.slane %v10651_v43, %v21774_v46  ;;  %v21780_v54 = vld [vmem:[#allocation88_spill] sm:$0xff] }
 0x62d   : > { %v10677_v56 = vrot.slane %v10652_v52, %v21774_v46  ;;  %v10681_v19 = vrot.slane %v10652_v52, %v21775_v5  ;;  %v10685_v6 = vrot.slane %v10652_v52, %v21776_v51  ;;  %v10689_v23 = vrot.slane %v10652_v52, %v21777_v7 }
 0x62e   : > { %v10693_v15 = vrot.slane %v10652_v52, %v21750_v3  ;;  %v10701_v12 = vrot.slane %v10651_v43, %v21775_v5  ;;  %v10705_v21 = vrot.slane %v10651_v43, %v21776_v51  ;;  %v10709_v29 = vrot.slane %v10651_v43, %v21777_v7 }
 0x62f   : > { %v10713_v61 = vrot.slane %v10651_v43, %v21750_v3  ;;  %v10717_v17 = vrot.slane %v10653_v26, %v21774_v46  ;;  %v10721_v32 = vrot.slane %v10653_v26, %v21775_v5  ;;  %v10725_v59 = vrot.slane %v10653_v26, %v21776_v51  ;;  %v21782_v43 = vld [vmem:[#allocation156_spill] sm:$0xff] }
 0x630   : > { %v10729_v11 = vrot.slane %v10653_v26, %v21777_v7  ;;  %v10733_v28 = vrot.slane %v10653_v26, %v21750_v3  ;;  %v10777_v9 = vmul.f32 %v21778_v49, %v10657_v13  ;;  %v10778_v25 = vmul.f32 %v21779_v41, %v10661_v10  ;;  %v10981_v3 = vpop.permute.xlu1 %10980 }
 0x631   : > { %v10779_v52 = vmul.f32 %v21780_v54, %v10665_v62  ;;  %v10780_v55 = vmul.f32 %v21781_v58, %v10669_v37  ;;  %v10781_v18 = vmul.f32 %v21782_v43, %v10673_v24  ;;  %v10782_v46 = vmul.f32 %v21778_v49, %v10677_v56  ;;  %v10983_v24 = vpop.permute.xlu0 %10982 }
 0x632   : > { %v10783_v5 = vmul.f32 %v21779_v41, %v10681_v19  ;;  %v10784_v51 = vmul.f32 %v21780_v54, %v10685_v6  ;;  %v10785_v7 = vmul.f32 %v21781_v58, %v10689_v23  ;;  %v10786_v26 = vmul.f32 %v21782_v43, %v10693_v15 }
 0x633   : > { %v10787_v13 = vmul.f32 %v21778_v49, %v10697_v47  ;;  %v10788_v10 = vmul.f32 %v21779_v41, %v10701_v12  ;;  %v10789_v62 = vmul.f32 %v21780_v54, %v10705_v21  ;;  %v10790_v37 = vmul.f32 %v21781_v58, %v10709_v29 }
 0x634   : > { %v10791_v56 = vmul.f32 %v21782_v43, %v10713_v61  ;;  %v10792_v19 = vmul.f32 %v21778_v49, %v10717_v17  ;;  %v10793_v6 = vmul.f32 %v21779_v41, %v10721_v32  ;;  %v10794_v23 = vmul.f32 %v21780_v54, %v10725_v59  ;;  %v21789_v59 = vld [vmem:[#allocation25_spill] sm:$0xff]  ;;  %v21794_v41 = vld [vmem:[#allocation8_spill] sm:$0xff] }
 0x635   : > { %v10795_v15 = vmul.f32 %v21781_v58, %v10729_v11  ;;  %v10796_v63 = vmul.f32 %v21782_v43, %v10733_v28  ;;  %v20029_v47 = vadd.f32 %v10777_v9, %v19888_v16  ;;  %v20032_v12 = vadd.f32 %v10778_v25, %v19891_v38  ;;  %v21791_v11 = vld [vmem:[#allocation62_spill] sm:$0xff]  ;;  %v21793_v9 = vld [vmem:[#allocation64_spill] sm:$0xff] }
 0x636   : > { %v20035_v21 = vadd.f32 %v10779_v52, %v19894_v40  ;;  %v20038_v29 = vadd.f32 %v10780_v55, %v19897_v20  ;;  %v20041_v61 = vadd.f32 %v10781_v18, %v19900_v36  ;;  %v20044_v17 = vadd.f32 %v10782_v46, %v19903_v30 }
 0x637   : > { %v20047_v58 = vadd.f32 %v10783_v5, %v19906_v34  ;;  %v20050_v16 = vadd.f32 %v10784_v51, %v19909_v33  ;;  %v20053_v38 = vadd.f32 %v10785_v7, %v19912_v1  ;;  %v20056_v40 = vadd.f32 %v10786_v26, %v19915_v60  ;;  %v10985_v33 = vpop.permute.xlu1 %10984 }
 0x638   : > { %v20059_v20 = vadd.f32 %v10787_v13, %v19918_v39  ;;  %v20062_v36 = vadd.f32 %v10788_v10, %v19921_v42  ;;  %v20065_v30 = vadd.f32 %v10789_v62, %v19924_v8  ;;  %v20068_v34 = vadd.f32 %v10790_v37, %v19927_v2  ;;  %v10987_v42 = vpop.permute.xlu0 %10986 }
 0x639   : > { %v20071_v18 = vadd.f32 %v10791_v56, %v19930_v50  ;;  %v20074_v1 = vadd.f32 %v10792_v19, %v19933_v44  ;;  %v20077_v60 = vadd.f32 %v10793_v6, %v19936_v22  ;;  %v20080_v39 = vadd.f32 %v10794_v23, %v19939_v0 }
 0x63a   : > { %v20083_v8 = vadd.f32 %v10795_v15, %v19942_v57  ;;  %v20086_v2 = vadd.f32 %v10796_v63, %v19945_v14  ;;  %v21786_v50 = vcombine.low %v19965_v48, %v19968_v53  ;;  %v10989_v44 = vsel %vm10988_vm10, %v19992_v35, %v10979_v31 }
 0x63b   : > { %21783 = vst [vmem:[#allocation152_spill] sm:$0xff] %v20080_v39  ;;  %v10990_v22 = vsel %vm10988_vm10, %v10979_v31, %v10981_v3  ;;  %v21787_v0 = vcombine.high %v19965_v48, %v19968_v53  ;;  %v21788_v57 = vcombine.high %v19971_v27, %v19971_v27  ;;  %v10991_v63 = vsel %vm10988_vm10, %v10981_v3, %v10983_v24  ;;  %v21790_v48 = vld [vmem:[#allocation63_spill] sm:$0xff]  ;;  %v21792_v27 = vld [vmem:[#allocation34_spill] sm:$0xff] }
 0x63c   : > { %21784 = vst [vmem:[#allocation18_spill] sm:$0xff] %v20083_v8  ;;  %21785 = vst [vmem:[#allocation20_spill] sm:$0xff] %v20086_v2  ;;  %v10850_v55 = vrot.slane %v21786_v50, %v21543_v45  ;;  %v10992_v5 = vsel %vm10988_vm10, %v10983_v24, %v10985_v33  ;;  %v10993_v35 = vsel %vm10988_vm10, %v10985_v33, %v10987_v42  ;;  %12496 = vpow2.f32 %v21789_v59  ;;  %v11223_v33 = vpop.permute.xlu1 %11222  ;;  %v11225_v42 = vpop.permute.xlu0 %11224 }
 0x63d   : > { %v10857_v46 = vrot.slane %v21787_v0, %v21543_v45  ;;  %v10871_v14 = vrot.slane %v21788_v57, %v21543_v45 }
 0x63e   : > { %v10872_v51 = vcombine.low %v10850_v55, %v19984_v4  ;;  %v10873_v7 = vcombine.high %v10850_v55, %v19984_v4 }
 0x63f   : > { %v10874_v31 = vcombine.low %v10857_v46, %v10871_v14  ;;  %v10875_v32 = vcombine.high %v10857_v46, %v10871_v14 }
 0x640   : > { %v10879_v53 = vrot.slane %v10872_v51, %v21790_v48  ;;  %v10883_v28 = vrot.slane %v10872_v51, %v21791_v11  ;;  %v10887_v49 = vrot.slane %v10872_v51, %v21792_v27  ;;  %v10891_v3 = vrot.slane %v10872_v51, %v21793_v9 }
 0x641   : > { %v10895_v25 = vrot.slane %v10872_v51, %v21794_v41  ;;  %v10899_v54 = vrot.slane %v10874_v31, %v21790_v48  ;;  %v10903_v4 = vrot.slane %v10874_v31, %v21791_v11  ;;  %v10907_v52 = vrot.slane %v10874_v31, %v21792_v27 }
 0x642   : > { %v10911_v43 = vrot.slane %v10874_v31, %v21793_v9  ;;  %v10915_v26 = vrot.slane %v10874_v31, %v21794_v41  ;;  %v10919_v13 = vrot.slane %v10873_v7, %v21790_v48  ;;  %v10923_v10 = vrot.slane %v10873_v7, %v21791_v11 }
 0x643   : > { %v10927_v62 = vrot.slane %v10873_v7, %v21792_v27  ;;  %v10931_v37 = vrot.slane %v10873_v7, %v21793_v9  ;;  %v10935_v24 = vrot.slane %v10873_v7, %v21794_v41  ;;  %v10939_v56 = vrot.slane %v10875_v32, %v21790_v48 }
 0x644   : > { %v10943_v19 = vrot.slane %v10875_v32, %v21791_v11  ;;  %v10947_v6 = vrot.slane %v10875_v32, %v21792_v27  ;;  %v10951_v23 = vrot.slane %v10875_v32, %v21793_v9  ;;  %v10955_v15 = vrot.slane %v10875_v32, %v21794_v41 }
 0x645   : > { %v10999_v50 = vmul.f32 %v10989_v44, %v10879_v53  ;;  %v11000_v55 = vmul.f32 %v10990_v22, %v10883_v28  ;;  %v11001_v0 = vmul.f32 %v10991_v63, %v10887_v49  ;;  %v11002_v46 = vmul.f32 %v10992_v5, %v10891_v3 }
 0x646   : > { %v11003_v57 = vmul.f32 %v10993_v35, %v10895_v25  ;;  %v11004_v14 = vmul.f32 %v10989_v44, %v10899_v54  ;;  %v11005_v51 = vmul.f32 %v10990_v22, %v10903_v4  ;;  %v11006_v7 = vmul.f32 %v10991_v63, %v10907_v52  ;;  %v11227_v25 = vpop.permute.xlu1 %11226  ;;  %v11229_v54 = vpop.permute.xlu0 %11228 }
 0x647   : > { %v11007_v31 = vmul.f32 %v10992_v5, %v10911_v43  ;;  %v11008_v59 = vmul.f32 %v10993_v35, %v10915_v26  ;;  %v11009_v48 = vmul.f32 %v10989_v44, %v10919_v13  ;;  %v11010_v11 = vmul.f32 %v10990_v22, %v10923_v10 }
 0x648   : > { %v11011_v45 = vmul.f32 %v10991_v63, %v10927_v62  ;;  %v11012_v27 = vmul.f32 %v10992_v5, %v10931_v37  ;;  %v11013_v2 = vmul.f32 %v10993_v35, %v10935_v24  ;;  %v11014_v9 = vmul.f32 %v10989_v44, %v10939_v56 }
 0x649   : > { %v11015_v8 = vmul.f32 %v10990_v22, %v10943_v19  ;;  %v11016_v32 = vmul.f32 %v10991_v63, %v10947_v6  ;;  %v11017_v41 = vmul.f32 %v10992_v5, %v10951_v23  ;;  %v11018_v39 = vmul.f32 %v10993_v35, %v10955_v15  ;;  %v12497_v63 = vpop.eup %12496 }
 0x64a   : > { %v20130_v53 = vadd.f32 %v10999_v50, %v20029_v47  ;;  %v20133_v28 = vadd.f32 %v11000_v55, %v20032_v12  ;;  %v20136_v49 = vadd.f32 %v11001_v0, %v20035_v21  ;;  %v20139_v3 = vadd.f32 %v11002_v46, %v20038_v29  ;;  %v21807_v55 = vld [vmem:[#allocation63_spill] sm:$0xff]  ;;  %v21808_v46 = vld [vmem:[#allocation62_spill] sm:$0xff] }
 0x64b   : > { %v20142_v44 = vadd.f32 %v11003_v57, %v20041_v61  ;;  %v20145_v22 = vadd.f32 %v11004_v14, %v20044_v17  ;;  %v20148_v47 = vadd.f32 %v11005_v51, %v20047_v58  ;;  %v20151_v12 = vadd.f32 %v11006_v7, %v20050_v16  ;;  %v21809_v57 = vld [vmem:[#allocation34_spill] sm:$0xff]  ;;  %v21810_v14 = vld [vmem:[#allocation64_spill] sm:$0xff] }
 0x64c   : > { %v20154_v21 = vadd.f32 %v11007_v31, %v20053_v38  ;;  %v20157_v29 = vadd.f32 %v11008_v59, %v20056_v40  ;;  %v20160_v5 = vadd.f32 %v11009_v48, %v20059_v20  ;;  %v20163_v61 = vadd.f32 %v11010_v11, %v20062_v36  ;;  %v21795_v20 = vld [vmem:[#allocation152_spill] sm:$0xff]  ;;  %v21796_v36 = vld [vmem:[#allocation18_spill] sm:$0xff] }
 0x64d   : > { %v20166_v17 = vadd.f32 %v11011_v45, %v20065_v30  ;;  %v20169_v58 = vadd.f32 %v11012_v27, %v20068_v34  ;;  %v20172_v16 = vadd.f32 %v11013_v2, %v20071_v18  ;;  %v20175_v38 = vadd.f32 %v11014_v9, %v20074_v1  ;;  %v21798_v45 = vld [vmem:[#allocation20_spill] sm:$0xff]  ;;  %v21800_v34 = vld [vmem:[#allocation30_spill] sm:$0xff]  ;;  %v11231_v27 = vpop.permute.xlu1 %11230  ;;  %v11233_v1 = vpop.permute.xlu0 %11232 }
 0x64e   : > { %v20178_v40 = vadd.f32 %v11015_v8, %v20077_v60  ;;  %v20181_v35 = vadd.f32 %v11016_v32, %v21795_v20  ;;  %v20184_v48 = vadd.f32 %v11017_v41, %v21796_v36  ;;  %v20187_v30 = vadd.f32 %v11018_v39, %v21798_v45  ;;  %v21801_v18 = vld [vmem:[#allocation142_spill] sm:$0xff]  ;;  %v21803_v8 = vld [vmem:[#allocation109_spill] sm:$0xff]  ;;  %v21811_v7 = vld [vmem:[#allocation8_spill] sm:$0xff] }
 0x64f   : > { %v11058_v11 = vadd.f32 %v12497_v63, %v21800_v34  ;;  %v11086_v2 = vrot.slane %v12497_v63, %v21801_v18  ;;  %v21802_v60 = vld [vmem:[#allocation106_spill] sm:$0xff]  ;;  %v11235_v13 = vsel %vm11234_vm12, %v11223_v33, %v11225_v42  ;;  %v11236_v10 = vsel %vm11234_vm12, %v11225_v42, %v11227_v25 }
 0x650   : > { %21797 = vst [vmem:[#allocation15_spill] sm:$0xff] %v20184_v48  ;;  %21799 = vst [vmem:[#allocation10_spill] sm:$0xff] %v20187_v30  ;;  %v21804_v4 = vcombine.low %v21802_v60, %v21803_v8  ;;  %v21805_v39 = vcombine.high %v21802_v60, %v21803_v8  ;;  %v11237_v56 = vsel %vm11234_vm12, %v11227_v25, %v11229_v54 }
 0x651   : > { %v11089_v9 = vcombine.high %v11086_v2, %v11086_v2  ;;  %v11110_v43 = vrot.slane %v11086_v2, %v21801_v18  ;;  %v11294_v41 = vrot.slane %v11058_v11, 4  ;;  %v11238_v19 = vsel %vm11234_vm12, %v11229_v54, %v11231_v27 }
 0x652   : > { %v11096_v52 = vrot.slane %v21804_v4, %v21801_v18  ;;  %v11103_v26 = vrot.slane %v21805_v39, %v21801_v18  ;;  %v11239_v6 = vsel %vm11234_vm12, %v11231_v27, %v11233_v1 }
 0x653   : > { %v11117_v62 = vrot.slane %v11089_v9, %v21801_v18  ;;  %v20206_v23 = vadd.f32 %v11294_v41, %v11058_v11 }
 0x654   : > { %v11118_v37 = vcombine.low %v11096_v52, %v11110_v43  ;;  %v11119_v24 = vcombine.high %v11096_v52, %v11110_v43 }
 0x655   : > { %21806 = vst [vmem:[#allocation32_spill] sm:$0xff] %v20206_v23  ;;  %v11120_v15 = vcombine.low %v11103_v26, %v11117_v62  ;;  %v11121_v50 = vcombine.high %v11103_v26, %v11117_v62 }
 0x656   : > { %v11125_v0 = vrot.slane %v11118_v37, %v21807_v55  ;;  %v11129_v33 = vrot.slane %v11118_v37, %v21808_v46  ;;  %v11133_v42 = vrot.slane %v11118_v37, %v21809_v57  ;;  %v11137_v51 = vrot.slane %v11118_v37, %v21810_v14 }
 0x657   : > { %v11141_v31 = vrot.slane %v11118_v37, %v21811_v7  ;;  %v11165_v59 = vrot.slane %v11119_v24, %v21807_v55  ;;  %v11145_v32 = vrot.slane %v11120_v15, %v21807_v55  ;;  %v11149_v25 = vrot.slane %v11120_v15, %v21808_v46 }
 0x658   : > { %v11153_v54 = vrot.slane %v11120_v15, %v21809_v57  ;;  %v11157_v63 = vrot.slane %v11120_v15, %v21810_v14  ;;  %v11161_v20 = vrot.slane %v11120_v15, %v21811_v7  ;;  %v11169_v36 = vrot.slane %v11119_v24, %v21808_v46 }
 0x659   : > { %v11173_v45 = vrot.slane %v11119_v24, %v21809_v57  ;;  %v11177_v34 = vrot.slane %v11119_v24, %v21810_v14  ;;  %v11181_v11 = vrot.slane %v11119_v24, %v21811_v7  ;;  %v11185_v2 = vrot.slane %v11121_v50, %v21807_v55 }
 0x65a   : > { %v11189_v27 = vrot.slane %v11121_v50, %v21808_v46  ;;  %v11193_v1 = vrot.slane %v11121_v50, %v21809_v57  ;;  %v11197_v9 = vrot.slane %v11121_v50, %v21810_v14  ;;  %v11201_v60 = vrot.slane %v11121_v50, %v21811_v7 }
 0x65b   : > { %v11245_v8 = vmul.f32 %v11235_v13, %v11125_v0  ;;  %v11246_v4 = vmul.f32 %v11236_v10, %v11129_v33  ;;  %v11247_v52 = vmul.f32 %v11237_v56, %v11133_v42  ;;  %v11248_v43 = vmul.f32 %v11238_v19, %v11137_v51 }
 0x65c   : > { %v11249_v41 = vmul.f32 %v11239_v6, %v11141_v31  ;;  %v11250_v39 = vmul.f32 %v11235_v13, %v11145_v32  ;;  %v11251_v26 = vmul.f32 %v11236_v10, %v11149_v25  ;;  %v11252_v62 = vmul.f32 %v11237_v56, %v11153_v54  ;;  %v21814_v25 = vld [vmem:[#allocation32_spill] sm:$0xff]  ;;  %v21820_v54 = vld [vmem:[#allocation63_spill] sm:$0xff] }
 0x65d   : > { %v11253_v37 = vmul.f32 %v11238_v19, %v11157_v63  ;;  %v11254_v24 = vmul.f32 %v11239_v6, %v11161_v20  ;;  %v11255_v15 = vmul.f32 %v11235_v13, %v11165_v59  ;;  %v11256_v55 = vmul.f32 %v11236_v10, %v11169_v36  ;;  %v21821_v20 = vld [vmem:[#allocation62_spill] sm:$0xff] }
 0x65e   : > { %v11257_v18 = vmul.f32 %v11237_v56, %v11173_v45  ;;  %v11258_v46 = vmul.f32 %v11238_v19, %v11177_v34  ;;  %v11259_v23 = vmul.f32 %v11239_v6, %v11181_v11  ;;  %v11260_v57 = vmul.f32 %v11235_v13, %v11185_v2  ;;  %v21822_v45 = vld [vmem:[#allocation34_spill] sm:$0xff]  ;;  %v21823_v11 = vld [vmem:[#allocation64_spill] sm:$0xff] }
 0x65f   : > { %v11261_v30 = vmul.f32 %v11236_v10, %v11189_v27  ;;  %v11262_v14 = vmul.f32 %v11237_v56, %v11193_v1  ;;  %v11263_v48 = vmul.f32 %v11238_v19, %v11197_v9  ;;  %v11264_v50 = vmul.f32 %v11239_v6, %v11201_v60  ;;  %v21812_v19 = vld [vmem:[#allocation15_spill] sm:$0xff]  ;;  %v21813_v6 = vld [vmem:[#allocation10_spill] sm:$0xff] }
 0x660   : > { %v11265_v0 = vadd.f32 %v11245_v8, %v20130_v53  ;;  %v11266_v33 = vadd.f32 %v11246_v4, %v20133_v28  ;;  %v11267_v42 = vadd.f32 %v11247_v52, %v20136_v49  ;;  %v11268_v51 = vadd.f32 %v11248_v43, %v20139_v3 }
 0x661   : > { %v11269_v31 = vadd.f32 %v11249_v41, %v20142_v44  ;;  %v11270_v59 = vadd.f32 %v11250_v39, %v20145_v22  ;;  %v11271_v32 = vadd.f32 %v11251_v26, %v20148_v47  ;;  %v11272_v13 = vadd.f32 %v11252_v62, %v20151_v12 }
 0x662   : > { %v11273_v10 = vadd.f32 %v11253_v37, %v20154_v21  ;;  %v11274_v56 = vadd.f32 %v11254_v24, %v20157_v29  ;;  %v11275_v53 = vadd.f32 %v11255_v15, %v20160_v5  ;;  %v11276_v28 = vadd.f32 %v11256_v55, %v20163_v61  ;;  %v21815_v61 = vld [vmem:[#allocation142_spill] sm:$0xff] }
 0x663   : > { %v11277_v49 = vadd.f32 %v11257_v18, %v20166_v17  ;;  %v11278_v3 = vadd.f32 %v11258_v46, %v20169_v58  ;;  %v11279_v44 = vadd.f32 %v11259_v23, %v20172_v16  ;;  %v11280_v22 = vadd.f32 %v11260_v57, %v20175_v38  ;;  %v21816_v58 = vld [vmem:[#allocation14_spill] sm:$0xff]  ;;  %v21817_v18 = vld [vmem:[#allocation9_spill] sm:$0xff] }
 0x664   : > { %v11281_v47 = vadd.f32 %v11261_v30, %v20178_v40  ;;  %v11282_v12 = vadd.f32 %v11262_v14, %v20181_v35  ;;  %v11283_v21 = vadd.f32 %v11263_v48, %v21812_v19  ;;  %v11284_v29 = vadd.f32 %v11264_v50, %v21813_v6 }
 0x665   : > { %12498 = vrcp.f32 %v21814_v25  ;;  %v21818_v16 = vcombine.low %v21816_v58, %v21817_v18  ;;  %v21819_v40 = vcombine.high %v21816_v58, %v21817_v18 }
 0x667   : > { %v11347_v23 = vrot.slane %v21818_v16, %v21815_v61  ;;  %v11354_v35 = vrot.slane %v21819_v40, %v21815_v61 }
 0x672   : > { %v12499_v5 = vpop.eup %12498 }
 0x673   : > { %v11337_v55 = vrot.slane %v12499_v5, %v21815_v61 }
 0x675   : > { %v11340_v17 = vcombine.high %v11337_v55, %v11337_v55  ;;  %v11361_v38 = vrot.slane %v11337_v55, %v21815_v61 }
 0x677   : > { %v11368_v48 = vrot.slane %v11340_v17, %v21815_v61  ;;  %v11369_v30 = vcombine.low %v11347_v23, %v11361_v38  ;;  %v11370_v46 = vcombine.high %v11347_v23, %v11361_v38 }
 0x679   : > { %v11371_v57 = vcombine.low %v11354_v35, %v11368_v48  ;;  %v11372_v14 = vcombine.high %v11354_v35, %v11368_v48  ;;  %v11376_v63 = vrot.slane %v11369_v30, %v21820_v54  ;;  %v11380_v36 = vrot.slane %v11369_v30, %v21821_v20  ;;  %v11497_v48 = vpop.permute.xlu1 %11496 }
 0x67a   : > { %v11384_v34 = vrot.slane %v11369_v30, %v21822_v45  ;;  %v11388_v2 = vrot.slane %v11369_v30, %v21823_v11  ;;  %v11392_v27 = vrot.slane %v11369_v30, %v21811_v7  ;;  %v11416_v1 = vrot.slane %v11370_v46, %v21820_v54 }
 0x67b   : > { %v11396_v9 = vrot.slane %v11371_v57, %v21820_v54  ;;  %v11400_v60 = vrot.slane %v11371_v57, %v21821_v20  ;;  %v11404_v8 = vrot.slane %v11371_v57, %v21822_v45  ;;  %v11408_v4 = vrot.slane %v11371_v57, %v21823_v11 }
 0x67c   : > { %v11412_v52 = vrot.slane %v11371_v57, %v21811_v7  ;;  %v11420_v43 = vrot.slane %v11370_v46, %v21821_v20  ;;  %v11424_v41 = vrot.slane %v11370_v46, %v21822_v45  ;;  %v11428_v39 = vrot.slane %v11370_v46, %v21823_v11 }
 0x67d   : > { %v11432_v26 = vrot.slane %v11370_v46, %v21811_v7  ;;  %v11436_v62 = vrot.slane %v11372_v14, %v21820_v54  ;;  %v11440_v37 = vrot.slane %v11372_v14, %v21821_v20  ;;  %v11444_v24 = vrot.slane %v11372_v14, %v21822_v45 }
 0x67e   : > { %v11448_v15 = vrot.slane %v11372_v14, %v21823_v11  ;;  %v11452_v50 = vrot.slane %v11372_v14, %v21811_v7  ;;  %v11473_v19 = vmul.f32 %v11376_v63, %v11265_v0  ;;  %v11474_v6 = vmul.f32 %v11380_v36, %v11266_v33 }
 0x67f   : > { %v11475_v25 = vmul.f32 %v11384_v34, %v11267_v42  ;;  %v11476_v5 = vmul.f32 %v11388_v2, %v11268_v51  ;;  %v11477_v61 = vmul.f32 %v11392_v27, %v11269_v31  ;;  %v11478_v55 = vmul.f32 %v11396_v9, %v11270_v59 }
 0x680   : > { %v11479_v17 = vmul.f32 %v11400_v60, %v11271_v32  ;;  %v11480_v58 = vmul.f32 %v11404_v8, %v11272_v13  ;;  %v11481_v18 = vmul.f32 %v11408_v4, %v11273_v10  ;;  %v11482_v16 = vmul.f32 %v11412_v52, %v11274_v56 }
 0x681   : > { %v11483_v23 = vmul.f32 %v11416_v1, %v11275_v53  ;;  %v11484_v38 = vmul.f32 %v11420_v43, %v11276_v28  ;;  %v11485_v40 = vmul.f32 %v11424_v41, %v11277_v49  ;;  %v11486_v35 = vmul.f32 %v11428_v39, %v11278_v3 }
 0x682   : > { %v11487_v30 = vmul.f32 %v11432_v26, %v11279_v44  ;;  %v11488_v46 = vmul.f32 %v11436_v62, %v11280_v22  ;;  %v11489_v7 = vmul.f32 %v11440_v37, %v11281_v47  ;;  %v11490_v0 = vmul.f32 %v11444_v24, %v11282_v12 }
 0x683   : > { %v11491_v33 = vmul.f32 %v11448_v15, %v11283_v21  ;;  %v11492_v57 = vmul.f32 %v11452_v50, %v11284_v29  ;;  %v11499_v42 = vadd.f32 %v11497_v48, %v11473_v19  ;;  %v11500_v51 = vadd.f32 %v11497_v48, %v11474_v6 }
 0x684   : > { %v11501_v31 = vadd.f32 %v11497_v48, %v11475_v25  ;;  %v11502_v59 = vadd.f32 %v11497_v48, %v11476_v5  ;;  %v11503_v32 = vadd.f32 %v11497_v48, %v11477_v61  ;;  %v11504_v13 = vadd.f32 %v11497_v48, %v11478_v55 }
 0x685   : > { %v11505_v10 = vadd.f32 %v11497_v48, %v11479_v17  ;;  %v11506_v56 = vadd.f32 %v11497_v48, %v11480_v58  ;;  %v11507_v53 = vadd.f32 %v11497_v48, %v11481_v18  ;;  %v11508_v28 = vadd.f32 %v11497_v48, %v11482_v16 }
 0x686   : > { %v11509_v49 = vadd.f32 %v11497_v48, %v11483_v23  ;;  %v11510_v3 = vadd.f32 %v11497_v48, %v11484_v38  ;;  %v11511_v14 = vadd.f32 %v11497_v48, %v11485_v40  ;;  %v11512_v44 = vadd.f32 %v11497_v48, %v11486_v35  ;;  %11553 = vst [vmem:[%s20284_s26 + $0x10] sm:$0xf] %v11503_v32 }
 0x687   : > { %v11513_v22 = vadd.f32 %v11497_v48, %v11487_v30  ;;  %v11514_v47 = vadd.f32 %v11497_v48, %v11488_v46  ;;  %v11515_v12 = vadd.f32 %v11497_v48, %v11489_v7  ;;  %v11516_v21 = vadd.f32 %v11497_v48, %v11490_v0  ;;  %11556 = vst [vmem:[%s20284_s26 + $0x24] sm:$0xf] %v11508_v28 }
 0x688   : > { %v11517_v29 = vadd.f32 %v11497_v48, %v11491_v33  ;;  %v11518_v54 = vadd.f32 %v11497_v48, %v11492_v57  ;;  %v11535_v63 = vcombine.low %v11499_v42, %v11500_v51  ;;  %v11536_v20 = vcombine.low %v11501_v31, %v11502_v59 }
 0x689   : > { %v11537_v36 = vcombine.low %v11504_v13, %v11505_v10  ;;  %v11538_v45 = vcombine.low %v11506_v56, %v11507_v53  ;;  %v11539_v34 = vcombine.low %v11509_v49, %v11510_v3  ;;  %v11540_v11 = vcombine.low %v11511_v14, %v11512_v44  ;;  %11559 = vst [vmem:[%s20284_s26 + $0x38] sm:$0xf] %v11513_v22 }
 0x68a   : > { %v11541_v2 = vcombine.low %v11514_v47, %v11515_v12  ;;  %v11542_v27 = vcombine.low %v11516_v21, %v11517_v29  ;;  %11551 = vst [vmem:[%s20284_s26] sm:$0xff] %v11535_v63  ;;  %11552 = vst [vmem:[%s20284_s26 + $0x8] sm:$0xff] %v11536_v20  ;;  %11569 = sbr.rel (!%p12653_p4) target bundleno = 1687 (0x697), region = 48 }
 0x68b   : > { %11562 = vst [vmem:[%s20284_s26 + $0x4c] sm:$0xf] %v11518_v54  ;;  %11554 = vst [vmem:[%s20284_s26 + $0x14] sm:$0xff] %v11537_v36 }
 0x68c   : > { %11555 = vst [vmem:[%s20284_s26 + $0x1c] sm:$0xff] %v11538_v45  ;;  %11557 = vst [vmem:[%s20284_s26 + $0x28] sm:$0xff] %v11539_v34 }
 0x68d   : > { %11558 = vst [vmem:[%s20284_s26 + $0x30] sm:$0xff] %v11540_v11  ;;  %11560 = vst [vmem:[%s20284_s26 + $0x3c] sm:$0xff] %v11541_v2  ;;  %v11976_v39 = vld [vmem:[%s20284_s26 + $0x10] sm:$0xf] (%p12653_p4) }
 0x68e   : > { %11561 = vst [vmem:[%s20284_s26 + $0x44] sm:$0xff] %v11542_v27  ;;  %11977 = vst [vmem:[%s11572_s13 + $0x10] sm:$0xf] (%p12653_p4), %v11976_v39  ;;  %v11978_v26 = vld [vmem:[%s20284_s26 + $0x24] sm:$0xf] (%p12653_p4) }
 0x68f   : > { %11979 = vst [vmem:[%s11572_s13 + $0x38] sm:$0xf] %v11978_v26 }
 0x690   : > { %v11980_v62 = vld [vmem:[%s20284_s26 + $0x38] sm:$0xf] }
 0x691   : > { %v11587_v1 = vld [vmem:[%s20284_s26] sm:$0xff]  ;;  %v11589_v9 = vld [vmem:[%s20284_s26 + $0x8] sm:$0xff]  ;;  %11981 = vst [vmem:[%s11572_s13 + $0x60] sm:$0xf] %v11980_v62 }
 0x692   : > { %v11591_v60 = vld [vmem:[%s20284_s26 + $0x14] sm:$0xff]  ;;  %11588 = vst [vmem:[%s11572_s13] sm:$0xff] %v11587_v1  ;;  %11590 = vst [vmem:[%s11572_s13 + $0x8] sm:$0xff] %v11589_v9  ;;  %v11982_v37 = vld [vmem:[%s20284_s26 + $0x4c] sm:$0xf] }
 0x693   : > { %v11593_v8 = vld [vmem:[%s20284_s26 + $0x1c] sm:$0xff]  ;;  %v11595_v4 = vld [vmem:[%s20284_s26 + $0x28] sm:$0xff]  ;;  %11592 = vst [vmem:[%s11572_s13 + $0x28] sm:$0xff] %v11591_v60  ;;  %11983 = vst [vmem:[%s11572_s13 + $0x88] sm:$0xf] %v11982_v37 }
 0x694   : > { %v11597_v52 = vld [vmem:[%s20284_s26 + $0x30] sm:$0xff]  ;;  %v11599_v43 = vld [vmem:[%s20284_s26 + $0x3c] sm:$0xff]  ;;  %11594 = vst [vmem:[%s11572_s13 + $0x30] sm:$0xff] %v11593_v8  ;;  %11596 = vst [vmem:[%s11572_s13 + $0x50] sm:$0xff] %v11595_v4 }
 0x695   : > { %v11601_v41 = vld [vmem:[%s20284_s26 + $0x44] sm:$0xff]  ;;  %11598 = vst [vmem:[%s11572_s13 + $0x58] sm:$0xff] %v11597_v52  ;;  %11600 = vst [vmem:[%s11572_s13 + $0x78] sm:$0xff] %v11599_v43 }
 0x696   : > { %11602 = vst [vmem:[%s11572_s13 + $0x80] sm:$0xff] %v11601_v41 }
 0x697 PF: > { %p13_p8 = scmp.ge.s32.totalorder %s12643_s25, 4   ;;  %s21824_s21 = smov %s12559_s22 }
 0x698   : > { %s21825_s22 = smov %s12651_s28  ;;  %s21826_s23 = smov %s12643_s25 }
 0x699   :  { %15 = sbr.rel (!%p13_p8) target bundleno = 2 (0x2), region = 106 }

</bundles_post_ra>
